<compile_context>
chip_gen: v6e
topology: v6e:2x2x1
jax: 0.10.0
libtpu: 0.0.40
codegen_flags: <defaults>
</compile_context>

<pallas_src>
import jax
import jax.numpy as jnp
from jax import lax
from jax.experimental import pallas as pl
from jax.experimental.pallas import tpu as pltpu


# --------------------------------------------------------------------------
# Block-size helpers
# --------------------------------------------------------------------------
def _pick_bn(n):
    """Images per conv grid step: prefer >=4 grid steps (>=2 per v7x core), cap 16."""
    for min_steps in (4, 2):
        for bn in range(min(n, 16), 0, -1):
            if n % bn == 0 and n // bn >= min_steps:
                return bn
    return n


def _pick_fc_tile(n):
    """Batch tile for the fc kernel (keeps blocks small on v7x, pipelines big N)."""
    if n <= 64:
        return n
    for tm in range(64, 7, -8):
        if n % tm == 0:
            return tm
    return n


# --------------------------------------------------------------------------
# Kernel 1: conv1 3x3(pad=1, Cin=1) + bias + ReLU + maxpool(2,2)
#   p_ref: (4, BN*32, 128) bf16 -- pool-quadrant-major im2col slab
#          row (per image) = i*2 + g   (i pooled row, g pooled-col group)
#          lane             = ml*16+tap (ml pooled col in group, tap=kh*3+kw, 9..15 zero)
#   w_ref: (128, 512) bf16 block-diagonal (8 copies of the 16x64 tap weight)
#   o_ref: (BN*32, 512) bf16 -- pooled map, lane = ml*64 + ch
# --------------------------------------------------------------------------
def conv1_kernel(p_ref, w_ref, b_ref, o_ref):
    w = w_ref[...]
    acc = jnp.dot(p_ref[0], w, preferred_element_type=jnp.float32)
    for q in range(1, 4):                                     # 2x2 max-pool over quadrants
        acc = jnp.maximum(acc, jnp.dot(p_ref[q], w, preferred_element_type=jnp.float32))
    o_ref[...] = jnp.maximum(acc + b_ref[...], 0.0).astype(o_ref.dtype)


def _build_conv1_patches(x_img):
    """x_img: (N,28,28) f32 -> (4, N*32, 128) bf16 lane-dense im2col slab."""
    N = x_img.shape[0]
    xp = jnp.pad(x_img, ((0, 0), (1, 1), (1, 1)))             # (N,30,30)
    quads = []
    for a in range(2):                                         # pooled-row parity
        for b in range(2):                                     # pooled-col parity
            taps = [xp[:, a + kh:a + kh + 28:2, b + kw:b + kw + 28:2]
                    for kh in range(3) for kw in range(3)]     # 9 x (N,14,14)
            t = jnp.stack(taps, axis=-1)                       # (N,14,14,9)
            t = jnp.pad(t, ((0, 0), (0, 2), (0, 2), (0, 7)))   # (N,16,16,16)
            t = t.reshape(N, 16, 2, 8, 16).reshape(N, 32, 128)  # rows i*2+g, lanes ml*16+tap
            quads.append(t)
    p = jnp.stack(quads, axis=0).reshape(4, N * 32, 128)       # quadrant-major
    return p.astype(jnp.bfloat16)


def conv1_relu_pool(patches, w1bd, b1t, bn):
    rows = patches.shape[1]                                    # N*32
    return pl.pallas_call(
        conv1_kernel,
        grid=(rows // (bn * 32),),
        in_specs=[
            pl.BlockSpec((4, bn * 32, 128), lambda n: (0, n, 0)),
            pl.BlockSpec((128, 512), lambda n: (0, 0)),
            pl.BlockSpec((1, 512), lambda n: (0, 0)),
        ],
        out_specs=pl.BlockSpec((bn * 32, 512), lambda n: (n, 0)),
        out_shape=jax.ShapeDtypeStruct((rows, 512), jnp.bfloat16),
        compiler_params=pltpu.CompilerParams(dimension_semantics=("parallel",)),
    )(patches, w1bd, b1t)


# --------------------------------------------------------------------------
# Kernel 2: conv2 3x3(pad=1, Cin=64) + bias + ReLU + maxpool(2,2)
#   xe/xo_ref: (BN*144, 192) bf16 -- kw-packed slabs for even/odd output cols;
#              per image: row = r*8 + m (r padded row 0..15, rows 128..143 zero),
#              lane = kw*64 + cin.
#   w_ref:     (3, 192, 128) bf16 -- per-kh (kw*cin, cout) weight
#   o_ref:     (BN*144, 128) bf16 -- valid features at row ip*16+m (ip,m < 7)
# --------------------------------------------------------------------------
def conv2_kernel(xe_ref, xo_ref, w_ref, b_ref, o_ref):
    m = o_ref.shape[0]                      # BN*144
    md = m - 16                             # kh-shifted slices stay inside the block
    acc_e = jnp.dot(xe_ref[0:md, :], w_ref[0], preferred_element_type=jnp.float32)
    acc_o = jnp.dot(xo_ref[0:md, :], w_ref[0], preferred_element_type=jnp.float32)
    for kh in (1, 2):
        acc_e = acc_e + jnp.dot(xe_ref[kh * 8:kh * 8 + md, :], w_ref[kh],
                                preferred_element_type=jnp.float32)
        acc_o = acc_o + jnp.dot(xo_ref[kh * 8:kh * 8 + md, :], w_ref[kh],
                                preferred_element_type=jnp.float32)
    # relu and max commute; bias is shared by both column parities.
    wp = jnp.maximum(jnp.maximum(acc_e, acc_o) + b_ref[...], 0.0)   # width pool
    hp = jnp.maximum(wp[0:md - 8], wp[8:md])                        # height pool
    o_ref[0:md - 8, :] = hp.astype(o_ref.dtype)
    o_ref[md - 8:m, :] = jnp.zeros((24, 128), o_ref.dtype)          # keep tail finite


def _build_conv2_inputs(h1_rows, N):
    """h1_rows: (N*32, 512) bf16 conv1 output -> (xe, xo), each (N*144, 192) bf16."""
    h1 = h1_rows.reshape(N, 16, 2, 8, 64)[:, :14]              # drop junk pooled rows
    h1 = h1.reshape(N, 14, 16, 64)[:, :, :14, :]               # drop junk pooled cols
    h1p = jnp.pad(h1, ((0, 0), (1, 1), (1, 3), (0, 0)))        # (N,16,18,64) zero-padded
    outs = []
    for p in range(2):                                          # output-col parity
        v = jnp.stack([h1p[:, :, p + kw:p + kw + 16:2, :]
                       for kw in range(3)], axis=3)             # (N,16,8,3,64)
        v = jnp.pad(v.reshape(N, 128, 192), ((0, 0), (0, 16), (0, 0)))   # 144 rows/img
        outs.append(v.reshape(N * 144, 192))
    return outs[0], outs[1]


def conv2_relu_pool(xe, xo, w2p, b2, bn):
    rows = xe.shape[0]                                          # N*144
    blk = bn * 144
    return pl.pallas_call(
        conv2_kernel,
        grid=(rows // blk,),
        in_specs=[
            pl.BlockSpec((blk, 192), lambda n: (n, 0)),
            pl.BlockSpec((blk, 192), lambda n: (n, 0)),
            pl.BlockSpec((3, 192, 128), lambda n: (0, 0, 0)),
            pl.BlockSpec((1, 128), lambda n: (0, 0)),
        ],
        out_specs=pl.BlockSpec((blk, 128), lambda n: (n, 0)),
        out_shape=jax.ShapeDtypeStruct((rows, 128), jnp.bfloat16),
        compiler_params=pltpu.CompilerParams(dimension_semantics=("parallel",)),
    )(xe, xo, w2p, b2)


# --------------------------------------------------------------------------
# Kernel 3: fc (Linear) + log_softmax, tiled over the batch
# --------------------------------------------------------------------------
def fc_logsoftmax_kernel(x_ref, w_ref, b_ref, o_ref):
    # TODO(synk): keep the LHS f32 if tighter-than-5e-2 PyTorch parity is ever needed.
    logits = jnp.dot(x_ref[...], w_ref[...],
                     preferred_element_type=jnp.float32) + b_ref[...]
    mx = jnp.max(logits, axis=1, keepdims=True)
    s = logits - mx
    lse = jnp.log(jnp.sum(jnp.exp(s), axis=1, keepdims=True))
    o_ref[...] = (s - lse).astype(o_ref.dtype)


def fc_log_softmax(feat, wfc_r, bfc):
    N, D = feat.shape
    K = wfc_r.shape[1]
    tm = _pick_fc_tile(N)
    return pl.pallas_call(
        fc_logsoftmax_kernel,
        grid=(N // tm,),
        in_specs=[
            pl.BlockSpec((tm, D), lambda i: (i, 0)),
            pl.BlockSpec((D, K), lambda i: (0, 0)),
            pl.BlockSpec((1, K), lambda i: (0, 0)),
        ],
        out_specs=pl.BlockSpec((tm, K), lambda i: (i, 0)),
        out_shape=jax.ShapeDtypeStruct((N, K), jnp.float32),
        compiler_params=pltpu.CompilerParams(dimension_semantics=("parallel",)),
    )(feat, wfc_r, bfc)


# --------------------------------------------------------------------------
# One-time parameter preparation (hoisted out of the forward pass)
# --------------------------------------------------------------------------
def prepare_params(params):
    w1, b1, w2, b2, wfc, bfc = params
    w1f = jnp.pad(w1.reshape(9, 64), ((0, 7), (0, 0)))                     # (16,64)
    w1bd = jnp.kron(jnp.eye(8, dtype=w1f.dtype), w1f).astype(jnp.bfloat16)  # (128,512)
    b1t = jnp.tile(b1, (1, 8))                                             # (1,512)
    w2p = w2.reshape(3, 192, 128).astype(jnp.bfloat16)                     # (kh, kw*cin, cout)
    # fc rows: PyTorch flatten order (c, ip, m) -> our feature order u*128+c, u = ip*16+m,
    # zero-padded for the junk rows/cols conv2 leaves in its uncompacted output.
    wfc_r = wfc.reshape(128, 7, 7, 10).transpose(1, 2, 0, 3)               # (ip,m,c,k)
    wfc_r = jnp.pad(wfc_r, ((0, 2), (0, 9), (0, 0), (0, 0)))               # (9,16,128,10)
    wfc_r = wfc_r.reshape(144 * 128, 10).astype(jnp.bfloat16)
    return (w1bd, b1t, w2p, b2, wfc_r, bfc)


# --------------------------------------------------------------------------
# Full NetConv forward
# --------------------------------------------------------------------------
def netconv_forward(x_nchw, prepared):
    w1bd, b1t, w2p, b2, wfc_r, bfc = prepared
    N = x_nchw.shape[0]
    bn = _pick_bn(N)
    x = x_nchw[:, 0].astype(jnp.float32)                       # (N,28,28)
    patches = _build_conv1_patches(x)                          # (4, N*32, 128) bf16
    h1 = conv1_relu_pool(patches, w1bd, b1t, bn)                # (N*32, 512)  bf16
    xe, xo = _build_conv2_inputs(h1, N)                        # 2 x (N*144, 192) bf16
    h2 = conv2_relu_pool(xe, xo, w2p, b2, bn)                  # (N*144, 128) bf16
    feat = h2.reshape(N, 144 * 128)                            # free row-major reshape
    return fc_log_softmax(feat, wfc_r, bfc)                    # (N,10) f32


# --------------------------------------------------------------------------
# Deterministic parameter init (PyTorch-default-style uniform(-1/sqrt(fan_in)))
# --------------------------------------------------------------------------
def init_params(key):
    ks = jax.random.split(key, 6)

    def u(k, shape, fan_in):
        bound = 1.0 / float(fan_in) ** 0.5
        return jax.random.uniform(k, shape, jnp.float32, -bound, bound)

    w1 = u(ks[0], (3, 3, 1, 64), 1 * 9)              # HWIO
    b1 = u(ks[1], (1, 64), 1 * 9)
    w2 = u(ks[2], (3, 3, 64, 128), 64 * 9)
    b2 = u(ks[3], (1, 128), 64 * 9)
    wfc = u(ks[4], (128 * 7 * 7, 10), 128 * 7 * 7)   # rows in PyTorch (c,h,w) order
    bfc = u(ks[5], (1, 10), 128 * 7 * 7)
    return (w1, b1, w2, b2, wfc, bfc)


# --------------------------------------------------------------------------
# Pure-JAX reference (for numerical check)
# --------------------------------------------------------------------------
def reference(x_nchw, w1, b1, w2, b2, wfc, bfc):
    x = jnp.transpose(x_nchw, (0, 2, 3, 1)).astype(jnp.float32)

    def conv_relu(x, w, b):
        y = lax.conv_general_dilated(
            x, w, (1, 1), 'SAME',
            dimension_numbers=('NHWC', 'HWIO', 'NHWC'))
        return jnp.maximum(y + b.reshape(1, 1, 1, -1), 0.0)

    def pool(x):
        return lax.reduce_window(x, -jnp.inf, lax.max,
                                 (1, 2, 2, 1), (1, 2, 2, 1), 'VALID')

    h = pool(conv_relu(x, w1, b1))
    h = pool(conv_relu(h, w2, b2))
    feat = jnp.transpose(h, (0, 3, 1, 2)).reshape(x.shape[0], -1)
    logits = feat @ wfc + bfc
    return jax.nn.log_softmax(logits, axis=1)


if __name__ == "__main__":
    key = jax.random.PRNGKey(0)
    kx, kx2, kp = jax.random.split(key, 3)
    params = init_params(kp)
    prepared = prepare_params(params)                          # one-time weight re-layout
    fwd = jax.jit(netconv_forward)

    # batch=2 (bn=1, grid=2) -- 28x28 is required by the hard-coded fc size.
    x = jax.random.normal(kx, (2, 1, 28, 28), jnp.float32)
    out = jax.block_until_ready(fwd(x, prepared))
    assert out.shape == (2, 10), out.shape
    err = float(jnp.max(jnp.abs(out - reference(x, *params))))
    assert err < 5e-2, f"mismatch vs reference (N=2): max abs err = {err}"

    # batch=8 exercises multi-image grid blocks (bn=2, 4 grid steps).
    x8 = jax.random.normal(kx2, (8, 1, 28, 28), jnp.float32)
    out8 = jax.block_until_ready(fwd(x8, prepared))
    assert out8.shape == (8, 10), out8.shape
    err8 = float(jnp.max(jnp.abs(out8 - reference(x8, *params))))
    assert err8 < 5e-2, f"mismatch vs reference (N=8): max abs err = {err8}"

    print("KERNEL_OK")
</pallas_src>

<mosaic_0001>
module attributes {stable_mosaic.version = 11 : i64} {
  func.func @conv1_kernel(%arg0: i32, %arg1: memref<4x32x128xbf16, #tpu.memory_space<vmem>>, %arg2: memref<128x512xbf16, #tpu.memory_space<vmem>>, %arg3: memref<1x512xf32, #tpu.memory_space<vmem>>, %arg4: memref<32x512xbf16, #tpu.memory_space<vmem>>) attributes {dimension_semantics = [#tpu.dimension_semantics<parallel>], iteration_bounds = array<i64: 2>, scalar_prefetch = 0 : i64, scratch_operands = 0 : i64, tpu.core_type = #tpu.core_type<tc>, window_params = [{transform_indices = @transform_0, window_bounds = array<i64: 4, 32, 128>}, {pipeline_mode = #tpu.pipeline_mode<synchronous>, transform_indices = @transform_1, window_bounds = array<i64: 128, 512>}, {pipeline_mode = #tpu.pipeline_mode<synchronous>, transform_indices = @transform_2, window_bounds = array<i64: 1, 512>}, {transform_indices = @transform_3, window_bounds = array<i64: 32, 512>}]} {
    %c0 = arith.constant 0 : index
    %c0_0 = arith.constant 0 : index
    %0 = vector.load %arg2[%c0, %c0_0] : memref<128x512xbf16, #tpu.memory_space<vmem>>, vector<128x512xbf16>
    %c0_1 = arith.constant 0 : index
    %c0_2 = arith.constant 0 : index
    %c0_3 = arith.constant 0 : index
    %1 = vector.load %arg1[%c0_1, %c0_2, %c0_3] : memref<4x32x128xbf16, #tpu.memory_space<vmem>>, vector<1x32x128xbf16>
    %2 = vector.shape_cast %1 : vector<1x32x128xbf16> to vector<32x128xbf16>
    %cst = arith.constant dense<0.000000e+00> : vector<32x512xf32>
    %3 = tpu.matmul %2, %0, %cst {dimension_numbers = #tpu.dot_dimension_numbers<[1], [0], [0], [1], [0, 0, 1, 1], [], []>} : vector<32x128xbf16>, vector<128x512xbf16>, vector<32x512xf32> -> vector<32x512xf32>
    %c1 = arith.constant 1 : index
    %c0_4 = arith.constant 0 : index
    %c0_5 = arith.constant 0 : index
    %4 = vector.load %arg1[%c1, %c0_4, %c0_5] : memref<4x32x128xbf16, #tpu.memory_space<vmem>>, vector<1x32x128xbf16>
    %5 = vector.shape_cast %4 : vector<1x32x128xbf16> to vector<32x128xbf16>
    %cst_6 = arith.constant dense<0.000000e+00> : vector<32x512xf32>
    %6 = tpu.matmul %5, %0, %cst_6 {dimension_numbers = #tpu.dot_dimension_numbers<[1], [0], [0], [1], [0, 0, 1, 1], [], []>} : vector<32x128xbf16>, vector<128x512xbf16>, vector<32x512xf32> -> vector<32x512xf32>
    %7 = arith.maximumf %3, %6 : vector<32x512xf32>
    %c2 = arith.constant 2 : index
    %c0_7 = arith.constant 0 : index
    %c0_8 = arith.constant 0 : index
    %8 = vector.load %arg1[%c2, %c0_7, %c0_8] : memref<4x32x128xbf16, #tpu.memory_space<vmem>>, vector<1x32x128xbf16>
    %9 = vector.shape_cast %8 : vector<1x32x128xbf16> to vector<32x128xbf16>
    %cst_9 = arith.constant dense<0.000000e+00> : vector<32x512xf32>
    %10 = tpu.matmul %9, %0, %cst_9 {dimension_numbers = #tpu.dot_dimension_numbers<[1], [0], [0], [1], [0, 0, 1, 1], [], []>} : vector<32x128xbf16>, vector<128x512xbf16>, vector<32x512xf32> -> vector<32x512xf32>
    %11 = arith.maximumf %7, %10 : vector<32x512xf32>
    %c3 = arith.constant 3 : index
    %c0_10 = arith.constant 0 : index
    %c0_11 = arith.constant 0 : index
    %12 = vector.load %arg1[%c3, %c0_10, %c0_11] : memref<4x32x128xbf16, #tpu.memory_space<vmem>>, vector<1x32x128xbf16>
    %13 = vector.shape_cast %12 : vector<1x32x128xbf16> to vector<32x128xbf16>
    %cst_12 = arith.constant dense<0.000000e+00> : vector<32x512xf32>
    %14 = tpu.matmul %13, %0, %cst_12 {dimension_numbers = #tpu.dot_dimension_numbers<[1], [0], [0], [1], [0, 0, 1, 1], [], []>} : vector<32x128xbf16>, vector<128x512xbf16>, vector<32x512xf32> -> vector<32x512xf32>
    %15 = arith.maximumf %11, %14 : vector<32x512xf32>
    %c0_13 = arith.constant 0 : index
    %c0_14 = arith.constant 0 : index
    %16 = vector.load %arg3[%c0_13, %c0_14] : memref<1x512xf32, #tpu.memory_space<vmem>>, vector<1x512xf32>
    %17 = vector.broadcast %16 : vector<1x512xf32> to vector<32x512xf32>
    %18 = arith.addf %15, %17 : vector<32x512xf32>
    %cst_15 = arith.constant 0.000000e+00 : f32
    %19 = vector.broadcast %cst_15 : f32 to vector<32x512xf32>
    %20 = arith.maximumf %18, %19 : vector<32x512xf32>
    %21 = arith.truncf %20 : vector<32x512xf32> to vector<32x512xbf16>
    %c0_16 = arith.constant 0 : index
    %c0_17 = arith.constant 0 : index
    %22 = vector.load %arg4[%c0_16, %c0_17] : memref<32x512xbf16, #tpu.memory_space<vmem>>, vector<32x512xbf16>
    tpu.vector_store %arg4[%c0_16, %c0_17], %21 {strides = array<i32>} : memref<32x512xbf16, #tpu.memory_space<vmem>>, vector<32x512xbf16>,
    return
  }
  func.func @transform_0(%arg0: i32) -> (i32, i32, i32) {
    %c0_i32 = arith.constant 0 : i32
    %c0_i32_0 = arith.constant 0 : i32
    %c0_i32_1 = arith.constant 0 : i32
    return %c0_i32, %arg0, %c0_i32_0 : i32, i32, i32
  }
  func.func @transform_1(%arg0: i32) -> (i32, i32) {
    %c0_i32 = arith.constant 0 : i32
    %c0_i32_0 = arith.constant 0 : i32
    %c0_i32_1 = arith.constant 0 : i32
    return %c0_i32, %c0_i32_0 : i32, i32
  }
  func.func @transform_2(%arg0: i32) -> (i32, i32) {
    %c0_i32 = arith.constant 0 : i32
    %c0_i32_0 = arith.constant 0 : i32
    %c0_i32_1 = arith.constant 0 : i32
    return %c0_i32, %c0_i32_0 : i32, i32
  }
  func.func @transform_3(%arg0: i32) -> (i32, i32) {
    %c0_i32 = arith.constant 0 : i32
    %c0_i32_0 = arith.constant 0 : i32
    return %arg0, %c0_i32 : i32, i32
  }
}

module attributes {stable_mosaic.version = 11 : i64} {
  func.func @conv2_kernel(%arg0: i32, %arg1: memref<144x192xbf16, #tpu.memory_space<vmem>>, %arg2: memref<144x192xbf16, #tpu.memory_space<vmem>>, %arg3: memref<3x192x128xbf16, #tpu.memory_space<vmem>>, %arg4: memref<1x128xf32, #tpu.memory_space<vmem>>, %arg5: memref<144x128xbf16, #tpu.memory_space<vmem>>) attributes {dimension_semantics = [#tpu.dimension_semantics<parallel>], iteration_bounds = array<i64: 2>, scalar_prefetch = 0 : i64, scratch_operands = 0 : i64, tpu.core_type = #tpu.core_type<tc>, window_params = [{transform_indices = @transform_0, window_bounds = array<i64: 144, 192>}, {transform_indices = @transform_1, window_bounds = array<i64: 144, 192>}, {pipeline_mode = #tpu.pipeline_mode<synchronous>, transform_indices = @transform_2, window_bounds = array<i64: 3, 192, 128>}, {pipeline_mode = #tpu.pipeline_mode<synchronous>, transform_indices = @transform_3, window_bounds = array<i64: 1, 128>}, {transform_indices = @transform_4, window_bounds = array<i64: 144, 128>}]} {
    %c0 = arith.constant 0 : index
    %c0_0 = arith.constant 0 : index
    %0 = vector.load %arg1[%c0, %c0_0] : memref<144x192xbf16, #tpu.memory_space<vmem>>, vector<128x192xbf16>
    %c0_1 = arith.constant 0 : index
    %c0_2 = arith.constant 0 : index
    %c0_3 = arith.constant 0 : index
    %1 = vector.load %arg3[%c0_1, %c0_2, %c0_3] : memref<3x192x128xbf16, #tpu.memory_space<vmem>>, vector<1x192x128xbf16>
    %2 = vector.shape_cast %1 : vector<1x192x128xbf16> to vector<192x128xbf16>
    %cst = arith.constant dense<0.000000e+00> : vector<128x128xf32>
    %3 = tpu.matmul %0, %2, %cst {dimension_numbers = #tpu.dot_dimension_numbers<[1], [0], [0], [1], [0, 0, 1, 1], [], []>} : vector<128x192xbf16>, vector<192x128xbf16>, vector<128x128xf32> -> vector<128x128xf32>
    %c0_4 = arith.constant 0 : index
    %c0_5 = arith.constant 0 : index
    %4 = vector.load %arg2[%c0_4, %c0_5] : memref<144x192xbf16, #tpu.memory_space<vmem>>, vector<128x192xbf16>
    %c0_6 = arith.constant 0 : index
    %c0_7 = arith.constant 0 : index
    %c0_8 = arith.constant 0 : index
    %5 = vector.load %arg3[%c0_6, %c0_7, %c0_8] : memref<3x192x128xbf16, #tpu.memory_space<vmem>>, vector<1x192x128xbf16>
    %6 = vector.shape_cast %5 : vector<1x192x128xbf16> to vector<192x128xbf16>
    %cst_9 = arith.constant dense<0.000000e+00> : vector<128x128xf32>
    %7 = tpu.matmul %4, %6, %cst_9 {dimension_numbers = #tpu.dot_dimension_numbers<[1], [0], [0], [1], [0, 0, 1, 1], [], []>} : vector<128x192xbf16>, vector<192x128xbf16>, vector<128x128xf32> -> vector<128x128xf32>
    %c8 = arith.constant 8 : index
    %c0_10 = arith.constant 0 : index
    %8 = vector.load %arg1[%c8, %c0_10] : memref<144x192xbf16, #tpu.memory_space<vmem>>, vector<128x192xbf16>
    %c1 = arith.constant 1 : index
    %c0_11 = arith.constant 0 : index
    %c0_12 = arith.constant 0 : index
    %9 = vector.load %arg3[%c1, %c0_11, %c0_12] : memref<3x192x128xbf16, #tpu.memory_space<vmem>>, vector<1x192x128xbf16>
    %10 = vector.shape_cast %9 : vector<1x192x128xbf16> to vector<192x128xbf16>
    %cst_13 = arith.constant dense<0.000000e+00> : vector<128x128xf32>
    %11 = tpu.matmul %8, %10, %cst_13 {dimension_numbers = #tpu.dot_dimension_numbers<[1], [0], [0], [1], [0, 0, 1, 1], [], []>} : vector<128x192xbf16>, vector<192x128xbf16>, vector<128x128xf32> -> vector<128x128xf32>
    %12 = arith.addf %3, %11 : vector<128x128xf32>
    %c8_14 = arith.constant 8 : index
    %c0_15 = arith.constant 0 : index
    %13 = vector.load %arg2[%c8_14, %c0_15] : memref<144x192xbf16, #tpu.memory_space<vmem>>, vector<128x192xbf16>
    %c1_16 = arith.constant 1 : index
    %c0_17 = arith.constant 0 : index
    %c0_18 = arith.constant 0 : index
    %14 = vector.load %arg3[%c1_16, %c0_17, %c0_18] : memref<3x192x128xbf16, #tpu.memory_space<vmem>>, vector<1x192x128xbf16>
    %15 = vector.shape_cast %14 : vector<1x192x128xbf16> to vector<192x128xbf16>
    %cst_19 = arith.constant dense<0.000000e+00> : vector<128x128xf32>
    %16 = tpu.matmul %13, %15, %cst_19 {dimension_numbers = #tpu.dot_dimension_numbers<[1], [0], [0], [1], [0, 0, 1, 1], [], []>} : vector<128x192xbf16>, vector<192x128xbf16>, vector<128x128xf32> -> vector<128x128xf32>
    %17 = arith.addf %7, %16 : vector<128x128xf32>
    %c16 = arith.constant 16 : index
    %c0_20 = arith.constant 0 : index
    %18 = vector.load %arg1[%c16, %c0_20] : memref<144x192xbf16, #tpu.memory_space<vmem>>, vector<128x192xbf16>
    %c2 = arith.constant 2 : index
    %c0_21 = arith.constant 0 : index
    %c0_22 = arith.constant 0 : index
    %19 = vector.load %arg3[%c2, %c0_21, %c0_22] : memref<3x192x128xbf16, #tpu.memory_space<vmem>>, vector<1x192x128xbf16>
    %20 = vector.shape_cast %19 : vector<1x192x128xbf16> to vector<192x128xbf16>
    %cst_23 = arith.constant dense<0.000000e+00> : vector<128x128xf32>
    %21 = tpu.matmul %18, %20, %cst_23 {dimension_numbers = #tpu.dot_dimension_numbers<[1], [0], [0], [1], [0, 0, 1, 1], [], []>} : vector<128x192xbf16>, vector<192x128xbf16>, vector<128x128xf32> -> vector<128x128xf32>
    %22 = arith.addf %12, %21 : vector<128x128xf32>
    %c16_24 = arith.constant 16 : index
    %c0_25 = arith.constant 0 : index
    %23 = vector.load %arg2[%c16_24, %c0_25] : memref<144x192xbf16, #tpu.memory_space<vmem>>, vector<128x192xbf16>
    %c2_26 = arith.constant 2 : index
    %c0_27 = arith.constant 0 : index
    %c0_28 = arith.constant 0 : index
    %24 = vector.load %arg3[%c2_26, %c0_27, %c0_28] : memref<3x192x128xbf16, #tpu.memory_space<vmem>>, vector<1x192x128xbf16>
    %25 = vector.shape_cast %24 : vector<1x192x128xbf16> to vector<192x128xbf16>
    %cst_29 = arith.constant dense<0.000000e+00> : vector<128x128xf32>
    %26 = tpu.matmul %23, %25, %cst_29 {dimension_numbers = #tpu.dot_dimension_numbers<[1], [0], [0], [1], [0, 0, 1, 1], [], []>} : vector<128x192xbf16>, vector<192x128xbf16>, vector<128x128xf32> -> vector<128x128xf32>
    %27 = arith.addf %17, %26 : vector<128x128xf32>
    %28 = arith.maximumf %22, %27 : vector<128x128xf32>
    %c0_30 = arith.constant 0 : index
    %c0_31 = arith.constant 0 : index
    %29 = vector.load %arg4[%c0_30, %c0_31] : memref<1x128xf32, #tpu.memory_space<vmem>>, vector<1x128xf32>
    %30 = vector.broadcast %29 : vector<1x128xf32> to vector<128x128xf32>
    %31 = arith.addf %28, %30 : vector<128x128xf32>
    %cst_32 = arith.constant 0.000000e+00 : f32
    %32 = vector.broadcast %cst_32 : f32 to vector<128x128xf32>
    %33 = arith.maximumf %31, %32 : vector<128x128xf32>
    %34 = vector.extract_strided_slice %33 {offsets = [0, 0], sizes = [120, 128], strides = [1, 1]} : vector<128x128xf32> to vector<120x128xf32>
    %35 = vector.extract_strided_slice %33 {offsets = [8, 0], sizes = [120, 128], strides = [1, 1]} : vector<128x128xf32> to vector<120x128xf32>
    %36 = arith.maximumf %34, %35 : vector<120x128xf32>
    %37 = arith.truncf %36 : vector<120x128xf32> to vector<120x128xbf16>
    %c0_33 = arith.constant 0 : index
    %c0_34 = arith.constant 0 : index
    %38 = vector.load %arg5[%c0_33, %c0_34] : memref<144x128xbf16, #tpu.memory_space<vmem>>, vector<120x128xbf16>
    tpu.vector_store %arg5[%c0_33, %c0_34], %37 {strides = array<i32>} : memref<144x128xbf16, #tpu.memory_space<vmem>>, vector<120x128xbf16>,
    %cst_35 = arith.constant 0.000000e+00 : bf16
    %39 = vector.broadcast %cst_35 : bf16 to vector<24x128xbf16>
    %c120 = arith.constant 120 : index
    %c0_36 = arith.constant 0 : index
    %40 = vector.load %arg5[%c120, %c0_36] : memref<144x128xbf16, #tpu.memory_space<vmem>>, vector<24x128xbf16>
    tpu.vector_store %arg5[%c120, %c0_36], %39 {strides = array<i32>} : memref<144x128xbf16, #tpu.memory_space<vmem>>, vector<24x128xbf16>,
    return
  }
  func.func @transform_0(%arg0: i32) -> (i32, i32) {
    %c0_i32 = arith.constant 0 : i32
    %c0_i32_0 = arith.constant 0 : i32
    return %arg0, %c0_i32 : i32, i32
  }
  func.func @transform_1(%arg0: i32) -> (i32, i32) {
    %c0_i32 = arith.constant 0 : i32
    %c0_i32_0 = arith.constant 0 : i32
    return %arg0, %c0_i32 : i32, i32
  }
  func.func @transform_2(%arg0: i32) -> (i32, i32, i32) {
    %c0_i32 = arith.constant 0 : i32
    %c0_i32_0 = arith.constant 0 : i32
    %c0_i32_1 = arith.constant 0 : i32
    %c0_i32_2 = arith.constant 0 : i32
    return %c0_i32, %c0_i32_0, %c0_i32_1 : i32, i32, i32
  }
  func.func @transform_3(%arg0: i32) -> (i32, i32) {
    %c0_i32 = arith.constant 0 : i32
    %c0_i32_0 = arith.constant 0 : i32
    %c0_i32_1 = arith.constant 0 : i32
    return %c0_i32, %c0_i32_0 : i32, i32
  }
  func.func @transform_4(%arg0: i32) -> (i32, i32) {
    %c0_i32 = arith.constant 0 : i32
    %c0_i32_0 = arith.constant 0 : i32
    return %arg0, %c0_i32 : i32, i32
  }
}

module attributes {stable_mosaic.version = 11 : i64} {
  func.func @fc_logsoftmax_kernel(%arg0: i32, %arg1: memref<2x18432xbf16, #tpu.memory_space<vmem>>, %arg2: memref<18432x10xbf16, #tpu.memory_space<vmem>>, %arg3: memref<1x10xf32, #tpu.memory_space<vmem>>, %arg4: memref<2x10xf32, #tpu.memory_space<vmem>>) attributes {dimension_semantics = [#tpu.dimension_semantics<parallel>], iteration_bounds = array<i64: 1>, scalar_prefetch = 0 : i64, scratch_operands = 0 : i64, tpu.core_type = #tpu.core_type<tc>, window_params = [{transform_indices = @transform_0, window_bounds = array<i64: 2, 18432>}, {pipeline_mode = #tpu.pipeline_mode<synchronous>, transform_indices = @transform_1, window_bounds = array<i64: 18432, 10>}, {pipeline_mode = #tpu.pipeline_mode<synchronous>, transform_indices = @transform_2, window_bounds = array<i64: 1, 10>}, {transform_indices = @transform_3, window_bounds = array<i64: 2, 10>}]} {
    %c0 = arith.constant 0 : index
    %c0_0 = arith.constant 0 : index
    %0 = vector.load %arg1[%c0, %c0_0] : memref<2x18432xbf16, #tpu.memory_space<vmem>>, vector<2x18432xbf16>
    %c0_1 = arith.constant 0 : index
    %c0_2 = arith.constant 0 : index
    %1 = vector.load %arg2[%c0_1, %c0_2] : memref<18432x10xbf16, #tpu.memory_space<vmem>>, vector<18432x10xbf16>
    %cst = arith.constant dense<0.000000e+00> : vector<2x10xf32>
    %2 = tpu.matmul %0, %1, %cst {dimension_numbers = #tpu.dot_dimension_numbers<[1], [0], [0], [1], [0, 0, 1, 1], [], []>} : vector<2x18432xbf16>, vector<18432x10xbf16>, vector<2x10xf32> -> vector<2x10xf32>
    %c0_3 = arith.constant 0 : index
    %c0_4 = arith.constant 0 : index
    %3 = vector.load %arg3[%c0_3, %c0_4] : memref<1x10xf32, #tpu.memory_space<vmem>>, vector<1x10xf32>
    %4 = vector.broadcast %3 : vector<1x10xf32> to vector<2x10xf32>
    %5 = arith.addf %2, %4 : vector<2x10xf32>
    %cst_5 = arith.constant dense<0xFF800000> : vector<2xf32>
    %6 = vector.multi_reduction <maximumf>, %5, %cst_5 [1] : vector<2x10xf32> to vector<2xf32>
    %7 = vector.shape_cast %6 : vector<2xf32> to vector<2x1xf32>
    %8 = vector.broadcast %7 : vector<2x1xf32> to vector<2x10xf32>
    %9 = arith.subf %5, %8 : vector<2x10xf32>
    %10 = math.exp %9 : vector<2x10xf32>
    %cst_6 = arith.constant dense<0.000000e+00> : vector<2xf32>
    %11 = vector.multi_reduction <add>, %10, %cst_6 [1] : vector<2x10xf32> to vector<2xf32>
    %12 = vector.shape_cast %11 : vector<2xf32> to vector<2x1xf32>
    %13 = math.log %12 : vector<2x1xf32>
    %14 = vector.broadcast %13 : vector<2x1xf32> to vector<2x10xf32>
    %15 = arith.subf %9, %14 : vector<2x10xf32>
    %c0_7 = arith.constant 0 : index
    %c0_8 = arith.constant 0 : index
    %16 = vector.load %arg4[%c0_7, %c0_8] : memref<2x10xf32, #tpu.memory_space<vmem>>, vector<2x10xf32>
    tpu.vector_store %arg4[%c0_7, %c0_8], %15 {strides = array<i32>} : memref<2x10xf32, #tpu.memory_space<vmem>>, vector<2x10xf32>,
    return
  }
  func.func @transform_0(%arg0: i32) -> (i32, i32) {
    %c0_i32 = arith.constant 0 : i32
    %c0_i32_0 = arith.constant 0 : i32
    return %arg0, %c0_i32 : i32, i32
  }
  func.func @transform_1(%arg0: i32) -> (i32, i32) {
    %c0_i32 = arith.constant 0 : i32
    %c0_i32_0 = arith.constant 0 : i32
    %c0_i32_1 = arith.constant 0 : i32
    return %c0_i32, %c0_i32_0 : i32, i32
  }
  func.func @transform_2(%arg0: i32) -> (i32, i32) {
    %c0_i32 = arith.constant 0 : i32
    %c0_i32_0 = arith.constant 0 : i32
    %c0_i32_1 = arith.constant 0 : i32
    return %c0_i32, %c0_i32_0 : i32, i32
  }
  func.func @transform_3(%arg0: i32) -> (i32, i32) {
    %c0_i32 = arith.constant 0 : i32
    %c0_i32_0 = arith.constant 0 : i32
    return %arg0, %c0_i32 : i32, i32
  }
}

</mosaic_0001>

<bundles_post_ra>
// kernel: netconv_forward.3
= control target key start
LH: loop header
LB: loop body
LE: loop exit
PB: predicated region body
PF: predicated region fallthrough
CT: control target
= control target key end

     0   :  { %8 = vsyncpa [#allocation4], 0  ;;  %s1997_s0 = inlined_call_operand.vmem [shape: bf16[4,64,128], index: 0, kind: input, shape index: {}]   ;;  %s1998_s1 = inlined_call_operand.hbm [shape: bf16[128,512], index: 1, kind: input, shape index: {}]   ;;  %s1999_s2 = inlined_call_operand.hbm [shape: f32[1,512], index: 2, kind: input, shape index: {}]   ;;  %s2000_s3 = inlined_call_operand.vmem [shape: bf16[64,512], index: 3, kind: output, shape index: {}]  }
   0x1   :  { %9 = vsyncpa [#allocation6], 0  ;;  %s1536_s12 = smov 0   ;;  %s1538_s13 = smov 0  }
   0x2   :  { %s1540_s14 = smov 0  }
   0x3 LB: > { %s1235_s15 = sadd.s32 4294967295, %s1509_s14   ;;  %s1553_s16 = sadd.s32 1, %s1509_s14   ;;  %s1509_s14 = sphi %s1540_s14, %s2010_s14   ;;  %s1505_s13 = sphi %s1538_s13, %s2009_s13   ;;  %s1501_s12 = sphi %s1536_s12, %s2008_s12  }
   0x4   : > { %s19_s17 = ssub.s32 %s1509_s14, %s1553_s16  ;;  %s22_s18 = sadd.s32 1, %s1505_s13 }
   0x5   : > { %p20_p0 = scmp.eq.s32.totalorder %s19_s17, 0  ;;  %p29_p1 = scmp.ne.s32.totalorder %s1505_s13, %s1501_s12 }
   0x6   : > { %p30_p2 = scmp.eq.s32.totalorder %s1509_s14, 0  ;;  %p1237_p3 = scmp.ge.s32.totalorder %s1509_s14, 1 }
   0x7   : > { %s1563_s19 = scalar_select %p20_p0, %s1505_s13, %s22_s18  }
   0x8   : > { %p1565_p4 = por %p30_p2, %p29_p1  ;;  %p114_p5 = scmp.lt.s32.totalorder %s1509_s14, 3 }
   0x9   : > { %p1572_p6 = scmp.eq.s32.totalorder %s1235_s15, 0  ;;  %s1511_s23 = smov [#allocation3]  }
   0xa   : > { %p1576_p7 = pnand %p1237_p3, %p114_p5  ;;  %s126_s24 = sshll.u32 %s1511_s23, 4  ;;  %s127_s24 = int_to_ptr.vmem [resolvable:$true] %s126_s24 }
   0xb   : > { %s2004_s21 = scalar_select %p1572_p6, 1, 0 }
   0xc   : > { %p1331_p8 = pneg %p1576_p7  ;;  %s1512_s26 = smov [#allocation5]  }
   0xd   : > { %s140_s27 = sshll.u32 %s1512_s26, 4  ;;  %s1438_s28 = scalar_lea.vmem %s127_s24, 4096  ;;  %s141_s27 = int_to_ptr.vmem [resolvable:$true] %s140_s27 }
   0xe   : > { %p1584_p9 = pnand %p1572_p6, %p1331_p8  ;;  %p1439_p11 = scmp.ne.s32.totalorder %s127_s24, %s1438_s28 }
   0xf   : > { %p1446_p0 = scmp.lt.s32.totalorder %s127_s24, %s127_s24  ;;  %p1447_p1 = scmp.lt.s32.totalorder %s1438_s28, %s1438_s28 }
  0x10   : > { %p1429_p10 = pneg %p1584_p9 }
  0x11   : > { %p1448_p2 = por %p1447_p1, %p1446_p0 }
  0x12   : > { %p1441_p12 = pnand %p1439_p11, %p1429_p10 }
  0x14   : > { %p1442_p13 = pneg %p1441_p12 }
  0x16   : > { %p1449_p3 = pnand %p1448_p2, %p1442_p13 }
  0x18   : > { %1452 = shalt.err (!%p1449_p3)
}
  0x19   : > { %s1513_s29 = smov 256   ;;  %s1514_s30 = smov 16  }
  0x1a   : > { %1334 = dma.hbm_to_vmem [thread:$0]  (!%p1584_p9), %s1998_s1, 4096, %s127_s24, [#allocation4], %s1513_s29, %s1513_s29, %s1514_s30  }
  0x1b   : > { %s1464_s6 = scalar_lea.vmem %s141_s27, 64  ;;  %p1472_p12 = scmp.lt.s32.totalorder %s141_s27, %s141_s27 }
  0x1c   : > { %p1465_p5 = scmp.ne.s32.totalorder %s141_s27, %s1464_s6  ;;  %p1473_p6 = scmp.lt.s32.totalorder %s1464_s6, %s1464_s6 }
  0x1e   : > { %p1467_p8 = pnand %p1465_p5, %p1429_p10  ;;  %p1474_p0 = por %p1473_p6, %p1472_p12 }
  0x20   : > { %p1468_p11 = pneg %p1467_p8 }
  0x22   : > { %p1475_p13 = pnand %p1474_p0, %p1468_p11 }
  0x24   : > { %1478 = shalt.err (!%p1475_p13)
}
  0x25   : > { %1337 = dma.hbm_to_vmem [thread:$0]  (!%p1584_p9), %s1999_s2, 64, %s141_s27, [#allocation6]  }
  0x26   : > { %p1240_p1 = scmp.ge.s32.totalorder %s1509_s14, 2 }
  0x28   : > { %147 = sbr.rel (%p1240_p1) target bundleno = 53 (0x35), region = 24 }
  0x2d   : > { %150 = sbr.rel (!%p1565_p4) target bundleno = 53 (0x35), region = 28  ;;  %s152_s9 = sand.u32 (%p1565_p4), 1, %s1505_s13  }
  0x2e   : > { %s1313_s10 = sshll.u32 (%p1565_p4), %s1509_s14, 4  ;;  %s1241_s11 = sshll.u32 (%p1565_p4), %s152_s9, 6 }
  0x2f   : > { %s157_s23 = scalar_lea.vmem (%p1565_p4), %s1997_s0, %s1313_s10  ;;  %s154_s24 = scalar_lea.vmem (%p1565_p4), [#allocation2], %s1241_s11 }
  0x30   : > { %v174_v0 = vld [vmem:[%s157_s23] sm:$0xff] (%p1565_p4)   ;;  %v178_v1 = vld [vmem:[%s157_s23 + $0x8] sm:$0xff] (%p1565_p4)  }
  0x31   : > { %v182_v2 = vld [vmem:[%s157_s23 + $0x20] sm:$0xff] (%p1565_p4)   ;;  %175 = vst [vmem:[%s154_s24] sm:$0xff] (%p1565_p4), %v174_v0   ;;  %179 = vst [vmem:[%s154_s24 + $0x8] sm:$0xff] (%p1565_p4), %v178_v1   ;;  %v186_v3 = vld [vmem:[%s157_s23 + $0x28] sm:$0xff] (%p1565_p4)  }
  0x32   : > { %183 = vst [vmem:[%s154_s24 + $0x10] sm:$0xff] %v182_v2   ;;  %v190_v4 = vld [vmem:[%s157_s23 + $0x40] sm:$0xff]   ;;  %v194_v5 = vld [vmem:[%s157_s23 + $0x48] sm:$0xff]   ;;  %187 = vst [vmem:[%s154_s24 + $0x18] sm:$0xff] %v186_v3  }
  0x33   : > { %191 = vst [vmem:[%s154_s24 + $0x20] sm:$0xff] %v190_v4   ;;  %195 = vst [vmem:[%s154_s24 + $0x28] sm:$0xff] %v194_v5   ;;  %v198_v6 = vld [vmem:[%s157_s23 + $0x60] sm:$0xff]   ;;  %v202_v7 = vld [vmem:[%s157_s23 + $0x68] sm:$0xff]  }
  0x34   : > { %199 = vst [vmem:[%s154_s24 + $0x30] sm:$0xff] %v198_v6   ;;  %203 = vst [vmem:[%s154_s24 + $0x38] sm:$0xff] %v202_v7  }
  0x35 PF: > { %264 = sbr.rel (%p1576_p7) target bundleno = 407 (0x197), region = 69  ;;  %s267_s20 = sand.u32 (!%p1576_p7), 1, %s1501_s12  }
  0x36   : > { %s1245_s25 = sshll.u32 (!%p1576_p7), %s267_s20, 6  ;;  %p2007_p4 = scmp.ne.s32.totalorder (!%p1576_p7), %s2004_s21, 0 }
  0x37   : > { %s1617_s26 = scalar_lea.vmem (!%p1576_p7), [#allocation2], %s1245_s25 }
  0x3a   : > { %1492 = dma.done.wait (%p2007_p4), [#allocation4], 4096  }
  0x3b   : > { %1494 = vsyncadd (%p2007_p4), [#allocation4], 4294963200 }
  0x3c   : > { %1496 = dma.done.wait (%p2007_p4), [#allocation6], 64  }
  0x3d   : > { %1498 = vsyncadd (%p2007_p4), [#allocation6], 4294967232  ;;  %v1515_v8 = vmov 0   ;;  %v1629_v9 = vld [vmem:[#allocation3 + $0xe4] ss:$16 sps:$4 sm:$0xff]   ;;  %v1420_v42 = vld [vmem:[%s1617_s26 + $0x8] sm:$0xff]  }
  0x3e   : > { %548 = vmatprep.mubr.bf16.mxu0 %v1515_v8  ;;  %601 = vmatprep.mubr.bf16.mxu1 %v1515_v8  ;;  %v1631_v10 = vld [vmem:[#allocation3 + $0xec] ss:$16 sps:$4 sm:$0xff]   ;;  %v1634_v11 = vld [vmem:[#allocation3 + $0xe0] ss:$16 sps:$4 sm:$0xff]   ;;  %v1636_v12 = vld [vmem:[#allocation3 + $0xe8] ss:$16 sps:$4 sm:$0xff]  }
  0x3f   : > { %516 = vmatprep.subr.bf16.mxu0 %v1629_v9  ;;  %569 = vmatprep.subr.bf16.mxu1 %v1631_v10  ;;  %v1639_v13 = vld [vmem:[#allocation3 + $0xc4] ss:$16 sps:$4 sm:$0xff]   ;;  %v1643_v14 = vld [vmem:[#allocation3 + $0xcc] ss:$16 sps:$4 sm:$0xff]   ;;  %v1645_v15 = vld [vmem:[#allocation3 + $0xc0] ss:$16 sps:$4 sm:$0xff]  }
  0x40   : > { %517 = vmatpush1.bf16.msra.mxu0 %v1634_v11  ;;  %570 = vmatpush1.bf16.msra.mxu1 %v1636_v12  ;;  %v1648_v16 = vld [vmem:[#allocation3 + $0xc8] ss:$16 sps:$4 sm:$0xff]   ;;  %v1651_v17 = vld [vmem:[#allocation3 + $0xa4] ss:$16 sps:$4 sm:$0xff]   ;;  %v1653_v18 = vld [vmem:[#allocation3 + $0xac] ss:$16 sps:$4 sm:$0xff]  }
  0x41   : > { %518 = vmatprep.subr.bf16.mxu0 %v1639_v13  ;;  %571 = vmatprep.subr.bf16.mxu1 %v1643_v14  ;;  %v1655_v19 = vld [vmem:[#allocation3 + $0xa0] ss:$16 sps:$4 sm:$0xff]   ;;  %v1657_v20 = vld [vmem:[#allocation3 + $0xa8] ss:$16 sps:$4 sm:$0xff]   ;;  %v1661_v21 = vld [vmem:[#allocation3 + $0x84] ss:$16 sps:$4 sm:$0xff]  }
  0x42   : > { %v1665_v22 = vld [vmem:[#allocation3 + $0x8c] ss:$16 sps:$4 sm:$0xff]   ;;  %v1667_v23 = vld [vmem:[#allocation3 + $0x80] ss:$16 sps:$4 sm:$0xff]   ;;  %v1671_v24 = vld [vmem:[#allocation3 + $0x88] ss:$16 sps:$4 sm:$0xff]  }
  0x43   : > { %v1673_v25 = vld [vmem:[#allocation3 + $0x64] ss:$16 sps:$4 sm:$0xff]   ;;  %v1677_v26 = vld [vmem:[#allocation3 + $0x6c] ss:$16 sps:$4 sm:$0xff]   ;;  %v1679_v27 = vld [vmem:[#allocation3 + $0x60] ss:$16 sps:$4 sm:$0xff]  }
  0x44   : > { %519 = vmatpush1.bf16.msra.mxu0 %v1645_v15  ;;  %572 = vmatpush1.bf16.msra.mxu1 %v1648_v16  ;;  %v1681_v28 = vld [vmem:[#allocation3 + $0x68] ss:$16 sps:$4 sm:$0xff]   ;;  %v1685_v29 = vld [vmem:[#allocation3 + $0x44] ss:$16 sps:$4 sm:$0xff]   ;;  %v1689_v30 = vld [vmem:[#allocation3 + $0x4c] ss:$16 sps:$4 sm:$0xff]  }
  0x45   : > { %520 = vmatprep.subr.bf16.mxu0 %v1651_v17  ;;  %573 = vmatprep.subr.bf16.mxu1 %v1653_v18  ;;  %v1691_v31 = vld [vmem:[#allocation3 + $0x40] ss:$16 sps:$4 sm:$0xff]   ;;  %v1695_v32 = vld [vmem:[#allocation3 + $0x48] ss:$16 sps:$4 sm:$0xff]   ;;  %v1697_v33 = vld [vmem:[#allocation3 + $0x24] ss:$16 sps:$4 sm:$0xff]  }
  0x46   : > { %v1701_v34 = vld [vmem:[#allocation3 + $0x2c] ss:$16 sps:$4 sm:$0xff]   ;;  %v1703_v35 = vld [vmem:[#allocation3 + $0x20] ss:$16 sps:$4 sm:$0xff]   ;;  %v1705_v36 = vld [vmem:[#allocation3 + $0x28] ss:$16 sps:$4 sm:$0xff]  }
  0x47   : > { %v1709_v37 = vld [vmem:[#allocation3 + $0x4] ss:$16 sps:$4 sm:$0xff]   ;;  %v1713_v38 = vld [vmem:[#allocation3 + $0xc] ss:$16 sps:$4 sm:$0xff]   ;;  %v1715_v39 = vld [vmem:[#allocation3] ss:$16 sps:$4 sm:$0xff]  }
  0x48   : > { %521 = vmatpush1.bf16.msra.mxu0 %v1655_v19  ;;  %574 = vmatpush1.bf16.msra.mxu1 %v1657_v20  ;;  %v1719_v40 = vld [vmem:[#allocation3 + $0x8] ss:$16 sps:$4 sm:$0xff]   ;;  %v1419_v41 = vld [vmem:[%s1617_s26] sm:$0xff]   ;;  %v1421_v43 = vld [vmem:[%s1617_s26 + $0x10] sm:$0xff]   ;;  %s1905_s12 = sshll.u32 %s1235_s15, 2 }
  0x49   : > { %522 = vmatprep.subr.bf16.mxu0 %v1661_v21  ;;  %575 = vmatprep.subr.bf16.mxu1 %v1665_v22  ;;  %v1422_v44 = vld [vmem:[%s1617_s26 + $0x18] sm:$0xff]   ;;  %v1423_v45 = vld [vmem:[%s1617_s26 + $0x20] sm:$0xff]   ;;  %v1424_v46 = vld [vmem:[%s1617_s26 + $0x28] sm:$0xff]   ;;  %p301_p6 = scmp.lt.s32.totalorder %s1905_s12, 7 }
  0x4a   : > { %v1425_v47 = vld [vmem:[%s1617_s26 + $0x30] sm:$0xff]   ;;  %v1426_v48 = vld [vmem:[%s1617_s26 + $0x38] sm:$0xff]  }
  0x4b   : > { %s2012_s12 = smov (!%p301_p6, %s1905_s12), 7 }
  0x4c   : > { %523 = vmatpush1.bf16.msra.mxu0 %v1667_v23  ;;  %576 = vmatpush1.bf16.msra.mxu1 %v1671_v24  ;;  %s1314_s14 = sshll.u32 %s2012_s12, 4 }
  0x4d   : > { %524 = vmatprep.subr.bf16.mxu0 %v1673_v25  ;;  %577 = vmatprep.subr.bf16.mxu1 %v1677_v26  ;;  %s1963_s22 = scalar_lea.vmem %s2000_s3, %s1314_s14 }
  0x50   : > { %525 = vmatpush1.bf16.msra.mxu0 %v1679_v27  ;;  %578 = vmatpush1.bf16.msra.mxu1 %v1681_v28 }
  0x51   : > { %526 = vmatprep.subr.bf16.mxu0 %v1685_v29  ;;  %579 = vmatprep.subr.bf16.mxu1 %v1689_v30 }
  0x54   : > { %527 = vmatpush1.bf16.msra.mxu0 %v1691_v31  ;;  %580 = vmatpush1.bf16.msra.mxu1 %v1695_v32 }
  0x55   : > { %528 = vmatprep.subr.bf16.mxu0 %v1697_v33  ;;  %581 = vmatprep.subr.bf16.mxu1 %v1701_v34 }
  0x58   : > { %529 = vmatpush1.bf16.msra.mxu0 %v1703_v35  ;;  %582 = vmatpush1.bf16.msra.mxu1 %v1705_v36 }
  0x59   : > { %530 = vmatprep.subr.bf16.mxu0 %v1709_v37  ;;  %583 = vmatprep.subr.bf16.mxu1 %v1713_v38 }
  0x5c   : > { %531 = vmatpush1.bf16.msra.mxu0 %v1715_v39  ;;  %584 = vmatpush1.bf16.msra.mxu1 %v1719_v40 }
  0x5d   : > { %639 = vmatprep.subr.bf16.mxu0 %v1629_v9  ;;  %692 = vmatprep.subr.bf16.mxu1 %v1631_v10 }
  0x5f   : > { %549 = vmatmul.mubr.bf16.vlgmr.msra.gmra.mxu0 %v1419_v41  ;;  %602 = vmatmul.mubr.bf16.vlgmr.msra.gmra.mxu1 %v1419_v41 }
  0x60   : > { %640 = vmatpush1.bf16.msra.mxu0 %v1634_v11  ;;  %693 = vmatpush1.bf16.msra.mxu1 %v1636_v12 }
  0x61   : > { %641 = vmatprep.subr.bf16.mxu0 %v1639_v13  ;;  %694 = vmatprep.subr.bf16.mxu1 %v1643_v14 }
  0x62   : > { %558 = vmatprep.mubr.bf16.mxu0 %v1515_v8  ;;  %611 = vmatprep.mubr.bf16.mxu1 %v1515_v8 }
  0x64   : > { %642 = vmatpush1.bf16.msra.mxu0 %v1645_v15  ;;  %695 = vmatpush1.bf16.msra.mxu1 %v1648_v16 }
  0x65   : > { %643 = vmatprep.subr.bf16.mxu0 %v1651_v17  ;;  %696 = vmatprep.subr.bf16.mxu1 %v1653_v18 }
  0x67   : > { %559 = vmatmul.mubr.bf16.gmra.mxu0 %v1420_v42  ;;  %612 = vmatmul.mubr.bf16.gmra.mxu1 %v1420_v42 }
  0x68   : > { %644 = vmatpush1.bf16.msra.mxu0 %v1655_v19  ;;  %697 = vmatpush1.bf16.msra.mxu1 %v1657_v20 }
  0x69   : > { %645 = vmatprep.subr.bf16.mxu0 %v1661_v21  ;;  %698 = vmatprep.subr.bf16.mxu1 %v1665_v22 }
  0x6a   : > { %671 = vmatprep.mubr.bf16.mxu0 %v1515_v8  ;;  %724 = vmatprep.mubr.bf16.mxu1 %v1515_v8 }
  0x6c   : > { %646 = vmatpush1.bf16.msra.mxu0 %v1667_v23  ;;  %699 = vmatpush1.bf16.msra.mxu1 %v1671_v24 }
  0x6d   : > { %647 = vmatprep.subr.bf16.mxu0 %v1673_v25  ;;  %700 = vmatprep.subr.bf16.mxu1 %v1677_v26 }
  0x70   : > { %648 = vmatpush1.bf16.msra.mxu0 %v1679_v27  ;;  %701 = vmatpush1.bf16.msra.mxu1 %v1681_v28 }
  0x71   : > { %649 = vmatprep.subr.bf16.mxu0 %v1685_v29  ;;  %702 = vmatprep.subr.bf16.mxu1 %v1689_v30 }
  0x74   : > { %650 = vmatpush1.bf16.msra.mxu0 %v1691_v31  ;;  %703 = vmatpush1.bf16.msra.mxu1 %v1695_v32 }
  0x75   : > { %651 = vmatprep.subr.bf16.mxu0 %v1697_v33  ;;  %704 = vmatprep.subr.bf16.mxu1 %v1701_v34 }
  0x78   : > { %652 = vmatpush1.bf16.msra.mxu0 %v1703_v35  ;;  %705 = vmatpush1.bf16.msra.mxu1 %v1705_v36 }
  0x79   : > { %653 = vmatprep.subr.bf16.mxu0 %v1709_v37  ;;  %706 = vmatprep.subr.bf16.mxu1 %v1713_v38 }
  0x7c   : > { %654 = vmatpush1.bf16.msra.mxu0 %v1715_v39  ;;  %707 = vmatpush1.bf16.msra.mxu1 %v1719_v40 }
  0x7d   : > { %778 = vmatprep.subr.bf16.mxu0 %v1629_v9  ;;  %831 = vmatprep.subr.bf16.mxu1 %v1631_v10 }
  0x7f   : > { %672 = vmatmul.mubr.bf16.vlgmr.msra.gmra.mxu0 %v1421_v43  ;;  %725 = vmatmul.mubr.bf16.vlgmr.msra.gmra.mxu1 %v1421_v43 }
  0x80   : > { %779 = vmatpush1.bf16.msra.mxu0 %v1634_v11  ;;  %832 = vmatpush1.bf16.msra.mxu1 %v1636_v12 }
  0x81   : > { %780 = vmatprep.subr.bf16.mxu0 %v1639_v13  ;;  %833 = vmatprep.subr.bf16.mxu1 %v1643_v14 }
  0x82   : > { %681 = vmatprep.mubr.bf16.mxu0 %v1515_v8  ;;  %734 = vmatprep.mubr.bf16.mxu1 %v1515_v8 }
  0x84   : > { %781 = vmatpush1.bf16.msra.mxu0 %v1645_v15  ;;  %834 = vmatpush1.bf16.msra.mxu1 %v1648_v16 }
  0x85   : > { %782 = vmatprep.subr.bf16.mxu0 %v1651_v17  ;;  %835 = vmatprep.subr.bf16.mxu1 %v1653_v18 }
  0x87   : > { %682 = vmatmul.mubr.bf16.gmra.mxu0 %v1422_v44  ;;  %735 = vmatmul.mubr.bf16.gmra.mxu1 %v1422_v44 }
  0x88   : > { %783 = vmatpush1.bf16.msra.mxu0 %v1655_v19  ;;  %836 = vmatpush1.bf16.msra.mxu1 %v1657_v20 }
  0x89   : > { %784 = vmatprep.subr.bf16.mxu0 %v1661_v21  ;;  %837 = vmatprep.subr.bf16.mxu1 %v1665_v22 }
  0x8a   : > { %810 = vmatprep.mubr.bf16.mxu0 %v1515_v8  ;;  %863 = vmatprep.mubr.bf16.mxu1 %v1515_v8 }
  0x8c   : > { %785 = vmatpush1.bf16.msra.mxu0 %v1667_v23  ;;  %838 = vmatpush1.bf16.msra.mxu1 %v1671_v24 }
  0x8d   : > { %786 = vmatprep.subr.bf16.mxu0 %v1673_v25  ;;  %839 = vmatprep.subr.bf16.mxu1 %v1677_v26 }
  0x90   : > { %787 = vmatpush1.bf16.msra.mxu0 %v1679_v27  ;;  %840 = vmatpush1.bf16.msra.mxu1 %v1681_v28 }
  0x91   : > { %788 = vmatprep.subr.bf16.mxu0 %v1685_v29  ;;  %841 = vmatprep.subr.bf16.mxu1 %v1689_v30 }
  0x94   : > { %789 = vmatpush1.bf16.msra.mxu0 %v1691_v31  ;;  %842 = vmatpush1.bf16.msra.mxu1 %v1695_v32 }
  0x95   : > { %790 = vmatprep.subr.bf16.mxu0 %v1697_v33  ;;  %843 = vmatprep.subr.bf16.mxu1 %v1701_v34 }
  0x98   : > { %791 = vmatpush1.bf16.msra.mxu0 %v1703_v35  ;;  %844 = vmatpush1.bf16.msra.mxu1 %v1705_v36 }
  0x99   : > { %792 = vmatprep.subr.bf16.mxu0 %v1709_v37  ;;  %845 = vmatprep.subr.bf16.mxu1 %v1713_v38 }
  0x9c   : > { %793 = vmatpush1.bf16.msra.mxu0 %v1715_v39  ;;  %846 = vmatpush1.bf16.msra.mxu1 %v1719_v40 }
  0x9d   : > { %917 = vmatprep.subr.bf16.mxu0 %v1629_v9  ;;  %970 = vmatprep.subr.bf16.mxu1 %v1631_v10 }
  0x9f   : > { %811 = vmatmul.mubr.bf16.vlgmr.msra.gmra.mxu0 %v1423_v45  ;;  %864 = vmatmul.mubr.bf16.vlgmr.msra.gmra.mxu1 %v1423_v45 }
  0xa0   : > { %918 = vmatpush1.bf16.msra.mxu0 %v1634_v11  ;;  %971 = vmatpush1.bf16.msra.mxu1 %v1636_v12 }
  0xa1   : > { %919 = vmatprep.subr.bf16.mxu0 %v1639_v13  ;;  %972 = vmatprep.subr.bf16.mxu1 %v1643_v14 }
  0xa2   : > { %820 = vmatprep.mubr.bf16.mxu0 %v1515_v8  ;;  %873 = vmatprep.mubr.bf16.mxu1 %v1515_v8 }
  0xa4   : > { %920 = vmatpush1.bf16.msra.mxu0 %v1645_v15  ;;  %973 = vmatpush1.bf16.msra.mxu1 %v1648_v16 }
  0xa5   : > { %921 = vmatprep.subr.bf16.mxu0 %v1651_v17  ;;  %974 = vmatprep.subr.bf16.mxu1 %v1653_v18 }
  0xa7   : > { %821 = vmatmul.mubr.bf16.gmra.mxu0 %v1424_v46  ;;  %874 = vmatmul.mubr.bf16.gmra.mxu1 %v1424_v46 }
  0xa8   : > { %922 = vmatpush1.bf16.msra.mxu0 %v1655_v19  ;;  %975 = vmatpush1.bf16.msra.mxu1 %v1657_v20 }
  0xa9   : > { %923 = vmatprep.subr.bf16.mxu0 %v1661_v21  ;;  %976 = vmatprep.subr.bf16.mxu1 %v1665_v22 }
  0xaa   : > { %949 = vmatprep.mubr.bf16.mxu0 %v1515_v8  ;;  %1002 = vmatprep.mubr.bf16.mxu1 %v1515_v8 }
  0xac   : > { %924 = vmatpush1.bf16.msra.mxu0 %v1667_v23  ;;  %977 = vmatpush1.bf16.msra.mxu1 %v1671_v24 }
  0xad   : > { %925 = vmatprep.subr.bf16.mxu0 %v1673_v25  ;;  %978 = vmatprep.subr.bf16.mxu1 %v1677_v26  ;;  %v1041_v25 = vlaneseq }
  0xb0   : > { %926 = vmatpush1.bf16.msra.mxu0 %v1679_v27  ;;  %979 = vmatpush1.bf16.msra.mxu1 %v1681_v28  ;;  %v1042_v28 = vshrl.u32 %v1041_v25, 7 }
  0xb1   : > { %927 = vmatprep.subr.bf16.mxu0 %v1685_v29  ;;  %980 = vmatprep.subr.bf16.mxu1 %v1689_v30 }
  0xb4   : > { %928 = vmatpush1.bf16.msra.mxu0 %v1691_v31  ;;  %981 = vmatpush1.bf16.msra.mxu1 %v1695_v32  ;;  %v1043_v31 = vsub.s32 0, %v1042_v28  ;;  %v1051_v32 = vsub.s32 2, %v1042_v28 }
  0xb5   : > { %929 = vmatprep.subr.bf16.mxu0 %v1697_v33  ;;  %982 = vmatprep.subr.bf16.mxu1 %v1701_v34  ;;  %v1047_v33 = vsub.s32 1, %v1042_v28  ;;  %v1055_v34 = vsub.s32 3, %v1042_v28 }
  0xb8   : > { %930 = vmatpush1.bf16.msra.mxu0 %v1703_v35  ;;  %983 = vmatpush1.bf16.msra.mxu1 %v1705_v36  ;;  %v1039_v35 = vld [vmem:[#allocation5] sm:$0xf] }
  0xb9   : > { %931 = vmatprep.subr.bf16.mxu0 %v1709_v37  ;;  %984 = vmatprep.subr.bf16.mxu1 %v1713_v38  ;;  %v1907_v38 = vrot.slane %v1039_v35, %v1043_v31  ;;  %v1913_v41 = vrot.slane %v1039_v35, %v1055_v34 }
  0xbc   : > { %932 = vmatpush1.bf16.msra.mxu0 %v1715_v39  ;;  %985 = vmatpush1.bf16.msra.mxu1 %v1719_v40  ;;  %v1909_v39 = vrot.slane %v1039_v35, %v1051_v32  ;;  %v1911_v40 = vrot.slane %v1039_v35, %v1047_v33 }
  0xbf   : > { %950 = vmatmul.mubr.bf16.vlgmr.msra.gmra.mxu0 %v1425_v47  ;;  %1003 = vmatmul.mubr.bf16.vlgmr.msra.gmra.mxu1 %v1425_v47 }
  0xc0   : > { %959 = vmatprep.mubr.bf16.mxu0 %v1515_v8  ;;  %1012 = vmatprep.mubr.bf16.mxu1 %v1515_v8 }
  0xc7   : > { %960 = vmatmul.mubr.bf16.gmra.mxu0 %v1426_v48  ;;  %1013 = vmatmul.mubr.bf16.gmra.mxu1 %v1426_v48 }
 0x11f   : > { %v1843_v49 = vpop.f32.mrf.mxu0  ;;  %v1845_v50 = vpop.f32.mrf.mxu1 }
 0x121   : > { %v1847_v51 = vpop.f32.mrf.mxu0  ;;  %v1849_v52 = vpop.f32.mrf.mxu1 }
 0x123   : > { %v1851_v53 = vpop.f32.mrf.mxu0  ;;  %v1853_v54 = vpop.f32.mrf.mxu1 }
 0x125   : > { %v1855_v55 = vpop.f32.mrf.mxu0  ;;  %v1857_v56 = vpop.f32.mrf.mxu1 }
 0x127   : > { %v1859_v57 = vpop.f32.mrf.mxu0  ;;  %v1861_v58 = vpop.f32.mrf.mxu1 }
 0x129   : > { %v1863_v59 = vpop.f32.mrf.mxu0  ;;  %v1865_v60 = vpop.f32.mrf.mxu1 }
 0x12b   : > { %v1867_v61 = vpop.f32.mrf.mxu0  ;;  %v1869_v62 = vpop.f32.mrf.mxu1 }
 0x12d   : > { %v1871_v63 = vpop.f32.mrf.mxu0  ;;  %v1873_v0 = vpop.f32.mrf.mxu1 }
 0x13f   : > { %v673_v1 = vpop.f32.mrf.mxu0  ;;  %v726_v2 = vpop.f32.mrf.mxu1 }
 0x140   : > { %v745_v42 = vmax.f32 %v1843_v49, %v673_v1  ;;  %v747_v43 = vmax.f32 %v1845_v50, %v726_v2 }
 0x141   : > { %v675_v3 = vpop.f32.mrf.mxu0  ;;  %v728_v4 = vpop.f32.mrf.mxu1 }
 0x142   : > { %v746_v44 = vmax.f32 %v1847_v51, %v675_v3  ;;  %v748_v45 = vmax.f32 %v1849_v52, %v728_v4 }
 0x143   : > { %v1875_v5 = vpop.f32.mrf.mxu0  ;;  %v1877_v6 = vpop.f32.mrf.mxu1 }
 0x144   : > { %v749_v46 = vmax.f32 %v1851_v53, %v1875_v5  ;;  %v751_v47 = vmax.f32 %v1853_v54, %v1877_v6 }
 0x145   : > { %v1879_v7 = vpop.f32.mrf.mxu0  ;;  %v1881_v8 = vpop.f32.mrf.mxu1 }
 0x146   : > { %v750_v48 = vmax.f32 %v1855_v55, %v1879_v7  ;;  %v752_v25 = vmax.f32 %v1857_v56, %v1881_v8 }
 0x147   : > { %v1883_v9 = vpop.f32.mrf.mxu0  ;;  %v1885_v10 = vpop.f32.mrf.mxu1 }
 0x148   : > { %v753_v51 = vmax.f32 %v1859_v57, %v1883_v9  ;;  %v755_v52 = vmax.f32 %v1861_v58, %v1885_v10 }
 0x149   : > { %v1887_v11 = vpop.f32.mrf.mxu0  ;;  %v1889_v12 = vpop.f32.mrf.mxu1 }
 0x14a   : > { %v754_v55 = vmax.f32 %v1863_v59, %v1887_v11  ;;  %v756_v56 = vmax.f32 %v1865_v60, %v1889_v12 }
 0x14b   : > { %v1891_v13 = vpop.f32.mrf.mxu0  ;;  %v1893_v14 = vpop.f32.mrf.mxu1 }
 0x14c   : > { %v757_v1 = vmax.f32 %v1867_v61, %v1891_v13  ;;  %v759_v2 = vmax.f32 %v1869_v62, %v1893_v14 }
 0x14d   : > { %v1895_v15 = vpop.f32.mrf.mxu0  ;;  %v1897_v16 = vpop.f32.mrf.mxu1 }
 0x14e   : > { %v758_v59 = vmax.f32 %v1871_v63, %v1895_v15  ;;  %v760_v60 = vmax.f32 %v1873_v0, %v1897_v16 }
 0x15f   : > { %v812_v17 = vpop.f32.mrf.mxu0  ;;  %v865_v18 = vpop.f32.mrf.mxu1 }
 0x160   : > { %v884_v53 = vmax.f32 %v745_v42, %v812_v17  ;;  %v886_v54 = vmax.f32 %v747_v43, %v865_v18 }
 0x161   : > { %v814_v19 = vpop.f32.mrf.mxu0  ;;  %v867_v20 = vpop.f32.mrf.mxu1 }
 0x162   : > { %v885_v57 = vmax.f32 %v746_v44, %v814_v19  ;;  %v887_v5 = vmax.f32 %v748_v45, %v867_v20 }
 0x163   : > { %v816_v21 = vpop.f32.mrf.mxu0  ;;  %v869_v22 = vpop.f32.mrf.mxu1 }
 0x164   : > { %v888_v7 = vmax.f32 %v749_v46, %v816_v21  ;;  %v890_v61 = vmax.f32 %v751_v47, %v869_v22 }
 0x165   : > { %v818_v23 = vpop.f32.mrf.mxu0  ;;  %v871_v24 = vpop.f32.mrf.mxu1 }
 0x166   : > { %v889_v13 = vmax.f32 %v750_v48, %v818_v23  ;;  %v891_v14 = vmax.f32 %v752_v25, %v871_v24 }
 0x167   : > { %v822_v26 = vpop.f32.mrf.mxu0  ;;  %v875_v27 = vpop.f32.mrf.mxu1 }
 0x168   : > { %v892_v17 = vmax.f32 %v753_v51, %v822_v26  ;;  %v894_v18 = vmax.f32 %v755_v52, %v875_v27 }
 0x169   : > { %v824_v29 = vpop.f32.mrf.mxu0  ;;  %v877_v30 = vpop.f32.mrf.mxu1 }
 0x16a   : > { %v893_v15 = vmax.f32 %v754_v55, %v824_v29  ;;  %v895_v20 = vmax.f32 %v756_v56, %v877_v30 }
 0x16b   : > { %v1899_v36 = vpop.f32.mrf.mxu0  ;;  %v1901_v37 = vpop.f32.mrf.mxu1 }
 0x16c   : > { %v896_v27 = vmax.f32 %v757_v1, %v1899_v36  ;;  %v898_v29 = vmax.f32 %v759_v2, %v1901_v37 }
 0x16d   : > { %v1928_v49 = vpop.f32.mrf.mxu0  ;;  %v1930_v50 = vpop.f32.mrf.mxu1 }
 0x16e   : > { %v897_v1 = vmax.f32 %v758_v59, %v1928_v49  ;;  %v899_v2 = vmax.f32 %v760_v60, %v1930_v50 }
 0x17f   : > { %v951_v3 = vpop.f32.mrf.mxu0  ;;  %v1004_v4 = vpop.f32.mrf.mxu1 }
 0x180   : > { %v1023_v6 = vmax.f32 %v884_v53, %v951_v3  ;;  %v1025_v58 = vmax.f32 %v886_v54, %v1004_v4 }
 0x181   : > { %v953_v8 = vpop.f32.mrf.mxu0  ;;  %v1006_v62 = vpop.f32.mrf.mxu1 }
 0x182   : > { %v1061_v9 = vadd.f32 %v1907_v38, %v1023_v6  ;;  %v1063_v10 = vadd.f32 %v1909_v39, %v1025_v58  ;;  %v1024_v11 = vmax.f32 %v885_v57, %v953_v8  ;;  %v1026_v12 = vmax.f32 %v887_v5, %v1006_v62 }
 0x183   : > { %v955_v19 = vpop.f32.mrf.mxu0  ;;  %v1008_v63 = vpop.f32.mrf.mxu1 }
 0x184   : > { %v1062_v0 = vadd.f32 %v1911_v40, %v1024_v11  ;;  %v1064_v16 = vadd.f32 %v1913_v41, %v1026_v12  ;;  %v1077_v21 = vmax.f32 %v1061_v9, 0.0  ;;  %v1079_v22 = vmax.f32 %v1063_v10, 0.0 }
 0x185   : > { %v1027_v28 = vmax.f32 %v888_v7, %v955_v19  ;;  %v1029_v31 = vmax.f32 %v890_v61, %v1008_v63  ;;  %v957_v32 = vpop.f32.mrf.mxu0  ;;  %v1010_v33 = vpop.f32.mrf.mxu1 }
 0x186   : > { %v1078_v34 = vmax.f32 %v1062_v0, 0.0  ;;  %v1080_v23 = vmax.f32 %v1064_v16, 0.0  ;;  %v1028_v24 = vmax.f32 %v889_v13, %v957_v32  ;;  %v1030_v26 = vmax.f32 %v891_v14, %v1010_v33 }
 0x187   : > { %v1065_v30 = vadd.f32 %v1907_v38, %v1027_v28  ;;  %v1067_v35 = vadd.f32 %v1909_v39, %v1029_v31  ;;  %v961_v42 = vpop.f32.mrf.mxu0  ;;  %v1014_v43 = vpop.f32.mrf.mxu1 }
 0x188   : > { %v1315_v44 = vpack.c.bf16 %v1078_v34, %v1077_v21  ;;  %v1316_v45 = vpack.c.bf16 %v1080_v23, %v1079_v22  ;;  %v1066_v46 = vadd.f32 %v1911_v40, %v1028_v24  ;;  %v1068_v36 = vadd.f32 %v1913_v41, %v1030_v26 }
 0x189   : > { %v1081_v37 = vmax.f32 %v1065_v30, 0.0  ;;  %v1083_v47 = vmax.f32 %v1067_v35, 0.0  ;;  %v1031_v48 = vmax.f32 %v892_v17, %v961_v42  ;;  %v1033_v25 = vmax.f32 %v894_v18, %v1014_v43  ;;  %v963_v51 = vpop.f32.mrf.mxu0  ;;  %v1016_v52 = vpop.f32.mrf.mxu1 }
 0x18a   : > { %1141 = vst [vmem:[%s1963_s22] sm:$0xff] %v1315_v44  ;;  %1142 = vst [vmem:[%s1963_s22 + $0x8] sm:$0xff] %v1316_v45  ;;  %v1082_v53 = vmax.f32 %v1066_v46, 0.0  ;;  %v1084_v54 = vmax.f32 %v1068_v36, 0.0  ;;  %v1032_v55 = vmax.f32 %v893_v15, %v963_v51  ;;  %v1034_v56 = vmax.f32 %v895_v20, %v1016_v52 }
 0x18b   : > { %v1069_v3 = vadd.f32 %v1907_v38, %v1031_v48  ;;  %v1071_v4 = vadd.f32 %v1909_v39, %v1033_v25  ;;  %v965_v57 = vpop.f32.mrf.mxu0  ;;  %v1018_v5 = vpop.f32.mrf.mxu1 }
 0x18c   : > { %v1317_v6 = vpack.c.bf16 %v1082_v53, %v1081_v37  ;;  %v1318_v58 = vpack.c.bf16 %v1084_v54, %v1083_v47  ;;  %v1070_v7 = vadd.f32 %v1911_v40, %v1032_v55  ;;  %v1072_v61 = vadd.f32 %v1913_v41, %v1034_v56 }
 0x18d   : > { %v1085_v8 = vmax.f32 %v1069_v3, 0.0  ;;  %v1087_v62 = vmax.f32 %v1071_v4, 0.0  ;;  %v1035_v9 = vmax.f32 %v896_v27, %v965_v57  ;;  %v1037_v49 = vmax.f32 %v898_v29, %v1018_v5  ;;  %v967_v50 = vpop.f32.mrf.mxu0  ;;  %v1020_v59 = vpop.f32.mrf.mxu1 }
 0x18e   : > { %1143 = vst [vmem:[%s1963_s22 + $0x10] sm:$0xff] %v1317_v6  ;;  %1144 = vst [vmem:[%s1963_s22 + $0x18] sm:$0xff] %v1318_v58  ;;  %v1086_v60 = vmax.f32 %v1070_v7, 0.0  ;;  %v1088_v10 = vmax.f32 %v1072_v61, 0.0  ;;  %v1036_v11 = vmax.f32 %v897_v1, %v967_v50  ;;  %v1038_v12 = vmax.f32 %v899_v2, %v1020_v59 }
 0x18f   : > { %v1073_v13 = vadd.f32 %v1907_v38, %v1035_v9  ;;  %v1075_v14 = vadd.f32 %v1909_v39, %v1037_v49 }
 0x190   : > { %v1319_v17 = vpack.c.bf16 %v1086_v60, %v1085_v8  ;;  %v1320_v18 = vpack.c.bf16 %v1088_v10, %v1087_v62  ;;  %v1074_v19 = vadd.f32 %v1911_v40, %v1036_v11  ;;  %v1076_v63 = vadd.f32 %v1913_v41, %v1038_v12 }
 0x191   : > { %v1089_v15 = vmax.f32 %v1073_v13, 0.0  ;;  %v1091_v20 = vmax.f32 %v1075_v14, 0.0 }
 0x192   : > { %1145 = vst [vmem:[%s1963_s22 + $0x20] sm:$0xff] %v1319_v17  ;;  %1146 = vst [vmem:[%s1963_s22 + $0x28] sm:$0xff] %v1320_v18  ;;  %v1090_v0 = vmax.f32 %v1074_v19, 0.0  ;;  %v1092_v16 = vmax.f32 %v1076_v63, 0.0 }
 0x194   : > { %v1321_v21 = vpack.c.bf16 %v1090_v0, %v1089_v15  ;;  %v1322_v22 = vpack.c.bf16 %v1092_v16, %v1091_v20 }
 0x196   : > { %1147 = vst [vmem:[%s1963_s22 + $0x30] sm:$0xff] %v1321_v21  ;;  %1148 = vst [vmem:[%s1963_s22 + $0x38] sm:$0xff] %v1322_v22 }
 0x197 PF: > { %p12_p7 = scmp.ge.s32.totalorder %s1553_s16, 4   ;;  %s2008_s12 = smov %s1505_s13 }
 0x198   : > { %s2009_s13 = smov %s1563_s19  ;;  %s2010_s14 = smov %s1553_s16 }
 0x199   :  { %14 = sbr.rel (!%p12_p7) target bundleno = 3 (0x3), region = 120 }
 0x19e   :  { %1173 = vsyncpa [#allocation4], 1 }
 0x19f   :  { %1175 = vsyncpa [#allocation4 + $0x1], 1 }
 0x1a0   :  { %1176 = vsyncpa [#allocation6], 1 }

// kernel: netconv_forward.4
= control target key start
LH: loop header
LB: loop body
LE: loop exit
PB: predicated region body
PF: predicated region fallthrough
CT: control target
= control target key end

     0   :  { %s2425_s15 = smov 0   ;;  %s3072_s0 = inlined_call_operand.vmem [shape: bf16[288,192], index: 0, kind: input, shape index: {}]   ;;  %s3073_s1 = inlined_call_operand.vmem [shape: bf16[288,192], index: 1, kind: input, shape index: {}]   ;;  %s3074_s2 = inlined_call_operand.vmem [shape: bf16[3,192,128], index: 2, kind: input, shape index: {}]   ;;  %s3075_s3 = inlined_call_operand.vmem [shape: f32[1,128], index: 3, kind: input, shape index: {}]   ;;  %s3076_s4 = inlined_call_operand.vmem [shape: bf16[288,128], index: 4, kind: output, shape index: {}]  }
   0x1 LB: > { %s1964_s16 = sadd.s32 4294967295, %s2397_s15   ;;  %p1968_p0 = scmp.ge.s32.totalorder %s2397_s15, 1  ;;  %s2397_s15 = sphi %s2425_s15, %s14_s15  }
   0x2   : > { %p176_p1 = scmp.lt.s32.totalorder %s2397_s15, 3 }
   0x4   : > { %p177_p2 = pnand %p1968_p0, %p176_p1 }
   0x5   : > { %s209_s27 = smul.u32 (!%p177_p2), 18, %s1964_s16 }
   0x6   : > { %180 = sbr.rel (%p177_p2) target bundleno = 454 (0x1c6), region = 36 }
   0x7   : > { %p210_p3 = scmp.lt.s32.totalorder (!%p177_p2), %s209_s27, 35 }
   0xb   : > { %v2436_v0 = vld [vmem:[%s3074_s2 + $0x98] sm:$0xff]   ;;  %v2399_v1 = vmov 0   ;;  %v2449_v3 = vld [vmem:[%s3074_s2 + $0x90] sm:$0xff]   ;;  %v2463_v5 = vld [vmem:[%s3074_s2 + $0x88] sm:$0xff]   ;;  %s3078_s27 = smov (!%p210_p3, %s209_s27), 35  ;;  %vm456_vm0 = vcmask 523264  }
   0xc   : > { %481 = vmatprep.subr.bf16.mxu0 %v2399_v1  ;;  %701 = vmatprep.subr.bf16.mxu1 %v2399_v1  ;;  %v2443_v2 = vld [vmem:[%s3074_s2 + $0x38] sm:$0xff]   ;;  %v2456_v4 = vld [vmem:[%s3074_s2 + $0x30] sm:$0xff]   ;;  %v2470_v6 = vld [vmem:[%s3074_s2 + $0x28] sm:$0xff]   ;;  %s2220_s14 = sshll.u32 %s3078_s27, 3 }
   0xd   : > { %482 = vmatpush1.bf16.msra.mxu0 %v2436_v0  ;;  %702 = vmatpush1.bf16.msra.mxu1 %v2443_v2  ;;  %v2477_v7 = vld [vmem:[%s3074_s2 + $0x80] sm:$0xff]   ;;  %v2491_v9 = vld [vmem:[%s3074_s2 + $0x78] sm:$0xff]   ;;  %v2507_v11 = vld [vmem:[%s3074_s2 + $0x70] sm:$0xff]   ;;  %s2523_s20 = scalar_lea.vmem %s3072_s0, %s2220_s14  ;;  %s2734_s25 = scalar_lea.vmem %s3073_s1, %s2220_s14 }
   0xe   : > { %483 = vmatprep.subr.bf16.mxu0 %v2399_v1  ;;  %703 = vmatprep.subr.bf16.mxu1 %v2399_v1  ;;  %v2484_v8 = vld [vmem:[%s3074_s2 + $0x20] sm:$0xff]   ;;  %v2500_v10 = vld [vmem:[%s3074_s2 + $0x18] sm:$0xff]   ;;  %v2515_v12 = vld [vmem:[%s3074_s2 + $0x10] sm:$0xff]  }
   0xf   : > { %v2529_v13 = vld [vmem:[%s3074_s2 + $0x68] sm:$0xff]   ;;  %v232_v16 = vld [vmem:[%s2523_s20 + $0x10] sm:$0xff]  ;;  %v230_v17 = vld [vmem:[%s2523_s20] sm:$0xff] }
  0x10   : > { %v2536_v14 = vld [vmem:[%s3074_s2 + $0x8] sm:$0xff]   ;;  %v2546_v20 = vld [vmem:[%s3074_s2 + $0x60] sm:$0xff]   ;;  %v2562_v22 = vld [vmem:[%s3074_s2 + $0xb8] sm:$0xff]  }
  0x11   : > { %484 = vmatpush1.bf16.msra.mxu0 %v2449_v3  ;;  %704 = vmatpush1.bf16.msra.mxu1 %v2456_v4  ;;  %v231_v15 = vld [vmem:[%s2523_s20 + $0x8] sm:$0xff]  ;;  %v2553_v21 = vld [vmem:[%s3074_s2] sm:$0xff]   ;;  %v2569_v23 = vld [vmem:[%s3074_s2 + $0x58] sm:$0xff]  }
  0x12   : > { %485 = vmatprep.subr.bf16.mxu0 %v2399_v1  ;;  %705 = vmatprep.subr.bf16.mxu1 %v2399_v1  ;;  %v1999_v18 = vcombine.high %v231_v15, %v232_v16  ;;  %v2035_v19 = vcombine.high %v230_v17, %v231_v15  ;;  %v2576_v24 = vld [vmem:[%s3074_s2 + $0xb0] sm:$0xff]   ;;  %v2590_v26 = vld [vmem:[%s3074_s2 + $0xa8] sm:$0xff]   ;;  %v2604_v28 = vld [vmem:[%s3074_s2 + $0xa0] sm:$0xff]   ;;  %v1998_v31 = vcombine.low %v231_v15, %v232_v16 }
  0x13   : > { %v2583_v25 = vld [vmem:[%s3074_s2 + $0x50] sm:$0xff]   ;;  %v2597_v27 = vld [vmem:[%s3074_s2 + $0x48] sm:$0xff]   ;;  %v2611_v29 = vld [vmem:[%s3074_s2 + $0x40] sm:$0xff]   ;;  %v2034_v33 = vcombine.low %v230_v17, %v231_v15 }
  0x14   : > { %2026 = vmatprep.mubr.msk.bf16.mxu0 %vm456_vm0, %v1999_v18  ;;  %2062 = vmatprep.mubr.msk.bf16.mxu1 %vm456_vm0, %v2035_v19  ;;  %v233_v30 = vld [vmem:[%s2523_s20 + $0x18] sm:$0xff]  ;;  %v234_v32 = vld [vmem:[%s2523_s20 + $0x20] sm:$0xff]  ;;  %v235_v36 = vld [vmem:[%s2523_s20 + $0x28] sm:$0xff] }
  0x15   : > { %486 = vmatpush1.bf16.msra.mxu0 %v2463_v5  ;;  %706 = vmatpush1.bf16.msra.mxu1 %v2470_v6  ;;  %v2001_v34 = vcombine.high %v233_v30, %v234_v32  ;;  %v2620_v35 = vcombine.high %v232_v16, %v233_v30  ;;  %v236_v37 = vld [vmem:[%s2523_s20 + $0x30] sm:$0xff]  ;;  %v2000_v38 = vcombine.low %v233_v30, %v234_v32  ;;  %v237_v42 = vld [vmem:[%s2523_s20 + $0x38] sm:$0xff]  ;;  %v238_v43 = vld [vmem:[%s2523_s20 + $0x40] sm:$0xff] }
  0x16   : > { %487 = vmatprep.subr.bf16.mxu0 %v2399_v1  ;;  %707 = vmatprep.subr.bf16.mxu1 %v2399_v1  ;;  %v2632_v39 = vcombine.low %v232_v16, %v233_v30  ;;  %v2003_v40 = vcombine.high %v235_v36, %v236_v37  ;;  %v2637_v41 = vcombine.high %v234_v32, %v235_v36  ;;  %v239_v48 = vld [vmem:[%s2523_s20 + $0x48] sm:$0xff]  ;;  %v240_v49 = vld [vmem:[%s2523_s20 + $0x50] sm:$0xff]  ;;  %v241_v54 = vld [vmem:[%s2523_s20 + $0x58] sm:$0xff] }
  0x17   : > { %v2002_v44 = vcombine.low %v235_v36, %v236_v37  ;;  %v2649_v45 = vcombine.low %v234_v32, %v235_v36  ;;  %v2005_v46 = vcombine.high %v237_v42, %v238_v43  ;;  %v2654_v47 = vcombine.high %v236_v37, %v237_v42  ;;  %v242_v55 = vld [vmem:[%s2523_s20 + $0x60] sm:$0xff]  ;;  %v243_v60 = vld [vmem:[%s2523_s20 + $0x68] sm:$0xff]  ;;  %v244_v61 = vld [vmem:[%s2523_s20 + $0x70] sm:$0xff] }
  0x18   : > { %v2004_v50 = vcombine.low %v237_v42, %v238_v43  ;;  %v2667_v51 = vcombine.low %v236_v37, %v237_v42  ;;  %v2007_v52 = vcombine.high %v239_v48, %v240_v49  ;;  %v2670_v53 = vcombine.high %v238_v43, %v239_v48  ;;  %v800_v17 = vld [vmem:[%s2734_s25 + $0x18] sm:$0xff]  ;;  %v801_v18 = vld [vmem:[%s2734_s25 + $0x20] sm:$0xff]  ;;  %v2364_v42 = vld [vmem:[%s3074_s2 + $0xd0] sm:$0xff]  }
  0x19   : > { %488 = vmatpush1.bf16.msra.mxu0 %v2477_v7  ;;  %708 = vmatpush1.bf16.msra.mxu1 %v2484_v8  ;;  %v2006_v56 = vcombine.low %v239_v48, %v240_v49  ;;  %v2685_v57 = vcombine.low %v238_v43, %v239_v48  ;;  %v2009_v58 = vcombine.high %v241_v54, %v242_v55  ;;  %v804_v32 = vld [vmem:[%s2734_s25 + $0x38] sm:$0xff]  ;;  %v806_v43 = vld [vmem:[%s2734_s25 + $0x48] sm:$0xff] }
  0x1a   : > { %489 = vmatprep.subr.bf16.mxu0 %v2399_v1  ;;  %709 = vmatprep.subr.bf16.mxu1 %v2399_v1  ;;  %v2687_v59 = vcombine.high %v240_v49, %v241_v54  ;;  %v2008_v62 = vcombine.low %v241_v54, %v242_v55  ;;  %v2703_v63 = vcombine.low %v240_v49, %v241_v54  ;;  %v808_v54 = vld [vmem:[%s2734_s25 + $0x58] sm:$0xff] }
  0x1d   : > { %490 = vmatpush1.bf16.msra.mxu0 %v2491_v9  ;;  %710 = vmatpush1.bf16.msra.mxu1 %v2500_v10 }
  0x1e   : > { %491 = vmatprep.subr.bf16.mxu0 %v2399_v1  ;;  %711 = vmatprep.subr.bf16.mxu1 %v2399_v1 }
  0x21   : > { %492 = vmatpush1.bf16.msra.mxu0 %v2507_v11  ;;  %712 = vmatpush1.bf16.msra.mxu1 %v2515_v12 }
  0x22   : > { %493 = vmatprep.subr.bf16.mxu0 %v2399_v1  ;;  %713 = vmatprep.subr.bf16.mxu1 %v2399_v1 }
  0x25   : > { %494 = vmatpush1.bf16.msra.mxu0 %v2529_v13  ;;  %714 = vmatpush1.bf16.msra.mxu1 %v2536_v14 }
  0x26   : > { %495 = vmatprep.subr.bf16.mxu0 %v2399_v1  ;;  %715 = vmatprep.subr.bf16.mxu1 %v2399_v1 }
  0x29   : > { %496 = vmatpush1.bf16.msra.mxu0 %v2546_v20  ;;  %716 = vmatpush1.bf16.msra.mxu1 %v2553_v21 }
  0x2a   : > { %505 = vmatprep.subr.bf16.mxu0 %v2399_v1  ;;  %725 = vmatprep.subr.bf16.mxu1 %v2399_v1 }
  0x2d   : > { %506 = vmatpush2.bf16.msra.mxu0 %v2562_v22  ;;  %726 = vmatpush2.bf16.msra.mxu1 %v2569_v23 }
  0x2e   : > { %507 = vmatprep.subr.bf16.mxu0 %v2399_v1  ;;  %727 = vmatprep.subr.bf16.mxu1 %v2399_v1 }
  0x31   : > { %508 = vmatpush2.bf16.msra.mxu0 %v2576_v24  ;;  %728 = vmatpush2.bf16.msra.mxu1 %v2583_v25 }
  0x32   : > { %509 = vmatprep.subr.bf16.mxu0 %v2399_v1  ;;  %729 = vmatprep.subr.bf16.mxu1 %v2399_v1 }
  0x35   : > { %510 = vmatpush2.bf16.msra.mxu0 %v2590_v26  ;;  %730 = vmatpush2.bf16.msra.mxu1 %v2597_v27 }
  0x36   : > { %511 = vmatprep.subr.bf16.mxu0 %v2399_v1  ;;  %731 = vmatprep.subr.bf16.mxu1 %v2399_v1 }
  0x39   : > { %512 = vmatpush2.bf16.msra.mxu0 %v2604_v28  ;;  %732 = vmatpush2.bf16.msra.mxu1 %v2611_v29 }
  0x3a   : > { %910 = vmatprep.subr.bf16.mxu0 %v2399_v1  ;;  %1103 = vmatprep.subr.bf16.mxu1 %v2399_v1 }
  0x3c   : > { %514 = vmatmul.mubr.bf16.vlgmr.msra.gmra.mxu0 %v1998_v31  ;;  %734 = vmatmul.mubr.bf16.vlgmr.msra.gmra.mxu1 %v2034_v33  ;;  %v2358_v31 = vld [vmem:[%s3074_s2 + $0xe0] sm:$0xff]  }
  0x3d   : > { %911 = vmatpush1.bf16.msra.mxu0 %v2436_v0  ;;  %1104 = vmatpush1.bf16.msra.mxu1 %v2443_v2  ;;  %v2011_v0 = vcombine.high %v243_v60, %v244_v61  ;;  %v2705_v2 = vcombine.high %v242_v55, %v243_v60  ;;  %v805_v33 = vld [vmem:[%s2734_s25 + $0x40] sm:$0xff] }
  0x3e   : > { %912 = vmatprep.subr.bf16.mxu0 %v2399_v1  ;;  %1105 = vmatprep.subr.bf16.mxu1 %v2399_v1  ;;  %v2077_v37 = vcombine.high %v804_v32, %v805_v33 }
  0x3f   : > { %2027 = vmatprep.mubr.msk.bf16.mxu0 %vm456_vm0, %v2001_v34  ;;  %2063 = vmatprep.mubr.msk.bf16.mxu1 %vm456_vm0, %v2620_v35 }
  0x41   : > { %913 = vmatpush1.bf16.msra.mxu0 %v2449_v3  ;;  %1106 = vmatpush1.bf16.msra.mxu1 %v2456_v4  ;;  %v245_v3 = vld [vmem:[%s2523_s20 + $0x78] sm:$0xff]  ;;  %v2717_v4 = vld [vmem:[%s2523_s20 + $0x80] sm:$0xff] }
  0x42   : > { %914 = vmatprep.subr.bf16.mxu0 %v2399_v1  ;;  %1107 = vmatprep.subr.bf16.mxu1 %v2399_v1 }
  0x44   : > { %522 = vmatmul.mubr.bf16.gmra.mxu0 %v2000_v38  ;;  %742 = vmatmul.mubr.bf16.gmra.mxu1 %v2632_v39 }
  0x45   : > { %915 = vmatpush1.bf16.msra.mxu0 %v2463_v5  ;;  %1108 = vmatpush1.bf16.msra.mxu1 %v2470_v6  ;;  %v2010_v5 = vcombine.low %v243_v60, %v244_v61  ;;  %v2723_v6 = vcombine.low %v242_v55, %v243_v60  ;;  %v809_v55 = vld [vmem:[%s2734_s25 + $0x60] sm:$0xff]  ;;  %v2829_v60 = vcombine.low %v805_v33, %v806_v43 }
  0x46   : > { %2028 = vmatprep.mubr.msk.bf16.mxu0 %vm456_vm0, %v2003_v40  ;;  %2064 = vmatprep.mubr.msk.bf16.mxu1 %vm456_vm0, %v2637_v41  ;;  %v2361_v40 = vld [vmem:[%s3074_s2 + $0xd8] sm:$0xff]  }
  0x47   : > { %916 = vmatprep.subr.bf16.mxu0 %v2399_v1  ;;  %1109 = vmatprep.subr.bf16.mxu1 %v2399_v1 }
  0x49   : > { %917 = vmatpush1.bf16.msra.mxu0 %v2477_v7  ;;  %1110 = vmatpush1.bf16.msra.mxu1 %v2484_v8  ;;  %v2013_v7 = vcombine.high %v245_v3, %v2717_v4  ;;  %v2726_v8 = vcombine.high %v244_v61, %v245_v3 }
  0x4a   : > { %918 = vmatprep.subr.bf16.mxu0 %v2399_v1  ;;  %1111 = vmatprep.subr.bf16.mxu1 %v2399_v1 }
  0x4c   : > { %530 = vmatmul.mubr.bf16.gmra.mxu0 %v2002_v44  ;;  %750 = vmatmul.mubr.bf16.gmra.mxu1 %v2649_v45  ;;  %v807_v44 = vld [vmem:[%s2734_s25 + $0x50] sm:$0xff] }
  0x4d   : > { %2029 = vmatprep.mubr.msk.bf16.mxu0 %vm456_vm0, %v2005_v46  ;;  %2065 = vmatprep.mubr.msk.bf16.mxu1 %vm456_vm0, %v2654_v47  ;;  %v2076_v46 = vcombine.low %v804_v32, %v805_v33  ;;  %v2079_v49 = vcombine.high %v806_v43, %v807_v44 }
  0x4e   : > { %919 = vmatpush1.bf16.msra.mxu0 %v2491_v9  ;;  %1112 = vmatpush1.bf16.msra.mxu1 %v2500_v10  ;;  %v798_v9 = vld [vmem:[%s2734_s25 + $0x8] sm:$0xff]  ;;  %v799_v10 = vld [vmem:[%s2734_s25 + $0x10] sm:$0xff] }
  0x4f   : > { %920 = vmatprep.subr.bf16.mxu0 %v2399_v1  ;;  %1113 = vmatprep.subr.bf16.mxu1 %v2399_v1  ;;  %v2070_v16 = vcombine.low %v798_v9, %v799_v10 }
  0x52   : > { %921 = vmatpush1.bf16.msra.mxu0 %v2507_v11  ;;  %1114 = vmatpush1.bf16.msra.mxu1 %v2515_v12  ;;  %v270_v11 = vld [vmem:[%s2734_s25] sm:$0xff]  ;;  %v2012_v12 = vcombine.low %v245_v3, %v2717_v4 }
  0x53   : > { %922 = vmatprep.subr.bf16.mxu0 %v2399_v1  ;;  %1115 = vmatprep.subr.bf16.mxu1 %v2399_v1  ;;  %v2095_v15 = vcombine.high %v270_v11, %v798_v9  ;;  %v2094_v19 = vcombine.low %v270_v11, %v798_v9 }
  0x54   : > { %538 = vmatmul.mubr.bf16.gmra.mxu0 %v2004_v50  ;;  %758 = vmatmul.mubr.bf16.gmra.mxu1 %v2667_v51  ;;  %v2811_v50 = vcombine.high %v805_v33, %v806_v43 }
  0x55   : > { %2030 = vmatprep.mubr.msk.bf16.mxu0 %vm456_vm0, %v2007_v52  ;;  %2066 = vmatprep.mubr.msk.bf16.mxu1 %vm456_vm0, %v2670_v53  ;;  %v2369_v52 = vld [vmem:[%s3074_s2 + $0xc8] sm:$0xff]  }
  0x56   : > { %923 = vmatpush1.bf16.msra.mxu0 %v2529_v13  ;;  %1116 = vmatpush1.bf16.msra.mxu1 %v2536_v14  ;;  %v2747_v13 = vcombine.low %v244_v61, %v245_v3  ;;  %v2071_v14 = vcombine.high %v798_v9, %v799_v10  ;;  %v2081_v61 = vcombine.high %v808_v54, %v809_v55  ;;  %v810_v3 = vld [vmem:[%s2734_s25 + $0x68] sm:$0xff] }
  0x57   : > { %924 = vmatprep.subr.bf16.mxu0 %v2399_v1  ;;  %1117 = vmatprep.subr.bf16.mxu1 %v2399_v1  ;;  %v2080_v9 = vcombine.low %v808_v54, %v809_v55 }
  0x5a   : > { %925 = vmatpush1.bf16.msra.mxu0 %v2546_v20  ;;  %1118 = vmatpush1.bf16.msra.mxu1 %v2553_v21  ;;  %v2347_v20 = vld [vmem:[%s3074_s2 + $0xf8] sm:$0xff]   ;;  %v2073_v21 = vcombine.high %v800_v17, %v801_v18 }
  0x5b   : > { %934 = vmatprep.subr.bf16.mxu0 %v2399_v1  ;;  %1127 = vmatprep.subr.bf16.mxu1 %v2399_v1 }
  0x5c   : > { %546 = vmatmul.mubr.bf16.gmra.mxu0 %v2006_v56  ;;  %766 = vmatmul.mubr.bf16.gmra.mxu1 %v2685_v57  ;;  %v2372_v56 = vld [vmem:[%s3074_s2 + $0xc0] sm:$0xff]  }
  0x5d   : > { %2031 = vmatprep.mubr.msk.bf16.mxu0 %vm456_vm0, %v2009_v58  ;;  %2067 = vmatprep.mubr.msk.bf16.mxu1 %vm456_vm0, %v2687_v59  ;;  %v2078_v58 = vcombine.low %v806_v43, %v807_v44 }
  0x5e   : > { %935 = vmatpush2.bf16.msra.mxu0 %v2562_v22  ;;  %1128 = vmatpush2.bf16.msra.mxu1 %v2569_v23  ;;  %v2757_v22 = vcombine.high %v799_v10, %v800_v17  ;;  %v2350_v23 = vld [vmem:[%s3074_s2 + $0xf0] sm:$0xff]  }
  0x5f   : > { %936 = vmatprep.subr.bf16.mxu0 %v2399_v1  ;;  %1129 = vmatprep.subr.bf16.mxu1 %v2399_v1 }
  0x62   : > { %937 = vmatpush2.bf16.msra.mxu0 %v2576_v24  ;;  %1130 = vmatpush2.bf16.msra.mxu1 %v2583_v25  ;;  %v802_v24 = vld [vmem:[%s2734_s25 + $0x28] sm:$0xff]  ;;  %v803_v25 = vld [vmem:[%s2734_s25 + $0x30] sm:$0xff] }
  0x63   : > { %938 = vmatprep.subr.bf16.mxu0 %v2399_v1  ;;  %1131 = vmatprep.subr.bf16.mxu1 %v2399_v1  ;;  %v2776_v30 = vcombine.high %v801_v18, %v802_v24  ;;  %v2074_v34 = vcombine.low %v802_v24, %v803_v25  ;;  %v2789_v36 = vcombine.low %v801_v18, %v802_v24 }
  0x64   : > { %554 = vmatmul.mubr.bf16.gmra.mxu0 %v2008_v62  ;;  %774 = vmatmul.mubr.bf16.gmra.mxu1 %v2703_v63  ;;  %v2792_v38 = vcombine.high %v803_v25, %v804_v32  ;;  %v2809_v48 = vcombine.low %v803_v25, %v804_v32  ;;  %v2831_v62 = vcombine.high %v807_v44, %v808_v54 }
  0x65   : > { %2032 = vmatprep.mubr.msk.bf16.mxu0 %vm456_vm0, %v2011_v0  ;;  %2068 = vmatprep.mubr.msk.bf16.mxu1 %vm456_vm0, %v2705_v2  ;;  %v2375_v0 = vld [vmem:[%s3074_s2 + $0x118] sm:$0xff]  }
  0x66   : > { %939 = vmatpush2.bf16.msra.mxu0 %v2590_v26  ;;  %1132 = vmatpush2.bf16.msra.mxu1 %v2597_v27  ;;  %v2072_v26 = vcombine.low %v800_v17, %v801_v18  ;;  %v2769_v27 = vcombine.low %v799_v10, %v800_v17  ;;  %v2104_v10 = vcombine.low %v807_v44, %v808_v54  ;;  %v2386_v17 = vld [vmem:[%s3074_s2 + $0x100] sm:$0xff]  }
  0x67   : > { %940 = vmatprep.subr.bf16.mxu0 %v2399_v1  ;;  %1133 = vmatprep.subr.bf16.mxu1 %v2399_v1 }
  0x6a   : > { %941 = vmatpush2.bf16.msra.mxu0 %v2604_v28  ;;  %1134 = vmatpush2.bf16.msra.mxu1 %v2611_v29  ;;  %v2353_v28 = vld [vmem:[%s3074_s2 + $0xe8] sm:$0xff]   ;;  %v2075_v29 = vcombine.high %v802_v24, %v803_v25 }
  0x6b   : > { %1409 = vmatprep.subr.bf16.mxu0 %v2399_v1  ;;  %1634 = vmatprep.subr.bf16.mxu1 %v2399_v1 }
  0x6c   : > { %562 = vmatmul.mubr.bf16.gmra.mxu0 %v2010_v5  ;;  %782 = vmatmul.mubr.bf16.gmra.mxu1 %v2723_v6  ;;  %v811_v5 = vld [vmem:[%s2734_s25 + $0x70] sm:$0xff] }
  0x6d   : > { %2033 = vmatprep.mubr.msk.bf16.mxu0 %vm456_vm0, %v2013_v7  ;;  %2069 = vmatprep.mubr.msk.bf16.mxu1 %vm456_vm0, %v2726_v8  ;;  %v2380_v7 = vld [vmem:[%s3074_s2 + $0x110] sm:$0xff]   ;;  %v2083_v11 = vcombine.high %v810_v3, %v811_v5  ;;  %v2082_v18 = vcombine.low %v810_v3, %v811_v5 }
  0x74   : > { %570 = vmatmul.mubr.bf16.gmra.mxu0 %v2012_v12  ;;  %790 = vmatmul.mubr.bf16.gmra.mxu1 %v2747_v13  ;;  %v2107_v12 = vcombine.high %v809_v55, %v810_v3 }
  0x75   : > { %2086 = vmatprep.mubr.msk.bf16.mxu0 %vm456_vm0, %v2071_v14  ;;  %2110 = vmatprep.mubr.msk.bf16.mxu1 %vm456_vm0, %v2095_v15  ;;  %v2383_v14 = vld [vmem:[%s3074_s2 + $0x108] sm:$0xff]   ;;  %v812_v15 = vld [vmem:[%s2734_s25 + $0x78] sm:$0xff] }
  0x76   : > { %v2108_v24 = vcombine.low %v811_v5, %v812_v15 }
  0x7c   : > { %943 = vmatmul.mubr.bf16.vlgmr.msra.gmra.mxu0 %v2070_v16  ;;  %1136 = vmatmul.mubr.bf16.vlgmr.msra.gmra.mxu1 %v2094_v19  ;;  %v813_v16 = vld [vmem:[%s2734_s25 + $0x80] sm:$0xff]  ;;  %v2106_v19 = vcombine.low %v809_v55, %v810_v3 }
  0x7d   : > { %1410 = vmatpush1.bf16.msra.mxu0 %v2347_v20  ;;  %1635 = vmatpush1.bf16.msra.mxu1 %v2347_v20  ;;  %v2085_v20 = vcombine.high %v812_v15, %v813_v16 }
  0x7e   : > { %1411 = vmatprep.subr.bf16.mxu0 %v2399_v1  ;;  %1636 = vmatprep.subr.bf16.mxu1 %v2399_v1 }
  0x7f   : > { %2087 = vmatprep.mubr.msk.bf16.mxu0 %vm456_vm0, %v2073_v21  ;;  %2111 = vmatprep.mubr.msk.bf16.mxu1 %vm456_vm0, %v2757_v22  ;;  %v2109_v21 = vcombine.high %v811_v5, %v812_v15 }
  0x81   : > { %1412 = vmatpush1.bf16.msra.mxu0 %v2350_v23  ;;  %1637 = vmatpush1.bf16.msra.mxu1 %v2350_v23  ;;  %v2084_v23 = vcombine.low %v812_v15, %v813_v16 }
  0x82   : > { %1413 = vmatprep.subr.bf16.mxu0 %v2399_v1  ;;  %1638 = vmatprep.subr.bf16.mxu1 %v2399_v1 }
  0x84   : > { %951 = vmatmul.mubr.bf16.gmra.mxu0 %v2072_v26  ;;  %1144 = vmatmul.mubr.bf16.gmra.mxu1 %v2769_v27 }
  0x85   : > { %1414 = vmatpush1.bf16.msra.mxu0 %v2353_v28  ;;  %1639 = vmatpush1.bf16.msra.mxu1 %v2353_v28 }
  0x86   : > { %2088 = vmatprep.mubr.msk.bf16.mxu0 %vm456_vm0, %v2075_v29  ;;  %2112 = vmatprep.mubr.msk.bf16.mxu1 %vm456_vm0, %v2776_v30 }
  0x87   : > { %1415 = vmatprep.subr.bf16.mxu0 %v2399_v1  ;;  %1640 = vmatprep.subr.bf16.mxu1 %v2399_v1 }
  0x89   : > { %1416 = vmatpush1.bf16.msra.mxu0 %v2358_v31  ;;  %1641 = vmatpush1.bf16.msra.mxu1 %v2358_v31 }
  0x8a   : > { %1417 = vmatprep.subr.bf16.mxu0 %v2399_v1  ;;  %1642 = vmatprep.subr.bf16.mxu1 %v2399_v1 }
  0x8c   : > { %959 = vmatmul.mubr.bf16.gmra.mxu0 %v2074_v34  ;;  %1152 = vmatmul.mubr.bf16.gmra.mxu1 %v2789_v36 }
  0x8d   : > { %2089 = vmatprep.mubr.msk.bf16.mxu0 %vm456_vm0, %v2077_v37  ;;  %2113 = vmatprep.mubr.msk.bf16.mxu1 %vm456_vm0, %v2792_v38 }
  0x8e   : > { %1418 = vmatpush1.bf16.msra.mxu0 %v2361_v40  ;;  %1643 = vmatpush1.bf16.msra.mxu1 %v2361_v40 }
  0x8f   : > { %1419 = vmatprep.subr.bf16.mxu0 %v2399_v1  ;;  %1644 = vmatprep.subr.bf16.mxu1 %v2399_v1 }
  0x92   : > { %1420 = vmatpush1.bf16.msra.mxu0 %v2364_v42  ;;  %1645 = vmatpush1.bf16.msra.mxu1 %v2364_v42 }
  0x93   : > { %1421 = vmatprep.subr.bf16.mxu0 %v2399_v1  ;;  %1646 = vmatprep.subr.bf16.mxu1 %v2399_v1 }
  0x94   : > { %967 = vmatmul.mubr.bf16.gmra.mxu0 %v2076_v46  ;;  %1160 = vmatmul.mubr.bf16.gmra.mxu1 %v2809_v48 }
  0x95   : > { %2090 = vmatprep.mubr.msk.bf16.mxu0 %vm456_vm0, %v2079_v49  ;;  %2114 = vmatprep.mubr.msk.bf16.mxu1 %vm456_vm0, %v2811_v50 }
  0x96   : > { %1422 = vmatpush1.bf16.msra.mxu0 %v2369_v52  ;;  %1647 = vmatpush1.bf16.msra.mxu1 %v2369_v52 }
  0x97   : > { %1423 = vmatprep.subr.bf16.mxu0 %v2399_v1  ;;  %1648 = vmatprep.subr.bf16.mxu1 %v2399_v1 }
  0x9a   : > { %1424 = vmatpush1.bf16.msra.mxu0 %v2372_v56  ;;  %1649 = vmatpush1.bf16.msra.mxu1 %v2372_v56 }
  0x9b   : > { %1433 = vmatprep.subr.bf16.mxu0 %v2399_v1  ;;  %1658 = vmatprep.subr.bf16.mxu1 %v2399_v1 }
  0x9c   : > { %975 = vmatmul.mubr.bf16.gmra.mxu0 %v2078_v58  ;;  %1168 = vmatmul.mubr.bf16.gmra.mxu1 %v2829_v60 }
  0x9d   : > { %2091 = vmatprep.mubr.msk.bf16.mxu0 %vm456_vm0, %v2081_v61  ;;  %2115 = vmatprep.mubr.msk.bf16.mxu1 %vm456_vm0, %v2831_v62 }
  0x9e   : > { %1434 = vmatpush2.bf16.msra.mxu0 %v2375_v0  ;;  %1659 = vmatpush2.bf16.msra.mxu1 %v2375_v0 }
  0x9f   : > { %1435 = vmatprep.subr.bf16.mxu0 %v2399_v1  ;;  %1660 = vmatprep.subr.bf16.mxu1 %v2399_v1 }
  0xa2   : > { %1436 = vmatpush2.bf16.msra.mxu0 %v2380_v7  ;;  %1661 = vmatpush2.bf16.msra.mxu1 %v2380_v7 }
  0xa3   : > { %1437 = vmatprep.subr.bf16.mxu0 %v2399_v1  ;;  %1662 = vmatprep.subr.bf16.mxu1 %v2399_v1 }
  0xa4   : > { %983 = vmatmul.mubr.bf16.gmra.mxu0 %v2080_v9  ;;  %1176 = vmatmul.mubr.bf16.gmra.mxu1 %v2104_v10 }
  0xa5   : > { %2092 = vmatprep.mubr.msk.bf16.mxu0 %vm456_vm0, %v2083_v11  ;;  %2116 = vmatprep.mubr.msk.bf16.mxu1 %vm456_vm0, %v2107_v12 }
  0xa6   : > { %1438 = vmatpush2.bf16.msra.mxu0 %v2383_v14  ;;  %1663 = vmatpush2.bf16.msra.mxu1 %v2383_v14 }
  0xa7   : > { %1439 = vmatprep.subr.bf16.mxu0 %v2399_v1  ;;  %1664 = vmatprep.subr.bf16.mxu1 %v2399_v1 }
  0xaa   : > { %1440 = vmatpush2.bf16.msra.mxu0 %v2386_v17  ;;  %1665 = vmatpush2.bf16.msra.mxu1 %v2386_v17 }
  0xac   : > { %991 = vmatmul.mubr.bf16.gmra.mxu0 %v2082_v18  ;;  %1184 = vmatmul.mubr.bf16.gmra.mxu1 %v2106_v19 }
  0xad   : > { %2093 = vmatprep.mubr.msk.bf16.mxu0 %vm456_vm0, %v2085_v20  ;;  %2117 = vmatprep.mubr.msk.bf16.mxu1 %vm456_vm0, %v2109_v21 }
  0xb4   : > { %999 = vmatmul.mubr.bf16.gmra.mxu0 %v2084_v23  ;;  %1192 = vmatmul.mubr.bf16.gmra.mxu1 %v2108_v24 }
  0xb5   : > { %2170 = vmatprep.mubr.msk.bf16.mxu0 %vm456_vm0, %v2620_v35  ;;  %2194 = vmatprep.mubr.msk.bf16.mxu1 %vm456_vm0, %v2757_v22  ;;  %v1215_v35 = vld [vmem:[%s2523_s20 + $0x88] sm:$0xff]  ;;  %s1973_s20 = sshll.u32 %s3078_s27, 2 }
  0xb6   : > { %s2920_s29 = scalar_lea.vmem %s3076_s4, %s1973_s20 }
  0xb7   : > { %1893 = vst [vmem:[%s2920_s29 + $0x3c] sm:$0xf] %v2399_v1  ;;  %1894 = vst [vmem:[%s2920_s29 + $0x40] sm:$0xf] %v2399_v1 }
  0xb8   : > { %1895 = vst [vmem:[%s2920_s29 + $0x44] sm:$0xf] %v2399_v1 }
  0xbc   : > { %1442 = vmatmul.mubr.bf16.vlgmr.msra.gmra.mxu0 %v2632_v39  ;;  %1667 = vmatmul.mubr.bf16.vlgmr.msra.gmra.mxu1 %v2769_v27  ;;  %v1537_v39 = vld [vmem:[%s2734_s25 + $0x88] sm:$0xff] }
  0xbd   : > { %2171 = vmatprep.mubr.msk.bf16.mxu0 %vm456_vm0, %v2637_v41  ;;  %2195 = vmatprep.mubr.msk.bf16.mxu1 %vm456_vm0, %v2776_v30  ;;  %v2157_v41 = vcombine.high %v2717_v4, %v1215_v35 }
  0xc4   : > { %1450 = vmatmul.mubr.bf16.gmra.mxu0 %v2649_v45  ;;  %1675 = vmatmul.mubr.bf16.gmra.mxu1 %v2789_v36  ;;  %v2193_v45 = vcombine.high %v813_v16, %v1537_v39 }
  0xc5   : > { %2172 = vmatprep.mubr.msk.bf16.mxu0 %vm456_vm0, %v2654_v47  ;;  %2196 = vmatprep.mubr.msk.bf16.mxu1 %vm456_vm0, %v2792_v38  ;;  %v2156_v47 = vcombine.low %v2717_v4, %v1215_v35 }
  0xcc   : > { %1458 = vmatmul.mubr.bf16.gmra.mxu0 %v2667_v51  ;;  %1683 = vmatmul.mubr.bf16.gmra.mxu1 %v2809_v48  ;;  %v2192_v51 = vcombine.low %v813_v16, %v1537_v39 }
  0xcd   : > { %2173 = vmatprep.mubr.msk.bf16.mxu0 %vm456_vm0, %v2670_v53  ;;  %2197 = vmatprep.mubr.msk.bf16.mxu1 %vm456_vm0, %v2811_v50 }
  0xd4   : > { %1466 = vmatmul.mubr.bf16.gmra.mxu0 %v2685_v57  ;;  %1691 = vmatmul.mubr.bf16.gmra.mxu1 %v2829_v60 }
  0xd5   : > { %2174 = vmatprep.mubr.msk.bf16.mxu0 %vm456_vm0, %v2687_v59  ;;  %2198 = vmatprep.mubr.msk.bf16.mxu1 %vm456_vm0, %v2831_v62 }
  0xdc   : > { %1474 = vmatmul.mubr.bf16.gmra.mxu0 %v2703_v63  ;;  %1699 = vmatmul.mubr.bf16.gmra.mxu1 %v2104_v10 }
  0xdd   : > { %2175 = vmatprep.mubr.msk.bf16.mxu0 %vm456_vm0, %v2705_v2  ;;  %2199 = vmatprep.mubr.msk.bf16.mxu1 %vm456_vm0, %v2107_v12 }
  0xe4   : > { %1482 = vmatmul.mubr.bf16.gmra.mxu0 %v2723_v6  ;;  %1707 = vmatmul.mubr.bf16.gmra.mxu1 %v2106_v19 }
  0xe5   : > { %2176 = vmatprep.mubr.msk.bf16.mxu0 %vm456_vm0, %v2726_v8  ;;  %2200 = vmatprep.mubr.msk.bf16.mxu1 %vm456_vm0, %v2109_v21 }
  0xec   : > { %1490 = vmatmul.mubr.bf16.gmra.mxu0 %v2747_v13  ;;  %1715 = vmatmul.mubr.bf16.gmra.mxu1 %v2108_v24 }
  0xed   : > { %2177 = vmatprep.mubr.msk.bf16.mxu0 %vm456_vm0, %v2157_v41  ;;  %2201 = vmatprep.mubr.msk.bf16.mxu1 %vm456_vm0, %v2193_v45 }
  0xf4   : > { %1498 = vmatmul.mubr.bf16.gmra.mxu0 %v2156_v47  ;;  %1723 = vmatmul.mubr.bf16.gmra.mxu1 %v2192_v51 }
  0xfc   : > { %v515_v53 = vpop.f32.mrf.mxu0  ;;  %v735_v57 = vpop.f32.mrf.mxu1 }
  0xfd   : > { %v2908_v59 = vadd.f32 %v735_v57, %v515_v53 }
  0xfe   : > { %v517_v63 = vpop.f32.mrf.mxu0  ;;  %v737_v2 = vpop.f32.mrf.mxu1 }
 0x100   : > { %v518_v6 = vpop.f32.mrf.mxu0  ;;  %v738_v8 = vpop.f32.mrf.mxu1 }
 0x101   : > { %v2910_v13 = vadd.f32 %v738_v8, %v518_v6 }
 0x102   : > { %v520_v22 = vpop.f32.mrf.mxu0  ;;  %v740_v25 = vpop.f32.mrf.mxu1 }
 0x104   : > { %v523_v26 = vpop.f32.mrf.mxu0  ;;  %v743_v27 = vpop.f32.mrf.mxu1 }
 0x105   : > { %v2912_v28 = vadd.f32 %v743_v27, %v523_v26 }
 0x106   : > { %v525_v4 = vpop.f32.mrf.mxu0  ;;  %v745_v29 = vpop.f32.mrf.mxu1 }
 0x108   : > { %v526_v30 = vpop.f32.mrf.mxu0  ;;  %v746_v31 = vpop.f32.mrf.mxu1 }
 0x109   : > { %v2914_v32 = vadd.f32 %v746_v31, %v526_v30 }
 0x10a   : > { %v528_v33 = vpop.f32.mrf.mxu0  ;;  %v748_v34 = vpop.f32.mrf.mxu1 }
 0x10c   : > { %v531_v36 = vpop.f32.mrf.mxu0  ;;  %v751_v37 = vpop.f32.mrf.mxu1 }
 0x10d   : > { %v2928_v38 = vadd.f32 %v751_v37, %v531_v36 }
 0x10e   : > { %v533_v40 = vpop.f32.mrf.mxu0  ;;  %v753_v42 = vpop.f32.mrf.mxu1 }
 0x110   : > { %v534_v43 = vpop.f32.mrf.mxu0  ;;  %v754_v44 = vpop.f32.mrf.mxu1 }
 0x111   : > { %v2930_v46 = vadd.f32 %v754_v44, %v534_v43 }
 0x112   : > { %v536_v48 = vpop.f32.mrf.mxu0  ;;  %v756_v49 = vpop.f32.mrf.mxu1 }
 0x114   : > { %v539_v50 = vpop.f32.mrf.mxu0  ;;  %v759_v52 = vpop.f32.mrf.mxu1 }
 0x115   : > { %v2932_v54 = vadd.f32 %v759_v52, %v539_v50 }
 0x116   : > { %v541_v55 = vpop.f32.mrf.mxu0  ;;  %v761_v56 = vpop.f32.mrf.mxu1 }
 0x118   : > { %v542_v58 = vpop.f32.mrf.mxu0  ;;  %v762_v60 = vpop.f32.mrf.mxu1 }
 0x119   : > { %v2934_v1 = vadd.f32 %v762_v60, %v542_v58 }
 0x11a   : > { %v544_v61 = vpop.f32.mrf.mxu0  ;;  %v764_v62 = vpop.f32.mrf.mxu1 }
 0x11c   : > { %v547_v0 = vpop.f32.mrf.mxu0  ;;  %v767_v3 = vpop.f32.mrf.mxu1 }
 0x11d   : > { %v2936_v5 = vadd.f32 %v767_v3, %v547_v0 }
 0x11e   : > { %v549_v7 = vpop.f32.mrf.mxu0  ;;  %v769_v9 = vpop.f32.mrf.mxu1 }
 0x120   : > { %v550_v10 = vpop.f32.mrf.mxu0  ;;  %v770_v11 = vpop.f32.mrf.mxu1 }
 0x121   : > { %v2938_v12 = vadd.f32 %v770_v11, %v550_v10 }
 0x122   : > { %v552_v14 = vpop.f32.mrf.mxu0  ;;  %v772_v15 = vpop.f32.mrf.mxu1 }
 0x124   : > { %v555_v16 = vpop.f32.mrf.mxu0  ;;  %v775_v17 = vpop.f32.mrf.mxu1 }
 0x125   : > { %v2940_v18 = vadd.f32 %v775_v17, %v555_v16 }
 0x126   : > { %v557_v19 = vpop.f32.mrf.mxu0  ;;  %v777_v20 = vpop.f32.mrf.mxu1 }
 0x128   : > { %v558_v21 = vpop.f32.mrf.mxu0  ;;  %v778_v23 = vpop.f32.mrf.mxu1 }
 0x129   : > { %v2942_v24 = vadd.f32 %v778_v23, %v558_v21 }
 0x12a   : > { %v560_v35 = vpop.f32.mrf.mxu0  ;;  %v780_v39 = vpop.f32.mrf.mxu1 }
 0x12c   : > { %v563_v41 = vpop.f32.mrf.mxu0  ;;  %v783_v45 = vpop.f32.mrf.mxu1 }
 0x12d   : > { %v2944_v47 = vadd.f32 %v783_v45, %v563_v41 }
 0x12e   : > { %v565_v51 = vpop.f32.mrf.mxu0  ;;  %v785_v53 = vpop.f32.mrf.mxu1 }
 0x130   : > { %v566_v57 = vpop.f32.mrf.mxu0  ;;  %v786_v63 = vpop.f32.mrf.mxu1 }
 0x131   : > { %v2946_v2 = vadd.f32 %v786_v63, %v566_v57 }
 0x132   : > { %v568_v6 = vpop.f32.mrf.mxu0  ;;  %v788_v8 = vpop.f32.mrf.mxu1 }
 0x134   : > { %v571_v22 = vpop.f32.mrf.mxu0  ;;  %v791_v25 = vpop.f32.mrf.mxu1 }
 0x135   : > { %v2948_v26 = vadd.f32 %v791_v25, %v571_v22 }
 0x136   : > { %v573_v27 = vpop.f32.mrf.mxu0  ;;  %v793_v4 = vpop.f32.mrf.mxu1 }
 0x138   : > { %v574_v29 = vpop.f32.mrf.mxu0  ;;  %v794_v30 = vpop.f32.mrf.mxu1 }
 0x139   : > { %v2950_v31 = vadd.f32 %v794_v30, %v574_v29 }
 0x13a   : > { %v576_v33 = vpop.f32.mrf.mxu0  ;;  %v796_v34 = vpop.f32.mrf.mxu1 }
 0x13c   : > { %v944_v36 = vpop.f32.mrf.mxu0  ;;  %v1137_v37 = vpop.f32.mrf.mxu1 }
 0x13d   : > { %v2952_v40 = vadd.f32 %v1137_v37, %v944_v36 }
 0x13e   : > { %v946_v42 = vpop.f32.mrf.mxu0  ;;  %v1139_v43 = vpop.f32.mrf.mxu1 }
 0x140   : > { %v947_v44 = vpop.f32.mrf.mxu0  ;;  %v1140_v48 = vpop.f32.mrf.mxu1 }
 0x141   : > { %v2954_v49 = vadd.f32 %v1140_v48, %v947_v44 }
 0x142   : > { %v949_v50 = vpop.f32.mrf.mxu0  ;;  %v1142_v52 = vpop.f32.mrf.mxu1 }
 0x144   : > { %v2956_v55 = vpop.f32.mrf.mxu0  ;;  %v2958_v56 = vpop.f32.mrf.mxu1 }
 0x146   : > { %v954_v58 = vpop.f32.mrf.mxu0  ;;  %v1147_v60 = vpop.f32.mrf.mxu1 }
 0x148   : > { %v955_v61 = vpop.f32.mrf.mxu0  ;;  %v1148_v62 = vpop.f32.mrf.mxu1 }
 0x149   : > { %v2960_v0 = vadd.f32 %v1148_v62, %v955_v61 }
 0x14a   : > { %v957_v3 = vpop.f32.mrf.mxu0  ;;  %v1150_v7 = vpop.f32.mrf.mxu1 }
 0x14c   : > { %v2962_v9 = vpop.f32.mrf.mxu0  ;;  %v2964_v10 = vpop.f32.mrf.mxu1 }
 0x14e   : > { %v962_v11 = vpop.f32.mrf.mxu0  ;;  %v1155_v14 = vpop.f32.mrf.mxu1 }
 0x150   : > { %v963_v15 = vpop.f32.mrf.mxu0  ;;  %v1156_v16 = vpop.f32.mrf.mxu1 }
 0x151   : > { %v2966_v17 = vadd.f32 %v1156_v16, %v963_v15 }
 0x152   : > { %v965_v19 = vpop.f32.mrf.mxu0  ;;  %v1158_v20 = vpop.f32.mrf.mxu1 }
 0x154   : > { %v2968_v21 = vpop.f32.mrf.mxu0  ;;  %v2970_v23 = vpop.f32.mrf.mxu1 }
 0x156   : > { %v970_v35 = vpop.f32.mrf.mxu0  ;;  %v1163_v39 = vpop.f32.mrf.mxu1 }
 0x158   : > { %v971_v41 = vpop.f32.mrf.mxu0  ;;  %v1164_v45 = vpop.f32.mrf.mxu1 }
 0x159   : > { %v2972_v51 = vadd.f32 %v1164_v45, %v971_v41 }
 0x15a   : > { %v973_v53 = vpop.f32.mrf.mxu0  ;;  %v1166_v57 = vpop.f32.mrf.mxu1 }
 0x15c   : > { %v2974_v63 = vpop.f32.mrf.mxu0  ;;  %v2976_v6 = vpop.f32.mrf.mxu1 }
 0x15e   : > { %v978_v8 = vpop.f32.mrf.mxu0  ;;  %v1171_v22 = vpop.f32.mrf.mxu1 }
 0x160   : > { %v979_v25 = vpop.f32.mrf.mxu0  ;;  %v1172_v27 = vpop.f32.mrf.mxu1 }
 0x161   : > { %v2978_v4 = vadd.f32 %v1172_v27, %v979_v25 }
 0x162   : > { %v981_v29 = vpop.f32.mrf.mxu0  ;;  %v1174_v30 = vpop.f32.mrf.mxu1 }
 0x164   : > { %v2980_v33 = vpop.f32.mrf.mxu0  ;;  %v2982_v34 = vpop.f32.mrf.mxu1 }
 0x166   : > { %v986_v36 = vpop.f32.mrf.mxu0  ;;  %v1179_v37 = vpop.f32.mrf.mxu1 }
 0x167   : > { %v3005_v36 = vld [vmem:[%s3075_s3] ss:$0 sm:$0xff] }
 0x168   : > { %v987_v42 = vpop.f32.mrf.mxu0  ;;  %v1180_v43 = vpop.f32.mrf.mxu1 }
 0x169   : > { %v2984_v44 = vadd.f32 %v1180_v43, %v987_v42 }
 0x16a   : > { %v989_v48 = vpop.f32.mrf.mxu0  ;;  %v1182_v50 = vpop.f32.mrf.mxu1 }
 0x16c   : > { %v2986_v52 = vpop.f32.mrf.mxu0  ;;  %v2988_v58 = vpop.f32.mrf.mxu1 }
 0x16e   : > { %v994_v60 = vpop.f32.mrf.mxu0  ;;  %v1187_v61 = vpop.f32.mrf.mxu1 }
 0x170   : > { %v995_v62 = vpop.f32.mrf.mxu0  ;;  %v1188_v3 = vpop.f32.mrf.mxu1 }
 0x171   : > { %v2990_v7 = vadd.f32 %v1188_v3, %v995_v62 }
 0x172   : > { %v997_v11 = vpop.f32.mrf.mxu0  ;;  %v1190_v14 = vpop.f32.mrf.mxu1 }
 0x174   : > { %v2992_v15 = vpop.f32.mrf.mxu0  ;;  %v2994_v16 = vpop.f32.mrf.mxu1 }
 0x176   : > { %v1002_v19 = vpop.f32.mrf.mxu0  ;;  %v1195_v20 = vpop.f32.mrf.mxu1 }
 0x178   : > { %v2996_v35 = vpop.f32.mrf.mxu0  ;;  %v2998_v39 = vpop.f32.mrf.mxu1 }
 0x17a   : > { %v1005_v41 = vpop.f32.mrf.mxu0  ;;  %v1198_v45 = vpop.f32.mrf.mxu1 }
 0x17c   : > { %v1443_v53 = vpop.f32.mrf.mxu0  ;;  %v1668_v8 = vpop.f32.mrf.mxu1 }
 0x17d   : > { %v1506_v57 = vadd.f32 %v1443_v53, %v2908_v59  ;;  %v1731_v22 = vadd.f32 %v1668_v8, %v2952_v40  ;;  %v1146_v59 = vadd.f32 %v2958_v56, %v2956_v55 }
 0x17e   : > { %v1445_v25 = vpop.f32.mrf.mxu0  ;;  %v1670_v27 = vpop.f32.mrf.mxu1 }
 0x17f   : > { %v1747_v29 = vmax.f32 %v1506_v57, %v1731_v22  ;;  %v1154_v25 = vadd.f32 %v2964_v10, %v2962_v9 }
 0x180   : > { %v1446_v30 = vpop.f32.mrf.mxu0  ;;  %v1671_v42 = vpop.f32.mrf.mxu1 }
 0x181   : > { %v1507_v37 = vadd.f32 %v1446_v30, %v2910_v13  ;;  %v1732_v43 = vadd.f32 %v1671_v42, %v2954_v49  ;;  %v1770_v40 = vadd.f32 %v3005_v36, %v1747_v29 }
 0x182   : > { %v1448_v48 = vpop.f32.mrf.mxu0  ;;  %v1673_v50 = vpop.f32.mrf.mxu1 }
 0x183   : > { %v1748_v60 = vmax.f32 %v1507_v37, %v1732_v43  ;;  %v1786_v20 = vmax.f32 %v1770_v40, 0.0 }
 0x184   : > { %v1451_v61 = vpop.f32.mrf.mxu0  ;;  %v1676_v3 = vpop.f32.mrf.mxu1 }
 0x185   : > { %v1508_v62 = vadd.f32 %v1451_v61, %v2912_v28  ;;  %v1771_v11 = vadd.f32 %v3005_v36, %v1748_v60  ;;  %v1733_v14 = vadd.f32 %v1676_v3, %v1146_v59 }
 0x186   : > { %v1453_v19 = vpop.f32.mrf.mxu0  ;;  %v1678_v13 = vpop.f32.mrf.mxu1 }
 0x187   : > { %v1787_v41 = vmax.f32 %v1771_v11, 0.0  ;;  %v1749_v49 = vmax.f32 %v1508_v62, %v1733_v14  ;;  %v1162_v19 = vadd.f32 %v2970_v23, %v2968_v21 }
 0x188   : > { %v1454_v45 = vpop.f32.mrf.mxu0  ;;  %v1679_v57 = vpop.f32.mrf.mxu1 }
 0x189   : > { %v1509_v53 = vadd.f32 %v1454_v45, %v2914_v32  ;;  %v1802_v55 = vmax.f32 %v1786_v20, %v1787_v41  ;;  %v1772_v56 = vadd.f32 %v3005_v36, %v1749_v49  ;;  %v1734_v8 = vadd.f32 %v1679_v57, %v2960_v0 }
 0x18a   : > { %v1456_v22 = vpop.f32.mrf.mxu0  ;;  %v1681_v28 = vpop.f32.mrf.mxu1 }
 0x18b   : > { %v1788_v27 = vmax.f32 %v1772_v56, 0.0  ;;  %v1750_v29 = vmax.f32 %v1509_v53, %v1734_v8 }
 0x18c   : > { %v1459_v30 = vpop.f32.mrf.mxu0  ;;  %v1684_v42 = vpop.f32.mrf.mxu1 }
 0x18d   : > { %v1510_v37 = vadd.f32 %v1459_v30, %v2928_v38  ;;  %v1803_v43 = vmax.f32 %v1787_v41, %v1788_v27  ;;  %v1773_v32 = vadd.f32 %v3005_v36, %v1750_v29  ;;  %v1735_v48 = vadd.f32 %v1684_v42, %v1154_v25 }
 0x18e   : > { %v1461_v50 = vpop.f32.mrf.mxu0  ;;  %v1686_v59 = vpop.f32.mrf.mxu1 }
 0x18f   : > { %v2240_v40 = vpack.c.bf16 %v1803_v43, %v1802_v55  ;;  %v1789_v0 = vmax.f32 %v1773_v32, 0.0  ;;  %v1751_v60 = vmax.f32 %v1510_v37, %v1735_v48  ;;  %v1170_v37 = vadd.f32 %v2976_v6, %v2974_v63 }
 0x190   : > { %v1462_v61 = vpop.f32.mrf.mxu0  ;;  %v1687_v9 = vpop.f32.mrf.mxu1 }
 0x191   : > { %v1511_v62 = vadd.f32 %v1462_v61, %v2930_v46  ;;  %2241 = vst [vmem:[%s2920_s29] sm:$0xff] %v2240_v40   ;;  %v1804_v10 = vmax.f32 %v1788_v27, %v1789_v0  ;;  %v1774_v3 = vadd.f32 %v3005_v36, %v1751_v60  ;;  %v1736_v38 = vadd.f32 %v1687_v9, %v2966_v17 }
 0x192   : > { %v1464_v11 = vpop.f32.mrf.mxu0  ;;  %v1689_v14 = vpop.f32.mrf.mxu1 }
 0x193   : > { %v1790_v13 = vmax.f32 %v1774_v3, 0.0  ;;  %v1752_v20 = vmax.f32 %v1511_v62, %v1736_v38  ;;  %v1178_v14 = vadd.f32 %v2982_v34, %v2980_v33 }
 0x194   : > { %v1467_v41 = vpop.f32.mrf.mxu0  ;;  %v1692_v45 = vpop.f32.mrf.mxu1 }
 0x195   : > { %v1512_v49 = vadd.f32 %v1467_v41, %v2932_v54  ;;  %v1805_v46 = vmax.f32 %v1789_v0, %v1790_v13  ;;  %v1775_v53 = vadd.f32 %v3005_v36, %v1752_v20  ;;  %v1737_v57 = vadd.f32 %v1692_v45, %v1162_v19 }
 0x196   : > { %v1469_v55 = vpop.f32.mrf.mxu0  ;;  %v1694_v56 = vpop.f32.mrf.mxu1 }
 0x197   : > { %v2245_v8 = vpack.c.bf16 %v1805_v46, %v1804_v10  ;;  %v1791_v17 = vmax.f32 %v1775_v53, 0.0  ;;  %v1753_v22 = vmax.f32 %v1512_v49, %v1737_v57 }
 0x198   : > { %v1470_v28 = vpop.f32.mrf.mxu0  ;;  %v1695_v21 = vpop.f32.mrf.mxu1 }
 0x199   : > { %v1513_v25 = vadd.f32 %v1470_v28, %v2934_v1  ;;  %2272 = vst [vmem:[%s2920_s29 + $0x8] sm:$0xff] %v2245_v8   ;;  %v1806_v23 = vmax.f32 %v1790_v13, %v1791_v17  ;;  %v1776_v27 = vadd.f32 %v3005_v36, %v1753_v22  ;;  %v1738_v54 = vadd.f32 %v1695_v21, %v2972_v51 }
 0x19a   : > { %v1472_v29 = vpop.f32.mrf.mxu0  ;;  %v1697_v30 = vpop.f32.mrf.mxu1  ;;  %v1186_v21 = vadd.f32 %v2988_v58, %v2986_v52 }
 0x19b   : > { %v1792_v42 = vmax.f32 %v1776_v27, 0.0  ;;  %v1754_v43 = vmax.f32 %v1513_v25, %v1738_v54 }
 0x19c   : > { %v1475_v32 = vpop.f32.mrf.mxu0  ;;  %v1700_v50 = vpop.f32.mrf.mxu1 }
 0x19d   : > { %v1514_v48 = vadd.f32 %v1475_v32, %v2936_v5  ;;  %v1807_v1 = vmax.f32 %v1791_v17, %v1792_v42  ;;  %v1777_v59 = vadd.f32 %v3005_v36, %v1754_v43  ;;  %v1739_v40 = vadd.f32 %v1700_v50, %v1170_v37 }
 0x19e   : > { %v1477_v0 = vpop.f32.mrf.mxu0  ;;  %v1702_v60 = vpop.f32.mrf.mxu1 }
 0x19f   : > { %v2250_v61 = vpack.c.bf16 %v1807_v1, %v1806_v23  ;;  %v1793_v51 = vmax.f32 %v1777_v59, 0.0  ;;  %v1755_v62 = vmax.f32 %v1514_v48, %v1739_v40 }
 0x1a0   : > { %v1478_v9 = vpop.f32.mrf.mxu0  ;;  %v1703_v63 = vpop.f32.mrf.mxu1 }
 0x1a1   : > { %v1515_v10 = vadd.f32 %v1478_v9, %v2938_v12  ;;  %2273 = vst [vmem:[%s2920_s29 + $0x10] sm:$0xff] %v2250_v61   ;;  %v1808_v6 = vmax.f32 %v1792_v42, %v1793_v51  ;;  %v1778_v3 = vadd.f32 %v3005_v36, %v1755_v62  ;;  %v1740_v5 = vadd.f32 %v1703_v63, %v2978_v4 }
 0x1a2   : > { %v1480_v38 = vpop.f32.mrf.mxu0  ;;  %v1705_v11 = vpop.f32.mrf.mxu1  ;;  %v1194_v61 = vadd.f32 %v2994_v16, %v2992_v15 }
 0x1a3   : > { %v1794_v19 = vmax.f32 %v1778_v3, 0.0  ;;  %v1756_v13 = vmax.f32 %v1515_v10, %v1740_v5 }
 0x1a4   : > { %v1483_v20 = vpop.f32.mrf.mxu0  ;;  %v1708_v49 = vpop.f32.mrf.mxu1 }
 0x1a5   : > { %v1516_v41 = vadd.f32 %v1483_v20, %v2940_v18  ;;  %v1809_v12 = vmax.f32 %v1793_v51, %v1794_v19  ;;  %v1779_v45 = vadd.f32 %v3005_v36, %v1756_v13  ;;  %v1741_v46 = vadd.f32 %v1708_v49, %v1178_v14 }
 0x1a6   : > { %v1485_v53 = vpop.f32.mrf.mxu0  ;;  %v1710_v57 = vpop.f32.mrf.mxu1 }
 0x1a7   : > { %v2255_v55 = vpack.c.bf16 %v1809_v12, %v1808_v6  ;;  %v1795_v4 = vmax.f32 %v1779_v45, 0.0  ;;  %v1757_v56 = vmax.f32 %v1516_v41, %v1741_v46 }
 0x1a8   : > { %v1486_v8 = vpop.f32.mrf.mxu0  ;;  %v1711_v33 = vpop.f32.mrf.mxu1 }
 0x1a9   : > { %v1517_v17 = vadd.f32 %v1486_v8, %v2942_v24  ;;  %2274 = vst [vmem:[%s2920_s29 + $0x18] sm:$0xff] %v2255_v55   ;;  %v1810_v34 = vmax.f32 %v1794_v19, %v1795_v4  ;;  %v1780_v22 = vadd.f32 %v3005_v36, %v1757_v56  ;;  %v1742_v18 = vadd.f32 %v1711_v33, %v2984_v44 }
 0x1aa   : > { %v1488_v28 = vpop.f32.mrf.mxu0  ;;  %v1713_v25 = vpop.f32.mrf.mxu1 }
 0x1ab   : > { %v1796_v23 = vmax.f32 %v1780_v22, 0.0  ;;  %v1758_v27 = vmax.f32 %v1517_v17, %v1742_v18 }
 0x1ac   : > { %v1491_v54 = vpop.f32.mrf.mxu0  ;;  %v1716_v30 = vpop.f32.mrf.mxu1 }
 0x1ad   : > { %v1518_v29 = vadd.f32 %v1491_v54, %v2944_v47  ;;  %v1811_v24 = vmax.f32 %v1795_v4, %v1796_v23  ;;  %v1781_v37 = vadd.f32 %v3005_v36, %v1758_v27  ;;  %v1743_v42 = vadd.f32 %v1716_v30, %v1186_v21 }
 0x1ae   : > { %v1493_v43 = vpop.f32.mrf.mxu0  ;;  %v1718_v32 = vpop.f32.mrf.mxu1 }
 0x1af   : > { %v2260_v48 = vpack.c.bf16 %v1811_v24, %v1810_v34  ;;  %v1797_v44 = vmax.f32 %v1781_v37, 0.0  ;;  %v1759_v50 = vmax.f32 %v1518_v29, %v1743_v42 }
 0x1b0   : > { %v1494_v1 = vpop.f32.mrf.mxu0  ;;  %v1719_v52 = vpop.f32.mrf.mxu1 }
 0x1b1   : > { %v1519_v59 = vadd.f32 %v1494_v1, %v2946_v2  ;;  %2275 = vst [vmem:[%s2920_s29 + $0x20] sm:$0xff] %v2260_v48   ;;  %v1812_v58 = vmax.f32 %v1796_v23, %v1797_v44  ;;  %v1782_v40 = vadd.f32 %v3005_v36, %v1759_v50  ;;  %v1744_v47 = vadd.f32 %v1719_v52, %v2990_v7 }
 0x1b2   : > { %v1496_v0 = vpop.f32.mrf.mxu0  ;;  %v1721_v60 = vpop.f32.mrf.mxu1  ;;  %v1197_v7 = vadd.f32 %v2998_v39, %v2996_v35 }
 0x1b3   : > { %v1798_v51 = vmax.f32 %v1782_v40, 0.0  ;;  %v1760_v62 = vmax.f32 %v1519_v59, %v1744_v47 }
 0x1b4   : > { %v1499_v9 = vpop.f32.mrf.mxu0  ;;  %v1724_v63 = vpop.f32.mrf.mxu1 }
 0x1b5   : > { %v1520_v10 = vadd.f32 %v1499_v9, %v2948_v26  ;;  %v1813_v2 = vmax.f32 %v1797_v44, %v1798_v51  ;;  %v1783_v6 = vadd.f32 %v3005_v36, %v1760_v62  ;;  %v1745_v3 = vadd.f32 %v1724_v63, %v1194_v61 }
 0x1b6   : > { %v1501_v5 = vpop.f32.mrf.mxu0  ;;  %v1726_v38 = vpop.f32.mrf.mxu1 }
 0x1b7   : > { %v2265_v11 = vpack.c.bf16 %v1813_v2, %v1812_v58  ;;  %v1799_v14 = vmax.f32 %v1783_v6, 0.0  ;;  %v1761_v19 = vmax.f32 %v1520_v10, %v1745_v3 }
 0x1b8   : > { %v1502_v15 = vpop.f32.mrf.mxu0  ;;  %v1727_v13 = vpop.f32.mrf.mxu1 }
 0x1b9   : > { %v1521_v16 = vadd.f32 %v1502_v15, %v2950_v31  ;;  %2276 = vst [vmem:[%s2920_s29 + $0x28] sm:$0xff] %v2265_v11   ;;  %v1814_v26 = vmax.f32 %v1798_v51, %v1799_v14  ;;  %v1784_v20 = vadd.f32 %v3005_v36, %v1761_v19  ;;  %v1746_v41 = vadd.f32 %v1727_v13, %v1197_v7 }
 0x1ba   : > { %v1504_v49 = vpop.f32.mrf.mxu0  ;;  %v1729_v12 = vpop.f32.mrf.mxu1 }
 0x1bb   : > { %v1800_v45 = vmax.f32 %v1784_v20, 0.0  ;;  %v1762_v46 = vmax.f32 %v1521_v16, %v1746_v41 }
 0x1bd   : > { %v1815_v53 = vmax.f32 %v1799_v14, %v1800_v45  ;;  %v1785_v35 = vadd.f32 %v3005_v36, %v1762_v46 }
 0x1bf   : > { %v2270_v39 = vpack.c.bf16 %v1815_v53, %v1814_v26  ;;  %v1801_v57 = vmax.f32 %v1785_v35, 0.0 }
 0x1c1   : > { %2277 = vst [vmem:[%s2920_s29 + $0x30] sm:$0xff] %v2270_v39   ;;  %v1816_v55 = vmax.f32 %v1800_v45, %v1801_v57 }
 0x1c3   : > { %v2236_v4 = vpack.c.bf16 %v1816_v55, %v1816_v55 }
 0x1c5   : > { %1892 = vst [vmem:[%s2920_s29 + $0x38] sm:$0xf] %v2236_v4 }
 0x1c6 PF: > { %s14_s15 = sadd.s32 1, %s2397_s15  }
 0x1c7   : > { %p11_p4 = scmp.ge.s32.totalorder %s14_s15, 4  }
 0x1c9   :  { %13 = sbr.rel (!%p11_p4) target bundleno = 1 (0x1), region = 71 }

// kernel: netconv_forward.5
= control target key start
LH: loop header
LB: loop body
LE: loop exit
PB: predicated region body
PF: predicated region fallthrough
CT: control target
= control target key end

     0   :  { %v2367_v28 = vlaneseq  ;;  %v17144_v36 = vmov 1966171168   ;;  %s20969_s0 = inlined_call_operand.vmem [shape: bf16[2,18432], index: 0, kind: input, shape index: {}]   ;;  %s20970_s1 = inlined_call_operand.vmem [shape: bf16[18432,10], index: 1, kind: input, shape index: {}]   ;;  %s20971_s2 = inlined_call_operand.vmem [shape: f32[1,10], index: 2, kind: input, shape index: {}]   ;;  %s20972_s3 = inlined_call_operand.hbm [shape: f32[2,10], index: 3, kind: output, shape index: {}]  }
   0x1   :  { %v15948_v0 = vld [vmem:[%s20970_s1 + $0x78] sm:$0xff]   ;;  %v15952_v4 = vld [vmem:[%s20970_s1 + $0x70] sm:$0xff]   ;;  %v15956_v8 = vld [vmem:[%s20970_s1 + $0x68] sm:$0xff]   ;;  %v2365_v37 = vunpack.c.l.s4 %v17144_v36 }
   0x2   :  { %v15949_v1 = vld [vmem:[%s20970_s1 + $0xf8] sm:$0xff]   ;;  %14362 = vmatprep.subr.bf16.mxu0 %v15948_v0  ;;  %v15953_v5 = vld [vmem:[%s20970_s1 + $0xf0] sm:$0xff]   ;;  %v15957_v9 = vld [vmem:[%s20970_s1 + $0xe8] sm:$0xff]   ;;  %v2368_v33 = vshrl.u32 %v2367_v28, 7 }
   0x3   :  { %v15950_v2 = vld [vmem:[%s20970_s1 + $0x38] sm:$0xff]   ;;  %14384 = vmatprep.subr.bf16.mxu1 %v15949_v1  ;;  %v15954_v6 = vld [vmem:[%s20970_s1 + $0x30] sm:$0xff]   ;;  %v15958_v10 = vld [vmem:[%s20970_s1 + $0x28] sm:$0xff]   ;;  %v2366_v40 = vunpack.c.0.s8 %v2365_v37 }
   0x4   :  { %v15951_v3 = vld [vmem:[%s20970_s1 + $0xb8] sm:$0xff]   ;;  %14363 = vmatpush3.bf16.msra.mxu0 %v15950_v2  ;;  %v15955_v7 = vld [vmem:[%s20970_s1 + $0xb0] sm:$0xff]   ;;  %v15959_v11 = vld [vmem:[%s20970_s1 + $0xa8] sm:$0xff]  }
   0x5   :  { %14385 = vmatpush3.bf16.msra.mxu1 %v15951_v3  ;;  %14364 = vmatprep.subr.bf16.mxu0 %v15952_v4  ;;  %v15960_v12 = vld [vmem:[%s20970_s1 + $0x60] sm:$0xff]   ;;  %v15964_v16 = vld [vmem:[%s20970_s1 + $0x58] sm:$0xff]   ;;  %v15968_v20 = vld [vmem:[%s20970_s1 + $0x50] sm:$0xff]   ;;  %v17271_v41 = vsub.s32 %v2366_v40, %v2368_v33 }
   0x6   :  { %14386 = vmatprep.subr.bf16.mxu1 %v15953_v5  ;;  %v15961_v13 = vld [vmem:[%s20970_s1 + $0xe0] sm:$0xff]   ;;  %v15965_v17 = vld [vmem:[%s20970_s1 + $0xd8] sm:$0xff]   ;;  %v15969_v21 = vld [vmem:[%s20970_s1 + $0xd0] sm:$0xff]  }
   0x7   :  { %v15962_v14 = vld [vmem:[%s20970_s1 + $0x20] sm:$0xff]   ;;  %v15966_v18 = vld [vmem:[%s20970_s1 + $0x18] sm:$0xff]   ;;  %v15970_v22 = vld [vmem:[%s20970_s1 + $0x10] sm:$0xff]  }
   0x8   :  { %14365 = vmatpush3.bf16.msra.mxu0 %v15954_v6  ;;  %v15963_v15 = vld [vmem:[%s20970_s1 + $0xa0] sm:$0xff]   ;;  %v15967_v19 = vld [vmem:[%s20970_s1 + $0x98] sm:$0xff]   ;;  %v15971_v23 = vld [vmem:[%s20970_s1 + $0x90] sm:$0xff]  }
   0x9   :  { %14387 = vmatpush3.bf16.msra.mxu1 %v15955_v7  ;;  %14366 = vmatprep.subr.bf16.mxu0 %v15956_v8  ;;  %v15972_v24 = vld [vmem:[%s20970_s1 + $0x48] sm:$0xff]   ;;  %v15976_v29 = vld [vmem:[%s20970_s1 + $0x40] sm:$0xff]   ;;  %v15981_v35 = vld [vmem:[%s20970_s1 + $0x178] sm:$0xff]  }
   0xa   :  { %14388 = vmatprep.subr.bf16.mxu1 %v15957_v9  ;;  %v15973_v25 = vld [vmem:[%s20970_s1 + $0xc8] sm:$0xff]   ;;  %v15977_v30 = vld [vmem:[%s20970_s1 + $0xc0] sm:$0xff]   ;;  %v15982_v38 = vld [vmem:[%s20970_s1 + $0x1f8] sm:$0xff]  }
   0xb   :  { %v15974_v26 = vld [vmem:[%s20970_s1 + $0x8] sm:$0xff]   ;;  %v15978_v31 = vld [vmem:[%s20970_s1] sm:$0xff]   ;;  %v15983_v47 = vld [vmem:[%s20970_s1 + $0x138] sm:$0xff]  }
   0xc   :  { %14367 = vmatpush3.bf16.msra.mxu0 %v15958_v10  ;;  %v15975_v27 = vld [vmem:[%s20970_s1 + $0x88] sm:$0xff]   ;;  %v15979_v32 = vld [vmem:[%s20970_s1 + $0x80] sm:$0xff]   ;;  %v15984_v49 = vld [vmem:[%s20970_s1 + $0x1b8] sm:$0xff]  }
   0xd   :  { %14389 = vmatpush3.bf16.msra.mxu1 %v15959_v11  ;;  %14368 = vmatprep.subr.bf16.mxu0 %v15960_v12  ;;  %v16_v34 = vld [vmem:[%s20969_s0] sm:$0xff]  ;;  %v15985_v52 = vld [vmem:[%s20970_s1 + $0x170] sm:$0xff]   ;;  %v15989_v58 = vld [vmem:[%s20970_s1 + $0x168] sm:$0xff]  }
   0xe   :  { %14390 = vmatprep.subr.bf16.mxu1 %v15961_v13  ;;  %v2363_v39 = vcombine.high %v16_v34, %v16_v34  ;;  %v2370_v42 = vrot.slane %v16_v34, %v17271_v41  ;;  %v15986_v54 = vld [vmem:[%s20970_s1 + $0x1f0] sm:$0xff]   ;;  %v15990_v59 = vld [vmem:[%s20970_s1 + $0x1e8] sm:$0xff]   ;;  %v15993_v62 = vld [vmem:[%s20970_s1 + $0x160] sm:$0xff]  }
   0xf   :  { %v15987_v55 = vld [vmem:[%s20970_s1 + $0x130] sm:$0xff]   ;;  %v15991_v60 = vld [vmem:[%s20970_s1 + $0x128] sm:$0xff]   ;;  %v15994_v63 = vld [vmem:[%s20970_s1 + $0x1e0] sm:$0xff]  }
  0x10   :  { %14369 = vmatpush3.bf16.msra.mxu0 %v15962_v14  ;;  %v17275_v43 = vrot.slane %v2363_v39, %v17271_v41  ;;  %v2378_v44 = vcombine.high %v2370_v42, %v2370_v42  ;;  %v2386_v45 = vrot.slane %v2370_v42, %v17271_v41  ;;  %v15988_v57 = vld [vmem:[%s20970_s1 + $0x1b0] sm:$0xff]   ;;  %v15992_v61 = vld [vmem:[%s20970_s1 + $0x1a8] sm:$0xff]   ;;  %v15995_v0 = vld [vmem:[%s20970_s1 + $0x120] sm:$0xff]  }
  0x11   :  { %14391 = vmatpush3.bf16.msra.mxu1 %v15963_v15  ;;  %14370 = vmatprep.subr.bf16.mxu0 %v15964_v16  ;;  %v15996_v1 = vld [vmem:[%s20970_s1 + $0x1a0] sm:$0xff]   ;;  %v15997_v2 = vld [vmem:[%s20970_s1 + $0x158] sm:$0xff]   ;;  %v16001_v6 = vld [vmem:[%s20970_s1 + $0x150] sm:$0xff]  }
  0x12   :  { %14392 = vmatprep.subr.bf16.mxu1 %v15965_v17  ;;  %v2379_v46 = vcombine.high %v17275_v43, %v17275_v43  ;;  %v2400_v48 = vrot.slane %v2378_v44, %v17271_v41  ;;  %v2408_v51 = vcombine.high %v2386_v45, %v2386_v45  ;;  %v15998_v3 = vld [vmem:[%s20970_s1 + $0x1d8] sm:$0xff]   ;;  %v16002_v7 = vld [vmem:[%s20970_s1 + $0x1d0] sm:$0xff]   ;;  %v16005_v10 = vld [vmem:[%s20970_s1 + $0x148] sm:$0xff]  }
  0x13   :  { %v15999_v4 = vld [vmem:[%s20970_s1 + $0x118] sm:$0xff]   ;;  %v16003_v8 = vld [vmem:[%s20970_s1 + $0x110] sm:$0xff]   ;;  %v16006_v11 = vld [vmem:[%s20970_s1 + $0x1c8] sm:$0xff]  }
  0x14   :  { %14371 = vmatpush3.bf16.msra.mxu0 %v15966_v18  ;;  %v2407_v50 = vrot.slane %v2379_v46, %v17271_v41  ;;  %10333 = vmatprep.mubr.bf16.mxu0 %v2400_v48  ;;  %v2410_v53 = vcombine.high %v2400_v48, %v2400_v48  ;;  %v16000_v5 = vld [vmem:[%s20970_s1 + $0x198] sm:$0xff]   ;;  %v16004_v9 = vld [vmem:[%s20970_s1 + $0x190] sm:$0xff]   ;;  %v16007_v12 = vld [vmem:[%s20970_s1 + $0x108] sm:$0xff]   ;;  %v2393_v18 = vrot.slane %v17275_v43, %v17271_v41 }
  0x15   :  { %14393 = vmatpush3.bf16.msra.mxu1 %v15967_v19  ;;  %14372 = vmatprep.subr.bf16.mxu0 %v15968_v20  ;;  %v16008_v13 = vld [vmem:[%s20970_s1 + $0x188] sm:$0xff]   ;;  %v16009_v14 = vld [vmem:[%s20970_s1 + $0x140] sm:$0xff]   ;;  %v16013_v19 = vld [vmem:[%s20970_s1 + $0x278] sm:$0xff]  }
  0x16   :  { %14394 = vmatprep.subr.bf16.mxu1 %v15969_v21  ;;  %v2411_v56 = vcombine.high %v2407_v50, %v2407_v50  ;;  %10373 = vmatprep.mubr.bf16.mxu1 %v2410_v53  ;;  %v16010_v15 = vld [vmem:[%s20970_s1 + $0x1c0] sm:$0xff]   ;;  %v16014_v20 = vld [vmem:[%s20970_s1 + $0x2f8] sm:$0xff]   ;;  %v16021_v28 = vld [vmem:[%s20970_s1 + $0x268] sm:$0xff]  }
  0x17   :  { %v16011_v16 = vld [vmem:[%s20970_s1 + $0x100] sm:$0xff]   ;;  %v16015_v21 = vld [vmem:[%s20970_s1 + $0x238] sm:$0xff]   ;;  %v16033_v40 = vld [vmem:[%s20970_s1 + $0x250] sm:$0xff]  }
  0x18   :  { %14373 = vmatpush3.bf16.msra.mxu0 %v15970_v22  ;;  %v16012_v17 = vld [vmem:[%s20970_s1 + $0x180] sm:$0xff]   ;;  %v16016_v22 = vld [vmem:[%s20970_s1 + $0x2b8] sm:$0xff]   ;;  %v16034_v42 = vld [vmem:[%s20970_s1 + $0x2d0] sm:$0xff]  }
  0x19   :  { %14395 = vmatpush3.bf16.msra.mxu1 %v15971_v23  ;;  %14374 = vmatprep.subr.bf16.mxu0 %v15972_v24  ;;  %v2409_v23 = vcombine.high %v2393_v18, %v2393_v18  ;;  %v16017_v24 = vld [vmem:[%s20970_s1 + $0x270] sm:$0xff]   ;;  %v16026_v33 = vld [vmem:[%s20970_s1 + $0x2e0] sm:$0xff]   ;;  %v16029_v36 = vld [vmem:[%s20970_s1 + $0x258] sm:$0xff]  }
  0x1a   :  { %14396 = vmatprep.subr.bf16.mxu1 %v15973_v25  ;;  %v16018_v25 = vld [vmem:[%s20970_s1 + $0x2f0] sm:$0xff]   ;;  %v16027_v34 = vld [vmem:[%s20970_s1 + $0x220] sm:$0xff]   ;;  %v16030_v37 = vld [vmem:[%s20970_s1 + $0x2d8] sm:$0xff]  }
  0x1b   :  { %v16032_v39 = vld [vmem:[%s20970_s1 + $0x298] sm:$0xff]   ;;  %v16035_v43 = vld [vmem:[%s20970_s1 + $0x210] sm:$0xff]   ;;  %v17_v46 = vld [vmem:[%s20969_s0 + $0x8] sm:$0xff] }
  0x1c   :  { %14375 = vmatpush3.bf16.msra.mxu0 %v15974_v26  ;;  %v16019_v26 = vld [vmem:[%s20970_s1 + $0x230] sm:$0xff]   ;;  %v2419_v48 = vrot.slane %v17_v46, %v17271_v41 }
  0x1d   :  { %14397 = vmatpush3.bf16.msra.mxu1 %v15975_v27  ;;  %14376 = vmatprep.subr.bf16.mxu0 %v15976_v29  ;;  %v16020_v27 = vld [vmem:[%s20970_s1 + $0x2b0] sm:$0xff]   ;;  %v16022_v29 = vld [vmem:[%s20970_s1 + $0x2e8] sm:$0xff]  }
  0x1e   :  { %14398 = vmatprep.subr.bf16.mxu1 %v15977_v30  ;;  %v16023_v30 = vld [vmem:[%s20970_s1 + $0x228] sm:$0xff]   ;;  %v16036_v44 = vld [vmem:[%s20970_s1 + $0x290] sm:$0xff]  }
  0x20   :  { %14377 = vmatpush3.bf16.msra.mxu0 %v15978_v31  ;;  %v16024_v31 = vld [vmem:[%s20970_s1 + $0x2a8] sm:$0xff]  }
  0x21   :  { %14399 = vmatpush3.bf16.msra.mxu1 %v15979_v32  ;;  %14406 = vmatprep.subr.bf16.mxu0 %v15981_v35  ;;  %v16025_v32 = vld [vmem:[%s20970_s1 + $0x260] sm:$0xff]  }
  0x22   :  { %14428 = vmatprep.subr.bf16.mxu1 %v15982_v38  ;;  %v16028_v35 = vld [vmem:[%s20970_s1 + $0x2a0] sm:$0xff]   ;;  %v16031_v38 = vld [vmem:[%s20970_s1 + $0x218] sm:$0xff]  }
  0x23   :  { %10334 = vmatmul.mubr.bf16.vlgmr.msra.gmra.mxu0 %v2386_v45  ;;  %v16037_v45 = vld [vmem:[%s20970_s1 + $0x248] sm:$0xff]  }
  0x24   :  { %14407 = vmatpush3.bf16.msra.mxu0 %v15983_v47  ;;  %10374 = vmatmul.mubr.bf16.vlgmr.msra.gmra.mxu1 %v2408_v51  ;;  %v16038_v47 = vld [vmem:[%s20970_s1 + $0x2c8] sm:$0xff]  }
  0x25   :  { %14408 = vmatprep.subr.bf16.mxu0 %v15985_v52  ;;  %14429 = vmatpush3.bf16.msra.mxu1 %v15984_v49  ;;  %v2412_v49 = vcombine.high %v17_v46, %v17_v46  ;;  %v16040_v51 = vld [vmem:[%s20970_s1 + $0x288] sm:$0xff]   ;;  %v2427_v52 = vcombine.high %v2419_v48, %v2419_v48 }
  0x26   :  { %10413 = vmatprep.mubr.bf16.mxu0 %v2407_v50  ;;  %14430 = vmatprep.subr.bf16.mxu1 %v15986_v54  ;;  %v16039_v50 = vld [vmem:[%s20970_s1 + $0x208] sm:$0xff]   ;;  %v16041_v54 = vld [vmem:[%s20970_s1 + $0x240] sm:$0xff]  }
  0x27   :  { %10453 = vmatprep.mubr.bf16.mxu1 %v2411_v56  ;;  %v17463_v53 = vrot.slane %v2412_v49, %v17271_v41  ;;  %v2449_v56 = vrot.slane %v2427_v52, %v17271_v41  ;;  %v16088_v46 = vld [vmem:[%s20970_s1 + $0x428] sm:$0xff]   ;;  %v16091_v49 = vld [vmem:[%s20970_s1 + $0x4e0] sm:$0xff]   ;;  %v16094_v52 = vld [vmem:[%s20970_s1 + $0x458] sm:$0xff]  }
  0x28   :  { %14409 = vmatpush3.bf16.msra.mxu0 %v15987_v55  ;;  %v16042_v55 = vld [vmem:[%s20970_s1 + $0x2c0] sm:$0xff]  }
  0x29   :  { %14410 = vmatprep.subr.bf16.mxu0 %v15989_v58  ;;  %14431 = vmatpush3.bf16.msra.mxu1 %v15988_v57  ;;  %v2428_v57 = vcombine.high %v17463_v53, %v17463_v53  ;;  %v16043_v58 = vld [vmem:[%s20970_s1 + $0x200] sm:$0xff]  }
  0x2a   :  { %14432 = vmatprep.subr.bf16.mxu1 %v15990_v59  ;;  %v16044_v59 = vld [vmem:[%s20970_s1 + $0x280] sm:$0xff]  }
  0x2c   :  { %14411 = vmatpush3.bf16.msra.mxu0 %v15991_v60  ;;  %v2459_v60 = vcombine.high %v2449_v56, %v2449_v56 }
  0x2d   :  { %14412 = vmatprep.subr.bf16.mxu0 %v15993_v62  ;;  %14433 = vmatpush3.bf16.msra.mxu1 %v15992_v61  ;;  %v2435_v61 = vrot.slane %v2419_v48, %v17271_v41  ;;  %v16045_v62 = vld [vmem:[%s20970_s1 + $0x378] sm:$0xff]   ;;  %v16090_v48 = vld [vmem:[%s20970_s1 + $0x460] sm:$0xff]  }
  0x2e   :  { %14434 = vmatprep.subr.bf16.mxu1 %v15994_v63  ;;  %v16046_v63 = vld [vmem:[%s20970_s1 + $0x3f8] sm:$0xff]  }
  0x30   :  { %14413 = vmatpush3.bf16.msra.mxu0 %v15995_v0  ;;  %v2456_v0 = vrot.slane %v2428_v57, %v17271_v41  ;;  %v16099_v57 = vld [vmem:[%s20970_s1 + $0x4d0] sm:$0xff]  }
  0x31   :  { %14414 = vmatprep.subr.bf16.mxu0 %v15997_v2  ;;  %14435 = vmatpush3.bf16.msra.mxu1 %v15996_v1  ;;  %v16047_v1 = vld [vmem:[%s20970_s1 + $0x338] sm:$0xff]  }
  0x32   :  { %14436 = vmatprep.subr.bf16.mxu1 %v15998_v3  ;;  %v16048_v2 = vld [vmem:[%s20970_s1 + $0x3b8] sm:$0xff]   ;;  %v2457_v3 = vcombine.high %v2435_v61, %v2435_v61 }
  0x34   :  { %14415 = vmatpush3.bf16.msra.mxu0 %v15999_v4  ;;  %v16049_v4 = vld [vmem:[%s20970_s1 + $0x370] sm:$0xff]  }
  0x35   :  { %14416 = vmatprep.subr.bf16.mxu0 %v16001_v6  ;;  %14437 = vmatpush3.bf16.msra.mxu1 %v16000_v5  ;;  %v16050_v5 = vld [vmem:[%s20970_s1 + $0x3f0] sm:$0xff]   ;;  %v2460_v6 = vcombine.high %v2456_v0, %v2456_v0 }
  0x36   :  { %14438 = vmatprep.subr.bf16.mxu1 %v16002_v7  ;;  %v16051_v7 = vld [vmem:[%s20970_s1 + $0x330] sm:$0xff]  }
  0x38   :  { %14417 = vmatpush3.bf16.msra.mxu0 %v16003_v8  ;;  %v16052_v8 = vld [vmem:[%s20970_s1 + $0x3b0] sm:$0xff]  }
  0x39   :  { %14418 = vmatprep.subr.bf16.mxu0 %v16005_v10  ;;  %14439 = vmatpush3.bf16.msra.mxu1 %v16004_v9  ;;  %v16053_v9 = vld [vmem:[%s20970_s1 + $0x368] sm:$0xff]  }
  0x3a   :  { %14440 = vmatprep.subr.bf16.mxu1 %v16006_v11  ;;  %v16054_v10 = vld [vmem:[%s20970_s1 + $0x3e8] sm:$0xff]  }
  0x3b   :  { %v16055_v11 = vld [vmem:[%s20970_s1 + $0x328] sm:$0xff]  }
  0x3c   :  { %14419 = vmatpush3.bf16.msra.mxu0 %v16007_v12  ;;  %v16056_v12 = vld [vmem:[%s20970_s1 + $0x3a8] sm:$0xff]  }
  0x3d   :  { %14420 = vmatprep.subr.bf16.mxu0 %v16009_v14  ;;  %14441 = vmatpush3.bf16.msra.mxu1 %v16008_v13  ;;  %v16057_v13 = vld [vmem:[%s20970_s1 + $0x360] sm:$0xff]  }
  0x3e   :  { %14442 = vmatprep.subr.bf16.mxu1 %v16010_v15  ;;  %v16058_v14 = vld [vmem:[%s20970_s1 + $0x3e0] sm:$0xff]  }
  0x3f   :  { %v16059_v15 = vld [vmem:[%s20970_s1 + $0x320] sm:$0xff]  }
  0x40   :  { %14421 = vmatpush3.bf16.msra.mxu0 %v16011_v16  ;;  %v16060_v16 = vld [vmem:[%s20970_s1 + $0x3a0] sm:$0xff]  }
  0x41   :  { %14450 = vmatprep.subr.bf16.mxu0 %v16013_v19  ;;  %14443 = vmatpush3.bf16.msra.mxu1 %v16012_v17  ;;  %v16061_v17 = vld [vmem:[%s20970_s1 + $0x358] sm:$0xff]  }
  0x42   :  { %14472 = vmatprep.subr.bf16.mxu1 %v16014_v20  ;;  %v16063_v19 = vld [vmem:[%s20970_s1 + $0x318] sm:$0xff]  }
  0x43   :  { %10414 = vmatmul.mubr.bf16.vlgmr.msra.gmra.mxu0 %v2393_v18  ;;  %v16062_v18 = vld [vmem:[%s20970_s1 + $0x3d8] sm:$0xff]  }
  0x44   :  { %14451 = vmatpush3.bf16.msra.mxu0 %v16015_v21  ;;  %10454 = vmatmul.mubr.bf16.vlgmr.msra.gmra.mxu1 %v2409_v23  ;;  %v16064_v20 = vld [vmem:[%s20970_s1 + $0x398] sm:$0xff]   ;;  %v16065_v21 = vld [vmem:[%s20970_s1 + $0x350] sm:$0xff]  }
  0x45   :  { %14452 = vmatprep.subr.bf16.mxu0 %v16017_v24  ;;  %14473 = vmatpush3.bf16.msra.mxu1 %v16016_v22  ;;  %v16066_v22 = vld [vmem:[%s20970_s1 + $0x3d0] sm:$0xff]  }
  0x46   :  { %14474 = vmatprep.subr.bf16.mxu1 %v16018_v25  ;;  %10493 = vmatprep.mubr.bf16.mxu0 %v2449_v56  ;;  %v16067_v23 = vld [vmem:[%s20970_s1 + $0x310] sm:$0xff]   ;;  %v16069_v25 = vld [vmem:[%s20970_s1 + $0x348] sm:$0xff]  }
  0x47   :  { %10533 = vmatprep.mubr.bf16.mxu1 %v2459_v60  ;;  %v16068_v24 = vld [vmem:[%s20970_s1 + $0x390] sm:$0xff]   ;;  %v16102_v60 = vld [vmem:[%s20970_s1 + $0x448] sm:$0xff]  }
  0x48   :  { %14453 = vmatpush3.bf16.msra.mxu0 %v16019_v26  ;;  %v16070_v26 = vld [vmem:[%s20970_s1 + $0x3c8] sm:$0xff]   ;;  %v16098_v56 = vld [vmem:[%s20970_s1 + $0x450] sm:$0xff]  }
  0x49   :  { %14454 = vmatprep.subr.bf16.mxu0 %v16021_v28  ;;  %14475 = vmatpush3.bf16.msra.mxu1 %v16020_v27  ;;  %v16071_v27 = vld [vmem:[%s20970_s1 + $0x308] sm:$0xff]  }
  0x4a   :  { %14476 = vmatprep.subr.bf16.mxu1 %v16022_v29  ;;  %v16072_v28 = vld [vmem:[%s20970_s1 + $0x388] sm:$0xff]   ;;  %v16073_v29 = vld [vmem:[%s20970_s1 + $0x340] sm:$0xff]  }
  0x4c   :  { %14455 = vmatpush3.bf16.msra.mxu0 %v16023_v30  ;;  %v16074_v30 = vld [vmem:[%s20970_s1 + $0x3c0] sm:$0xff]  }
  0x4d   :  { %14456 = vmatprep.subr.bf16.mxu0 %v16025_v32  ;;  %14477 = vmatpush3.bf16.msra.mxu1 %v16024_v31  ;;  %v16075_v31 = vld [vmem:[%s20970_s1 + $0x300] sm:$0xff]  }
  0x4e   :  { %14478 = vmatprep.subr.bf16.mxu1 %v16026_v33  ;;  %v16076_v32 = vld [vmem:[%s20970_s1 + $0x380] sm:$0xff]   ;;  %v2442_v33 = vrot.slane %v17463_v53, %v17271_v41  ;;  %v16095_v53 = vld [vmem:[%s20970_s1 + $0x4d8] sm:$0xff]  }
  0x50   :  { %14457 = vmatpush3.bf16.msra.mxu0 %v16027_v34  ;;  %v16078_v34 = vld [vmem:[%s20970_s1 + $0x478] sm:$0xff]  }
  0x51   :  { %14458 = vmatprep.subr.bf16.mxu0 %v16029_v36  ;;  %14479 = vmatpush3.bf16.msra.mxu1 %v16028_v35  ;;  %v16079_v35 = vld [vmem:[%s20970_s1 + $0x4f8] sm:$0xff]  }
  0x52   :  { %14480 = vmatprep.subr.bf16.mxu1 %v16030_v37  ;;  %v16080_v36 = vld [vmem:[%s20970_s1 + $0x438] sm:$0xff]  }
  0x53   :  { %v16081_v37 = vld [vmem:[%s20970_s1 + $0x4b8] sm:$0xff]  }
  0x54   :  { %14459 = vmatpush3.bf16.msra.mxu0 %v16031_v38  ;;  %v2458_v38 = vcombine.high %v2442_v33, %v2442_v33 }
  0x55   :  { %14460 = vmatprep.subr.bf16.mxu0 %v16033_v40  ;;  %14481 = vmatpush3.bf16.msra.mxu1 %v16032_v39  ;;  %v16082_v39 = vld [vmem:[%s20970_s1 + $0x470] sm:$0xff]  }
  0x56   :  { %14482 = vmatprep.subr.bf16.mxu1 %v16034_v42  ;;  %v16083_v40 = vld [vmem:[%s20970_s1 + $0x4f0] sm:$0xff]  }
  0x57   :  { %v16084_v42 = vld [vmem:[%s20970_s1 + $0x430] sm:$0xff]  }
  0x58   :  { %14461 = vmatpush3.bf16.msra.mxu0 %v16035_v43  ;;  %v16085_v43 = vld [vmem:[%s20970_s1 + $0x4b0] sm:$0xff]  }
  0x59   :  { %14462 = vmatprep.subr.bf16.mxu0 %v16037_v45  ;;  %14483 = vmatpush3.bf16.msra.mxu1 %v16036_v44  ;;  %v16086_v44 = vld [vmem:[%s20970_s1 + $0x468] sm:$0xff]  }
  0x5a   :  { %14484 = vmatprep.subr.bf16.mxu1 %v16038_v47  ;;  %v16087_v45 = vld [vmem:[%s20970_s1 + $0x4e8] sm:$0xff]  }
  0x5b   :  { %v16089_v47 = vld [vmem:[%s20970_s1 + $0x4a8] sm:$0xff]  }
  0x5c   :  { %14463 = vmatpush3.bf16.msra.mxu0 %v16039_v50  ;;  %v16092_v50 = vld [vmem:[%s20970_s1 + $0x420] sm:$0xff]  }
  0x5d   :  { %14464 = vmatprep.subr.bf16.mxu0 %v16041_v54  ;;  %14485 = vmatpush3.bf16.msra.mxu1 %v16040_v51  ;;  %v16093_v51 = vld [vmem:[%s20970_s1 + $0x4a0] sm:$0xff]   ;;  %v16096_v54 = vld [vmem:[%s20970_s1 + $0x418] sm:$0xff]  }
  0x5e   :  { %14486 = vmatprep.subr.bf16.mxu1 %v16042_v55  ;;  %v16097_v55 = vld [vmem:[%s20970_s1 + $0x498] sm:$0xff]  }
  0x60   :  { %14465 = vmatpush3.bf16.msra.mxu0 %v16043_v58  ;;  %v16100_v58 = vld [vmem:[%s20970_s1 + $0x410] sm:$0xff]  }
  0x61   :  { %14494 = vmatprep.subr.bf16.mxu0 %v16045_v62  ;;  %14487 = vmatpush3.bf16.msra.mxu1 %v16044_v59  ;;  %v16101_v59 = vld [vmem:[%s20970_s1 + $0x490] sm:$0xff]   ;;  %v16103_v62 = vld [vmem:[%s20970_s1 + $0x4c8] sm:$0xff]  }
  0x62   :  { %14516 = vmatprep.subr.bf16.mxu1 %v16046_v63 }
  0x63   :  { %10494 = vmatmul.mubr.bf16.vlgmr.msra.gmra.mxu0 %v2435_v61  ;;  %v18_v61 = vld [vmem:[%s20969_s0 + $0x10] sm:$0xff] }
  0x64   :  { %14495 = vmatpush3.bf16.msra.mxu0 %v16047_v1  ;;  %10573 = vmatprep.mubr.bf16.mxu0 %v2456_v0  ;;  %v2468_v63 = vrot.slane %v18_v61, %v17271_v41  ;;  %v2461_v0 = vcombine.high %v18_v61, %v18_v61  ;;  %v16104_v1 = vld [vmem:[%s20970_s1 + $0x408] sm:$0xff]  }
  0x65   :  { %10534 = vmatmul.mubr.bf16.vlgmr.msra.gmra.mxu1 %v2457_v3  ;;  %14496 = vmatprep.subr.bf16.mxu0 %v16049_v4  ;;  %v16153_v61 = vld [vmem:[%s20970_s1 + $0x628] sm:$0xff]  }
  0x66   :  { %14517 = vmatpush3.bf16.msra.mxu1 %v16048_v2  ;;  %10613 = vmatprep.mubr.bf16.mxu1 %v2460_v6  ;;  %v16105_v2 = vld [vmem:[%s20970_s1 + $0x488] sm:$0xff]   ;;  %v2476_v3 = vcombine.high %v2468_v63, %v2468_v63  ;;  %v17669_v4 = vrot.slane %v2461_v0, %v17271_v41  ;;  %v16107_v6 = vld [vmem:[%s20970_s1 + $0x4c0] sm:$0xff]  }
  0x67   :  { %14518 = vmatprep.subr.bf16.mxu1 %v16050_v5  ;;  %v16106_v5 = vld [vmem:[%s20970_s1 + $0x440] sm:$0xff]  }
  0x68   :  { %14497 = vmatpush3.bf16.msra.mxu0 %v16051_v7  ;;  %v2498_v7 = vrot.slane %v2476_v3, %v17271_v41  ;;  %v16156_v0 = vld [vmem:[%s20970_s1 + $0x6e0] sm:$0xff]   ;;  %v16159_v3 = vld [vmem:[%s20970_s1 + $0x658] sm:$0xff]  }
  0x69   :  { %14498 = vmatprep.subr.bf16.mxu0 %v16053_v9  ;;  %v16108_v9 = vld [vmem:[%s20970_s1 + $0x400] sm:$0xff]  }
  0x6a   :  { %14519 = vmatpush3.bf16.msra.mxu1 %v16052_v8  ;;  %v2477_v8 = vcombine.high %v17669_v4, %v17669_v4 }
  0x6b   :  { %14520 = vmatprep.subr.bf16.mxu1 %v16054_v10  ;;  %v16109_v10 = vld [vmem:[%s20970_s1 + $0x480] sm:$0xff]  }
  0x6c   :  { %14499 = vmatpush3.bf16.msra.mxu0 %v16055_v11  ;;  %v2508_v11 = vcombine.high %v2498_v7, %v2498_v7 }
  0x6d   :  { %14500 = vmatprep.subr.bf16.mxu0 %v16057_v13  ;;  %v16110_v13 = vld [vmem:[%s20970_s1 + $0x578] sm:$0xff]  }
  0x6e   :  { %14521 = vmatpush3.bf16.msra.mxu1 %v16056_v12  ;;  %v2484_v12 = vrot.slane %v2468_v63, %v17271_v41  ;;  %v16155_v63 = vld [vmem:[%s20970_s1 + $0x660] sm:$0xff]  }
  0x6f   :  { %14522 = vmatprep.subr.bf16.mxu1 %v16058_v14  ;;  %v16111_v14 = vld [vmem:[%s20970_s1 + $0x5f8] sm:$0xff]  }
  0x70   :  { %14501 = vmatpush3.bf16.msra.mxu0 %v16059_v15  ;;  %v2505_v15 = vrot.slane %v2477_v8, %v17271_v41  ;;  %v16164_v8 = vld [vmem:[%s20970_s1 + $0x6d0] sm:$0xff]  }
  0x71   :  { %14502 = vmatprep.subr.bf16.mxu0 %v16061_v17  ;;  %v16113_v17 = vld [vmem:[%s20970_s1 + $0x5b8] sm:$0xff]  }
  0x72   :  { %14523 = vmatpush3.bf16.msra.mxu1 %v16060_v16  ;;  %v16112_v16 = vld [vmem:[%s20970_s1 + $0x538] sm:$0xff]  }
  0x73   :  { %14524 = vmatprep.subr.bf16.mxu1 %v16062_v18  ;;  %v2506_v18 = vcombine.high %v2484_v12, %v2484_v12 }
  0x74   :  { %14503 = vmatpush3.bf16.msra.mxu0 %v16063_v19  ;;  %v16114_v19 = vld [vmem:[%s20970_s1 + $0x570] sm:$0xff]  }
  0x75   :  { %14504 = vmatprep.subr.bf16.mxu0 %v16065_v21  ;;  %v2509_v21 = vcombine.high %v2505_v15, %v2505_v15 }
  0x76   :  { %14525 = vmatpush3.bf16.msra.mxu1 %v16064_v20  ;;  %v16115_v20 = vld [vmem:[%s20970_s1 + $0x5f0] sm:$0xff]  }
  0x77   :  { %14526 = vmatprep.subr.bf16.mxu1 %v16066_v22  ;;  %v16116_v22 = vld [vmem:[%s20970_s1 + $0x530] sm:$0xff]  }
  0x78   :  { %14505 = vmatpush3.bf16.msra.mxu0 %v16067_v23  ;;  %v16117_v23 = vld [vmem:[%s20970_s1 + $0x5b0] sm:$0xff]  }
  0x79   :  { %14506 = vmatprep.subr.bf16.mxu0 %v16069_v25  ;;  %v16119_v25 = vld [vmem:[%s20970_s1 + $0x5e8] sm:$0xff]  }
  0x7a   :  { %14527 = vmatpush3.bf16.msra.mxu1 %v16068_v24  ;;  %v16118_v24 = vld [vmem:[%s20970_s1 + $0x568] sm:$0xff]  }
  0x7b   :  { %14528 = vmatprep.subr.bf16.mxu1 %v16070_v26  ;;  %v16120_v26 = vld [vmem:[%s20970_s1 + $0x528] sm:$0xff]  }
  0x7c   :  { %14507 = vmatpush3.bf16.msra.mxu0 %v16071_v27  ;;  %v16121_v27 = vld [vmem:[%s20970_s1 + $0x5a8] sm:$0xff]  }
  0x7d   :  { %14508 = vmatprep.subr.bf16.mxu0 %v16073_v29  ;;  %v16123_v29 = vld [vmem:[%s20970_s1 + $0x5e0] sm:$0xff]  }
  0x7e   :  { %14529 = vmatpush3.bf16.msra.mxu1 %v16072_v28  ;;  %v16122_v28 = vld [vmem:[%s20970_s1 + $0x560] sm:$0xff]  }
  0x7f   :  { %14530 = vmatprep.subr.bf16.mxu1 %v16074_v30  ;;  %v16124_v30 = vld [vmem:[%s20970_s1 + $0x520] sm:$0xff]  }
  0x80   :  { %14509 = vmatpush3.bf16.msra.mxu0 %v16075_v31  ;;  %v16125_v31 = vld [vmem:[%s20970_s1 + $0x5a0] sm:$0xff]  }
  0x81   :  { %14538 = vmatprep.subr.bf16.mxu0 %v16078_v34  ;;  %v16128_v34 = vld [vmem:[%s20970_s1 + $0x518] sm:$0xff]  }
  0x82   :  { %14531 = vmatpush3.bf16.msra.mxu1 %v16076_v32  ;;  %v16126_v32 = vld [vmem:[%s20970_s1 + $0x558] sm:$0xff]  }
  0x83   :  { %10574 = vmatmul.mubr.bf16.vlgmr.msra.gmra.mxu0 %v2442_v33  ;;  %14560 = vmatprep.subr.bf16.mxu1 %v16079_v35  ;;  %v16127_v33 = vld [vmem:[%s20970_s1 + $0x5d8] sm:$0xff]  }
  0x84   :  { %14539 = vmatpush3.bf16.msra.mxu0 %v16080_v36  ;;  %10653 = vmatprep.mubr.bf16.mxu0 %v2498_v7  ;;  %v16129_v35 = vld [vmem:[%s20970_s1 + $0x598] sm:$0xff]   ;;  %v16130_v36 = vld [vmem:[%s20970_s1 + $0x550] sm:$0xff]  }
  0x85   :  { %10614 = vmatmul.mubr.bf16.vlgmr.msra.gmra.mxu1 %v2458_v38  ;;  %14540 = vmatprep.subr.bf16.mxu0 %v16082_v39  ;;  %v16132_v38 = vld [vmem:[%s20970_s1 + $0x510] sm:$0xff]  }
  0x86   :  { %14561 = vmatpush3.bf16.msra.mxu1 %v16081_v37  ;;  %10693 = vmatprep.mubr.bf16.mxu1 %v2508_v11  ;;  %v16131_v37 = vld [vmem:[%s20970_s1 + $0x5d0] sm:$0xff]   ;;  %v16167_v11 = vld [vmem:[%s20970_s1 + $0x648] sm:$0xff]  }
  0x87   :  { %14562 = vmatprep.subr.bf16.mxu1 %v16083_v40  ;;  %v16133_v39 = vld [vmem:[%s20970_s1 + $0x590] sm:$0xff]   ;;  %v16134_v40 = vld [vmem:[%s20970_s1 + $0x548] sm:$0xff]  }
  0x88   :  { %14541 = vmatpush3.bf16.msra.mxu0 %v16084_v42  ;;  %v16135_v42 = vld [vmem:[%s20970_s1 + $0x5c8] sm:$0xff]   ;;  %v16163_v7 = vld [vmem:[%s20970_s1 + $0x650] sm:$0xff]  }
  0x89   :  { %14542 = vmatprep.subr.bf16.mxu0 %v16086_v44  ;;  %v16137_v44 = vld [vmem:[%s20970_s1 + $0x588] sm:$0xff]  }
  0x8a   :  { %14563 = vmatpush3.bf16.msra.mxu1 %v16085_v43  ;;  %v16136_v43 = vld [vmem:[%s20970_s1 + $0x508] sm:$0xff]  }
  0x8b   :  { %14564 = vmatprep.subr.bf16.mxu1 %v16087_v45  ;;  %v16138_v45 = vld [vmem:[%s20970_s1 + $0x540] sm:$0xff]  }
  0x8c   :  { %14543 = vmatpush3.bf16.msra.mxu0 %v16088_v46  ;;  %v16139_v46 = vld [vmem:[%s20970_s1 + $0x5c0] sm:$0xff]  }
  0x8d   :  { %14544 = vmatprep.subr.bf16.mxu0 %v16090_v48  ;;  %v16141_v48 = vld [vmem:[%s20970_s1 + $0x580] sm:$0xff]  }
  0x8e   :  { %14565 = vmatpush3.bf16.msra.mxu1 %v16089_v47  ;;  %v16140_v47 = vld [vmem:[%s20970_s1 + $0x500] sm:$0xff]  }
  0x8f   :  { %14566 = vmatprep.subr.bf16.mxu1 %v16091_v49  ;;  %v2491_v49 = vrot.slane %v17669_v4, %v17271_v41  ;;  %v16160_v4 = vld [vmem:[%s20970_s1 + $0x6d8] sm:$0xff]  }
  0x90   :  { %14545 = vmatpush3.bf16.msra.mxu0 %v16092_v50  ;;  %v16143_v50 = vld [vmem:[%s20970_s1 + $0x678] sm:$0xff]  }
  0x91   :  { %14546 = vmatprep.subr.bf16.mxu0 %v16094_v52  ;;  %v16145_v52 = vld [vmem:[%s20970_s1 + $0x638] sm:$0xff]  }
  0x92   :  { %14567 = vmatpush3.bf16.msra.mxu1 %v16093_v51  ;;  %v16144_v51 = vld [vmem:[%s20970_s1 + $0x6f8] sm:$0xff]  }
  0x93   :  { %14568 = vmatprep.subr.bf16.mxu1 %v16095_v53  ;;  %v16146_v53 = vld [vmem:[%s20970_s1 + $0x6b8] sm:$0xff]  }
  0x94   :  { %14547 = vmatpush3.bf16.msra.mxu0 %v16096_v54  ;;  %v2507_v54 = vcombine.high %v2491_v49, %v2491_v49 }
  0x95   :  { %14548 = vmatprep.subr.bf16.mxu0 %v16098_v56  ;;  %v16148_v56 = vld [vmem:[%s20970_s1 + $0x6f0] sm:$0xff]  }
  0x96   :  { %14569 = vmatpush3.bf16.msra.mxu1 %v16097_v55  ;;  %v16147_v55 = vld [vmem:[%s20970_s1 + $0x670] sm:$0xff]  }
  0x97   :  { %14570 = vmatprep.subr.bf16.mxu1 %v16099_v57  ;;  %v16149_v57 = vld [vmem:[%s20970_s1 + $0x630] sm:$0xff]  }
  0x98   :  { %14549 = vmatpush3.bf16.msra.mxu0 %v16100_v58  ;;  %v16150_v58 = vld [vmem:[%s20970_s1 + $0x6b0] sm:$0xff]  }
  0x99   :  { %14550 = vmatprep.subr.bf16.mxu0 %v16102_v60  ;;  %v16152_v60 = vld [vmem:[%s20970_s1 + $0x6e8] sm:$0xff]  }
  0x9a   :  { %14571 = vmatpush3.bf16.msra.mxu1 %v16101_v59  ;;  %v16151_v59 = vld [vmem:[%s20970_s1 + $0x668] sm:$0xff]  }
  0x9b   :  { %14572 = vmatprep.subr.bf16.mxu1 %v16103_v62  ;;  %v16154_v62 = vld [vmem:[%s20970_s1 + $0x6a8] sm:$0xff]  }
  0x9c   :  { %14551 = vmatpush3.bf16.msra.mxu0 %v16104_v1  ;;  %v16157_v1 = vld [vmem:[%s20970_s1 + $0x620] sm:$0xff]  }
  0x9d   :  { %14552 = vmatprep.subr.bf16.mxu0 %v16106_v5  ;;  %v16161_v5 = vld [vmem:[%s20970_s1 + $0x618] sm:$0xff]  }
  0x9e   :  { %14573 = vmatpush3.bf16.msra.mxu1 %v16105_v2  ;;  %v16158_v2 = vld [vmem:[%s20970_s1 + $0x6a0] sm:$0xff]  }
  0x9f   :  { %14574 = vmatprep.subr.bf16.mxu1 %v16107_v6  ;;  %v16162_v6 = vld [vmem:[%s20970_s1 + $0x698] sm:$0xff]  }
  0xa0   :  { %14553 = vmatpush3.bf16.msra.mxu0 %v16108_v9  ;;  %v16165_v9 = vld [vmem:[%s20970_s1 + $0x610] sm:$0xff]  }
  0xa1   :  { %14582 = vmatprep.subr.bf16.mxu0 %v16110_v13  ;;  %v16168_v13 = vld [vmem:[%s20970_s1 + $0x6c8] sm:$0xff]  }
  0xa2   :  { %14575 = vmatpush3.bf16.msra.mxu1 %v16109_v10  ;;  %v16166_v10 = vld [vmem:[%s20970_s1 + $0x690] sm:$0xff]  }
  0xa3   :  { %10654 = vmatmul.mubr.bf16.vlgmr.msra.gmra.mxu0 %v2484_v12  ;;  %14604 = vmatprep.subr.bf16.mxu1 %v16111_v14  ;;  %v19_v12 = vld [vmem:[%s20969_s0 + $0x18] sm:$0xff] }
  0xa4   :  { %14583 = vmatpush3.bf16.msra.mxu0 %v16112_v16  ;;  %10733 = vmatprep.mubr.bf16.mxu0 %v2505_v15  ;;  %v2517_v14 = vrot.slane %v19_v12, %v17271_v41  ;;  %v2510_v15 = vcombine.high %v19_v12, %v19_v12  ;;  %v16169_v16 = vld [vmem:[%s20970_s1 + $0x608] sm:$0xff]   ;;  %v16206_v12 = vld [vmem:[%s20970_s1 + $0x780] sm:$0xff]  }
  0xa5   :  { %10694 = vmatmul.mubr.bf16.vlgmr.msra.gmra.mxu1 %v2506_v18  ;;  %14584 = vmatprep.subr.bf16.mxu0 %v16114_v19 }
  0xa6   :  { %14605 = vmatpush3.bf16.msra.mxu1 %v16113_v17  ;;  %10773 = vmatprep.mubr.bf16.mxu1 %v2509_v21  ;;  %v16171_v17 = vld [vmem:[%s20970_s1 + $0x640] sm:$0xff]   ;;  %v2525_v18 = vcombine.high %v2517_v14, %v2517_v14  ;;  %v17875_v19 = vrot.slane %v2510_v15, %v17271_v41  ;;  %v16209_v15 = vld [vmem:[%s20970_s1 + $0x8f8] sm:$0xff]  }
  0xa7   :  { %14606 = vmatprep.subr.bf16.mxu1 %v16115_v20  ;;  %v16170_v20 = vld [vmem:[%s20970_s1 + $0x688] sm:$0xff]   ;;  %v16172_v21 = vld [vmem:[%s20970_s1 + $0x6c0] sm:$0xff]  }
  0xa8   :  { %14585 = vmatpush3.bf16.msra.mxu0 %v16116_v22  ;;  %v16173_v22 = vld [vmem:[%s20970_s1 + $0x600] sm:$0xff]  }
  0xa9   :  { %14586 = vmatprep.subr.bf16.mxu0 %v16118_v24  ;;  %v2526_v24 = vcombine.high %v17875_v19, %v17875_v19 }
  0xaa   :  { %14607 = vmatpush3.bf16.msra.mxu1 %v16117_v23  ;;  %v2547_v23 = vrot.slane %v2525_v18, %v17271_v41 }
  0xab   :  { %14608 = vmatprep.subr.bf16.mxu1 %v16119_v25  ;;  %v16174_v25 = vld [vmem:[%s20970_s1 + $0x680] sm:$0xff]  }
  0xac   :  { %14587 = vmatpush3.bf16.msra.mxu0 %v16120_v26  ;;  %v2557_v26 = vcombine.high %v2547_v23, %v2547_v23 }
  0xad   :  { %14588 = vmatprep.subr.bf16.mxu0 %v16122_v28  ;;  %v16175_v28 = vld [vmem:[%s20970_s1 + $0x778] sm:$0xff]  }
  0xae   :  { %14609 = vmatpush3.bf16.msra.mxu1 %v16121_v27  ;;  %v2533_v27 = vrot.slane %v2517_v14, %v17271_v41  ;;  %v16208_v14 = vld [vmem:[%s20970_s1 + $0x878] sm:$0xff]  }
  0xaf   :  { %14610 = vmatprep.subr.bf16.mxu1 %v16123_v29  ;;  %v16176_v29 = vld [vmem:[%s20970_s1 + $0x7f8] sm:$0xff]  }
  0xb0   :  { %14589 = vmatpush3.bf16.msra.mxu0 %v16124_v30  ;;  %v2554_v30 = vrot.slane %v2526_v24, %v17271_v41 }
  0xb1   :  { %14590 = vmatprep.subr.bf16.mxu0 %v16126_v32  ;;  %v16178_v32 = vld [vmem:[%s20970_s1 + $0x7b8] sm:$0xff]  }
  0xb2   :  { %14611 = vmatpush3.bf16.msra.mxu1 %v16125_v31  ;;  %v16177_v31 = vld [vmem:[%s20970_s1 + $0x738] sm:$0xff]  }
  0xb3   :  { %14612 = vmatprep.subr.bf16.mxu1 %v16127_v33  ;;  %v2555_v33 = vcombine.high %v2533_v27, %v2533_v27 }
  0xb4   :  { %14591 = vmatpush3.bf16.msra.mxu0 %v16128_v34  ;;  %v16179_v34 = vld [vmem:[%s20970_s1 + $0x770] sm:$0xff]  }
  0xb5   :  { %14592 = vmatprep.subr.bf16.mxu0 %v16130_v36  ;;  %v2558_v36 = vcombine.high %v2554_v30, %v2554_v30 }
  0xb6   :  { %14613 = vmatpush3.bf16.msra.mxu1 %v16129_v35  ;;  %v16180_v35 = vld [vmem:[%s20970_s1 + $0x7f0] sm:$0xff]  }
  0xb7   :  { %14614 = vmatprep.subr.bf16.mxu1 %v16131_v37 }
  0xb8   :  { %14593 = vmatpush3.bf16.msra.mxu0 %v16132_v38  ;;  %v13209_v38 = vld [vmem:[%s20971_s2] ss:$0 sm:$0xff] }
  0xb9   :  { %14594 = vmatprep.subr.bf16.mxu0 %v16134_v40  ;;  %v16182_v40 = vld [vmem:[%s20970_s1 + $0x7b0] sm:$0xff]  }
  0xba   :  { %14615 = vmatpush3.bf16.msra.mxu1 %v16133_v39  ;;  %v16181_v39 = vld [vmem:[%s20970_s1 + $0x730] sm:$0xff]  }
  0xbb   :  { %14616 = vmatprep.subr.bf16.mxu1 %v16135_v42 }
  0xbc   :  { %14595 = vmatpush3.bf16.msra.mxu0 %v16136_v43 }
  0xbd   :  { %14596 = vmatprep.subr.bf16.mxu0 %v16138_v45 }
  0xbe   :  { %14617 = vmatpush3.bf16.msra.mxu1 %v16137_v44  ;;  %v16183_v44 = vld [vmem:[%s20970_s1 + $0x768] sm:$0xff]  }
  0xbf   :  { %14618 = vmatprep.subr.bf16.mxu1 %v16139_v46  ;;  %v16184_v46 = vld [vmem:[%s20970_s1 + $0x7e8] sm:$0xff]  }
  0xc0   :  { %14597 = vmatpush3.bf16.msra.mxu0 %v16140_v47 }
  0xc1   :  { %14626 = vmatprep.subr.bf16.mxu0 %v16143_v50 }
  0xc2   :  { %14619 = vmatpush3.bf16.msra.mxu1 %v16141_v48 }
  0xc3   :  { %10734 = vmatmul.mubr.bf16.vlgmr.msra.gmra.mxu0 %v2491_v49  ;;  %14648 = vmatprep.subr.bf16.mxu1 %v16144_v51  ;;  %v16185_v49 = vld [vmem:[%s20970_s1 + $0x728] sm:$0xff]  }
  0xc4   :  { %14627 = vmatpush3.bf16.msra.mxu0 %v16145_v52  ;;  %10813 = vmatprep.mubr.bf16.mxu0 %v2547_v23  ;;  %v16186_v52 = vld [vmem:[%s20970_s1 + $0x7a8] sm:$0xff]   ;;  %v16215_v23 = vld [vmem:[%s20970_s1 + $0x8b0] sm:$0xff]  }
  0xc5   :  { %10774 = vmatmul.mubr.bf16.vlgmr.msra.gmra.mxu1 %v2507_v54  ;;  %14628 = vmatprep.subr.bf16.mxu0 %v16147_v55  ;;  %v16187_v55 = vld [vmem:[%s20970_s1 + $0x760] sm:$0xff]  }
  0xc6   :  { %14649 = vmatpush3.bf16.msra.mxu1 %v16146_v53  ;;  %10853 = vmatprep.mubr.bf16.mxu1 %v2557_v26  ;;  %v16216_v26 = vld [vmem:[%s20970_s1 + $0x868] sm:$0xff]  }
  0xc7   :  { %14650 = vmatprep.subr.bf16.mxu1 %v16148_v56 }
  0xc8   :  { %14629 = vmatpush3.bf16.msra.mxu0 %v16149_v57  ;;  %v16188_v57 = vld [vmem:[%s20970_s1 + $0x7e0] sm:$0xff]  }
  0xc9   :  { %14630 = vmatprep.subr.bf16.mxu0 %v16151_v59  ;;  %v16189_v59 = vld [vmem:[%s20970_s1 + $0x720] sm:$0xff]  }
  0xca   :  { %14651 = vmatpush3.bf16.msra.mxu1 %v16150_v58 }
  0xcb   :  { %14652 = vmatprep.subr.bf16.mxu1 %v16152_v60  ;;  %v16190_v60 = vld [vmem:[%s20970_s1 + $0x7a0] sm:$0xff]  }
  0xcc   :  { %14631 = vmatpush3.bf16.msra.mxu0 %v16153_v61  ;;  %v16191_v61 = vld [vmem:[%s20970_s1 + $0x758] sm:$0xff]  }
  0xcd   :  { %14632 = vmatprep.subr.bf16.mxu0 %v16155_v63  ;;  %v16193_v63 = vld [vmem:[%s20970_s1 + $0x718] sm:$0xff]  }
  0xce   :  { %14653 = vmatpush3.bf16.msra.mxu1 %v16154_v62  ;;  %v16192_v62 = vld [vmem:[%s20970_s1 + $0x7d8] sm:$0xff]  }
  0xcf   :  { %14654 = vmatprep.subr.bf16.mxu1 %v16156_v0  ;;  %v16194_v0 = vld [vmem:[%s20970_s1 + $0x798] sm:$0xff]  }
  0xd0   :  { %14633 = vmatpush3.bf16.msra.mxu0 %v16157_v1  ;;  %v16195_v1 = vld [vmem:[%s20970_s1 + $0x750] sm:$0xff]  }
  0xd1   :  { %14634 = vmatprep.subr.bf16.mxu0 %v16159_v3  ;;  %v16197_v3 = vld [vmem:[%s20970_s1 + $0x710] sm:$0xff]  }
  0xd2   :  { %14655 = vmatpush3.bf16.msra.mxu1 %v16158_v2  ;;  %v16196_v2 = vld [vmem:[%s20970_s1 + $0x7d0] sm:$0xff]  }
  0xd3   :  { %14656 = vmatprep.subr.bf16.mxu1 %v16160_v4  ;;  %v16198_v4 = vld [vmem:[%s20970_s1 + $0x790] sm:$0xff]  }
  0xd4   :  { %14635 = vmatpush3.bf16.msra.mxu0 %v16161_v5  ;;  %v16199_v5 = vld [vmem:[%s20970_s1 + $0x748] sm:$0xff]  }
  0xd5   :  { %14636 = vmatprep.subr.bf16.mxu0 %v16163_v7  ;;  %v16201_v7 = vld [vmem:[%s20970_s1 + $0x708] sm:$0xff]  }
  0xd6   :  { %14657 = vmatpush3.bf16.msra.mxu1 %v16162_v6  ;;  %v16200_v6 = vld [vmem:[%s20970_s1 + $0x7c8] sm:$0xff]  }
  0xd7   :  { %14658 = vmatprep.subr.bf16.mxu1 %v16164_v8  ;;  %v16202_v8 = vld [vmem:[%s20970_s1 + $0x788] sm:$0xff]  }
  0xd8   :  { %14637 = vmatpush3.bf16.msra.mxu0 %v16165_v9  ;;  %v16203_v9 = vld [vmem:[%s20970_s1 + $0x740] sm:$0xff]  }
  0xd9   :  { %14638 = vmatprep.subr.bf16.mxu0 %v16167_v11  ;;  %v16205_v11 = vld [vmem:[%s20970_s1 + $0x700] sm:$0xff]  }
  0xda   :  { %14659 = vmatpush3.bf16.msra.mxu1 %v16166_v10  ;;  %v16204_v10 = vld [vmem:[%s20970_s1 + $0x7c0] sm:$0xff]  }
  0xdb   :  { %14660 = vmatprep.subr.bf16.mxu1 %v16168_v13  ;;  %v2540_v13 = vrot.slane %v17875_v19, %v17271_v41  ;;  %v16212_v19 = vld [vmem:[%s20970_s1 + $0x870] sm:$0xff]  }
  0xdc   :  { %14639 = vmatpush3.bf16.msra.mxu0 %v16169_v16  ;;  %v16210_v16 = vld [vmem:[%s20970_s1 + $0x838] sm:$0xff]  }
  0xdd   :  { %14640 = vmatprep.subr.bf16.mxu0 %v16171_v17  ;;  %v16211_v17 = vld [vmem:[%s20970_s1 + $0x8b8] sm:$0xff]   ;;  %v2556_v18 = vcombine.high %v2540_v13, %v2540_v13 }
  0xde   :  { %14661 = vmatpush3.bf16.msra.mxu1 %v16170_v20  ;;  %v16213_v20 = vld [vmem:[%s20970_s1 + $0x8f0] sm:$0xff]  }
  0xdf   :  { %14662 = vmatprep.subr.bf16.mxu1 %v16172_v21 }
  0xe0   :  { %14641 = vmatpush3.bf16.msra.mxu0 %v16173_v22  ;;  %v16214_v22 = vld [vmem:[%s20970_s1 + $0x830] sm:$0xff]  }
  0xe1   :  { %14670 = vmatprep.subr.bf16.mxu0 %v16175_v28  ;;  %v16217_v28 = vld [vmem:[%s20970_s1 + $0x8e8] sm:$0xff]  }
  0xe2   :  { %14663 = vmatpush3.bf16.msra.mxu1 %v16174_v25 }
  0xe3   :  { %v14378_v37 = vpop.f32.mrf.mxu0  ;;  %10814 = vmatmul.mubr.bf16.vlgmr.msra.gmra.mxu0 %v2533_v27  ;;  %14692 = vmatprep.subr.bf16.mxu1 %v16176_v29 }
  0xe4   :  { %14671 = vmatpush3.bf16.msra.mxu0 %v16177_v31  ;;  %10893 = vmatprep.mubr.bf16.mxu0 %v2554_v30  ;;  %v14400_v42 = vpop.f32.mrf.mxu1  ;;  %v16218_v31 = vld [vmem:[%s20970_s1 + $0x828] sm:$0xff]  }
  0xe5   :  { %10854 = vmatmul.mubr.bf16.vlgmr.msra.gmra.mxu1 %v2555_v33  ;;  %v14379_v43 = vpop.f32.mrf.mxu0  ;;  %14672 = vmatprep.subr.bf16.mxu0 %v16179_v34  ;;  %v16219_v34 = vld [vmem:[%s20970_s1 + $0x8a8] sm:$0xff]  }
  0xe6   :  { %14693 = vmatpush3.bf16.msra.mxu1 %v16178_v32  ;;  %v14380_v45 = vadd.f32 %v14379_v43, %v14378_v37  ;;  %10933 = vmatprep.mubr.bf16.mxu1 %v2558_v36  ;;  %v14401_v47 = vpop.f32.mrf.mxu1  ;;  %v16220_v37 = vld [vmem:[%s20970_s1 + $0x860] sm:$0xff]  }
  0xe7   :  { %v14381_v48 = vpop.f32.mrf.mxu0  ;;  %14694 = vmatprep.subr.bf16.mxu1 %v16180_v35  ;;  %v14402_v51 = vadd.f32 %v14401_v47, %v14400_v42  ;;  %v16222_v42 = vld [vmem:[%s20970_s1 + $0x820] sm:$0xff]   ;;  %v16227_v47 = vld [vmem:[%s20970_s1 + $0x898] sm:$0xff]  }
  0xe8   :  { %v10336_v50 = vadd.f32 %v14380_v45, %v13209_v38  ;;  %14673 = vmatpush3.bf16.msra.mxu0 %v16181_v39  ;;  %v14403_v53 = vpop.f32.mrf.mxu1  ;;  %v16221_v39 = vld [vmem:[%s20970_s1 + $0x8e0] sm:$0xff]   ;;  %v16225_v45 = vld [vmem:[%s20970_s1 + $0x8d8] sm:$0xff]   ;;  %v16228_v48 = vld [vmem:[%s20970_s1 + $0x850] sm:$0xff]  }
  0xe9   :  { %v14382_v54 = vpop.f32.mrf.mxu0  ;;  %14674 = vmatprep.subr.bf16.mxu0 %v16183_v44  ;;  %v16223_v43 = vld [vmem:[%s20970_s1 + $0x8a0] sm:$0xff]   ;;  %v16224_v44 = vld [vmem:[%s20970_s1 + $0x858] sm:$0xff]   ;;  %v16233_v53 = vld [vmem:[%s20970_s1 + $0x8c8] sm:$0xff]  }
  0xea   :  { %v17936_v56 = vadd.f32 %v14402_v51, %v10336_v50  ;;  %14695 = vmatpush3.bf16.msra.mxu1 %v16182_v40  ;;  %v14404_v58 = vpop.f32.mrf.mxu1  ;;  %v16230_v50 = vld [vmem:[%s20970_s1 + $0x810] sm:$0xff]   ;;  %v20_v54 = vld [vmem:[%s20969_s0 + $0x20] sm:$0xff] }
  0xeb   :  { %14696 = vmatprep.subr.bf16.mxu1 %v16184_v46  ;;  %v16226_v46 = vld [vmem:[%s20970_s1 + $0x818] sm:$0xff]   ;;  %v16231_v51 = vld [vmem:[%s20970_s1 + $0x890] sm:$0xff]   ;;  %v16235_v58 = vld [vmem:[%s20970_s1 + $0x888] sm:$0xff]  }
  0xec   :  { %14675 = vmatpush3.bf16.msra.mxu0 %v16185_v49  ;;  %v16229_v49 = vld [vmem:[%s20970_s1 + $0x8d0] sm:$0xff]  }
  0xed   :  { %14676 = vmatprep.subr.bf16.mxu0 %v16187_v55  ;;  %v16234_v55 = vld [vmem:[%s20970_s1 + $0x808] sm:$0xff]  }
  0xee   :  { %14697 = vmatpush3.bf16.msra.mxu1 %v16186_v52  ;;  %v16232_v52 = vld [vmem:[%s20970_s1 + $0x848] sm:$0xff]  }
  0xef   :  { %14698 = vmatprep.subr.bf16.mxu1 %v16188_v57  ;;  %v2559_v57 = vcombine.high %v20_v54, %v20_v54 }
  0xf0   :  { %14677 = vmatpush3.bf16.msra.mxu0 %v16189_v59  ;;  %v16236_v59 = vld [vmem:[%s20970_s1 + $0x840] sm:$0xff]  }
  0xf1   :  { %14678 = vmatprep.subr.bf16.mxu0 %v16191_v61  ;;  %v18092_v61 = vrot.slane %v2559_v57, %v17271_v41  ;;  %v16276_v57 = vld [vmem:[%s20970_s1 + $0xab8] sm:$0xff]  }
  0xf2   :  { %14699 = vmatpush3.bf16.msra.mxu1 %v16190_v60 }
  0xf3   :  { %14700 = vmatprep.subr.bf16.mxu1 %v16192_v62  ;;  %v16237_v62 = vld [vmem:[%s20970_s1 + $0x8c0] sm:$0xff]  }
  0xf4   :  { %14679 = vmatpush3.bf16.msra.mxu0 %v16193_v63  ;;  %v16238_v63 = vld [vmem:[%s20970_s1 + $0x800] sm:$0xff]  }
  0xf5   :  { %14680 = vmatprep.subr.bf16.mxu0 %v16195_v1  ;;  %v2575_v1 = vcombine.high %v18092_v61, %v18092_v61 }
  0xf6   :  { %14701 = vmatpush3.bf16.msra.mxu1 %v16194_v0 }
  0xf7   :  { %14702 = vmatprep.subr.bf16.mxu1 %v16196_v2  ;;  %v16239_v2 = vld [vmem:[%s20970_s1 + $0x880] sm:$0xff]  }
  0xf8   :  { %14681 = vmatpush3.bf16.msra.mxu0 %v16197_v3 }
  0xf9   :  { %14682 = vmatprep.subr.bf16.mxu0 %v16199_v5  ;;  %v16240_v5 = vld [vmem:[%s20970_s1 + $0x978] sm:$0xff]  }
  0xfa   :  { %14703 = vmatpush3.bf16.msra.mxu1 %v16198_v4 }
  0xfb   :  { %14704 = vmatprep.subr.bf16.mxu1 %v16200_v6  ;;  %v16241_v6 = vld [vmem:[%s20970_s1 + $0x9f8] sm:$0xff]  }
  0xfc   :  { %14683 = vmatpush3.bf16.msra.mxu0 %v16201_v7  ;;  %v2603_v7 = vrot.slane %v2575_v1, %v17271_v41 }
  0xfd   :  { %14684 = vmatprep.subr.bf16.mxu0 %v16203_v9  ;;  %v16243_v9 = vld [vmem:[%s20970_s1 + $0x9b8] sm:$0xff]  }
  0xfe   :  { %14705 = vmatpush3.bf16.msra.mxu1 %v16202_v8  ;;  %v16242_v8 = vld [vmem:[%s20970_s1 + $0x938] sm:$0xff]  }
  0xff   :  { %14706 = vmatprep.subr.bf16.mxu1 %v16204_v10 }
 0x100   :  { %14685 = vmatpush3.bf16.msra.mxu0 %v16205_v11  ;;  %v16244_v11 = vld [vmem:[%s20970_s1 + $0x970] sm:$0xff]  }
 0x101   :  { %14714 = vmatprep.subr.bf16.mxu0 %v16208_v14 }
 0x102   :  { %14707 = vmatpush3.bf16.msra.mxu1 %v16206_v12  ;;  %v16245_v12 = vld [vmem:[%s20970_s1 + $0x9f0] sm:$0xff]  }
 0x103   :  { %v14422_v21 = vpop.f32.mrf.mxu0  ;;  %10894 = vmatmul.mubr.bf16.vlgmr.msra.gmra.mxu0 %v2540_v13  ;;  %14736 = vmatprep.subr.bf16.mxu1 %v16209_v15  ;;  %v2607_v13 = vcombine.high %v2603_v7, %v2603_v7  ;;  %v16246_v15 = vld [vmem:[%s20970_s1 + $0x930] sm:$0xff]  }
 0x104   :  { %14715 = vmatpush3.bf16.msra.mxu0 %v16210_v16  ;;  %v14444_v24 = vpop.f32.mrf.mxu1  ;;  %v16247_v16 = vld [vmem:[%s20970_s1 + $0x9b0] sm:$0xff]  }
 0x105   :  { %10934 = vmatmul.mubr.bf16.vlgmr.msra.gmra.mxu1 %v2556_v18  ;;  %v14423_v25 = vpop.f32.mrf.mxu0  ;;  %14716 = vmatprep.subr.bf16.mxu0 %v16212_v19  ;;  %v16248_v19 = vld [vmem:[%s20970_s1 + $0x968] sm:$0xff]  }
 0x106   :  { %14737 = vmatpush3.bf16.msra.mxu1 %v16211_v17  ;;  %v14424_v27 = vadd.f32 %v14423_v25, %v14422_v21  ;;  %v14445_v29 = vpop.f32.mrf.mxu1  ;;  %v16249_v21 = vld [vmem:[%s20970_s1 + $0x9e8] sm:$0xff]  }
 0x107   :  { %v14425_v30 = vpop.f32.mrf.mxu0  ;;  %14738 = vmatprep.subr.bf16.mxu1 %v16213_v20  ;;  %v14446_v33 = vadd.f32 %v14445_v29, %v14444_v24  ;;  %v16250_v24 = vld [vmem:[%s20970_s1 + $0x928] sm:$0xff]  }
 0x108   :  { %v10416_v32 = vadd.f32 %v14424_v27, %v17936_v56  ;;  %14717 = vmatpush3.bf16.msra.mxu0 %v16214_v22  ;;  %v14447_v35 = vpop.f32.mrf.mxu1  ;;  %v2566_v56 = vrot.slane %v20_v54, %v17271_v41  ;;  %v16251_v27 = vld [vmem:[%s20970_s1 + $0x9a8] sm:$0xff]   ;;  %v16252_v30 = vld [vmem:[%s20970_s1 + $0x960] sm:$0xff]   ;;  %v16273_v54 = vld [vmem:[%s20970_s1 + $0xa78] sm:$0xff]  }
 0x109   :  { %v14426_v36 = vpop.f32.mrf.mxu0  ;;  %14718 = vmatprep.subr.bf16.mxu0 %v16216_v26  ;;  %v16255_v35 = vld [vmem:[%s20970_s1 + $0x9a0] sm:$0xff]  }
 0x10a   :  { %v18037_v38 = vadd.f32 %v14446_v33, %v10416_v32  ;;  %14739 = vmatpush3.bf16.msra.mxu1 %v16215_v23  ;;  %v14448_v40 = vpop.f32.mrf.mxu1  ;;  %v2574_v60 = vcombine.high %v2566_v56, %v2566_v56  ;;  %v2582_v4 = vrot.slane %v2566_v56, %v17271_v41  ;;  %v16253_v32 = vld [vmem:[%s20970_s1 + $0x9e0] sm:$0xff]   ;;  %v16256_v36 = vld [vmem:[%s20970_s1 + $0x958] sm:$0xff]  }
 0x10b   :  { %14740 = vmatprep.subr.bf16.mxu1 %v16217_v28  ;;  %v16260_v40 = vld [vmem:[%s20970_s1 + $0x950] sm:$0xff]   ;;  %v16275_v56 = vld [vmem:[%s20970_s1 + $0xa38] sm:$0xff]  }
 0x10c   :  { %14719 = vmatpush3.bf16.msra.mxu0 %v16218_v31  ;;  %v2596_v0 = vrot.slane %v2574_v60, %v17271_v41  ;;  %v2604_v10 = vcombine.high %v2582_v4, %v2582_v4  ;;  %v16278_v60 = vld [vmem:[%s20970_s1 + $0xaf0] sm:$0xff]  }
 0x10d   :  { %14720 = vmatprep.subr.bf16.mxu0 %v16220_v37  ;;  %v16257_v37 = vld [vmem:[%s20970_s1 + $0x9d8] sm:$0xff]  }
 0x10e   :  { %14741 = vmatpush3.bf16.msra.mxu1 %v16219_v34  ;;  %10973 = vmatprep.mubr.bf16.mxu0 %v2596_v0  ;;  %v2606_v3 = vcombine.high %v2596_v0, %v2596_v0  ;;  %v16254_v34 = vld [vmem:[%s20970_s1 + $0x920] sm:$0xff]  }
 0x10f   :  { %14742 = vmatprep.subr.bf16.mxu1 %v16221_v39  ;;  %v16259_v39 = vld [vmem:[%s20970_s1 + $0x998] sm:$0xff]  }
 0x110   :  { %14721 = vmatpush3.bf16.msra.mxu0 %v16222_v42  ;;  %11013 = vmatprep.mubr.bf16.mxu1 %v2606_v3  ;;  %v16261_v42 = vld [vmem:[%s20970_s1 + $0x9d0] sm:$0xff]  }
 0x111   :  { %14722 = vmatprep.subr.bf16.mxu0 %v16224_v44  ;;  %v16263_v44 = vld [vmem:[%s20970_s1 + $0x990] sm:$0xff]  }
 0x112   :  { %14743 = vmatpush3.bf16.msra.mxu1 %v16223_v43  ;;  %v16262_v43 = vld [vmem:[%s20970_s1 + $0x910] sm:$0xff]  }
 0x113   :  { %14744 = vmatprep.subr.bf16.mxu1 %v16225_v45  ;;  %v16264_v45 = vld [vmem:[%s20970_s1 + $0x948] sm:$0xff]  }
 0x114   :  { %14723 = vmatpush3.bf16.msra.mxu0 %v16226_v46  ;;  %v16265_v46 = vld [vmem:[%s20970_s1 + $0x9c8] sm:$0xff]  }
 0x115   :  { %14724 = vmatprep.subr.bf16.mxu0 %v16228_v48  ;;  %v16267_v48 = vld [vmem:[%s20970_s1 + $0x988] sm:$0xff]  }
 0x116   :  { %14745 = vmatpush3.bf16.msra.mxu1 %v16227_v47  ;;  %v16266_v47 = vld [vmem:[%s20970_s1 + $0x908] sm:$0xff]  }
 0x117   :  { %14746 = vmatprep.subr.bf16.mxu1 %v16229_v49  ;;  %v16268_v49 = vld [vmem:[%s20970_s1 + $0x940] sm:$0xff]  }
 0x118   :  { %14725 = vmatpush3.bf16.msra.mxu0 %v16230_v50  ;;  %v16269_v50 = vld [vmem:[%s20970_s1 + $0x9c0] sm:$0xff]  }
 0x119   :  { %14726 = vmatprep.subr.bf16.mxu0 %v16232_v52  ;;  %v16271_v52 = vld [vmem:[%s20970_s1 + $0x980] sm:$0xff]  }
 0x11a   :  { %14747 = vmatpush3.bf16.msra.mxu1 %v16231_v51  ;;  %v16270_v51 = vld [vmem:[%s20970_s1 + $0x900] sm:$0xff]  }
 0x11b   :  { %14748 = vmatprep.subr.bf16.mxu1 %v16233_v53  ;;  %v2589_v53 = vrot.slane %v18092_v61, %v17271_v41 }
 0x11c   :  { %14727 = vmatpush3.bf16.msra.mxu0 %v16234_v55  ;;  %v16274_v55 = vld [vmem:[%s20970_s1 + $0xaf8] sm:$0xff]  }
 0x11d   :  { %14728 = vmatprep.subr.bf16.mxu0 %v16236_v59  ;;  %v16277_v59 = vld [vmem:[%s20970_s1 + $0xa70] sm:$0xff]  }
 0x11e   :  { %14749 = vmatpush3.bf16.msra.mxu1 %v16235_v58  ;;  %v2605_v58 = vcombine.high %v2589_v53, %v2589_v53 }
 0x11f   :  { %14750 = vmatprep.subr.bf16.mxu1 %v16237_v62  ;;  %v16279_v62 = vld [vmem:[%s20970_s1 + $0xa30] sm:$0xff]  }
 0x120   :  { %14729 = vmatpush3.bf16.msra.mxu0 %v16238_v63  ;;  %v16280_v63 = vld [vmem:[%s20970_s1 + $0xab0] sm:$0xff]  }
 0x121   :  { %14758 = vmatprep.subr.bf16.mxu0 %v16240_v5 }
 0x122   :  { %14751 = vmatpush3.bf16.msra.mxu1 %v16239_v2  ;;  %v16281_v2 = vld [vmem:[%s20970_s1 + $0xa68] sm:$0xff]  }
 0x123   :  { %v14466_v14 = vpop.f32.mrf.mxu0  ;;  %10974 = vmatmul.mubr.bf16.vlgmr.msra.gmra.mxu0 %v2582_v4  ;;  %14780 = vmatprep.subr.bf16.mxu1 %v16241_v6  ;;  %v16282_v4 = vld [vmem:[%s20970_s1 + $0xae8] sm:$0xff]  }
 0x124   :  { %14759 = vmatpush3.bf16.msra.mxu0 %v16242_v8  ;;  %11053 = vmatprep.mubr.bf16.mxu0 %v2603_v7  ;;  %v16283_v7 = vld [vmem:[%s20970_s1 + $0xa28] sm:$0xff]  }
 0x125   :  { %v14488_v17 = vpop.f32.mrf.mxu1  ;;  %11014 = vmatmul.mubr.bf16.vlgmr.msra.gmra.mxu1 %v2604_v10  ;;  %v14467_v18 = vpop.f32.mrf.mxu0  ;;  %14760 = vmatprep.subr.bf16.mxu0 %v16244_v11  ;;  %v16284_v10 = vld [vmem:[%s20970_s1 + $0xaa8] sm:$0xff]  }
 0x126   :  { %14781 = vmatpush3.bf16.msra.mxu1 %v16243_v9  ;;  %v14468_v20 = vadd.f32 %v14467_v18, %v14466_v14  ;;  %11093 = vmatprep.mubr.bf16.mxu1 %v2607_v13  ;;  %v16285_v13 = vld [vmem:[%s20970_s1 + $0xa60] sm:$0xff]  }
 0x127   :  { %v14489_v22 = vpop.f32.mrf.mxu1  ;;  %v14469_v23 = vpop.f32.mrf.mxu0  ;;  %14782 = vmatprep.subr.bf16.mxu1 %v16245_v12  ;;  %v16288_v18 = vld [vmem:[%s20970_s1 + $0xaa0] sm:$0xff]  }
 0x128   :  { %v10496_v25 = vadd.f32 %v14468_v20, %v18037_v38  ;;  %v14490_v26 = vadd.f32 %v14489_v22, %v14488_v17  ;;  %14761 = vmatpush3.bf16.msra.mxu0 %v16246_v15  ;;  %v16258_v38 = vld [vmem:[%s20970_s1 + $0x918] sm:$0xff]   ;;  %v16286_v15 = vld [vmem:[%s20970_s1 + $0xae0] sm:$0xff]   ;;  %v16293_v23 = vld [vmem:[%s20970_s1 + $0xa50] sm:$0xff]  }
 0x129   :  { %v14491_v28 = vpop.f32.mrf.mxu1  ;;  %v14470_v29 = vpop.f32.mrf.mxu0  ;;  %14762 = vmatprep.subr.bf16.mxu0 %v16248_v19  ;;  %v16287_v17 = vld [vmem:[%s20970_s1 + $0xa20] sm:$0xff]   ;;  %v16289_v19 = vld [vmem:[%s20970_s1 + $0xa58] sm:$0xff]  }
 0x12a   :  { %v18148_v31 = vadd.f32 %v14490_v26, %v10496_v25  ;;  %14783 = vmatpush3.bf16.msra.mxu1 %v16247_v16  ;;  %v16290_v20 = vld [vmem:[%s20970_s1 + $0xad8] sm:$0xff]   ;;  %v16295_v25 = vld [vmem:[%s20970_s1 + $0xa10] sm:$0xff]   ;;  %v16298_v28 = vld [vmem:[%s20970_s1 + $0xac8] sm:$0xff]  }
 0x12b   :  { %v14492_v33 = vpop.f32.mrf.mxu1  ;;  %14784 = vmatprep.subr.bf16.mxu1 %v16249_v21  ;;  %v16291_v21 = vld [vmem:[%s20970_s1 + $0xa18] sm:$0xff]   ;;  %v16296_v26 = vld [vmem:[%s20970_s1 + $0xa90] sm:$0xff]   ;;  %v16299_v29 = vld [vmem:[%s20970_s1 + $0xa08] sm:$0xff]  }
 0x12c   :  { %14763 = vmatpush3.bf16.msra.mxu0 %v16250_v24  ;;  %v16292_v22 = vld [vmem:[%s20970_s1 + $0xa98] sm:$0xff]   ;;  %v16294_v24 = vld [vmem:[%s20970_s1 + $0xad0] sm:$0xff]  }
 0x12d   :  { %14764 = vmatprep.subr.bf16.mxu0 %v16252_v30  ;;  %v21_v30 = vld [vmem:[%s20969_s0 + $0x28] sm:$0xff] }
 0x12e   :  { %14785 = vmatpush3.bf16.msra.mxu1 %v16251_v27  ;;  %v16297_v27 = vld [vmem:[%s20970_s1 + $0xa48] sm:$0xff]   ;;  %v2608_v33 = vcombine.high %v21_v30, %v21_v30 }
 0x12f   :  { %14786 = vmatprep.subr.bf16.mxu1 %v16253_v32  ;;  %v2615_v32 = vrot.slane %v21_v30, %v17271_v41  ;;  %v16339_v30 = vld [vmem:[%s20970_s1 + $0xcf8] sm:$0xff]  }
 0x130   :  { %14765 = vmatpush3.bf16.msra.mxu0 %v16254_v34  ;;  %v16301_v34 = vld [vmem:[%s20970_s1 + $0xa40] sm:$0xff]  }
 0x131   :  { %14766 = vmatprep.subr.bf16.mxu0 %v16256_v36  ;;  %v2623_v36 = vcombine.high %v2615_v32, %v2615_v32 }
 0x132   :  { %14787 = vmatpush3.bf16.msra.mxu1 %v16255_v35  ;;  %v16302_v35 = vld [vmem:[%s20970_s1 + $0xac0] sm:$0xff]  }
 0x133   :  { %14788 = vmatprep.subr.bf16.mxu1 %v16257_v37  ;;  %v18307_v37 = vrot.slane %v2608_v33, %v17271_v41 }
 0x134   :  { %14767 = vmatpush3.bf16.msra.mxu0 %v16258_v38  ;;  %v16303_v38 = vld [vmem:[%s20970_s1 + $0xa00] sm:$0xff]  }
 0x135   :  { %14768 = vmatprep.subr.bf16.mxu0 %v16260_v40  ;;  %v2645_v40 = vrot.slane %v2623_v36, %v17271_v41 }
 0x136   :  { %14789 = vmatpush3.bf16.msra.mxu1 %v16259_v39  ;;  %v16304_v39 = vld [vmem:[%s20970_s1 + $0xa80] sm:$0xff]  }
 0x137   :  { %14790 = vmatprep.subr.bf16.mxu1 %v16261_v42  ;;  %v2624_v42 = vcombine.high %v18307_v37, %v18307_v37 }
 0x138   :  { %14769 = vmatpush3.bf16.msra.mxu0 %v16262_v43  ;;  %v2631_v43 = vrot.slane %v2615_v32, %v17271_v41  ;;  %v16341_v32 = vld [vmem:[%s20970_s1 + $0xcb8] sm:$0xff]  }
 0x139   :  { %14770 = vmatprep.subr.bf16.mxu0 %v16264_v45  ;;  %v2655_v45 = vcombine.high %v2645_v40, %v2645_v40 }
 0x13a   :  { %14791 = vmatpush3.bf16.msra.mxu1 %v16263_v44  ;;  %v16305_v44 = vld [vmem:[%s20970_s1 + $0xb78] sm:$0xff]  }
 0x13b   :  { %14792 = vmatprep.subr.bf16.mxu1 %v16265_v46  ;;  %v16306_v46 = vld [vmem:[%s20970_s1 + $0xbf8] sm:$0xff]  }
 0x13c   :  { %14771 = vmatpush3.bf16.msra.mxu0 %v16266_v47  ;;  %v2652_v47 = vrot.slane %v2624_v42, %v17271_v41  ;;  %v16346_v42 = vld [vmem:[%s20970_s1 + $0xc68] sm:$0xff]  }
 0x13d   :  { %14772 = vmatprep.subr.bf16.mxu0 %v16268_v49  ;;  %v16308_v49 = vld [vmem:[%s20970_s1 + $0xbb8] sm:$0xff]  }
 0x13e   :  { %14793 = vmatpush3.bf16.msra.mxu1 %v16267_v48  ;;  %v16307_v48 = vld [vmem:[%s20970_s1 + $0xb38] sm:$0xff]  }
 0x13f   :  { %14794 = vmatprep.subr.bf16.mxu1 %v16269_v50  ;;  %v2653_v50 = vcombine.high %v2631_v43, %v2631_v43 }
 0x140   :  { %14773 = vmatpush3.bf16.msra.mxu0 %v16270_v51  ;;  %v16309_v51 = vld [vmem:[%s20970_s1 + $0xb70] sm:$0xff]  }
 0x141   :  { %14802 = vmatprep.subr.bf16.mxu0 %v16273_v54 }
 0x142   :  { %14795 = vmatpush3.bf16.msra.mxu1 %v16271_v52  ;;  %v16310_v52 = vld [vmem:[%s20970_s1 + $0xbf0] sm:$0xff]  }
 0x143   :  { %v14510_v61 = vpop.f32.mrf.mxu0  ;;  %11054 = vmatmul.mubr.bf16.vlgmr.msra.gmra.mxu0 %v2589_v53  ;;  %14824 = vmatprep.subr.bf16.mxu1 %v16274_v55  ;;  %v2656_v53 = vcombine.high %v2652_v47, %v2652_v47  ;;  %v16311_v55 = vld [vmem:[%s20970_s1 + $0xb30] sm:$0xff]  }
 0x144   :  { %14803 = vmatpush3.bf16.msra.mxu0 %v16275_v56  ;;  %11133 = vmatprep.mubr.bf16.mxu0 %v2645_v40  ;;  %v16312_v56 = vld [vmem:[%s20970_s1 + $0xbb0] sm:$0xff]  }
 0x145   :  { %v14532_v0 = vpop.f32.mrf.mxu1  ;;  %11094 = vmatmul.mubr.bf16.vlgmr.msra.gmra.mxu1 %v2605_v58  ;;  %v14511_v1 = vpop.f32.mrf.mxu0  ;;  %14804 = vmatprep.subr.bf16.mxu0 %v16277_v59  ;;  %v16313_v59 = vld [vmem:[%s20970_s1 + $0xb68] sm:$0xff]  }
 0x146   :  { %14825 = vmatpush3.bf16.msra.mxu1 %v16276_v57  ;;  %v14512_v3 = vadd.f32 %v14511_v1, %v14510_v61  ;;  %11173 = vmatprep.mubr.bf16.mxu1 %v2655_v45  ;;  %v16314_v61 = vld [vmem:[%s20970_s1 + $0xbe8] sm:$0xff]  }
 0x147   :  { %v14533_v5 = vpop.f32.mrf.mxu1  ;;  %v14513_v6 = vpop.f32.mrf.mxu0  ;;  %14826 = vmatprep.subr.bf16.mxu1 %v16278_v60 }
 0x148   :  { %v10576_v8 = vadd.f32 %v14512_v3, %v18148_v31  ;;  %v14534_v9 = vadd.f32 %v14533_v5, %v14532_v0  ;;  %14805 = vmatpush3.bf16.msra.mxu0 %v16279_v62  ;;  %v16300_v31 = vld [vmem:[%s20970_s1 + $0xa88] sm:$0xff]   ;;  %v16317_v6 = vld [vmem:[%s20970_s1 + $0xb60] sm:$0xff]  }
 0x149   :  { %v14535_v11 = vpop.f32.mrf.mxu1  ;;  %v14514_v12 = vpop.f32.mrf.mxu0  ;;  %14806 = vmatprep.subr.bf16.mxu0 %v16281_v2  ;;  %v16315_v0 = vld [vmem:[%s20970_s1 + $0xb28] sm:$0xff]  }
 0x14a   :  { %v18249_v14 = vadd.f32 %v14534_v9, %v10576_v8  ;;  %14827 = vmatpush3.bf16.msra.mxu1 %v16280_v63  ;;  %v16316_v3 = vld [vmem:[%s20970_s1 + $0xba8] sm:$0xff]   ;;  %v16318_v8 = vld [vmem:[%s20970_s1 + $0xbe0] sm:$0xff]   ;;  %v16321_v12 = vld [vmem:[%s20970_s1 + $0xb58] sm:$0xff]  }
 0x14b   :  { %v14536_v16 = vpop.f32.mrf.mxu1  ;;  %14828 = vmatprep.subr.bf16.mxu1 %v16282_v4  ;;  %v16320_v11 = vld [vmem:[%s20970_s1 + $0xba0] sm:$0xff]  }
 0x14c   :  { %14807 = vmatpush3.bf16.msra.mxu0 %v16283_v7  ;;  %v16325_v16 = vld [vmem:[%s20970_s1 + $0xb50] sm:$0xff]  }
 0x14d   :  { %14808 = vmatprep.subr.bf16.mxu0 %v16285_v13  ;;  %v16322_v13 = vld [vmem:[%s20970_s1 + $0xbd8] sm:$0xff]  }
 0x14e   :  { %14829 = vmatpush3.bf16.msra.mxu1 %v16284_v10  ;;  %v16319_v10 = vld [vmem:[%s20970_s1 + $0xb20] sm:$0xff]  }
 0x14f   :  { %14830 = vmatprep.subr.bf16.mxu1 %v16286_v15  ;;  %v16324_v15 = vld [vmem:[%s20970_s1 + $0xb98] sm:$0xff]  }
 0x150   :  { %14809 = vmatpush3.bf16.msra.mxu0 %v16287_v17  ;;  %v16326_v17 = vld [vmem:[%s20970_s1 + $0xbd0] sm:$0xff]  }
 0x151   :  { %14810 = vmatprep.subr.bf16.mxu0 %v16289_v19  ;;  %v16328_v19 = vld [vmem:[%s20970_s1 + $0xb90] sm:$0xff]  }
 0x152   :  { %14831 = vmatpush3.bf16.msra.mxu1 %v16288_v18  ;;  %v16327_v18 = vld [vmem:[%s20970_s1 + $0xb10] sm:$0xff]  }
 0x153   :  { %14832 = vmatprep.subr.bf16.mxu1 %v16290_v20  ;;  %v16329_v20 = vld [vmem:[%s20970_s1 + $0xb48] sm:$0xff]  }
 0x154   :  { %14811 = vmatpush3.bf16.msra.mxu0 %v16291_v21  ;;  %v16330_v21 = vld [vmem:[%s20970_s1 + $0xbc8] sm:$0xff]  }
 0x155   :  { %14812 = vmatprep.subr.bf16.mxu0 %v16293_v23  ;;  %v16332_v23 = vld [vmem:[%s20970_s1 + $0xb88] sm:$0xff]  }
 0x156   :  { %14833 = vmatpush3.bf16.msra.mxu1 %v16292_v22  ;;  %v16331_v22 = vld [vmem:[%s20970_s1 + $0xb08] sm:$0xff]  }
 0x157   :  { %14834 = vmatprep.subr.bf16.mxu1 %v16294_v24  ;;  %v16333_v24 = vld [vmem:[%s20970_s1 + $0xb40] sm:$0xff]  }
 0x158   :  { %14813 = vmatpush3.bf16.msra.mxu0 %v16295_v25  ;;  %v16334_v25 = vld [vmem:[%s20970_s1 + $0xbc0] sm:$0xff]  }
 0x159   :  { %14814 = vmatprep.subr.bf16.mxu0 %v16297_v27  ;;  %v16336_v27 = vld [vmem:[%s20970_s1 + $0xb80] sm:$0xff]  }
 0x15a   :  { %14835 = vmatpush3.bf16.msra.mxu1 %v16296_v26  ;;  %v16335_v26 = vld [vmem:[%s20970_s1 + $0xb00] sm:$0xff]  }
 0x15b   :  { %14836 = vmatprep.subr.bf16.mxu1 %v16298_v28  ;;  %v2638_v28 = vrot.slane %v18307_v37, %v17271_v41  ;;  %v16344_v37 = vld [vmem:[%s20970_s1 + $0xc30] sm:$0xff]  }
 0x15c   :  { %14815 = vmatpush3.bf16.msra.mxu0 %v16299_v29  ;;  %v16338_v29 = vld [vmem:[%s20970_s1 + $0xc78] sm:$0xff]  }
 0x15d   :  { %14816 = vmatprep.subr.bf16.mxu0 %v16301_v34  ;;  %v2654_v33 = vcombine.high %v2638_v28, %v2638_v28  ;;  %v16342_v34 = vld [vmem:[%s20970_s1 + $0xc70] sm:$0xff]  }
 0x15e   :  { %14837 = vmatpush3.bf16.msra.mxu1 %v16300_v31  ;;  %v16340_v31 = vld [vmem:[%s20970_s1 + $0xc38] sm:$0xff]  }
 0x15f   :  { %14838 = vmatprep.subr.bf16.mxu1 %v16302_v35  ;;  %v16343_v35 = vld [vmem:[%s20970_s1 + $0xcf0] sm:$0xff]  }
 0x160   :  { %14817 = vmatpush3.bf16.msra.mxu0 %v16303_v38  ;;  %v16345_v38 = vld [vmem:[%s20970_s1 + $0xcb0] sm:$0xff]  }
 0x161   :  { %14846 = vmatprep.subr.bf16.mxu0 %v16305_v44  ;;  %v16347_v44 = vld [vmem:[%s20970_s1 + $0xce8] sm:$0xff]  }
 0x162   :  { %14839 = vmatpush3.bf16.msra.mxu1 %v16304_v39 }
 0x163   :  { %v14554_v54 = vpop.f32.mrf.mxu0  ;;  %11134 = vmatmul.mubr.bf16.vlgmr.msra.gmra.mxu0 %v2631_v43  ;;  %14868 = vmatprep.subr.bf16.mxu1 %v16306_v46 }
 0x164   :  { %14847 = vmatpush3.bf16.msra.mxu0 %v16307_v48  ;;  %11213 = vmatprep.mubr.bf16.mxu0 %v2652_v47  ;;  %v16348_v47 = vld [vmem:[%s20970_s1 + $0xc28] sm:$0xff]  }
 0x165   :  { %v14576_v57 = vpop.f32.mrf.mxu1  ;;  %11174 = vmatmul.mubr.bf16.vlgmr.msra.gmra.mxu1 %v2653_v50  ;;  %v14555_v58 = vpop.f32.mrf.mxu0  ;;  %14848 = vmatprep.subr.bf16.mxu0 %v16309_v51  ;;  %v16349_v50 = vld [vmem:[%s20970_s1 + $0xca8] sm:$0xff]  }
 0x166   :  { %14869 = vmatpush3.bf16.msra.mxu1 %v16308_v49  ;;  %v14556_v60 = vadd.f32 %v14555_v58, %v14554_v54  ;;  %11253 = vmatprep.mubr.bf16.mxu1 %v2656_v53  ;;  %v16350_v53 = vld [vmem:[%s20970_s1 + $0xc60] sm:$0xff]  }
 0x167   :  { %v14577_v62 = vpop.f32.mrf.mxu1  ;;  %v14557_v63 = vpop.f32.mrf.mxu0  ;;  %14870 = vmatprep.subr.bf16.mxu1 %v16310_v52  ;;  %v16353_v58 = vld [vmem:[%s20970_s1 + $0xca0] sm:$0xff]  }
 0x168   :  { %v10656_v1 = vadd.f32 %v14556_v60, %v18249_v14  ;;  %v14578_v2 = vadd.f32 %v14577_v62, %v14576_v57  ;;  %14849 = vmatpush3.bf16.msra.mxu0 %v16311_v55  ;;  %v16323_v14 = vld [vmem:[%s20970_s1 + $0xb18] sm:$0xff]   ;;  %v16351_v55 = vld [vmem:[%s20970_s1 + $0xce0] sm:$0xff]   ;;  %v16358_v63 = vld [vmem:[%s20970_s1 + $0xc50] sm:$0xff]  }
 0x169   :  { %v14579_v4 = vpop.f32.mrf.mxu1  ;;  %v14558_v5 = vpop.f32.mrf.mxu0  ;;  %14850 = vmatprep.subr.bf16.mxu0 %v16313_v59  ;;  %v16352_v57 = vld [vmem:[%s20970_s1 + $0xc20] sm:$0xff]   ;;  %v16354_v59 = vld [vmem:[%s20970_s1 + $0xc58] sm:$0xff]  }
 0x16a   :  { %v18360_v7 = vadd.f32 %v14578_v2, %v10656_v1  ;;  %14871 = vmatpush3.bf16.msra.mxu1 %v16312_v56  ;;  %v16355_v60 = vld [vmem:[%s20970_s1 + $0xcd8] sm:$0xff]   ;;  %v16360_v1 = vld [vmem:[%s20970_s1 + $0xc10] sm:$0xff]   ;;  %v16363_v4 = vld [vmem:[%s20970_s1 + $0xcc8] sm:$0xff]  }
 0x16b   :  { %v14580_v9 = vpop.f32.mrf.mxu1  ;;  %14872 = vmatprep.subr.bf16.mxu1 %v16314_v61  ;;  %v16356_v61 = vld [vmem:[%s20970_s1 + $0xc18] sm:$0xff]   ;;  %v16361_v2 = vld [vmem:[%s20970_s1 + $0xc90] sm:$0xff]   ;;  %v16364_v5 = vld [vmem:[%s20970_s1 + $0xc08] sm:$0xff]  }
 0x16c   :  { %14851 = vmatpush3.bf16.msra.mxu0 %v16315_v0  ;;  %v16357_v62 = vld [vmem:[%s20970_s1 + $0xc98] sm:$0xff]   ;;  %v16359_v0 = vld [vmem:[%s20970_s1 + $0xcd0] sm:$0xff]  }
 0x16d   :  { %14852 = vmatprep.subr.bf16.mxu0 %v16317_v6  ;;  %v22_v6 = vld [vmem:[%s20969_s0 + $0x30] sm:$0xff] }
 0x16e   :  { %14873 = vmatpush3.bf16.msra.mxu1 %v16316_v3  ;;  %v16362_v3 = vld [vmem:[%s20970_s1 + $0xc48] sm:$0xff]   ;;  %v2657_v9 = vcombine.high %v22_v6, %v22_v6 }
 0x16f   :  { %14874 = vmatprep.subr.bf16.mxu1 %v16318_v8  ;;  %v2664_v8 = vrot.slane %v22_v6, %v17271_v41  ;;  %v16404_v6 = vld [vmem:[%s20970_s1 + $0xef8] sm:$0xff]  }
 0x170   :  { %14853 = vmatpush3.bf16.msra.mxu0 %v16319_v10  ;;  %v16366_v10 = vld [vmem:[%s20970_s1 + $0xc40] sm:$0xff]  }
 0x171   :  { %14854 = vmatprep.subr.bf16.mxu0 %v16321_v12  ;;  %v2672_v12 = vcombine.high %v2664_v8, %v2664_v8 }
 0x172   :  { %14875 = vmatpush3.bf16.msra.mxu1 %v16320_v11  ;;  %v16367_v11 = vld [vmem:[%s20970_s1 + $0xcc0] sm:$0xff]  }
 0x173   :  { %14876 = vmatprep.subr.bf16.mxu1 %v16322_v13  ;;  %v18519_v13 = vrot.slane %v2657_v9, %v17271_v41 }
 0x174   :  { %14855 = vmatpush3.bf16.msra.mxu0 %v16323_v14  ;;  %v16368_v14 = vld [vmem:[%s20970_s1 + $0xc00] sm:$0xff]  }
 0x175   :  { %14856 = vmatprep.subr.bf16.mxu0 %v16325_v16  ;;  %v2694_v16 = vrot.slane %v2672_v12, %v17271_v41 }
 0x176   :  { %14877 = vmatpush3.bf16.msra.mxu1 %v16324_v15  ;;  %v16369_v15 = vld [vmem:[%s20970_s1 + $0xc80] sm:$0xff]  }
 0x177   :  { %14878 = vmatprep.subr.bf16.mxu1 %v16326_v17  ;;  %v2673_v17 = vcombine.high %v18519_v13, %v18519_v13 }
 0x178   :  { %14857 = vmatpush3.bf16.msra.mxu0 %v16327_v18  ;;  %v2680_v18 = vrot.slane %v2664_v8, %v17271_v41  ;;  %v16406_v8 = vld [vmem:[%s20970_s1 + $0xeb8] sm:$0xff]  }
 0x179   :  { %14858 = vmatprep.subr.bf16.mxu0 %v16329_v20  ;;  %v2704_v20 = vcombine.high %v2694_v16, %v2694_v16 }
 0x17a   :  { %14879 = vmatpush3.bf16.msra.mxu1 %v16328_v19  ;;  %v16370_v19 = vld [vmem:[%s20970_s1 + $0xd78] sm:$0xff]  }
 0x17b   :  { %14880 = vmatprep.subr.bf16.mxu1 %v16330_v21  ;;  %v16371_v21 = vld [vmem:[%s20970_s1 + $0xdf8] sm:$0xff]  }
 0x17c   :  { %14859 = vmatpush3.bf16.msra.mxu0 %v16331_v22  ;;  %v2701_v22 = vrot.slane %v2673_v17, %v17271_v41  ;;  %v16411_v17 = vld [vmem:[%s20970_s1 + $0xe68] sm:$0xff]  }
 0x17d   :  { %14860 = vmatprep.subr.bf16.mxu0 %v16333_v24  ;;  %v16373_v24 = vld [vmem:[%s20970_s1 + $0xdb8] sm:$0xff]  }
 0x17e   :  { %14881 = vmatpush3.bf16.msra.mxu1 %v16332_v23  ;;  %v16372_v23 = vld [vmem:[%s20970_s1 + $0xd38] sm:$0xff]  }
 0x17f   :  { %14882 = vmatprep.subr.bf16.mxu1 %v16334_v25  ;;  %v2702_v25 = vcombine.high %v2680_v18, %v2680_v18 }
 0x180   :  { %14861 = vmatpush3.bf16.msra.mxu0 %v16335_v26  ;;  %v16374_v26 = vld [vmem:[%s20970_s1 + $0xd70] sm:$0xff]  }
 0x181   :  { %14890 = vmatprep.subr.bf16.mxu0 %v16338_v29 }
 0x182   :  { %14883 = vmatpush3.bf16.msra.mxu1 %v16336_v27  ;;  %v16375_v27 = vld [vmem:[%s20970_s1 + $0xdf0] sm:$0xff]  }
 0x183   :  { %v14598_v36 = vpop.f32.mrf.mxu0  ;;  %11214 = vmatmul.mubr.bf16.vlgmr.msra.gmra.mxu0 %v2638_v28  ;;  %14912 = vmatprep.subr.bf16.mxu1 %v16339_v30  ;;  %v2705_v28 = vcombine.high %v2701_v22, %v2701_v22  ;;  %v16376_v30 = vld [vmem:[%s20970_s1 + $0xd30] sm:$0xff]  }
 0x184   :  { %14891 = vmatpush3.bf16.msra.mxu0 %v16340_v31  ;;  %11293 = vmatprep.mubr.bf16.mxu0 %v2694_v16  ;;  %v16377_v31 = vld [vmem:[%s20970_s1 + $0xdb0] sm:$0xff]  }
 0x185   :  { %v14620_v39 = vpop.f32.mrf.mxu1  ;;  %11254 = vmatmul.mubr.bf16.vlgmr.msra.gmra.mxu1 %v2654_v33  ;;  %v14599_v40 = vpop.f32.mrf.mxu0  ;;  %14892 = vmatprep.subr.bf16.mxu0 %v16342_v34  ;;  %v16378_v34 = vld [vmem:[%s20970_s1 + $0xd68] sm:$0xff]  }
 0x186   :  { %14913 = vmatpush3.bf16.msra.mxu1 %v16341_v32  ;;  %v14600_v43 = vadd.f32 %v14599_v40, %v14598_v36  ;;  %11333 = vmatprep.mubr.bf16.mxu1 %v2704_v20  ;;  %v16379_v36 = vld [vmem:[%s20970_s1 + $0xde8] sm:$0xff]  }
 0x187   :  { %v14621_v45 = vpop.f32.mrf.mxu1  ;;  %v14601_v46 = vpop.f32.mrf.mxu0  ;;  %14914 = vmatprep.subr.bf16.mxu1 %v16343_v35 }
 0x188   :  { %v10736_v48 = vadd.f32 %v14600_v43, %v18360_v7  ;;  %v14622_v49 = vadd.f32 %v14621_v45, %v14620_v39  ;;  %14893 = vmatpush3.bf16.msra.mxu0 %v16344_v37  ;;  %v16365_v7 = vld [vmem:[%s20970_s1 + $0xc88] sm:$0xff]   ;;  %v16382_v46 = vld [vmem:[%s20970_s1 + $0xd60] sm:$0xff]  }
 0x189   :  { %v14623_v51 = vpop.f32.mrf.mxu1  ;;  %v14602_v52 = vpop.f32.mrf.mxu0  ;;  %14894 = vmatprep.subr.bf16.mxu0 %v16346_v42  ;;  %v16380_v39 = vld [vmem:[%s20970_s1 + $0xd28] sm:$0xff]  }
 0x18a   :  { %v18461_v54 = vadd.f32 %v14622_v49, %v10736_v48  ;;  %14915 = vmatpush3.bf16.msra.mxu1 %v16345_v38  ;;  %v16381_v43 = vld [vmem:[%s20970_s1 + $0xda8] sm:$0xff]   ;;  %v16383_v48 = vld [vmem:[%s20970_s1 + $0xde0] sm:$0xff]   ;;  %v16386_v52 = vld [vmem:[%s20970_s1 + $0xd58] sm:$0xff]  }
 0x18b   :  { %v14624_v56 = vpop.f32.mrf.mxu1  ;;  %14916 = vmatprep.subr.bf16.mxu1 %v16347_v44  ;;  %v16385_v51 = vld [vmem:[%s20970_s1 + $0xda0] sm:$0xff]  }
 0x18c   :  { %14895 = vmatpush3.bf16.msra.mxu0 %v16348_v47  ;;  %v16390_v56 = vld [vmem:[%s20970_s1 + $0xd50] sm:$0xff]  }
 0x18d   :  { %14896 = vmatprep.subr.bf16.mxu0 %v16350_v53  ;;  %v16387_v53 = vld [vmem:[%s20970_s1 + $0xdd8] sm:$0xff]  }
 0x18e   :  { %14917 = vmatpush3.bf16.msra.mxu1 %v16349_v50  ;;  %v16384_v50 = vld [vmem:[%s20970_s1 + $0xd20] sm:$0xff]  }
 0x18f   :  { %14918 = vmatprep.subr.bf16.mxu1 %v16351_v55  ;;  %v16389_v55 = vld [vmem:[%s20970_s1 + $0xd98] sm:$0xff]  }
 0x190   :  { %14897 = vmatpush3.bf16.msra.mxu0 %v16352_v57  ;;  %v16391_v57 = vld [vmem:[%s20970_s1 + $0xdd0] sm:$0xff]  }
 0x191   :  { %14898 = vmatprep.subr.bf16.mxu0 %v16354_v59  ;;  %v16393_v59 = vld [vmem:[%s20970_s1 + $0xd90] sm:$0xff]  }
 0x192   :  { %14919 = vmatpush3.bf16.msra.mxu1 %v16353_v58  ;;  %v16392_v58 = vld [vmem:[%s20970_s1 + $0xd10] sm:$0xff]  }
 0x193   :  { %14920 = vmatprep.subr.bf16.mxu1 %v16355_v60  ;;  %v16394_v60 = vld [vmem:[%s20970_s1 + $0xd48] sm:$0xff]  }
 0x194   :  { %14899 = vmatpush3.bf16.msra.mxu0 %v16356_v61  ;;  %v16395_v61 = vld [vmem:[%s20970_s1 + $0xdc8] sm:$0xff]  }
 0x195   :  { %14900 = vmatprep.subr.bf16.mxu0 %v16358_v63  ;;  %v16397_v63 = vld [vmem:[%s20970_s1 + $0xd88] sm:$0xff]  }
 0x196   :  { %14921 = vmatpush3.bf16.msra.mxu1 %v16357_v62  ;;  %v16396_v62 = vld [vmem:[%s20970_s1 + $0xd08] sm:$0xff]  }
 0x197   :  { %14922 = vmatprep.subr.bf16.mxu1 %v16359_v0  ;;  %v16398_v0 = vld [vmem:[%s20970_s1 + $0xd40] sm:$0xff]  }
 0x198   :  { %14901 = vmatpush3.bf16.msra.mxu0 %v16360_v1  ;;  %v16399_v1 = vld [vmem:[%s20970_s1 + $0xdc0] sm:$0xff]  }
 0x199   :  { %14902 = vmatprep.subr.bf16.mxu0 %v16362_v3  ;;  %v16401_v3 = vld [vmem:[%s20970_s1 + $0xd80] sm:$0xff]  }
 0x19a   :  { %14923 = vmatpush3.bf16.msra.mxu1 %v16361_v2  ;;  %v16400_v2 = vld [vmem:[%s20970_s1 + $0xd00] sm:$0xff]  }
 0x19b   :  { %14924 = vmatprep.subr.bf16.mxu1 %v16363_v4  ;;  %v2687_v4 = vrot.slane %v18519_v13, %v17271_v41  ;;  %v16409_v13 = vld [vmem:[%s20970_s1 + $0xe30] sm:$0xff]  }
 0x19c   :  { %14903 = vmatpush3.bf16.msra.mxu0 %v16364_v5  ;;  %v16403_v5 = vld [vmem:[%s20970_s1 + $0xe78] sm:$0xff]  }
 0x19d   :  { %14904 = vmatprep.subr.bf16.mxu0 %v16366_v10  ;;  %v2703_v9 = vcombine.high %v2687_v4, %v2687_v4  ;;  %v16407_v10 = vld [vmem:[%s20970_s1 + $0xe70] sm:$0xff]  }
 0x19e   :  { %14925 = vmatpush3.bf16.msra.mxu1 %v16365_v7  ;;  %v16405_v7 = vld [vmem:[%s20970_s1 + $0xe38] sm:$0xff]  }
 0x19f   :  { %14926 = vmatprep.subr.bf16.mxu1 %v16367_v11  ;;  %v16408_v11 = vld [vmem:[%s20970_s1 + $0xef0] sm:$0xff]  }
 0x1a0   :  { %14905 = vmatpush3.bf16.msra.mxu0 %v16368_v14  ;;  %v16410_v14 = vld [vmem:[%s20970_s1 + $0xeb0] sm:$0xff]  }
 0x1a1   :  { %14934 = vmatprep.subr.bf16.mxu0 %v16370_v19  ;;  %v16412_v19 = vld [vmem:[%s20970_s1 + $0xee8] sm:$0xff]  }
 0x1a2   :  { %14927 = vmatpush3.bf16.msra.mxu1 %v16369_v15 }
 0x1a3   :  { %v14642_v29 = vpop.f32.mrf.mxu0  ;;  %11294 = vmatmul.mubr.bf16.vlgmr.msra.gmra.mxu0 %v2680_v18  ;;  %14956 = vmatprep.subr.bf16.mxu1 %v16371_v21 }
 0x1a4   :  { %14935 = vmatpush3.bf16.msra.mxu0 %v16372_v23  ;;  %11373 = vmatprep.mubr.bf16.mxu0 %v2701_v22  ;;  %v16413_v22 = vld [vmem:[%s20970_s1 + $0xe28] sm:$0xff]  }
 0x1a5   :  { %v14664_v32 = vpop.f32.mrf.mxu1  ;;  %11334 = vmatmul.mubr.bf16.vlgmr.msra.gmra.mxu1 %v2702_v25  ;;  %v14643_v33 = vpop.f32.mrf.mxu0  ;;  %14936 = vmatprep.subr.bf16.mxu0 %v16374_v26  ;;  %v16414_v25 = vld [vmem:[%s20970_s1 + $0xea8] sm:$0xff]  }
 0x1a6   :  { %14957 = vmatpush3.bf16.msra.mxu1 %v16373_v24  ;;  %v14644_v35 = vadd.f32 %v14643_v33, %v14642_v29  ;;  %11413 = vmatprep.mubr.bf16.mxu1 %v2705_v28  ;;  %v16415_v28 = vld [vmem:[%s20970_s1 + $0xe60] sm:$0xff]  }
 0x1a7   :  { %v14665_v37 = vpop.f32.mrf.mxu1  ;;  %v14645_v38 = vpop.f32.mrf.mxu0  ;;  %14958 = vmatprep.subr.bf16.mxu1 %v16375_v27  ;;  %v16418_v33 = vld [vmem:[%s20970_s1 + $0xea0] sm:$0xff]  }
 0x1a8   :  { %v10816_v40 = vadd.f32 %v14644_v35, %v18461_v54  ;;  %v14666_v42 = vadd.f32 %v14665_v37, %v14664_v32  ;;  %14937 = vmatpush3.bf16.msra.mxu0 %v16376_v30  ;;  %v16388_v54 = vld [vmem:[%s20970_s1 + $0xd18] sm:$0xff]   ;;  %v16416_v30 = vld [vmem:[%s20970_s1 + $0xee0] sm:$0xff]   ;;  %v16423_v38 = vld [vmem:[%s20970_s1 + $0xe50] sm:$0xff]  }
 0x1a9   :  { %v14667_v44 = vpop.f32.mrf.mxu1  ;;  %v14646_v45 = vpop.f32.mrf.mxu0  ;;  %14938 = vmatprep.subr.bf16.mxu0 %v16378_v34  ;;  %v16417_v32 = vld [vmem:[%s20970_s1 + $0xe20] sm:$0xff]   ;;  %v16419_v34 = vld [vmem:[%s20970_s1 + $0xe58] sm:$0xff]  }
 0x1aa   :  { %v18572_v47 = vadd.f32 %v14666_v42, %v10816_v40  ;;  %14959 = vmatpush3.bf16.msra.mxu1 %v16377_v31  ;;  %v16420_v35 = vld [vmem:[%s20970_s1 + $0xed8] sm:$0xff]   ;;  %v16425_v40 = vld [vmem:[%s20970_s1 + $0xe10] sm:$0xff]   ;;  %v16428_v44 = vld [vmem:[%s20970_s1 + $0xec8] sm:$0xff]  }
 0x1ab   :  { %v14668_v49 = vpop.f32.mrf.mxu1  ;;  %14960 = vmatprep.subr.bf16.mxu1 %v16379_v36  ;;  %v16421_v36 = vld [vmem:[%s20970_s1 + $0xe18] sm:$0xff]   ;;  %v16426_v42 = vld [vmem:[%s20970_s1 + $0xe90] sm:$0xff]   ;;  %v16429_v45 = vld [vmem:[%s20970_s1 + $0xe08] sm:$0xff]  }
 0x1ac   :  { %14939 = vmatpush3.bf16.msra.mxu0 %v16380_v39  ;;  %v16422_v37 = vld [vmem:[%s20970_s1 + $0xe98] sm:$0xff]   ;;  %v16424_v39 = vld [vmem:[%s20970_s1 + $0xed0] sm:$0xff]  }
 0x1ad   :  { %14940 = vmatprep.subr.bf16.mxu0 %v16382_v46  ;;  %v23_v46 = vld [vmem:[%s20969_s0 + $0x38] sm:$0xff] }
 0x1ae   :  { %14961 = vmatpush3.bf16.msra.mxu1 %v16381_v43  ;;  %v16427_v43 = vld [vmem:[%s20970_s1 + $0xe48] sm:$0xff]   ;;  %v2706_v49 = vcombine.high %v23_v46, %v23_v46 }
 0x1af   :  { %14962 = vmatprep.subr.bf16.mxu1 %v16383_v48  ;;  %v2713_v48 = vrot.slane %v23_v46, %v17271_v41  ;;  %v16469_v46 = vld [vmem:[%s20970_s1 + $0x10f8] sm:$0xff]  }
 0x1b0   :  { %14941 = vmatpush3.bf16.msra.mxu0 %v16384_v50  ;;  %v16431_v50 = vld [vmem:[%s20970_s1 + $0xe40] sm:$0xff]  }
 0x1b1   :  { %14942 = vmatprep.subr.bf16.mxu0 %v16386_v52  ;;  %v2721_v52 = vcombine.high %v2713_v48, %v2713_v48 }
 0x1b2   :  { %14963 = vmatpush3.bf16.msra.mxu1 %v16385_v51  ;;  %v16432_v51 = vld [vmem:[%s20970_s1 + $0xec0] sm:$0xff]  }
 0x1b3   :  { %14964 = vmatprep.subr.bf16.mxu1 %v16387_v53  ;;  %v18731_v53 = vrot.slane %v2706_v49, %v17271_v41 }
 0x1b4   :  { %14943 = vmatpush3.bf16.msra.mxu0 %v16388_v54  ;;  %v16433_v54 = vld [vmem:[%s20970_s1 + $0xe00] sm:$0xff]  }
 0x1b5   :  { %14944 = vmatprep.subr.bf16.mxu0 %v16390_v56  ;;  %v2743_v56 = vrot.slane %v2721_v52, %v17271_v41 }
 0x1b6   :  { %14965 = vmatpush3.bf16.msra.mxu1 %v16389_v55  ;;  %v16434_v55 = vld [vmem:[%s20970_s1 + $0xe80] sm:$0xff]  }
 0x1b7   :  { %14966 = vmatprep.subr.bf16.mxu1 %v16391_v57  ;;  %v2722_v57 = vcombine.high %v18731_v53, %v18731_v53 }
 0x1b8   :  { %14945 = vmatpush3.bf16.msra.mxu0 %v16392_v58  ;;  %v2729_v58 = vrot.slane %v2713_v48, %v17271_v41  ;;  %v16471_v48 = vld [vmem:[%s20970_s1 + $0x10b8] sm:$0xff]  }
 0x1b9   :  { %14946 = vmatprep.subr.bf16.mxu0 %v16394_v60  ;;  %v2753_v60 = vcombine.high %v2743_v56, %v2743_v56 }
 0x1ba   :  { %14967 = vmatpush3.bf16.msra.mxu1 %v16393_v59  ;;  %v16435_v59 = vld [vmem:[%s20970_s1 + $0xf78] sm:$0xff]  }
 0x1bb   :  { %14968 = vmatprep.subr.bf16.mxu1 %v16395_v61  ;;  %v16436_v61 = vld [vmem:[%s20970_s1 + $0xff8] sm:$0xff]  }
 0x1bc   :  { %14947 = vmatpush3.bf16.msra.mxu0 %v16396_v62  ;;  %v2750_v62 = vrot.slane %v2722_v57, %v17271_v41  ;;  %v16476_v57 = vld [vmem:[%s20970_s1 + $0x1068] sm:$0xff]  }
 0x1bd   :  { %14948 = vmatprep.subr.bf16.mxu0 %v16398_v0  ;;  %v16438_v0 = vld [vmem:[%s20970_s1 + $0xfb8] sm:$0xff]  }
 0x1be   :  { %14969 = vmatpush3.bf16.msra.mxu1 %v16397_v63  ;;  %v16437_v63 = vld [vmem:[%s20970_s1 + $0xf38] sm:$0xff]  }
 0x1bf   :  { %14970 = vmatprep.subr.bf16.mxu1 %v16399_v1  ;;  %v2751_v1 = vcombine.high %v2729_v58, %v2729_v58 }
 0x1c0   :  { %14949 = vmatpush3.bf16.msra.mxu0 %v16400_v2  ;;  %v16439_v2 = vld [vmem:[%s20970_s1 + $0xf70] sm:$0xff]  }
 0x1c1   :  { %14978 = vmatprep.subr.bf16.mxu0 %v16403_v5 }
 0x1c2   :  { %14971 = vmatpush3.bf16.msra.mxu1 %v16401_v3  ;;  %v16440_v3 = vld [vmem:[%s20970_s1 + $0xff0] sm:$0xff]  }
 0x1c3   :  { %v14686_v12 = vpop.f32.mrf.mxu0  ;;  %11374 = vmatmul.mubr.bf16.vlgmr.msra.gmra.mxu0 %v2687_v4  ;;  %15000 = vmatprep.subr.bf16.mxu1 %v16404_v6  ;;  %v2754_v4 = vcombine.high %v2750_v62, %v2750_v62  ;;  %v16441_v6 = vld [vmem:[%s20970_s1 + $0xf30] sm:$0xff]  }
 0x1c4   :  { %14979 = vmatpush3.bf16.msra.mxu0 %v16405_v7  ;;  %11453 = vmatprep.mubr.bf16.mxu0 %v2743_v56  ;;  %v16442_v7 = vld [vmem:[%s20970_s1 + $0xfb0] sm:$0xff]  }
 0x1c5   :  { %v14708_v15 = vpop.f32.mrf.mxu1  ;;  %11414 = vmatmul.mubr.bf16.vlgmr.msra.gmra.mxu1 %v2703_v9  ;;  %v14687_v16 = vpop.f32.mrf.mxu0  ;;  %14980 = vmatprep.subr.bf16.mxu0 %v16407_v10  ;;  %v16443_v10 = vld [vmem:[%s20970_s1 + $0xf68] sm:$0xff]  }
 0x1c6   :  { %15001 = vmatpush3.bf16.msra.mxu1 %v16406_v8  ;;  %v14688_v18 = vadd.f32 %v14687_v16, %v14686_v12  ;;  %11493 = vmatprep.mubr.bf16.mxu1 %v2753_v60  ;;  %v16444_v12 = vld [vmem:[%s20970_s1 + $0xfe8] sm:$0xff]  }
 0x1c7   :  { %v14709_v20 = vpop.f32.mrf.mxu1  ;;  %v14689_v21 = vpop.f32.mrf.mxu0  ;;  %15002 = vmatprep.subr.bf16.mxu1 %v16408_v11 }
 0x1c8   :  { %v10896_v23 = vadd.f32 %v14688_v18, %v18572_v47  ;;  %v14710_v24 = vadd.f32 %v14709_v20, %v14708_v15  ;;  %14981 = vmatpush3.bf16.msra.mxu0 %v16409_v13  ;;  %v16430_v47 = vld [vmem:[%s20970_s1 + $0xe88] sm:$0xff]   ;;  %v16447_v21 = vld [vmem:[%s20970_s1 + $0xf60] sm:$0xff]  }
 0x1c9   :  { %v14711_v26 = vpop.f32.mrf.mxu1  ;;  %v14690_v27 = vpop.f32.mrf.mxu0  ;;  %14982 = vmatprep.subr.bf16.mxu0 %v16411_v17  ;;  %v16445_v15 = vld [vmem:[%s20970_s1 + $0xf28] sm:$0xff]  }
 0x1ca   :  { %v18673_v29 = vadd.f32 %v14710_v24, %v10896_v23  ;;  %15003 = vmatpush3.bf16.msra.mxu1 %v16410_v14  ;;  %v16446_v18 = vld [vmem:[%s20970_s1 + $0xfa8] sm:$0xff]   ;;  %v16448_v23 = vld [vmem:[%s20970_s1 + $0xfe0] sm:$0xff]   ;;  %v16451_v27 = vld [vmem:[%s20970_s1 + $0xf58] sm:$0xff]  }
 0x1cb   :  { %v14712_v31 = vpop.f32.mrf.mxu1  ;;  %15004 = vmatprep.subr.bf16.mxu1 %v16412_v19  ;;  %v16450_v26 = vld [vmem:[%s20970_s1 + $0xfa0] sm:$0xff]  }
 0x1cc   :  { %14983 = vmatpush3.bf16.msra.mxu0 %v16413_v22  ;;  %v16455_v31 = vld [vmem:[%s20970_s1 + $0xf50] sm:$0xff]  }
 0x1cd   :  { %14984 = vmatprep.subr.bf16.mxu0 %v16415_v28  ;;  %v16452_v28 = vld [vmem:[%s20970_s1 + $0xfd8] sm:$0xff]  }
 0x1ce   :  { %15005 = vmatpush3.bf16.msra.mxu1 %v16414_v25  ;;  %v16449_v25 = vld [vmem:[%s20970_s1 + $0xf20] sm:$0xff]  }
 0x1cf   :  { %15006 = vmatprep.subr.bf16.mxu1 %v16416_v30  ;;  %v16454_v30 = vld [vmem:[%s20970_s1 + $0xf98] sm:$0xff]  }
 0x1d0   :  { %14985 = vmatpush3.bf16.msra.mxu0 %v16417_v32  ;;  %v16456_v32 = vld [vmem:[%s20970_s1 + $0xfd0] sm:$0xff]  }
 0x1d1   :  { %14986 = vmatprep.subr.bf16.mxu0 %v16419_v34  ;;  %v16458_v34 = vld [vmem:[%s20970_s1 + $0xf90] sm:$0xff]  }
 0x1d2   :  { %15007 = vmatpush3.bf16.msra.mxu1 %v16418_v33  ;;  %v16457_v33 = vld [vmem:[%s20970_s1 + $0xf10] sm:$0xff]  }
 0x1d3   :  { %15008 = vmatprep.subr.bf16.mxu1 %v16420_v35  ;;  %v16459_v35 = vld [vmem:[%s20970_s1 + $0xf48] sm:$0xff]  }
 0x1d4   :  { %14987 = vmatpush3.bf16.msra.mxu0 %v16421_v36  ;;  %v16460_v36 = vld [vmem:[%s20970_s1 + $0xfc8] sm:$0xff]  }
 0x1d5   :  { %14988 = vmatprep.subr.bf16.mxu0 %v16423_v38  ;;  %v16462_v38 = vld [vmem:[%s20970_s1 + $0xf88] sm:$0xff]  }
 0x1d6   :  { %15009 = vmatpush3.bf16.msra.mxu1 %v16422_v37  ;;  %v16461_v37 = vld [vmem:[%s20970_s1 + $0xf08] sm:$0xff]  }
 0x1d7   :  { %15010 = vmatprep.subr.bf16.mxu1 %v16424_v39  ;;  %v16463_v39 = vld [vmem:[%s20970_s1 + $0xf40] sm:$0xff]  }
 0x1d8   :  { %14989 = vmatpush3.bf16.msra.mxu0 %v16425_v40  ;;  %v16464_v40 = vld [vmem:[%s20970_s1 + $0xfc0] sm:$0xff]  }
 0x1d9   :  { %14990 = vmatprep.subr.bf16.mxu0 %v16427_v43  ;;  %v16466_v43 = vld [vmem:[%s20970_s1 + $0xf80] sm:$0xff]  }
 0x1da   :  { %15011 = vmatpush3.bf16.msra.mxu1 %v16426_v42  ;;  %v16465_v42 = vld [vmem:[%s20970_s1 + $0xf00] sm:$0xff]  }
 0x1db   :  { %15012 = vmatprep.subr.bf16.mxu1 %v16428_v44  ;;  %v2736_v44 = vrot.slane %v18731_v53, %v17271_v41  ;;  %v16474_v53 = vld [vmem:[%s20970_s1 + $0x1030] sm:$0xff]  }
 0x1dc   :  { %14991 = vmatpush3.bf16.msra.mxu0 %v16429_v45  ;;  %v16468_v45 = vld [vmem:[%s20970_s1 + $0x1078] sm:$0xff]  }
 0x1dd   :  { %14992 = vmatprep.subr.bf16.mxu0 %v16431_v50  ;;  %v2752_v49 = vcombine.high %v2736_v44, %v2736_v44  ;;  %v16472_v50 = vld [vmem:[%s20970_s1 + $0x1070] sm:$0xff]  }
 0x1de   :  { %15013 = vmatpush3.bf16.msra.mxu1 %v16430_v47  ;;  %v16470_v47 = vld [vmem:[%s20970_s1 + $0x1038] sm:$0xff]  }
 0x1df   :  { %15014 = vmatprep.subr.bf16.mxu1 %v16432_v51  ;;  %v16473_v51 = vld [vmem:[%s20970_s1 + $0x10f0] sm:$0xff]  }
 0x1e0   :  { %14993 = vmatpush3.bf16.msra.mxu0 %v16433_v54  ;;  %v16475_v54 = vld [vmem:[%s20970_s1 + $0x10b0] sm:$0xff]  }
 0x1e1   :  { %15022 = vmatprep.subr.bf16.mxu0 %v16435_v59  ;;  %v16477_v59 = vld [vmem:[%s20970_s1 + $0x10e8] sm:$0xff]  }
 0x1e2   :  { %15015 = vmatpush3.bf16.msra.mxu1 %v16434_v55 }
 0x1e3   :  { %v14730_v5 = vpop.f32.mrf.mxu0  ;;  %11454 = vmatmul.mubr.bf16.vlgmr.msra.gmra.mxu0 %v2729_v58  ;;  %15044 = vmatprep.subr.bf16.mxu1 %v16436_v61 }
 0x1e4   :  { %15023 = vmatpush3.bf16.msra.mxu0 %v16437_v63  ;;  %11533 = vmatprep.mubr.bf16.mxu0 %v2750_v62  ;;  %v16478_v62 = vld [vmem:[%s20970_s1 + $0x1028] sm:$0xff]  }
 0x1e5   :  { %v14752_v8 = vpop.f32.mrf.mxu1  ;;  %11494 = vmatmul.mubr.bf16.vlgmr.msra.gmra.mxu1 %v2751_v1  ;;  %v14731_v9 = vpop.f32.mrf.mxu0  ;;  %15024 = vmatprep.subr.bf16.mxu0 %v16439_v2  ;;  %v16479_v1 = vld [vmem:[%s20970_s1 + $0x10a8] sm:$0xff]  }
 0x1e6   :  { %15045 = vmatpush3.bf16.msra.mxu1 %v16438_v0  ;;  %v14732_v11 = vadd.f32 %v14731_v9, %v14730_v5  ;;  %11573 = vmatprep.mubr.bf16.mxu1 %v2754_v4  ;;  %v16480_v4 = vld [vmem:[%s20970_s1 + $0x1060] sm:$0xff]  }
 0x1e7   :  { %v14753_v13 = vpop.f32.mrf.mxu1  ;;  %v14733_v14 = vpop.f32.mrf.mxu0  ;;  %15046 = vmatprep.subr.bf16.mxu1 %v16440_v3  ;;  %v16483_v9 = vld [vmem:[%s20970_s1 + $0x10a0] sm:$0xff]  }
 0x1e8   :  { %v10976_v16 = vadd.f32 %v14732_v11, %v18673_v29  ;;  %v14754_v17 = vadd.f32 %v14753_v13, %v14752_v8  ;;  %15025 = vmatpush3.bf16.msra.mxu0 %v16441_v6  ;;  %v16453_v29 = vld [vmem:[%s20970_s1 + $0xf18] sm:$0xff]   ;;  %v16481_v6 = vld [vmem:[%s20970_s1 + $0x10e0] sm:$0xff]   ;;  %v16488_v14 = vld [vmem:[%s20970_s1 + $0x1050] sm:$0xff]  }
 0x1e9   :  { %v14755_v19 = vpop.f32.mrf.mxu1  ;;  %v14734_v20 = vpop.f32.mrf.mxu0  ;;  %15026 = vmatprep.subr.bf16.mxu0 %v16443_v10  ;;  %v16482_v8 = vld [vmem:[%s20970_s1 + $0x1020] sm:$0xff]   ;;  %v16484_v10 = vld [vmem:[%s20970_s1 + $0x1058] sm:$0xff]  }
 0x1ea   :  { %v18784_v22 = vadd.f32 %v14754_v17, %v10976_v16  ;;  %15047 = vmatpush3.bf16.msra.mxu1 %v16442_v7  ;;  %v16485_v11 = vld [vmem:[%s20970_s1 + $0x10d8] sm:$0xff]   ;;  %v16490_v16 = vld [vmem:[%s20970_s1 + $0x1010] sm:$0xff]   ;;  %v16493_v19 = vld [vmem:[%s20970_s1 + $0x10c8] sm:$0xff]  }
 0x1eb   :  { %v14756_v24 = vpop.f32.mrf.mxu1  ;;  %15048 = vmatprep.subr.bf16.mxu1 %v16444_v12  ;;  %v16486_v12 = vld [vmem:[%s20970_s1 + $0x1018] sm:$0xff]   ;;  %v16491_v17 = vld [vmem:[%s20970_s1 + $0x1090] sm:$0xff]   ;;  %v16494_v20 = vld [vmem:[%s20970_s1 + $0x1008] sm:$0xff]  }
 0x1ec   :  { %15027 = vmatpush3.bf16.msra.mxu0 %v16445_v15  ;;  %v16487_v13 = vld [vmem:[%s20970_s1 + $0x1098] sm:$0xff]   ;;  %v16489_v15 = vld [vmem:[%s20970_s1 + $0x10d0] sm:$0xff]  }
 0x1ed   :  { %15028 = vmatprep.subr.bf16.mxu0 %v16447_v21  ;;  %v16495_v21 = vld [vmem:[%s20970_s1 + $0x1088] sm:$0xff]  }
 0x1ee   :  { %15049 = vmatpush3.bf16.msra.mxu1 %v16446_v18  ;;  %v16492_v18 = vld [vmem:[%s20970_s1 + $0x1048] sm:$0xff]  }
 0x1ef   :  { %15050 = vmatprep.subr.bf16.mxu1 %v16448_v23  ;;  %v16496_v23 = vld [vmem:[%s20970_s1 + $0x1040] sm:$0xff]  }
 0x1f0   :  { %15029 = vmatpush3.bf16.msra.mxu0 %v16449_v25 }
 0x1f1   :  { %15030 = vmatprep.subr.bf16.mxu0 %v16451_v27  ;;  %v16498_v27 = vld [vmem:[%s20970_s1 + $0x1000] sm:$0xff]  }
 0x1f2   :  { %15051 = vmatpush3.bf16.msra.mxu1 %v16450_v26  ;;  %v16497_v26 = vld [vmem:[%s20970_s1 + $0x10c0] sm:$0xff]  }
 0x1f3   :  { %15052 = vmatprep.subr.bf16.mxu1 %v16452_v28 }
 0x1f4   :  { %15031 = vmatpush3.bf16.msra.mxu0 %v16453_v29 }
 0x1f5   :  { %15032 = vmatprep.subr.bf16.mxu0 %v16455_v31 }
 0x1f6   :  { %15053 = vmatpush3.bf16.msra.mxu1 %v16454_v30  ;;  %v16499_v30 = vld [vmem:[%s20970_s1 + $0x1080] sm:$0xff]  }
 0x1f7   :  { %15054 = vmatprep.subr.bf16.mxu1 %v16456_v32 }
 0x1f8   :  { %15033 = vmatpush3.bf16.msra.mxu0 %v16457_v33  ;;  %v16500_v33 = vld [vmem:[%s20970_s1 + $0x1178] sm:$0xff]  }
 0x1f9   :  { %15034 = vmatprep.subr.bf16.mxu0 %v16459_v35  ;;  %v16501_v35 = vld [vmem:[%s20970_s1 + $0x11f8] sm:$0xff]  }
 0x1fa   :  { %15055 = vmatpush3.bf16.msra.mxu1 %v16458_v34 }
 0x1fb   :  { %15056 = vmatprep.subr.bf16.mxu1 %v16460_v36 }
 0x1fc   :  { %15035 = vmatpush3.bf16.msra.mxu0 %v16461_v37  ;;  %v16502_v37 = vld [vmem:[%s20970_s1 + $0x1138] sm:$0xff]  }
 0x1fd   :  { %15036 = vmatprep.subr.bf16.mxu0 %v16463_v39  ;;  %v16503_v39 = vld [vmem:[%s20970_s1 + $0x11b8] sm:$0xff]  }
 0x1fe   :  { %15057 = vmatpush3.bf16.msra.mxu1 %v16462_v38 }
 0x1ff   :  { %15058 = vmatprep.subr.bf16.mxu1 %v16464_v40 }
 0x200   :  { %15037 = vmatpush3.bf16.msra.mxu0 %v16465_v42  ;;  %v16504_v42 = vld [vmem:[%s20970_s1 + $0x1170] sm:$0xff]  }
 0x201   :  { %15066 = vmatprep.subr.bf16.mxu0 %v16468_v45 }
 0x202   :  { %15059 = vmatpush3.bf16.msra.mxu1 %v16466_v43  ;;  %v16505_v43 = vld [vmem:[%s20970_s1 + $0x11f0] sm:$0xff]  }
 0x203   :  { %v14774_v52 = vpop.f32.mrf.mxu0  ;;  %11534 = vmatmul.mubr.bf16.vlgmr.msra.gmra.mxu0 %v2736_v44  ;;  %15088 = vmatprep.subr.bf16.mxu1 %v16469_v46  ;;  %v16506_v46 = vld [vmem:[%s20970_s1 + $0x1130] sm:$0xff]  }
 0x204   :  { %15067 = vmatpush3.bf16.msra.mxu0 %v16470_v47  ;;  %v16507_v47 = vld [vmem:[%s20970_s1 + $0x11b0] sm:$0xff]  }
 0x205   :  { %v14796_v55 = vpop.f32.mrf.mxu1  ;;  %11574 = vmatmul.mubr.bf16.vlgmr.msra.gmra.mxu1 %v2752_v49  ;;  %v14775_v56 = vpop.f32.mrf.mxu0  ;;  %15068 = vmatprep.subr.bf16.mxu0 %v16472_v50  ;;  %v16508_v50 = vld [vmem:[%s20970_s1 + $0x1168] sm:$0xff]  }
 0x206   :  { %15089 = vmatpush3.bf16.msra.mxu1 %v16471_v48  ;;  %v14776_v58 = vadd.f32 %v14775_v56, %v14774_v52  ;;  %v16509_v52 = vld [vmem:[%s20970_s1 + $0x11e8] sm:$0xff]  }
 0x207   :  { %v14797_v60 = vpop.f32.mrf.mxu1  ;;  %v14777_v61 = vpop.f32.mrf.mxu0  ;;  %15090 = vmatprep.subr.bf16.mxu1 %v16473_v51 }
 0x208   :  { %v11056_v63 = vadd.f32 %v14776_v58, %v18784_v22  ;;  %v14798_v0 = vadd.f32 %v14797_v60, %v14796_v55  ;;  %15069 = vmatpush3.bf16.msra.mxu0 %v16474_v53  ;;  %v24_v22 = vld [vmem:[%s20969_s0 + $0x40] sm:$0xff]  ;;  %v16510_v55 = vld [vmem:[%s20970_s1 + $0x1128] sm:$0xff]  }
 0x209   :  { %v14799_v2 = vpop.f32.mrf.mxu1  ;;  %v14778_v3 = vpop.f32.mrf.mxu0  ;;  %15070 = vmatprep.subr.bf16.mxu0 %v16476_v57  ;;  %v2762_v24 = vrot.slane %v24_v22, %v17271_v41  ;;  %v2755_v25 = vcombine.high %v24_v22, %v24_v22  ;;  %v16511_v58 = vld [vmem:[%s20970_s1 + $0x11a8] sm:$0xff]   ;;  %v16512_v61 = vld [vmem:[%s20970_s1 + $0x1160] sm:$0xff]   ;;  %v16535_v22 = vld [vmem:[%s20970_s1 + $0x1238] sm:$0xff]  }
 0x20a   :  { %v18885_v5 = vadd.f32 %v14798_v0, %v11056_v63  ;;  %15091 = vmatpush3.bf16.msra.mxu1 %v16475_v54  ;;  %v16513_v63 = vld [vmem:[%s20970_s1 + $0x11e0] sm:$0xff]   ;;  %v16516_v3 = vld [vmem:[%s20970_s1 + $0x1158] sm:$0xff]  }
 0x20b   :  { %v14800_v7 = vpop.f32.mrf.mxu1  ;;  %15092 = vmatprep.subr.bf16.mxu1 %v16477_v59  ;;  %v2770_v28 = vcombine.high %v2762_v24, %v2762_v24  ;;  %v18946_v29 = vrot.slane %v2755_v25, %v17271_v41  ;;  %v2778_v32 = vrot.slane %v2762_v24, %v17271_v41  ;;  %v16515_v2 = vld [vmem:[%s20970_s1 + $0x11a0] sm:$0xff]   ;;  %v16537_v25 = vld [vmem:[%s20970_s1 + $0x1270] sm:$0xff]  }
 0x20c   :  { %15071 = vmatpush3.bf16.msra.mxu0 %v16478_v62  ;;  %v16520_v7 = vld [vmem:[%s20970_s1 + $0x1150] sm:$0xff]  }
 0x20d   :  { %15072 = vmatprep.subr.bf16.mxu0 %v16480_v4  ;;  %v2792_v31 = vrot.slane %v2770_v28, %v17271_v41  ;;  %v2771_v34 = vcombine.high %v18946_v29, %v18946_v29  ;;  %v2800_v40 = vcombine.high %v2778_v32, %v2778_v32  ;;  %v16517_v4 = vld [vmem:[%s20970_s1 + $0x11d8] sm:$0xff]   ;;  %v16539_v28 = vld [vmem:[%s20970_s1 + $0x1230] sm:$0xff]  }
 0x20e   :  { %15093 = vmatpush3.bf16.msra.mxu1 %v16479_v1  ;;  %v16514_v1 = vld [vmem:[%s20970_s1 + $0x1120] sm:$0xff]  }
 0x20f   :  { %15094 = vmatprep.subr.bf16.mxu1 %v16481_v6  ;;  %11613 = vmatprep.mubr.bf16.mxu0 %v2792_v31  ;;  %v2802_v36 = vcombine.high %v2792_v31, %v2792_v31  ;;  %v2799_v38 = vrot.slane %v2771_v34, %v17271_v41  ;;  %v16519_v6 = vld [vmem:[%s20970_s1 + $0x1198] sm:$0xff]   ;;  %v16542_v34 = vld [vmem:[%s20970_s1 + $0x12e8] sm:$0xff]  }
 0x210   :  { %15073 = vmatpush3.bf16.msra.mxu0 %v16482_v8  ;;  %v16521_v8 = vld [vmem:[%s20970_s1 + $0x11d0] sm:$0xff]  }
 0x211   :  { %15074 = vmatprep.subr.bf16.mxu0 %v16484_v10  ;;  %11653 = vmatprep.mubr.bf16.mxu1 %v2802_v36  ;;  %v2803_v44 = vcombine.high %v2799_v38, %v2799_v38  ;;  %v16523_v10 = vld [vmem:[%s20970_s1 + $0x1190] sm:$0xff]  }
 0x212   :  { %15095 = vmatpush3.bf16.msra.mxu1 %v16483_v9  ;;  %v16522_v9 = vld [vmem:[%s20970_s1 + $0x1110] sm:$0xff]  }
 0x213   :  { %15096 = vmatprep.subr.bf16.mxu1 %v16485_v11  ;;  %v16524_v11 = vld [vmem:[%s20970_s1 + $0x1148] sm:$0xff]  }
 0x214   :  { %15075 = vmatpush3.bf16.msra.mxu0 %v16486_v12  ;;  %v16525_v12 = vld [vmem:[%s20970_s1 + $0x11c8] sm:$0xff]  }
 0x215   :  { %15076 = vmatprep.subr.bf16.mxu0 %v16488_v14  ;;  %v16527_v14 = vld [vmem:[%s20970_s1 + $0x1188] sm:$0xff]  }
 0x216   :  { %15097 = vmatpush3.bf16.msra.mxu1 %v16487_v13  ;;  %v16526_v13 = vld [vmem:[%s20970_s1 + $0x1108] sm:$0xff]  }
 0x217   :  { %15098 = vmatprep.subr.bf16.mxu1 %v16489_v15  ;;  %v16528_v15 = vld [vmem:[%s20970_s1 + $0x1140] sm:$0xff]  }
 0x218   :  { %15077 = vmatpush3.bf16.msra.mxu0 %v16490_v16  ;;  %v16529_v16 = vld [vmem:[%s20970_s1 + $0x11c0] sm:$0xff]  }
 0x219   :  { %15078 = vmatprep.subr.bf16.mxu0 %v16492_v18  ;;  %v16531_v18 = vld [vmem:[%s20970_s1 + $0x1180] sm:$0xff]  }
 0x21a   :  { %15099 = vmatpush3.bf16.msra.mxu1 %v16491_v17  ;;  %v16530_v17 = vld [vmem:[%s20970_s1 + $0x1100] sm:$0xff]  }
 0x21b   :  { %15100 = vmatprep.subr.bf16.mxu1 %v16493_v19  ;;  %v2785_v19 = vrot.slane %v18946_v29, %v17271_v41  ;;  %v16540_v29 = vld [vmem:[%s20970_s1 + $0x12b0] sm:$0xff]  }
 0x21c   :  { %15079 = vmatpush3.bf16.msra.mxu0 %v16494_v20  ;;  %v16533_v20 = vld [vmem:[%s20970_s1 + $0x1278] sm:$0xff]  }
 0x21d   :  { %15080 = vmatprep.subr.bf16.mxu0 %v16496_v23  ;;  %v16536_v23 = vld [vmem:[%s20970_s1 + $0x12b8] sm:$0xff]   ;;  %v2801_v24 = vcombine.high %v2785_v19, %v2785_v19 }
 0x21e   :  { %15101 = vmatpush3.bf16.msra.mxu1 %v16495_v21  ;;  %v16534_v21 = vld [vmem:[%s20970_s1 + $0x12f8] sm:$0xff]  }
 0x21f   :  { %15102 = vmatprep.subr.bf16.mxu1 %v16497_v26  ;;  %v16538_v26 = vld [vmem:[%s20970_s1 + $0x12f0] sm:$0xff]  }
 0x220   :  { %15081 = vmatpush3.bf16.msra.mxu0 %v16498_v27 }
 0x221   :  { %15110 = vmatprep.subr.bf16.mxu0 %v16500_v33 }
 0x222   :  { %15103 = vmatpush3.bf16.msra.mxu1 %v16499_v30 }
 0x223   :  { %v14818_v45 = vpop.f32.mrf.mxu0  ;;  %11614 = vmatmul.mubr.bf16.vlgmr.msra.gmra.mxu0 %v2778_v32  ;;  %15132 = vmatprep.subr.bf16.mxu1 %v16501_v35  ;;  %v16541_v32 = vld [vmem:[%s20970_s1 + $0x1268] sm:$0xff]  }
 0x224   :  { %15111 = vmatpush3.bf16.msra.mxu0 %v16502_v37  ;;  %11693 = vmatprep.mubr.bf16.mxu0 %v2799_v38  ;;  %v16543_v37 = vld [vmem:[%s20970_s1 + $0x1228] sm:$0xff]  }
 0x225   :  { %v14840_v48 = vpop.f32.mrf.mxu1  ;;  %11654 = vmatmul.mubr.bf16.vlgmr.msra.gmra.mxu1 %v2800_v40  ;;  %v14819_v49 = vpop.f32.mrf.mxu0  ;;  %15112 = vmatprep.subr.bf16.mxu0 %v16504_v42  ;;  %v16544_v40 = vld [vmem:[%s20970_s1 + $0x12a8] sm:$0xff]  }
 0x226   :  { %15133 = vmatpush3.bf16.msra.mxu1 %v16503_v39  ;;  %v14820_v51 = vadd.f32 %v14819_v49, %v14818_v45  ;;  %11733 = vmatprep.mubr.bf16.mxu1 %v2803_v44  ;;  %v16545_v44 = vld [vmem:[%s20970_s1 + $0x1260] sm:$0xff]  }
 0x227   :  { %v14841_v53 = vpop.f32.mrf.mxu1  ;;  %v14821_v54 = vpop.f32.mrf.mxu0  ;;  %15134 = vmatprep.subr.bf16.mxu1 %v16505_v43  ;;  %v16548_v49 = vld [vmem:[%s20970_s1 + $0x12a0] sm:$0xff]  }
 0x228   :  { %v11136_v56 = vadd.f32 %v14820_v51, %v18885_v5  ;;  %v14842_v57 = vadd.f32 %v14841_v53, %v14840_v48  ;;  %15113 = vmatpush3.bf16.msra.mxu0 %v16506_v46  ;;  %v16518_v5 = vld [vmem:[%s20970_s1 + $0x1118] sm:$0xff]   ;;  %v16546_v46 = vld [vmem:[%s20970_s1 + $0x12e0] sm:$0xff]   ;;  %v16553_v54 = vld [vmem:[%s20970_s1 + $0x1250] sm:$0xff]  }
 0x229   :  { %v14843_v59 = vpop.f32.mrf.mxu1  ;;  %v14822_v60 = vpop.f32.mrf.mxu0  ;;  %15114 = vmatprep.subr.bf16.mxu0 %v16508_v50  ;;  %v16547_v48 = vld [vmem:[%s20970_s1 + $0x1220] sm:$0xff]   ;;  %v16549_v50 = vld [vmem:[%s20970_s1 + $0x1258] sm:$0xff]  }
 0x22a   :  { %v18996_v62 = vadd.f32 %v14842_v57, %v11136_v56  ;;  %15135 = vmatpush3.bf16.msra.mxu1 %v16507_v47  ;;  %v16550_v51 = vld [vmem:[%s20970_s1 + $0x12d8] sm:$0xff]   ;;  %v16555_v56 = vld [vmem:[%s20970_s1 + $0x1210] sm:$0xff]   ;;  %v16558_v59 = vld [vmem:[%s20970_s1 + $0x12c8] sm:$0xff]  }
 0x22b   :  { %v14844_v0 = vpop.f32.mrf.mxu1  ;;  %15136 = vmatprep.subr.bf16.mxu1 %v16509_v52  ;;  %v16551_v52 = vld [vmem:[%s20970_s1 + $0x1218] sm:$0xff]   ;;  %v16556_v57 = vld [vmem:[%s20970_s1 + $0x1290] sm:$0xff]   ;;  %v16559_v60 = vld [vmem:[%s20970_s1 + $0x1208] sm:$0xff]  }
 0x22c   :  { %15115 = vmatpush3.bf16.msra.mxu0 %v16510_v55  ;;  %v16552_v53 = vld [vmem:[%s20970_s1 + $0x1298] sm:$0xff]   ;;  %v16554_v55 = vld [vmem:[%s20970_s1 + $0x12d0] sm:$0xff]  }
 0x22d   :  { %15116 = vmatprep.subr.bf16.mxu0 %v16512_v61  ;;  %v16560_v61 = vld [vmem:[%s20970_s1 + $0x1288] sm:$0xff]  }
 0x22e   :  { %15137 = vmatpush3.bf16.msra.mxu1 %v16511_v58  ;;  %v16557_v58 = vld [vmem:[%s20970_s1 + $0x1248] sm:$0xff]  }
 0x22f   :  { %15138 = vmatprep.subr.bf16.mxu1 %v16513_v63  ;;  %v16561_v63 = vld [vmem:[%s20970_s1 + $0x1240] sm:$0xff]  }
 0x230   :  { %15117 = vmatpush3.bf16.msra.mxu0 %v16514_v1 }
 0x231   :  { %15118 = vmatprep.subr.bf16.mxu0 %v16516_v3  ;;  %v16563_v3 = vld [vmem:[%s20970_s1 + $0x1200] sm:$0xff]  }
 0x232   :  { %15139 = vmatpush3.bf16.msra.mxu1 %v16515_v2  ;;  %v16562_v2 = vld [vmem:[%s20970_s1 + $0x12c0] sm:$0xff]  }
 0x233   :  { %15140 = vmatprep.subr.bf16.mxu1 %v16517_v4 }
 0x234   :  { %15119 = vmatpush3.bf16.msra.mxu0 %v16518_v5 }
 0x235   :  { %15120 = vmatprep.subr.bf16.mxu0 %v16520_v7 }
 0x236   :  { %15141 = vmatpush3.bf16.msra.mxu1 %v16519_v6  ;;  %v16564_v6 = vld [vmem:[%s20970_s1 + $0x1280] sm:$0xff]  }
 0x237   :  { %15142 = vmatprep.subr.bf16.mxu1 %v16521_v8 }
 0x238   :  { %15121 = vmatpush3.bf16.msra.mxu0 %v16522_v9  ;;  %v16565_v9 = vld [vmem:[%s20970_s1 + $0x1378] sm:$0xff]  }
 0x239   :  { %15122 = vmatprep.subr.bf16.mxu0 %v16524_v11  ;;  %v16566_v11 = vld [vmem:[%s20970_s1 + $0x13f8] sm:$0xff]  }
 0x23a   :  { %15143 = vmatpush3.bf16.msra.mxu1 %v16523_v10 }
 0x23b   :  { %15144 = vmatprep.subr.bf16.mxu1 %v16525_v12 }
 0x23c   :  { %15123 = vmatpush3.bf16.msra.mxu0 %v16526_v13  ;;  %v16567_v13 = vld [vmem:[%s20970_s1 + $0x1338] sm:$0xff]  }
 0x23d   :  { %15124 = vmatprep.subr.bf16.mxu0 %v16528_v15  ;;  %v16568_v15 = vld [vmem:[%s20970_s1 + $0x13b8] sm:$0xff]  }
 0x23e   :  { %15145 = vmatpush3.bf16.msra.mxu1 %v16527_v14 }
 0x23f   :  { %15146 = vmatprep.subr.bf16.mxu1 %v16529_v16 }
 0x240   :  { %15125 = vmatpush3.bf16.msra.mxu0 %v16530_v17  ;;  %v16569_v17 = vld [vmem:[%s20970_s1 + $0x1370] sm:$0xff]  }
 0x241   :  { %15154 = vmatprep.subr.bf16.mxu0 %v16533_v20 }
 0x242   :  { %15147 = vmatpush3.bf16.msra.mxu1 %v16531_v18  ;;  %v16570_v18 = vld [vmem:[%s20970_s1 + $0x13f0] sm:$0xff]  }
 0x243   :  { %v14862_v27 = vpop.f32.mrf.mxu0  ;;  %11694 = vmatmul.mubr.bf16.vlgmr.msra.gmra.mxu0 %v2785_v19  ;;  %15176 = vmatprep.subr.bf16.mxu1 %v16534_v21  ;;  %v16571_v21 = vld [vmem:[%s20970_s1 + $0x1330] sm:$0xff]  }
 0x244   :  { %15155 = vmatpush3.bf16.msra.mxu0 %v16535_v22  ;;  %v16572_v22 = vld [vmem:[%s20970_s1 + $0x13b0] sm:$0xff]  }
 0x245   :  { %v14884_v30 = vpop.f32.mrf.mxu1  ;;  %11734 = vmatmul.mubr.bf16.vlgmr.msra.gmra.mxu1 %v2801_v24  ;;  %v14863_v31 = vpop.f32.mrf.mxu0  ;;  %15156 = vmatprep.subr.bf16.mxu0 %v16537_v25  ;;  %v16573_v25 = vld [vmem:[%s20970_s1 + $0x1368] sm:$0xff]  }
 0x246   :  { %15177 = vmatpush3.bf16.msra.mxu1 %v16536_v23  ;;  %v14864_v33 = vadd.f32 %v14863_v31, %v14862_v27  ;;  %v16574_v27 = vld [vmem:[%s20970_s1 + $0x13e8] sm:$0xff]  }
 0x247   :  { %v14885_v35 = vpop.f32.mrf.mxu1  ;;  %v14865_v36 = vpop.f32.mrf.mxu0  ;;  %15178 = vmatprep.subr.bf16.mxu1 %v16538_v26 }
 0x248   :  { %v11216_v38 = vadd.f32 %v14864_v33, %v18996_v62  ;;  %v14886_v39 = vadd.f32 %v14885_v35, %v14884_v30  ;;  %15157 = vmatpush3.bf16.msra.mxu0 %v16539_v28  ;;  %v25_v62 = vld [vmem:[%s20969_s0 + $0x48] sm:$0xff]  ;;  %v16577_v36 = vld [vmem:[%s20970_s1 + $0x1360] sm:$0xff]  }
 0x249   :  { %v14887_v42 = vpop.f32.mrf.mxu1  ;;  %v14866_v43 = vpop.f32.mrf.mxu0  ;;  %15158 = vmatprep.subr.bf16.mxu0 %v16541_v32  ;;  %v2811_v0 = vrot.slane %v25_v62, %v17271_v41  ;;  %v2804_v1 = vcombine.high %v25_v62, %v25_v62  ;;  %v16575_v30 = vld [vmem:[%s20970_s1 + $0x1328] sm:$0xff]   ;;  %v16600_v62 = vld [vmem:[%s20970_s1 + $0x1438] sm:$0xff]  }
 0x24a   :  { %v19097_v45 = vadd.f32 %v14886_v39, %v11216_v38  ;;  %15179 = vmatpush3.bf16.msra.mxu1 %v16540_v29  ;;  %v16576_v33 = vld [vmem:[%s20970_s1 + $0x13a8] sm:$0xff]   ;;  %v16578_v38 = vld [vmem:[%s20970_s1 + $0x13e0] sm:$0xff]   ;;  %v16581_v43 = vld [vmem:[%s20970_s1 + $0x1358] sm:$0xff]  }
 0x24b   :  { %v14888_v47 = vpop.f32.mrf.mxu1  ;;  %15180 = vmatprep.subr.bf16.mxu1 %v16542_v34  ;;  %v2819_v4 = vcombine.high %v2811_v0, %v2811_v0  ;;  %v19158_v5 = vrot.slane %v2804_v1, %v17271_v41  ;;  %v2827_v8 = vrot.slane %v2811_v0, %v17271_v41  ;;  %v16580_v42 = vld [vmem:[%s20970_s1 + $0x13a0] sm:$0xff]   ;;  %v16602_v1 = vld [vmem:[%s20970_s1 + $0x1470] sm:$0xff]  }
 0x24c   :  { %15159 = vmatpush3.bf16.msra.mxu0 %v16543_v37  ;;  %v16585_v47 = vld [vmem:[%s20970_s1 + $0x1350] sm:$0xff]  }
 0x24d   :  { %15160 = vmatprep.subr.bf16.mxu0 %v16545_v44  ;;  %v2841_v7 = vrot.slane %v2819_v4, %v17271_v41  ;;  %v2820_v10 = vcombine.high %v19158_v5, %v19158_v5  ;;  %v2849_v16 = vcombine.high %v2827_v8, %v2827_v8  ;;  %v16582_v44 = vld [vmem:[%s20970_s1 + $0x13d8] sm:$0xff]   ;;  %v16604_v4 = vld [vmem:[%s20970_s1 + $0x1430] sm:$0xff]  }
 0x24e   :  { %15181 = vmatpush3.bf16.msra.mxu1 %v16544_v40  ;;  %v16579_v40 = vld [vmem:[%s20970_s1 + $0x1320] sm:$0xff]  }
 0x24f   :  { %15182 = vmatprep.subr.bf16.mxu1 %v16546_v46  ;;  %11773 = vmatprep.mubr.bf16.mxu0 %v2841_v7  ;;  %v2851_v12 = vcombine.high %v2841_v7, %v2841_v7  ;;  %v2848_v14 = vrot.slane %v2820_v10, %v17271_v41  ;;  %v16584_v46 = vld [vmem:[%s20970_s1 + $0x1398] sm:$0xff]   ;;  %v16607_v10 = vld [vmem:[%s20970_s1 + $0x14e8] sm:$0xff]  }
 0x250   :  { %15161 = vmatpush3.bf16.msra.mxu0 %v16547_v48  ;;  %v16586_v48 = vld [vmem:[%s20970_s1 + $0x13d0] sm:$0xff]  }
 0x251   :  { %15162 = vmatprep.subr.bf16.mxu0 %v16549_v50  ;;  %11813 = vmatprep.mubr.bf16.mxu1 %v2851_v12  ;;  %v2852_v19 = vcombine.high %v2848_v14, %v2848_v14  ;;  %v16588_v50 = vld [vmem:[%s20970_s1 + $0x1390] sm:$0xff]  }
 0x252   :  { %15183 = vmatpush3.bf16.msra.mxu1 %v16548_v49  ;;  %v16587_v49 = vld [vmem:[%s20970_s1 + $0x1310] sm:$0xff]  }
 0x253   :  { %15184 = vmatprep.subr.bf16.mxu1 %v16550_v51  ;;  %v16589_v51 = vld [vmem:[%s20970_s1 + $0x1348] sm:$0xff]  }
 0x254   :  { %15163 = vmatpush3.bf16.msra.mxu0 %v16551_v52  ;;  %v16590_v52 = vld [vmem:[%s20970_s1 + $0x13c8] sm:$0xff]  }
 0x255   :  { %15164 = vmatprep.subr.bf16.mxu0 %v16553_v54  ;;  %v16592_v54 = vld [vmem:[%s20970_s1 + $0x1388] sm:$0xff]  }
 0x256   :  { %15185 = vmatpush3.bf16.msra.mxu1 %v16552_v53  ;;  %v16591_v53 = vld [vmem:[%s20970_s1 + $0x1308] sm:$0xff]  }
 0x257   :  { %15186 = vmatprep.subr.bf16.mxu1 %v16554_v55  ;;  %v16593_v55 = vld [vmem:[%s20970_s1 + $0x1340] sm:$0xff]  }
 0x258   :  { %15165 = vmatpush3.bf16.msra.mxu0 %v16555_v56  ;;  %v16594_v56 = vld [vmem:[%s20970_s1 + $0x13c0] sm:$0xff]  }
 0x259   :  { %15166 = vmatprep.subr.bf16.mxu0 %v16557_v58  ;;  %v16596_v58 = vld [vmem:[%s20970_s1 + $0x1380] sm:$0xff]  }
 0x25a   :  { %15187 = vmatpush3.bf16.msra.mxu1 %v16556_v57  ;;  %v16595_v57 = vld [vmem:[%s20970_s1 + $0x1300] sm:$0xff]  }
 0x25b   :  { %15188 = vmatprep.subr.bf16.mxu1 %v16558_v59  ;;  %v2834_v59 = vrot.slane %v19158_v5, %v17271_v41  ;;  %v16605_v5 = vld [vmem:[%s20970_s1 + $0x14b0] sm:$0xff]  }
 0x25c   :  { %15167 = vmatpush3.bf16.msra.mxu0 %v16559_v60  ;;  %v16598_v60 = vld [vmem:[%s20970_s1 + $0x1478] sm:$0xff]  }
 0x25d   :  { %15168 = vmatprep.subr.bf16.mxu0 %v16561_v63  ;;  %v16601_v63 = vld [vmem:[%s20970_s1 + $0x14b8] sm:$0xff]   ;;  %v2850_v0 = vcombine.high %v2834_v59, %v2834_v59 }
 0x25e   :  { %15189 = vmatpush3.bf16.msra.mxu1 %v16560_v61  ;;  %v16599_v61 = vld [vmem:[%s20970_s1 + $0x14f8] sm:$0xff]  }
 0x25f   :  { %15190 = vmatprep.subr.bf16.mxu1 %v16562_v2  ;;  %v16603_v2 = vld [vmem:[%s20970_s1 + $0x14f0] sm:$0xff]  }
 0x260   :  { %15169 = vmatpush3.bf16.msra.mxu0 %v16563_v3 }
 0x261   :  { %15198 = vmatprep.subr.bf16.mxu0 %v16565_v9 }
 0x262   :  { %15191 = vmatpush3.bf16.msra.mxu1 %v16564_v6 }
 0x263   :  { %v14906_v20 = vpop.f32.mrf.mxu0  ;;  %11774 = vmatmul.mubr.bf16.vlgmr.msra.gmra.mxu0 %v2827_v8  ;;  %15220 = vmatprep.subr.bf16.mxu1 %v16566_v11  ;;  %v16606_v8 = vld [vmem:[%s20970_s1 + $0x1468] sm:$0xff]  }
 0x264   :  { %15199 = vmatpush3.bf16.msra.mxu0 %v16567_v13  ;;  %11853 = vmatprep.mubr.bf16.mxu0 %v2848_v14  ;;  %v16608_v13 = vld [vmem:[%s20970_s1 + $0x1428] sm:$0xff]  }
 0x265   :  { %v14928_v23 = vpop.f32.mrf.mxu1  ;;  %11814 = vmatmul.mubr.bf16.vlgmr.msra.gmra.mxu1 %v2849_v16  ;;  %v14907_v24 = vpop.f32.mrf.mxu0  ;;  %15200 = vmatprep.subr.bf16.mxu0 %v16569_v17  ;;  %v16609_v16 = vld [vmem:[%s20970_s1 + $0x14a8] sm:$0xff]  }
 0x266   :  { %15221 = vmatpush3.bf16.msra.mxu1 %v16568_v15  ;;  %v14908_v26 = vadd.f32 %v14907_v24, %v14906_v20  ;;  %11893 = vmatprep.mubr.bf16.mxu1 %v2852_v19  ;;  %v16610_v19 = vld [vmem:[%s20970_s1 + $0x1460] sm:$0xff]  }
 0x267   :  { %v14929_v28 = vpop.f32.mrf.mxu1  ;;  %v14909_v29 = vpop.f32.mrf.mxu0  ;;  %15222 = vmatprep.subr.bf16.mxu1 %v16570_v18  ;;  %v16613_v24 = vld [vmem:[%s20970_s1 + $0x14a0] sm:$0xff]  }
 0x268   :  { %v11296_v31 = vadd.f32 %v14908_v26, %v19097_v45  ;;  %v14930_v32 = vadd.f32 %v14929_v28, %v14928_v23  ;;  %15201 = vmatpush3.bf16.msra.mxu0 %v16571_v21  ;;  %v16583_v45 = vld [vmem:[%s20970_s1 + $0x1318] sm:$0xff]   ;;  %v16611_v21 = vld [vmem:[%s20970_s1 + $0x14e0] sm:$0xff]   ;;  %v16618_v29 = vld [vmem:[%s20970_s1 + $0x1450] sm:$0xff]  }
 0x269   :  { %v14931_v34 = vpop.f32.mrf.mxu1  ;;  %v14910_v35 = vpop.f32.mrf.mxu0  ;;  %15202 = vmatprep.subr.bf16.mxu0 %v16573_v25  ;;  %v16612_v23 = vld [vmem:[%s20970_s1 + $0x1420] sm:$0xff]   ;;  %v16614_v25 = vld [vmem:[%s20970_s1 + $0x1458] sm:$0xff]  }
 0x26a   :  { %v19208_v37 = vadd.f32 %v14930_v32, %v11296_v31  ;;  %15223 = vmatpush3.bf16.msra.mxu1 %v16572_v22  ;;  %v16615_v26 = vld [vmem:[%s20970_s1 + $0x14d8] sm:$0xff]   ;;  %v16620_v31 = vld [vmem:[%s20970_s1 + $0x1410] sm:$0xff]   ;;  %v16623_v34 = vld [vmem:[%s20970_s1 + $0x14c8] sm:$0xff]  }
 0x26b   :  { %v14932_v39 = vpop.f32.mrf.mxu1  ;;  %15224 = vmatprep.subr.bf16.mxu1 %v16574_v27  ;;  %v16616_v27 = vld [vmem:[%s20970_s1 + $0x1418] sm:$0xff]   ;;  %v16621_v32 = vld [vmem:[%s20970_s1 + $0x1490] sm:$0xff]   ;;  %v16624_v35 = vld [vmem:[%s20970_s1 + $0x1408] sm:$0xff]  }
 0x26c   :  { %15203 = vmatpush3.bf16.msra.mxu0 %v16575_v30  ;;  %v16617_v28 = vld [vmem:[%s20970_s1 + $0x1498] sm:$0xff]   ;;  %v16619_v30 = vld [vmem:[%s20970_s1 + $0x14d0] sm:$0xff]  }
 0x26d   :  { %15204 = vmatprep.subr.bf16.mxu0 %v16577_v36  ;;  %v16625_v36 = vld [vmem:[%s20970_s1 + $0x1488] sm:$0xff]  }
 0x26e   :  { %15225 = vmatpush3.bf16.msra.mxu1 %v16576_v33  ;;  %v16622_v33 = vld [vmem:[%s20970_s1 + $0x1448] sm:$0xff]  }
 0x26f   :  { %15226 = vmatprep.subr.bf16.mxu1 %v16578_v38  ;;  %v16626_v38 = vld [vmem:[%s20970_s1 + $0x1440] sm:$0xff]  }
 0x270   :  { %15205 = vmatpush3.bf16.msra.mxu0 %v16579_v40 }
 0x271   :  { %15206 = vmatprep.subr.bf16.mxu0 %v16581_v43  ;;  %v16628_v43 = vld [vmem:[%s20970_s1 + $0x1400] sm:$0xff]  }
 0x272   :  { %15227 = vmatpush3.bf16.msra.mxu1 %v16580_v42  ;;  %v16627_v42 = vld [vmem:[%s20970_s1 + $0x14c0] sm:$0xff]  }
 0x273   :  { %15228 = vmatprep.subr.bf16.mxu1 %v16582_v44 }
 0x274   :  { %15207 = vmatpush3.bf16.msra.mxu0 %v16583_v45 }
 0x275   :  { %15208 = vmatprep.subr.bf16.mxu0 %v16585_v47 }
 0x276   :  { %15229 = vmatpush3.bf16.msra.mxu1 %v16584_v46  ;;  %v16629_v46 = vld [vmem:[%s20970_s1 + $0x1480] sm:$0xff]  }
 0x277   :  { %15230 = vmatprep.subr.bf16.mxu1 %v16586_v48 }
 0x278   :  { %15209 = vmatpush3.bf16.msra.mxu0 %v16587_v49  ;;  %v16630_v49 = vld [vmem:[%s20970_s1 + $0x1578] sm:$0xff]  }
 0x279   :  { %15210 = vmatprep.subr.bf16.mxu0 %v16589_v51  ;;  %v16631_v51 = vld [vmem:[%s20970_s1 + $0x15f8] sm:$0xff]  }
 0x27a   :  { %15231 = vmatpush3.bf16.msra.mxu1 %v16588_v50 }
 0x27b   :  { %15232 = vmatprep.subr.bf16.mxu1 %v16590_v52 }
 0x27c   :  { %15211 = vmatpush3.bf16.msra.mxu0 %v16591_v53  ;;  %v16632_v53 = vld [vmem:[%s20970_s1 + $0x1538] sm:$0xff]  }
 0x27d   :  { %15212 = vmatprep.subr.bf16.mxu0 %v16593_v55  ;;  %v16633_v55 = vld [vmem:[%s20970_s1 + $0x15b8] sm:$0xff]  }
 0x27e   :  { %15233 = vmatpush3.bf16.msra.mxu1 %v16592_v54 }
 0x27f   :  { %15234 = vmatprep.subr.bf16.mxu1 %v16594_v56 }
 0x280   :  { %15213 = vmatpush3.bf16.msra.mxu0 %v16595_v57  ;;  %v16634_v57 = vld [vmem:[%s20970_s1 + $0x1570] sm:$0xff]  }
 0x281   :  { %15242 = vmatprep.subr.bf16.mxu0 %v16598_v60 }
 0x282   :  { %15235 = vmatpush3.bf16.msra.mxu1 %v16596_v58  ;;  %v16635_v58 = vld [vmem:[%s20970_s1 + $0x15f0] sm:$0xff]  }
 0x283   :  { %v14950_v3 = vpop.f32.mrf.mxu0  ;;  %11854 = vmatmul.mubr.bf16.vlgmr.msra.gmra.mxu0 %v2834_v59  ;;  %15264 = vmatprep.subr.bf16.mxu1 %v16599_v61  ;;  %v16636_v61 = vld [vmem:[%s20970_s1 + $0x1530] sm:$0xff]  }
 0x284   :  { %15243 = vmatpush3.bf16.msra.mxu0 %v16600_v62  ;;  %v16637_v62 = vld [vmem:[%s20970_s1 + $0x15b0] sm:$0xff]  }
 0x285   :  { %v14972_v6 = vpop.f32.mrf.mxu1  ;;  %11894 = vmatmul.mubr.bf16.vlgmr.msra.gmra.mxu1 %v2850_v0  ;;  %v14951_v7 = vpop.f32.mrf.mxu0  ;;  %15244 = vmatprep.subr.bf16.mxu0 %v16602_v1  ;;  %v16638_v1 = vld [vmem:[%s20970_s1 + $0x1568] sm:$0xff]  }
 0x286   :  { %15265 = vmatpush3.bf16.msra.mxu1 %v16601_v63  ;;  %v14952_v9 = vadd.f32 %v14951_v7, %v14950_v3  ;;  %v16639_v3 = vld [vmem:[%s20970_s1 + $0x15e8] sm:$0xff]  }
 0x287   :  { %v14973_v11 = vpop.f32.mrf.mxu1  ;;  %v14953_v12 = vpop.f32.mrf.mxu0  ;;  %15266 = vmatprep.subr.bf16.mxu1 %v16603_v2 }
 0x288   :  { %v11376_v14 = vadd.f32 %v14952_v9, %v19208_v37  ;;  %v14974_v15 = vadd.f32 %v14973_v11, %v14972_v6  ;;  %15245 = vmatpush3.bf16.msra.mxu0 %v16604_v4  ;;  %v26_v37 = vld [vmem:[%s20969_s0 + $0x50] sm:$0xff]  ;;  %v16640_v6 = vld [vmem:[%s20970_s1 + $0x1528] sm:$0xff]   ;;  %v16642_v12 = vld [vmem:[%s20970_s1 + $0x1560] sm:$0xff]  }
 0x289   :  { %v14975_v17 = vpop.f32.mrf.mxu1  ;;  %v14954_v18 = vpop.f32.mrf.mxu0  ;;  %15246 = vmatprep.subr.bf16.mxu0 %v16606_v8  ;;  %v2860_v39 = vrot.slane %v26_v37, %v17271_v41  ;;  %v2853_v40 = vcombine.high %v26_v37, %v26_v37  ;;  %v16641_v9 = vld [vmem:[%s20970_s1 + $0x15a8] sm:$0xff]   ;;  %v16665_v37 = vld [vmem:[%s20970_s1 + $0x1638] sm:$0xff]  }
 0x28a   :  { %v19309_v20 = vadd.f32 %v14974_v15, %v11376_v14  ;;  %15267 = vmatpush3.bf16.msra.mxu1 %v16605_v5  ;;  %v16643_v14 = vld [vmem:[%s20970_s1 + $0x15e0] sm:$0xff]   ;;  %v16646_v18 = vld [vmem:[%s20970_s1 + $0x1558] sm:$0xff]  }
 0x28b   :  { %v14976_v22 = vpop.f32.mrf.mxu1  ;;  %15268 = vmatprep.subr.bf16.mxu1 %v16607_v10  ;;  %v2868_v44 = vcombine.high %v2860_v39, %v2860_v39  ;;  %v19370_v45 = vrot.slane %v2853_v40, %v17271_v41  ;;  %v2876_v48 = vrot.slane %v2860_v39, %v17271_v41  ;;  %v16645_v17 = vld [vmem:[%s20970_s1 + $0x15a0] sm:$0xff]   ;;  %v16667_v40 = vld [vmem:[%s20970_s1 + $0x1670] sm:$0xff]  }
 0x28c   :  { %15247 = vmatpush3.bf16.msra.mxu0 %v16608_v13  ;;  %v16650_v22 = vld [vmem:[%s20970_s1 + $0x1550] sm:$0xff]  }
 0x28d   :  { %15248 = vmatprep.subr.bf16.mxu0 %v16610_v19  ;;  %v2890_v47 = vrot.slane %v2868_v44, %v17271_v41  ;;  %v2869_v50 = vcombine.high %v19370_v45, %v19370_v45  ;;  %v2898_v56 = vcombine.high %v2876_v48, %v2876_v48  ;;  %v16647_v19 = vld [vmem:[%s20970_s1 + $0x15d8] sm:$0xff]   ;;  %v16669_v44 = vld [vmem:[%s20970_s1 + $0x1630] sm:$0xff]  }
 0x28e   :  { %15269 = vmatpush3.bf16.msra.mxu1 %v16609_v16  ;;  %v16644_v16 = vld [vmem:[%s20970_s1 + $0x1520] sm:$0xff]  }
 0x28f   :  { %15270 = vmatprep.subr.bf16.mxu1 %v16611_v21  ;;  %11933 = vmatprep.mubr.bf16.mxu0 %v2890_v47  ;;  %v2900_v52 = vcombine.high %v2890_v47, %v2890_v47  ;;  %v2897_v54 = vrot.slane %v2869_v50, %v17271_v41  ;;  %v16649_v21 = vld [vmem:[%s20970_s1 + $0x1598] sm:$0xff]   ;;  %v16672_v50 = vld [vmem:[%s20970_s1 + $0x16e8] sm:$0xff]  }
 0x290   :  { %15249 = vmatpush3.bf16.msra.mxu0 %v16612_v23  ;;  %v16651_v23 = vld [vmem:[%s20970_s1 + $0x15d0] sm:$0xff]  }
 0x291   :  { %15250 = vmatprep.subr.bf16.mxu0 %v16614_v25  ;;  %11973 = vmatprep.mubr.bf16.mxu1 %v2900_v52  ;;  %v2901_v59 = vcombine.high %v2897_v54, %v2897_v54  ;;  %v16653_v25 = vld [vmem:[%s20970_s1 + $0x1590] sm:$0xff]  }
 0x292   :  { %15271 = vmatpush3.bf16.msra.mxu1 %v16613_v24  ;;  %v16652_v24 = vld [vmem:[%s20970_s1 + $0x1510] sm:$0xff]  }
 0x293   :  { %15272 = vmatprep.subr.bf16.mxu1 %v16615_v26  ;;  %v16654_v26 = vld [vmem:[%s20970_s1 + $0x1548] sm:$0xff]  }
 0x294   :  { %15251 = vmatpush3.bf16.msra.mxu0 %v16616_v27  ;;  %v16655_v27 = vld [vmem:[%s20970_s1 + $0x15c8] sm:$0xff]  }
 0x295   :  { %15252 = vmatprep.subr.bf16.mxu0 %v16618_v29  ;;  %v16657_v29 = vld [vmem:[%s20970_s1 + $0x1588] sm:$0xff]  }
 0x296   :  { %15273 = vmatpush3.bf16.msra.mxu1 %v16617_v28  ;;  %v16656_v28 = vld [vmem:[%s20970_s1 + $0x1508] sm:$0xff]  }
 0x297   :  { %15274 = vmatprep.subr.bf16.mxu1 %v16619_v30  ;;  %v16658_v30 = vld [vmem:[%s20970_s1 + $0x1540] sm:$0xff]  }
 0x298   :  { %15253 = vmatpush3.bf16.msra.mxu0 %v16620_v31  ;;  %v16659_v31 = vld [vmem:[%s20970_s1 + $0x15c0] sm:$0xff]  }
 0x299   :  { %15254 = vmatprep.subr.bf16.mxu0 %v16622_v33  ;;  %v16661_v33 = vld [vmem:[%s20970_s1 + $0x1580] sm:$0xff]  }
 0x29a   :  { %15275 = vmatpush3.bf16.msra.mxu1 %v16621_v32  ;;  %v16660_v32 = vld [vmem:[%s20970_s1 + $0x1500] sm:$0xff]  }
 0x29b   :  { %15276 = vmatprep.subr.bf16.mxu1 %v16623_v34  ;;  %v2883_v34 = vrot.slane %v19370_v45, %v17271_v41  ;;  %v16670_v45 = vld [vmem:[%s20970_s1 + $0x16b0] sm:$0xff]  }
 0x29c   :  { %15255 = vmatpush3.bf16.msra.mxu0 %v16624_v35  ;;  %v16663_v35 = vld [vmem:[%s20970_s1 + $0x1678] sm:$0xff]  }
 0x29d   :  { %15256 = vmatprep.subr.bf16.mxu0 %v16626_v38  ;;  %v16666_v38 = vld [vmem:[%s20970_s1 + $0x16b8] sm:$0xff]   ;;  %v2899_v39 = vcombine.high %v2883_v34, %v2883_v34 }
 0x29e   :  { %15277 = vmatpush3.bf16.msra.mxu1 %v16625_v36  ;;  %v16664_v36 = vld [vmem:[%s20970_s1 + $0x16f8] sm:$0xff]  }
 0x29f   :  { %15278 = vmatprep.subr.bf16.mxu1 %v16627_v42  ;;  %v16668_v42 = vld [vmem:[%s20970_s1 + $0x16f0] sm:$0xff]  }
 0x2a0   :  { %15257 = vmatpush3.bf16.msra.mxu0 %v16628_v43 }
 0x2a1   :  { %15286 = vmatprep.subr.bf16.mxu0 %v16630_v49 }
 0x2a2   :  { %15279 = vmatpush3.bf16.msra.mxu1 %v16629_v46 }
 0x2a3   :  { %v14994_v60 = vpop.f32.mrf.mxu0  ;;  %11934 = vmatmul.mubr.bf16.vlgmr.msra.gmra.mxu0 %v2876_v48  ;;  %15308 = vmatprep.subr.bf16.mxu1 %v16631_v51  ;;  %v16671_v48 = vld [vmem:[%s20970_s1 + $0x1668] sm:$0xff]  }
 0x2a4   :  { %15287 = vmatpush3.bf16.msra.mxu0 %v16632_v53  ;;  %12013 = vmatprep.mubr.bf16.mxu0 %v2897_v54  ;;  %v16673_v53 = vld [vmem:[%s20970_s1 + $0x1628] sm:$0xff]  }
 0x2a5   :  { %v15016_v63 = vpop.f32.mrf.mxu1  ;;  %11974 = vmatmul.mubr.bf16.vlgmr.msra.gmra.mxu1 %v2898_v56  ;;  %v14995_v0 = vpop.f32.mrf.mxu0  ;;  %15288 = vmatprep.subr.bf16.mxu0 %v16634_v57  ;;  %v16674_v56 = vld [vmem:[%s20970_s1 + $0x16a8] sm:$0xff]  }
 0x2a6   :  { %15309 = vmatpush3.bf16.msra.mxu1 %v16633_v55  ;;  %v14996_v2 = vadd.f32 %v14995_v0, %v14994_v60  ;;  %12053 = vmatprep.mubr.bf16.mxu1 %v2901_v59  ;;  %v16675_v59 = vld [vmem:[%s20970_s1 + $0x1660] sm:$0xff]  }
 0x2a7   :  { %v15017_v4 = vpop.f32.mrf.mxu1  ;;  %v14997_v5 = vpop.f32.mrf.mxu0  ;;  %15310 = vmatprep.subr.bf16.mxu1 %v16635_v58  ;;  %v16678_v0 = vld [vmem:[%s20970_s1 + $0x16a0] sm:$0xff]  }
 0x2a8   :  { %v11456_v7 = vadd.f32 %v14996_v2, %v19309_v20  ;;  %v15018_v8 = vadd.f32 %v15017_v4, %v15016_v63  ;;  %15289 = vmatpush3.bf16.msra.mxu0 %v16636_v61  ;;  %v16648_v20 = vld [vmem:[%s20970_s1 + $0x1518] sm:$0xff]   ;;  %v16676_v61 = vld [vmem:[%s20970_s1 + $0x16e0] sm:$0xff]   ;;  %v16683_v5 = vld [vmem:[%s20970_s1 + $0x1650] sm:$0xff]  }
 0x2a9   :  { %v15019_v10 = vpop.f32.mrf.mxu1  ;;  %v14998_v11 = vpop.f32.mrf.mxu0  ;;  %15290 = vmatprep.subr.bf16.mxu0 %v16638_v1  ;;  %v16677_v63 = vld [vmem:[%s20970_s1 + $0x1620] sm:$0xff]   ;;  %v16679_v1 = vld [vmem:[%s20970_s1 + $0x1658] sm:$0xff]  }
 0x2aa   :  { %v19420_v13 = vadd.f32 %v15018_v8, %v11456_v7  ;;  %15311 = vmatpush3.bf16.msra.mxu1 %v16637_v62  ;;  %v16680_v2 = vld [vmem:[%s20970_s1 + $0x16d8] sm:$0xff]   ;;  %v16685_v7 = vld [vmem:[%s20970_s1 + $0x1610] sm:$0xff]   ;;  %v16688_v10 = vld [vmem:[%s20970_s1 + $0x16c8] sm:$0xff]  }
 0x2ab   :  { %v15020_v15 = vpop.f32.mrf.mxu1  ;;  %15312 = vmatprep.subr.bf16.mxu1 %v16639_v3  ;;  %v16681_v3 = vld [vmem:[%s20970_s1 + $0x1618] sm:$0xff]   ;;  %v16686_v8 = vld [vmem:[%s20970_s1 + $0x1690] sm:$0xff]   ;;  %v16689_v11 = vld [vmem:[%s20970_s1 + $0x1608] sm:$0xff]  }
 0x2ac   :  { %15291 = vmatpush3.bf16.msra.mxu0 %v16640_v6  ;;  %v16682_v4 = vld [vmem:[%s20970_s1 + $0x1698] sm:$0xff]   ;;  %v16684_v6 = vld [vmem:[%s20970_s1 + $0x16d0] sm:$0xff]   ;;  %v16692_v15 = vld [vmem:[%s20970_s1 + $0x16c0] sm:$0xff]  }
 0x2ad   :  { %15292 = vmatprep.subr.bf16.mxu0 %v16642_v12  ;;  %v16690_v12 = vld [vmem:[%s20970_s1 + $0x1688] sm:$0xff]  }
 0x2ae   :  { %15313 = vmatpush3.bf16.msra.mxu1 %v16641_v9  ;;  %v16687_v9 = vld [vmem:[%s20970_s1 + $0x1648] sm:$0xff]  }
 0x2af   :  { %15314 = vmatprep.subr.bf16.mxu1 %v16643_v14  ;;  %v27_v14 = vld [vmem:[%s20969_s0 + $0x58] sm:$0xff] }
 0x2b0   :  { %15293 = vmatpush3.bf16.msra.mxu0 %v16644_v16  ;;  %v2909_v16 = vrot.slane %v27_v14, %v17271_v41 }
 0x2b1   :  { %15294 = vmatprep.subr.bf16.mxu0 %v16646_v18  ;;  %v16693_v18 = vld [vmem:[%s20970_s1 + $0x1600] sm:$0xff]  }
 0x2b2   :  { %15315 = vmatpush3.bf16.msra.mxu1 %v16645_v17  ;;  %v2902_v17 = vcombine.high %v27_v14, %v27_v14  ;;  %v16731_v14 = vld [vmem:[%s20970_s1 + $0x18b8] sm:$0xff]  }
 0x2b3   :  { %15316 = vmatprep.subr.bf16.mxu1 %v16647_v19  ;;  %v16694_v19 = vld [vmem:[%s20970_s1 + $0x1680] sm:$0xff]  }
 0x2b4   :  { %15295 = vmatpush3.bf16.msra.mxu0 %v16648_v20  ;;  %v2917_v20 = vcombine.high %v2909_v16, %v2909_v16 }
 0x2b5   :  { %15296 = vmatprep.subr.bf16.mxu0 %v16650_v22  ;;  %v2925_v22 = vrot.slane %v2909_v16, %v17271_v41  ;;  %v16732_v16 = vld [vmem:[%s20970_s1 + $0x1870] sm:$0xff]  }
 0x2b6   :  { %15317 = vmatpush3.bf16.msra.mxu1 %v16649_v21  ;;  %v19585_v21 = vrot.slane %v2902_v17, %v17271_v41  ;;  %v16733_v17 = vld [vmem:[%s20970_s1 + $0x18f0] sm:$0xff]  }
 0x2b7   :  { %15318 = vmatprep.subr.bf16.mxu1 %v16651_v23  ;;  %v16695_v23 = vld [vmem:[%s20970_s1 + $0x1778] sm:$0xff]  }
 0x2b8   :  { %15297 = vmatpush3.bf16.msra.mxu0 %v16652_v24  ;;  %v2939_v24 = vrot.slane %v2917_v20, %v17271_v41  ;;  %v16735_v20 = vld [vmem:[%s20970_s1 + $0x18b0] sm:$0xff]  }
 0x2b9   :  { %15298 = vmatprep.subr.bf16.mxu0 %v16654_v26  ;;  %v2918_v26 = vcombine.high %v19585_v21, %v19585_v21 }
 0x2ba   :  { %15319 = vmatpush3.bf16.msra.mxu1 %v16653_v25  ;;  %v16696_v25 = vld [vmem:[%s20970_s1 + $0x17f8] sm:$0xff]  }
 0x2bb   :  { %15320 = vmatprep.subr.bf16.mxu1 %v16655_v27  ;;  %v16697_v27 = vld [vmem:[%s20970_s1 + $0x1738] sm:$0xff]  }
 0x2bc   :  { %15299 = vmatpush3.bf16.msra.mxu0 %v16656_v28  ;;  %v2949_v28 = vcombine.high %v2939_v24, %v2939_v24 }
 0x2bd   :  { %15300 = vmatprep.subr.bf16.mxu0 %v16658_v30  ;;  %v2946_v30 = vrot.slane %v2918_v26, %v17271_v41 }
 0x2be   :  { %15321 = vmatpush3.bf16.msra.mxu1 %v16657_v29  ;;  %v16698_v29 = vld [vmem:[%s20970_s1 + $0x17b8] sm:$0xff]  }
 0x2bf   :  { %15322 = vmatprep.subr.bf16.mxu1 %v16659_v31  ;;  %v2947_v31 = vcombine.high %v2925_v22, %v2925_v22 }
 0x2c0   :  { %15301 = vmatpush3.bf16.msra.mxu0 %v16660_v32  ;;  %v16699_v32 = vld [vmem:[%s20970_s1 + $0x1770] sm:$0xff]  }
 0x2c1   :  { %15330 = vmatprep.subr.bf16.mxu0 %v16663_v35 }
 0x2c2   :  { %15323 = vmatpush3.bf16.msra.mxu1 %v16661_v33  ;;  %v16700_v33 = vld [vmem:[%s20970_s1 + $0x17f0] sm:$0xff]  }
 0x2c3   :  { %v15038_v43 = vpop.f32.mrf.mxu0  ;;  %12014 = vmatmul.mubr.bf16.vlgmr.msra.gmra.mxu0 %v2883_v34  ;;  %15352 = vmatprep.subr.bf16.mxu1 %v16664_v36  ;;  %v2950_v34 = vcombine.high %v2946_v30, %v2946_v30  ;;  %v16701_v36 = vld [vmem:[%s20970_s1 + $0x1730] sm:$0xff]  }
 0x2c4   :  { %15331 = vmatpush3.bf16.msra.mxu0 %v16665_v37  ;;  %12093 = vmatprep.mubr.bf16.mxu0 %v2939_v24  ;;  %v16702_v37 = vld [vmem:[%s20970_s1 + $0x17b0] sm:$0xff]  }
 0x2c5   :  { %v15060_v46 = vpop.f32.mrf.mxu1  ;;  %12054 = vmatmul.mubr.bf16.vlgmr.msra.gmra.mxu1 %v2899_v39  ;;  %v15039_v47 = vpop.f32.mrf.mxu0  ;;  %15332 = vmatprep.subr.bf16.mxu0 %v16667_v40  ;;  %v16703_v40 = vld [vmem:[%s20970_s1 + $0x1768] sm:$0xff]  }
 0x2c6   :  { %15353 = vmatpush3.bf16.msra.mxu1 %v16666_v38  ;;  %v15040_v49 = vadd.f32 %v15039_v47, %v15038_v43  ;;  %12133 = vmatprep.mubr.bf16.mxu1 %v2949_v28  ;;  %v16704_v43 = vld [vmem:[%s20970_s1 + $0x17e8] sm:$0xff]  }
 0x2c7   :  { %v15061_v51 = vpop.f32.mrf.mxu1  ;;  %v15041_v52 = vpop.f32.mrf.mxu0  ;;  %15354 = vmatprep.subr.bf16.mxu1 %v16668_v42  ;;  %v16738_v28 = vld [vmem:[%s20970_s1 + $0x1828] sm:$0xff]  }
 0x2c8   :  { %v11536_v54 = vadd.f32 %v15040_v49, %v19420_v13  ;;  %v15062_v55 = vadd.f32 %v15061_v51, %v15060_v46  ;;  %15333 = vmatpush3.bf16.msra.mxu0 %v16669_v44  ;;  %v16691_v13 = vld [vmem:[%s20970_s1 + $0x1640] sm:$0xff]   ;;  %v16705_v46 = vld [vmem:[%s20970_s1 + $0x1728] sm:$0xff]  }
 0x2c9   :  { %v15063_v57 = vpop.f32.mrf.mxu1  ;;  %v15042_v58 = vpop.f32.mrf.mxu0  ;;  %15334 = vmatprep.subr.bf16.mxu0 %v16671_v48  ;;  %v16706_v49 = vld [vmem:[%s20970_s1 + $0x17a8] sm:$0xff]   ;;  %v16707_v52 = vld [vmem:[%s20970_s1 + $0x1760] sm:$0xff]  }
 0x2ca   :  { %v19521_v60 = vadd.f32 %v15062_v55, %v11536_v54  ;;  %15355 = vmatpush3.bf16.msra.mxu1 %v16670_v45  ;;  %v16708_v54 = vld [vmem:[%s20970_s1 + $0x17e0] sm:$0xff]   ;;  %v16711_v58 = vld [vmem:[%s20970_s1 + $0x1758] sm:$0xff]  }
 0x2cb   :  { %v15064_v62 = vpop.f32.mrf.mxu1  ;;  %15356 = vmatprep.subr.bf16.mxu1 %v16672_v50  ;;  %v16710_v57 = vld [vmem:[%s20970_s1 + $0x17a0] sm:$0xff]  }
 0x2cc   :  { %15335 = vmatpush3.bf16.msra.mxu0 %v16673_v53  ;;  %v16715_v62 = vld [vmem:[%s20970_s1 + $0x1750] sm:$0xff]  }
 0x2cd   :  { %15336 = vmatprep.subr.bf16.mxu0 %v16675_v59  ;;  %v16712_v59 = vld [vmem:[%s20970_s1 + $0x17d8] sm:$0xff]  }
 0x2ce   :  { %15357 = vmatpush3.bf16.msra.mxu1 %v16674_v56  ;;  %v16709_v56 = vld [vmem:[%s20970_s1 + $0x1720] sm:$0xff]  }
 0x2cf   :  { %15358 = vmatprep.subr.bf16.mxu1 %v16676_v61  ;;  %v16714_v61 = vld [vmem:[%s20970_s1 + $0x1798] sm:$0xff]  }
 0x2d0   :  { %15337 = vmatpush3.bf16.msra.mxu0 %v16677_v63  ;;  %v16716_v63 = vld [vmem:[%s20970_s1 + $0x17d0] sm:$0xff]  }
 0x2d1   :  { %15338 = vmatprep.subr.bf16.mxu0 %v16679_v1  ;;  %v16718_v1 = vld [vmem:[%s20970_s1 + $0x1790] sm:$0xff]  }
 0x2d2   :  { %15359 = vmatpush3.bf16.msra.mxu1 %v16678_v0  ;;  %v16717_v0 = vld [vmem:[%s20970_s1 + $0x1710] sm:$0xff]  }
 0x2d3   :  { %15360 = vmatprep.subr.bf16.mxu1 %v16680_v2  ;;  %v16719_v2 = vld [vmem:[%s20970_s1 + $0x1748] sm:$0xff]  }
 0x2d4   :  { %15339 = vmatpush3.bf16.msra.mxu0 %v16681_v3  ;;  %v16720_v3 = vld [vmem:[%s20970_s1 + $0x17c8] sm:$0xff]  }
 0x2d5   :  { %15340 = vmatprep.subr.bf16.mxu0 %v16683_v5  ;;  %v16722_v5 = vld [vmem:[%s20970_s1 + $0x1788] sm:$0xff]  }
 0x2d6   :  { %15361 = vmatpush3.bf16.msra.mxu1 %v16682_v4  ;;  %v16721_v4 = vld [vmem:[%s20970_s1 + $0x1708] sm:$0xff]  }
 0x2d7   :  { %15362 = vmatprep.subr.bf16.mxu1 %v16684_v6  ;;  %v16723_v6 = vld [vmem:[%s20970_s1 + $0x1740] sm:$0xff]  }
 0x2d8   :  { %15341 = vmatpush3.bf16.msra.mxu0 %v16685_v7  ;;  %v16724_v7 = vld [vmem:[%s20970_s1 + $0x17c0] sm:$0xff]  }
 0x2d9   :  { %15342 = vmatprep.subr.bf16.mxu0 %v16687_v9  ;;  %v16726_v9 = vld [vmem:[%s20970_s1 + $0x1780] sm:$0xff]  }
 0x2da   :  { %15363 = vmatpush3.bf16.msra.mxu1 %v16686_v8  ;;  %v16725_v8 = vld [vmem:[%s20970_s1 + $0x1700] sm:$0xff]  }
 0x2db   :  { %15364 = vmatprep.subr.bf16.mxu1 %v16688_v10  ;;  %v2932_v10 = vrot.slane %v19585_v21, %v17271_v41 }
 0x2dc   :  { %15343 = vmatpush3.bf16.msra.mxu0 %v16689_v11  ;;  %v16728_v11 = vld [vmem:[%s20970_s1 + $0x1878] sm:$0xff]  }
 0x2dd   :  { %15344 = vmatprep.subr.bf16.mxu0 %v16691_v13  ;;  %v16730_v13 = vld [vmem:[%s20970_s1 + $0x1838] sm:$0xff]  }
 0x2de   :  { %15365 = vmatpush3.bf16.msra.mxu1 %v16690_v12  ;;  %v16729_v12 = vld [vmem:[%s20970_s1 + $0x18f8] sm:$0xff]  }
 0x2df   :  { %15366 = vmatprep.subr.bf16.mxu1 %v16692_v15  ;;  %v2948_v15 = vcombine.high %v2932_v10, %v2932_v10 }
 0x2e0   :  { %15345 = vmatpush3.bf16.msra.mxu0 %v16693_v18 }
 0x2e1   :  { %15374 = vmatprep.subr.bf16.mxu0 %v16695_v23  ;;  %v16736_v23 = vld [vmem:[%s20970_s1 + $0x1868] sm:$0xff]  }
 0x2e2   :  { %15367 = vmatpush3.bf16.msra.mxu1 %v16694_v19  ;;  %v16734_v19 = vld [vmem:[%s20970_s1 + $0x1830] sm:$0xff]  }
 0x2e3   :  { %v15082_v35 = vpop.f32.mrf.mxu0  ;;  %12094 = vmatmul.mubr.bf16.vlgmr.msra.gmra.mxu0 %v2925_v22  ;;  %15396 = vmatprep.subr.bf16.mxu1 %v16696_v25  ;;  %v16737_v25 = vld [vmem:[%s20970_s1 + $0x18e8] sm:$0xff]  }
 0x2e4   :  { %15375 = vmatpush3.bf16.msra.mxu0 %v16697_v27  ;;  %12173 = vmatprep.mubr.bf16.mxu0 %v2946_v30 }
 0x2e5   :  { %v15104_v38 = vpop.f32.mrf.mxu1  ;;  %12134 = vmatmul.mubr.bf16.vlgmr.msra.gmra.mxu1 %v2947_v31  ;;  %v15083_v39 = vpop.f32.mrf.mxu0  ;;  %15376 = vmatprep.subr.bf16.mxu0 %v16699_v32  ;;  %v16739_v31 = vld [vmem:[%s20970_s1 + $0x18a8] sm:$0xff]  }
 0x2e6   :  { %15397 = vmatpush3.bf16.msra.mxu1 %v16698_v29  ;;  %v15084_v42 = vadd.f32 %v15083_v39, %v15082_v35  ;;  %12213 = vmatprep.mubr.bf16.mxu1 %v2950_v34  ;;  %v16740_v34 = vld [vmem:[%s20970_s1 + $0x1860] sm:$0xff]  }
 0x2e7   :  { %v15105_v44 = vpop.f32.mrf.mxu1  ;;  %v15085_v45 = vpop.f32.mrf.mxu0  ;;  %15398 = vmatprep.subr.bf16.mxu1 %v16700_v33  ;;  %v16743_v39 = vld [vmem:[%s20970_s1 + $0x18a0] sm:$0xff]  }
 0x2e8   :  { %v11616_v47 = vadd.f32 %v15084_v42, %v19521_v60  ;;  %v15106_v48 = vadd.f32 %v15105_v44, %v15104_v38  ;;  %15377 = vmatpush3.bf16.msra.mxu0 %v16701_v36  ;;  %v16713_v60 = vld [vmem:[%s20970_s1 + $0x1718] sm:$0xff]   ;;  %v16741_v36 = vld [vmem:[%s20970_s1 + $0x18e0] sm:$0xff]   ;;  %v16748_v45 = vld [vmem:[%s20970_s1 + $0x1850] sm:$0xff]  }
 0x2e9   :  { %v15107_v50 = vpop.f32.mrf.mxu1  ;;  %v15086_v51 = vpop.f32.mrf.mxu0  ;;  %15378 = vmatprep.subr.bf16.mxu0 %v16703_v40  ;;  %v16742_v38 = vld [vmem:[%s20970_s1 + $0x1820] sm:$0xff]   ;;  %v16744_v40 = vld [vmem:[%s20970_s1 + $0x1858] sm:$0xff]  }
 0x2ea   :  { %v19632_v53 = vadd.f32 %v15106_v48, %v11616_v47  ;;  %15399 = vmatpush3.bf16.msra.mxu1 %v16702_v37  ;;  %v16745_v42 = vld [vmem:[%s20970_s1 + $0x18d8] sm:$0xff]   ;;  %v16750_v47 = vld [vmem:[%s20970_s1 + $0x1810] sm:$0xff]   ;;  %v16753_v50 = vld [vmem:[%s20970_s1 + $0x18c8] sm:$0xff]  }
 0x2eb   :  { %v15108_v55 = vpop.f32.mrf.mxu1  ;;  %15400 = vmatprep.subr.bf16.mxu1 %v16704_v43  ;;  %v16746_v43 = vld [vmem:[%s20970_s1 + $0x1818] sm:$0xff]   ;;  %v16751_v48 = vld [vmem:[%s20970_s1 + $0x1890] sm:$0xff]   ;;  %v16754_v51 = vld [vmem:[%s20970_s1 + $0x1808] sm:$0xff]  }
 0x2ec   :  { %15379 = vmatpush3.bf16.msra.mxu0 %v16705_v46  ;;  %v16747_v44 = vld [vmem:[%s20970_s1 + $0x1898] sm:$0xff]   ;;  %v16749_v46 = vld [vmem:[%s20970_s1 + $0x18d0] sm:$0xff]   ;;  %v16757_v55 = vld [vmem:[%s20970_s1 + $0x18c0] sm:$0xff]  }
 0x2ed   :  { %15380 = vmatprep.subr.bf16.mxu0 %v16707_v52  ;;  %v16755_v52 = vld [vmem:[%s20970_s1 + $0x1888] sm:$0xff]  }
 0x2ee   :  { %15401 = vmatpush3.bf16.msra.mxu1 %v16706_v49  ;;  %v16752_v49 = vld [vmem:[%s20970_s1 + $0x1848] sm:$0xff]  }
 0x2ef   :  { %15402 = vmatprep.subr.bf16.mxu1 %v16708_v54  ;;  %v28_v54 = vld [vmem:[%s20969_s0 + $0x60] sm:$0xff] }
 0x2f0   :  { %15381 = vmatpush3.bf16.msra.mxu0 %v16709_v56  ;;  %v2958_v56 = vrot.slane %v28_v54, %v17271_v41 }
 0x2f1   :  { %15382 = vmatprep.subr.bf16.mxu0 %v16711_v58  ;;  %v16758_v58 = vld [vmem:[%s20970_s1 + $0x1800] sm:$0xff]  }
 0x2f2   :  { %15403 = vmatpush3.bf16.msra.mxu1 %v16710_v57  ;;  %v2951_v57 = vcombine.high %v28_v54, %v28_v54  ;;  %v16796_v54 = vld [vmem:[%s20970_s1 + $0x1ab8] sm:$0xff]  }
 0x2f3   :  { %15404 = vmatprep.subr.bf16.mxu1 %v16712_v59  ;;  %v16759_v59 = vld [vmem:[%s20970_s1 + $0x1880] sm:$0xff]  }
 0x2f4   :  { %15383 = vmatpush3.bf16.msra.mxu0 %v16713_v60  ;;  %v2966_v60 = vcombine.high %v2958_v56, %v2958_v56 }
 0x2f5   :  { %15384 = vmatprep.subr.bf16.mxu0 %v16715_v62  ;;  %v2974_v62 = vrot.slane %v2958_v56, %v17271_v41  ;;  %v16797_v56 = vld [vmem:[%s20970_s1 + $0x1a70] sm:$0xff]  }
 0x2f6   :  { %15405 = vmatpush3.bf16.msra.mxu1 %v16714_v61  ;;  %v19797_v61 = vrot.slane %v2951_v57, %v17271_v41  ;;  %v16798_v57 = vld [vmem:[%s20970_s1 + $0x1af0] sm:$0xff]  }
 0x2f7   :  { %15406 = vmatprep.subr.bf16.mxu1 %v16716_v63  ;;  %v16760_v63 = vld [vmem:[%s20970_s1 + $0x1978] sm:$0xff]  }
 0x2f8   :  { %15385 = vmatpush3.bf16.msra.mxu0 %v16717_v0  ;;  %v2988_v0 = vrot.slane %v2966_v60, %v17271_v41  ;;  %v16800_v60 = vld [vmem:[%s20970_s1 + $0x1ab0] sm:$0xff]  }
 0x2f9   :  { %15386 = vmatprep.subr.bf16.mxu0 %v16719_v2  ;;  %v2967_v2 = vcombine.high %v19797_v61, %v19797_v61 }
 0x2fa   :  { %15407 = vmatpush3.bf16.msra.mxu1 %v16718_v1  ;;  %v16761_v1 = vld [vmem:[%s20970_s1 + $0x19f8] sm:$0xff]  }
 0x2fb   :  { %15408 = vmatprep.subr.bf16.mxu1 %v16720_v3  ;;  %v16762_v3 = vld [vmem:[%s20970_s1 + $0x1938] sm:$0xff]  }
 0x2fc   :  { %15387 = vmatpush3.bf16.msra.mxu0 %v16721_v4  ;;  %v2998_v4 = vcombine.high %v2988_v0, %v2988_v0 }
 0x2fd   :  { %15388 = vmatprep.subr.bf16.mxu0 %v16723_v6  ;;  %v2995_v6 = vrot.slane %v2967_v2, %v17271_v41 }
 0x2fe   :  { %15409 = vmatpush3.bf16.msra.mxu1 %v16722_v5  ;;  %v16763_v5 = vld [vmem:[%s20970_s1 + $0x19b8] sm:$0xff]  }
 0x2ff   :  { %15410 = vmatprep.subr.bf16.mxu1 %v16724_v7  ;;  %v2996_v7 = vcombine.high %v2974_v62, %v2974_v62 }
 0x300   :  { %15389 = vmatpush3.bf16.msra.mxu0 %v16725_v8  ;;  %v16764_v8 = vld [vmem:[%s20970_s1 + $0x1970] sm:$0xff]  }
 0x301   :  { %15418 = vmatprep.subr.bf16.mxu0 %v16728_v11 }
 0x302   :  { %15411 = vmatpush3.bf16.msra.mxu1 %v16726_v9  ;;  %v16765_v9 = vld [vmem:[%s20970_s1 + $0x19f0] sm:$0xff]  }
 0x303   :  { %v15126_v18 = vpop.f32.mrf.mxu0  ;;  %12174 = vmatmul.mubr.bf16.vlgmr.msra.gmra.mxu0 %v2932_v10  ;;  %15440 = vmatprep.subr.bf16.mxu1 %v16729_v12  ;;  %v2999_v10 = vcombine.high %v2995_v6, %v2995_v6  ;;  %v16766_v12 = vld [vmem:[%s20970_s1 + $0x1930] sm:$0xff]  }
 0x304   :  { %15419 = vmatpush3.bf16.msra.mxu0 %v16730_v13  ;;  %12253 = vmatprep.mubr.bf16.mxu0 %v2988_v0  ;;  %v16767_v13 = vld [vmem:[%s20970_s1 + $0x19b0] sm:$0xff]  }
 0x305   :  { %v15148_v21 = vpop.f32.mrf.mxu1  ;;  %12214 = vmatmul.mubr.bf16.vlgmr.msra.gmra.mxu1 %v2948_v15  ;;  %v15127_v22 = vpop.f32.mrf.mxu0  ;;  %15420 = vmatprep.subr.bf16.mxu0 %v16732_v16  ;;  %v16768_v16 = vld [vmem:[%s20970_s1 + $0x1968] sm:$0xff]  }
 0x306   :  { %15441 = vmatpush3.bf16.msra.mxu1 %v16731_v14  ;;  %v15128_v24 = vadd.f32 %v15127_v22, %v15126_v18  ;;  %12293 = vmatprep.mubr.bf16.mxu1 %v2998_v4  ;;  %v16769_v18 = vld [vmem:[%s20970_s1 + $0x19e8] sm:$0xff]  }
 0x307   :  { %v15149_v26 = vpop.f32.mrf.mxu1  ;;  %v15129_v27 = vpop.f32.mrf.mxu0  ;;  %15442 = vmatprep.subr.bf16.mxu1 %v16733_v17  ;;  %v16803_v4 = vld [vmem:[%s20970_s1 + $0x1a28] sm:$0xff]  }
 0x308   :  { %v11696_v29 = vadd.f32 %v15128_v24, %v19632_v53  ;;  %v15150_v30 = vadd.f32 %v15149_v26, %v15148_v21  ;;  %15421 = vmatpush3.bf16.msra.mxu0 %v16734_v19  ;;  %v16756_v53 = vld [vmem:[%s20970_s1 + $0x1840] sm:$0xff]   ;;  %v16770_v21 = vld [vmem:[%s20970_s1 + $0x1928] sm:$0xff]  }
 0x309   :  { %v15151_v32 = vpop.f32.mrf.mxu1  ;;  %v15130_v33 = vpop.f32.mrf.mxu0  ;;  %15422 = vmatprep.subr.bf16.mxu0 %v16736_v23  ;;  %v16771_v24 = vld [vmem:[%s20970_s1 + $0x19a8] sm:$0xff]   ;;  %v16772_v27 = vld [vmem:[%s20970_s1 + $0x1960] sm:$0xff]  }
 0x30a   :  { %v19733_v35 = vadd.f32 %v15150_v30, %v11696_v29  ;;  %15443 = vmatpush3.bf16.msra.mxu1 %v16735_v20  ;;  %v16773_v29 = vld [vmem:[%s20970_s1 + $0x19e0] sm:$0xff]   ;;  %v16776_v33 = vld [vmem:[%s20970_s1 + $0x1958] sm:$0xff]  }
 0x30b   :  { %v15152_v37 = vpop.f32.mrf.mxu1  ;;  %15444 = vmatprep.subr.bf16.mxu1 %v16737_v25  ;;  %v16775_v32 = vld [vmem:[%s20970_s1 + $0x19a0] sm:$0xff]  }
 0x30c   :  { %15423 = vmatpush3.bf16.msra.mxu0 %v16738_v28  ;;  %v16780_v37 = vld [vmem:[%s20970_s1 + $0x1950] sm:$0xff]  }
 0x30d   :  { %15424 = vmatprep.subr.bf16.mxu0 %v16740_v34  ;;  %v16777_v34 = vld [vmem:[%s20970_s1 + $0x19d8] sm:$0xff]  }
 0x30e   :  { %15445 = vmatpush3.bf16.msra.mxu1 %v16739_v31  ;;  %v16774_v31 = vld [vmem:[%s20970_s1 + $0x1920] sm:$0xff]  }
 0x30f   :  { %15446 = vmatprep.subr.bf16.mxu1 %v16741_v36  ;;  %v16779_v36 = vld [vmem:[%s20970_s1 + $0x1998] sm:$0xff]  }
 0x310   :  { %15425 = vmatpush3.bf16.msra.mxu0 %v16742_v38  ;;  %v16781_v38 = vld [vmem:[%s20970_s1 + $0x19d0] sm:$0xff]  }
 0x311   :  { %15426 = vmatprep.subr.bf16.mxu0 %v16744_v40  ;;  %v16783_v40 = vld [vmem:[%s20970_s1 + $0x1990] sm:$0xff]  }
 0x312   :  { %15447 = vmatpush3.bf16.msra.mxu1 %v16743_v39  ;;  %v16782_v39 = vld [vmem:[%s20970_s1 + $0x1910] sm:$0xff]  }
 0x313   :  { %15448 = vmatprep.subr.bf16.mxu1 %v16745_v42  ;;  %v16784_v42 = vld [vmem:[%s20970_s1 + $0x1948] sm:$0xff]  }
 0x314   :  { %15427 = vmatpush3.bf16.msra.mxu0 %v16746_v43  ;;  %v16785_v43 = vld [vmem:[%s20970_s1 + $0x19c8] sm:$0xff]  }
 0x315   :  { %15428 = vmatprep.subr.bf16.mxu0 %v16748_v45  ;;  %v16787_v45 = vld [vmem:[%s20970_s1 + $0x1988] sm:$0xff]  }
 0x316   :  { %15449 = vmatpush3.bf16.msra.mxu1 %v16747_v44  ;;  %v16786_v44 = vld [vmem:[%s20970_s1 + $0x1908] sm:$0xff]  }
 0x317   :  { %15450 = vmatprep.subr.bf16.mxu1 %v16749_v46  ;;  %v16788_v46 = vld [vmem:[%s20970_s1 + $0x1940] sm:$0xff]  }
 0x318   :  { %15429 = vmatpush3.bf16.msra.mxu0 %v16750_v47  ;;  %v16789_v47 = vld [vmem:[%s20970_s1 + $0x19c0] sm:$0xff]  }
 0x319   :  { %15430 = vmatprep.subr.bf16.mxu0 %v16752_v49  ;;  %v16791_v49 = vld [vmem:[%s20970_s1 + $0x1980] sm:$0xff]  }
 0x31a   :  { %15451 = vmatpush3.bf16.msra.mxu1 %v16751_v48  ;;  %v16790_v48 = vld [vmem:[%s20970_s1 + $0x1900] sm:$0xff]  }
 0x31b   :  { %15452 = vmatprep.subr.bf16.mxu1 %v16753_v50  ;;  %v2981_v50 = vrot.slane %v19797_v61, %v17271_v41 }
 0x31c   :  { %15431 = vmatpush3.bf16.msra.mxu0 %v16754_v51  ;;  %v16793_v51 = vld [vmem:[%s20970_s1 + $0x1a78] sm:$0xff]  }
 0x31d   :  { %15432 = vmatprep.subr.bf16.mxu0 %v16756_v53  ;;  %v16795_v53 = vld [vmem:[%s20970_s1 + $0x1a38] sm:$0xff]  }
 0x31e   :  { %15453 = vmatpush3.bf16.msra.mxu1 %v16755_v52  ;;  %v16794_v52 = vld [vmem:[%s20970_s1 + $0x1af8] sm:$0xff]  }
 0x31f   :  { %15454 = vmatprep.subr.bf16.mxu1 %v16757_v55  ;;  %v2997_v55 = vcombine.high %v2981_v50, %v2981_v50 }
 0x320   :  { %15433 = vmatpush3.bf16.msra.mxu0 %v16758_v58 }
 0x321   :  { %15462 = vmatprep.subr.bf16.mxu0 %v16760_v63  ;;  %v16801_v63 = vld [vmem:[%s20970_s1 + $0x1a68] sm:$0xff]  }
 0x322   :  { %15455 = vmatpush3.bf16.msra.mxu1 %v16759_v59  ;;  %v16799_v59 = vld [vmem:[%s20970_s1 + $0x1a30] sm:$0xff]  }
 0x323   :  { %v15170_v11 = vpop.f32.mrf.mxu0  ;;  %12254 = vmatmul.mubr.bf16.vlgmr.msra.gmra.mxu0 %v2974_v62  ;;  %15484 = vmatprep.subr.bf16.mxu1 %v16761_v1  ;;  %v16802_v1 = vld [vmem:[%s20970_s1 + $0x1ae8] sm:$0xff]  }
 0x324   :  { %15463 = vmatpush3.bf16.msra.mxu0 %v16762_v3  ;;  %12333 = vmatprep.mubr.bf16.mxu0 %v2995_v6 }
 0x325   :  { %v15192_v14 = vpop.f32.mrf.mxu1  ;;  %12294 = vmatmul.mubr.bf16.vlgmr.msra.gmra.mxu1 %v2996_v7  ;;  %v15171_v15 = vpop.f32.mrf.mxu0  ;;  %15464 = vmatprep.subr.bf16.mxu0 %v16764_v8  ;;  %v16804_v7 = vld [vmem:[%s20970_s1 + $0x1aa8] sm:$0xff]  }
 0x326   :  { %15485 = vmatpush3.bf16.msra.mxu1 %v16763_v5  ;;  %v15172_v17 = vadd.f32 %v15171_v15, %v15170_v11  ;;  %12373 = vmatprep.mubr.bf16.mxu1 %v2999_v10  ;;  %v16805_v10 = vld [vmem:[%s20970_s1 + $0x1a60] sm:$0xff]  }
 0x327   :  { %v15193_v19 = vpop.f32.mrf.mxu1  ;;  %v15173_v20 = vpop.f32.mrf.mxu0  ;;  %15486 = vmatprep.subr.bf16.mxu1 %v16765_v9  ;;  %v16808_v15 = vld [vmem:[%s20970_s1 + $0x1aa0] sm:$0xff]  }
 0x328   :  { %v11776_v22 = vadd.f32 %v15172_v17, %v19733_v35  ;;  %v15194_v23 = vadd.f32 %v15193_v19, %v15192_v14  ;;  %15465 = vmatpush3.bf16.msra.mxu0 %v16766_v12  ;;  %v16778_v35 = vld [vmem:[%s20970_s1 + $0x1918] sm:$0xff]   ;;  %v16806_v12 = vld [vmem:[%s20970_s1 + $0x1ae0] sm:$0xff]   ;;  %v16813_v20 = vld [vmem:[%s20970_s1 + $0x1a50] sm:$0xff]  }
 0x329   :  { %v15195_v25 = vpop.f32.mrf.mxu1  ;;  %v15174_v26 = vpop.f32.mrf.mxu0  ;;  %15466 = vmatprep.subr.bf16.mxu0 %v16768_v16  ;;  %v16807_v14 = vld [vmem:[%s20970_s1 + $0x1a20] sm:$0xff]   ;;  %v16809_v16 = vld [vmem:[%s20970_s1 + $0x1a58] sm:$0xff]  }
 0x32a   :  { %v19844_v28 = vadd.f32 %v15194_v23, %v11776_v22  ;;  %15487 = vmatpush3.bf16.msra.mxu1 %v16767_v13  ;;  %v16810_v17 = vld [vmem:[%s20970_s1 + $0x1ad8] sm:$0xff]   ;;  %v16815_v22 = vld [vmem:[%s20970_s1 + $0x1a10] sm:$0xff]   ;;  %v16818_v25 = vld [vmem:[%s20970_s1 + $0x1ac8] sm:$0xff]  }
 0x32b   :  { %v15196_v30 = vpop.f32.mrf.mxu1  ;;  %15488 = vmatprep.subr.bf16.mxu1 %v16769_v18  ;;  %v16811_v18 = vld [vmem:[%s20970_s1 + $0x1a18] sm:$0xff]   ;;  %v16816_v23 = vld [vmem:[%s20970_s1 + $0x1a90] sm:$0xff]   ;;  %v16819_v26 = vld [vmem:[%s20970_s1 + $0x1a08] sm:$0xff]  }
 0x32c   :  { %15467 = vmatpush3.bf16.msra.mxu0 %v16770_v21  ;;  %v16812_v19 = vld [vmem:[%s20970_s1 + $0x1a98] sm:$0xff]   ;;  %v16814_v21 = vld [vmem:[%s20970_s1 + $0x1ad0] sm:$0xff]   ;;  %v16822_v30 = vld [vmem:[%s20970_s1 + $0x1ac0] sm:$0xff]  }
 0x32d   :  { %15468 = vmatprep.subr.bf16.mxu0 %v16772_v27  ;;  %v16820_v27 = vld [vmem:[%s20970_s1 + $0x1a88] sm:$0xff]  }
 0x32e   :  { %15489 = vmatpush3.bf16.msra.mxu1 %v16771_v24  ;;  %v16817_v24 = vld [vmem:[%s20970_s1 + $0x1a48] sm:$0xff]  }
 0x32f   :  { %15490 = vmatprep.subr.bf16.mxu1 %v16773_v29  ;;  %v29_v29 = vld [vmem:[%s20969_s0 + $0x68] sm:$0xff] }
 0x330   :  { %15469 = vmatpush3.bf16.msra.mxu0 %v16774_v31  ;;  %v3007_v31 = vrot.slane %v29_v29, %v17271_v41 }
 0x331   :  { %15470 = vmatprep.subr.bf16.mxu0 %v16776_v33  ;;  %v16823_v33 = vld [vmem:[%s20970_s1 + $0x1a00] sm:$0xff]  }
 0x332   :  { %15491 = vmatpush3.bf16.msra.mxu1 %v16775_v32  ;;  %v3000_v32 = vcombine.high %v29_v29, %v29_v29  ;;  %v16861_v29 = vld [vmem:[%s20970_s1 + $0x1cb8] sm:$0xff]  }
 0x333   :  { %15492 = vmatprep.subr.bf16.mxu1 %v16777_v34  ;;  %v16824_v34 = vld [vmem:[%s20970_s1 + $0x1a80] sm:$0xff]  }
 0x334   :  { %15471 = vmatpush3.bf16.msra.mxu0 %v16778_v35  ;;  %v3015_v35 = vcombine.high %v3007_v31, %v3007_v31 }
 0x335   :  { %15472 = vmatprep.subr.bf16.mxu0 %v16780_v37  ;;  %v3023_v37 = vrot.slane %v3007_v31, %v17271_v41  ;;  %v16862_v31 = vld [vmem:[%s20970_s1 + $0x1c70] sm:$0xff]  }
 0x336   :  { %15493 = vmatpush3.bf16.msra.mxu1 %v16779_v36  ;;  %v20009_v36 = vrot.slane %v3000_v32, %v17271_v41  ;;  %v16863_v32 = vld [vmem:[%s20970_s1 + $0x1cf0] sm:$0xff]  }
 0x337   :  { %15494 = vmatprep.subr.bf16.mxu1 %v16781_v38  ;;  %v16825_v38 = vld [vmem:[%s20970_s1 + $0x1b78] sm:$0xff]  }
 0x338   :  { %15473 = vmatpush3.bf16.msra.mxu0 %v16782_v39  ;;  %v3037_v39 = vrot.slane %v3015_v35, %v17271_v41  ;;  %v16865_v35 = vld [vmem:[%s20970_s1 + $0x1cb0] sm:$0xff]  }
 0x339   :  { %15474 = vmatprep.subr.bf16.mxu0 %v16784_v42  ;;  %v3016_v42 = vcombine.high %v20009_v36, %v20009_v36 }
 0x33a   :  { %15495 = vmatpush3.bf16.msra.mxu1 %v16783_v40  ;;  %v16826_v40 = vld [vmem:[%s20970_s1 + $0x1bf8] sm:$0xff]  }
 0x33b   :  { %15496 = vmatprep.subr.bf16.mxu1 %v16785_v43  ;;  %v16827_v43 = vld [vmem:[%s20970_s1 + $0x1b38] sm:$0xff]  }
 0x33c   :  { %15475 = vmatpush3.bf16.msra.mxu0 %v16786_v44  ;;  %v3047_v44 = vcombine.high %v3037_v39, %v3037_v39 }
 0x33d   :  { %15476 = vmatprep.subr.bf16.mxu0 %v16788_v46  ;;  %v3044_v46 = vrot.slane %v3016_v42, %v17271_v41 }
 0x33e   :  { %15497 = vmatpush3.bf16.msra.mxu1 %v16787_v45  ;;  %v16828_v45 = vld [vmem:[%s20970_s1 + $0x1bb8] sm:$0xff]  }
 0x33f   :  { %15498 = vmatprep.subr.bf16.mxu1 %v16789_v47  ;;  %v3045_v47 = vcombine.high %v3023_v37, %v3023_v37 }
 0x340   :  { %15477 = vmatpush3.bf16.msra.mxu0 %v16790_v48  ;;  %v16829_v48 = vld [vmem:[%s20970_s1 + $0x1b70] sm:$0xff]  }
 0x341   :  { %15506 = vmatprep.subr.bf16.mxu0 %v16793_v51 }
 0x342   :  { %15499 = vmatpush3.bf16.msra.mxu1 %v16791_v49  ;;  %v16830_v49 = vld [vmem:[%s20970_s1 + $0x1bf0] sm:$0xff]  }
 0x343   :  { %v15214_v58 = vpop.f32.mrf.mxu0  ;;  %12334 = vmatmul.mubr.bf16.vlgmr.msra.gmra.mxu0 %v2981_v50  ;;  %15528 = vmatprep.subr.bf16.mxu1 %v16794_v52  ;;  %v3048_v50 = vcombine.high %v3044_v46, %v3044_v46  ;;  %v16831_v52 = vld [vmem:[%s20970_s1 + $0x1b30] sm:$0xff]  }
 0x344   :  { %15507 = vmatpush3.bf16.msra.mxu0 %v16795_v53  ;;  %12413 = vmatprep.mubr.bf16.mxu0 %v3037_v39  ;;  %v16832_v53 = vld [vmem:[%s20970_s1 + $0x1bb0] sm:$0xff]  }
 0x345   :  { %v15236_v61 = vpop.f32.mrf.mxu1  ;;  %12374 = vmatmul.mubr.bf16.vlgmr.msra.gmra.mxu1 %v2997_v55  ;;  %v15215_v62 = vpop.f32.mrf.mxu0  ;;  %15508 = vmatprep.subr.bf16.mxu0 %v16797_v56  ;;  %v16833_v56 = vld [vmem:[%s20970_s1 + $0x1b68] sm:$0xff]  }
 0x346   :  { %15529 = vmatpush3.bf16.msra.mxu1 %v16796_v54  ;;  %v15216_v0 = vadd.f32 %v15215_v62, %v15214_v58  ;;  %12453 = vmatprep.mubr.bf16.mxu1 %v3047_v44  ;;  %v16834_v58 = vld [vmem:[%s20970_s1 + $0x1be8] sm:$0xff]  }
 0x347   :  { %v15237_v2 = vpop.f32.mrf.mxu1  ;;  %v15217_v3 = vpop.f32.mrf.mxu0  ;;  %15530 = vmatprep.subr.bf16.mxu1 %v16798_v57  ;;  %v16868_v44 = vld [vmem:[%s20970_s1 + $0x1c28] sm:$0xff]  }
 0x348   :  { %v11856_v5 = vadd.f32 %v15216_v0, %v19844_v28  ;;  %v15238_v6 = vadd.f32 %v15237_v2, %v15236_v61  ;;  %15509 = vmatpush3.bf16.msra.mxu0 %v16799_v59  ;;  %v16821_v28 = vld [vmem:[%s20970_s1 + $0x1a40] sm:$0xff]   ;;  %v16835_v61 = vld [vmem:[%s20970_s1 + $0x1b28] sm:$0xff]  }
 0x349   :  { %v15239_v8 = vpop.f32.mrf.mxu1  ;;  %v15218_v9 = vpop.f32.mrf.mxu0  ;;  %15510 = vmatprep.subr.bf16.mxu0 %v16801_v63  ;;  %v16836_v0 = vld [vmem:[%s20970_s1 + $0x1ba8] sm:$0xff]   ;;  %v16837_v3 = vld [vmem:[%s20970_s1 + $0x1b60] sm:$0xff]  }
 0x34a   :  { %v19945_v11 = vadd.f32 %v15238_v6, %v11856_v5  ;;  %15531 = vmatpush3.bf16.msra.mxu1 %v16800_v60  ;;  %v16838_v5 = vld [vmem:[%s20970_s1 + $0x1be0] sm:$0xff]   ;;  %v16841_v9 = vld [vmem:[%s20970_s1 + $0x1b58] sm:$0xff]  }
 0x34b   :  { %v15240_v13 = vpop.f32.mrf.mxu1  ;;  %15532 = vmatprep.subr.bf16.mxu1 %v16802_v1  ;;  %v16840_v8 = vld [vmem:[%s20970_s1 + $0x1ba0] sm:$0xff]  }
 0x34c   :  { %15511 = vmatpush3.bf16.msra.mxu0 %v16803_v4  ;;  %v16845_v13 = vld [vmem:[%s20970_s1 + $0x1b50] sm:$0xff]  }
 0x34d   :  { %15512 = vmatprep.subr.bf16.mxu0 %v16805_v10  ;;  %v16842_v10 = vld [vmem:[%s20970_s1 + $0x1bd8] sm:$0xff]  }
 0x34e   :  { %15533 = vmatpush3.bf16.msra.mxu1 %v16804_v7  ;;  %v16839_v7 = vld [vmem:[%s20970_s1 + $0x1b20] sm:$0xff]  }
 0x34f   :  { %15534 = vmatprep.subr.bf16.mxu1 %v16806_v12  ;;  %v16844_v12 = vld [vmem:[%s20970_s1 + $0x1b98] sm:$0xff]  }
 0x350   :  { %15513 = vmatpush3.bf16.msra.mxu0 %v16807_v14  ;;  %v16846_v14 = vld [vmem:[%s20970_s1 + $0x1bd0] sm:$0xff]  }
 0x351   :  { %15514 = vmatprep.subr.bf16.mxu0 %v16809_v16  ;;  %v16848_v16 = vld [vmem:[%s20970_s1 + $0x1b90] sm:$0xff]  }
 0x352   :  { %15535 = vmatpush3.bf16.msra.mxu1 %v16808_v15  ;;  %v16847_v15 = vld [vmem:[%s20970_s1 + $0x1b10] sm:$0xff]  }
 0x353   :  { %15536 = vmatprep.subr.bf16.mxu1 %v16810_v17  ;;  %v16849_v17 = vld [vmem:[%s20970_s1 + $0x1b48] sm:$0xff]  }
 0x354   :  { %15515 = vmatpush3.bf16.msra.mxu0 %v16811_v18  ;;  %v16850_v18 = vld [vmem:[%s20970_s1 + $0x1bc8] sm:$0xff]  }
 0x355   :  { %15516 = vmatprep.subr.bf16.mxu0 %v16813_v20  ;;  %v16852_v20 = vld [vmem:[%s20970_s1 + $0x1b88] sm:$0xff]  }
 0x356   :  { %15537 = vmatpush3.bf16.msra.mxu1 %v16812_v19  ;;  %v16851_v19 = vld [vmem:[%s20970_s1 + $0x1b08] sm:$0xff]  }
 0x357   :  { %15538 = vmatprep.subr.bf16.mxu1 %v16814_v21  ;;  %v16853_v21 = vld [vmem:[%s20970_s1 + $0x1b40] sm:$0xff]  }
 0x358   :  { %15517 = vmatpush3.bf16.msra.mxu0 %v16815_v22  ;;  %v16854_v22 = vld [vmem:[%s20970_s1 + $0x1bc0] sm:$0xff]  }
 0x359   :  { %15518 = vmatprep.subr.bf16.mxu0 %v16817_v24  ;;  %v16856_v24 = vld [vmem:[%s20970_s1 + $0x1b80] sm:$0xff]  }
 0x35a   :  { %15539 = vmatpush3.bf16.msra.mxu1 %v16816_v23  ;;  %v16855_v23 = vld [vmem:[%s20970_s1 + $0x1b00] sm:$0xff]  }
 0x35b   :  { %15540 = vmatprep.subr.bf16.mxu1 %v16818_v25  ;;  %v3030_v25 = vrot.slane %v20009_v36, %v17271_v41 }
 0x35c   :  { %15519 = vmatpush3.bf16.msra.mxu0 %v16819_v26  ;;  %v16858_v26 = vld [vmem:[%s20970_s1 + $0x1c78] sm:$0xff]  }
 0x35d   :  { %15520 = vmatprep.subr.bf16.mxu0 %v16821_v28  ;;  %v16860_v28 = vld [vmem:[%s20970_s1 + $0x1c38] sm:$0xff]  }
 0x35e   :  { %15541 = vmatpush3.bf16.msra.mxu1 %v16820_v27  ;;  %v16859_v27 = vld [vmem:[%s20970_s1 + $0x1cf8] sm:$0xff]  }
 0x35f   :  { %15542 = vmatprep.subr.bf16.mxu1 %v16822_v30  ;;  %v3046_v30 = vcombine.high %v3030_v25, %v3030_v25 }
 0x360   :  { %15521 = vmatpush3.bf16.msra.mxu0 %v16823_v33 }
 0x361   :  { %15550 = vmatprep.subr.bf16.mxu0 %v16825_v38  ;;  %v16866_v38 = vld [vmem:[%s20970_s1 + $0x1c68] sm:$0xff]  }
 0x362   :  { %15543 = vmatpush3.bf16.msra.mxu1 %v16824_v34  ;;  %v16864_v34 = vld [vmem:[%s20970_s1 + $0x1c30] sm:$0xff]  }
 0x363   :  { %v15258_v51 = vpop.f32.mrf.mxu0  ;;  %12414 = vmatmul.mubr.bf16.vlgmr.msra.gmra.mxu0 %v3023_v37  ;;  %15572 = vmatprep.subr.bf16.mxu1 %v16826_v40  ;;  %v16867_v40 = vld [vmem:[%s20970_s1 + $0x1ce8] sm:$0xff]  }
 0x364   :  { %15551 = vmatpush3.bf16.msra.mxu0 %v16827_v43  ;;  %12493 = vmatprep.mubr.bf16.mxu0 %v3044_v46 }
 0x365   :  { %v15280_v54 = vpop.f32.mrf.mxu1  ;;  %12454 = vmatmul.mubr.bf16.vlgmr.msra.gmra.mxu1 %v3045_v47  ;;  %v15259_v55 = vpop.f32.mrf.mxu0  ;;  %15552 = vmatprep.subr.bf16.mxu0 %v16829_v48  ;;  %v16869_v47 = vld [vmem:[%s20970_s1 + $0x1ca8] sm:$0xff]  }
 0x366   :  { %15573 = vmatpush3.bf16.msra.mxu1 %v16828_v45  ;;  %v15260_v57 = vadd.f32 %v15259_v55, %v15258_v51  ;;  %12533 = vmatprep.mubr.bf16.mxu1 %v3048_v50  ;;  %v16870_v50 = vld [vmem:[%s20970_s1 + $0x1c60] sm:$0xff]  }
 0x367   :  { %v15281_v59 = vpop.f32.mrf.mxu1  ;;  %v15261_v60 = vpop.f32.mrf.mxu0  ;;  %15574 = vmatprep.subr.bf16.mxu1 %v16830_v49  ;;  %v16873_v55 = vld [vmem:[%s20970_s1 + $0x1ca0] sm:$0xff]  }
 0x368   :  { %v11936_v62 = vadd.f32 %v15260_v57, %v19945_v11  ;;  %v15282_v63 = vadd.f32 %v15281_v59, %v15280_v54  ;;  %15553 = vmatpush3.bf16.msra.mxu0 %v16831_v52  ;;  %v16843_v11 = vld [vmem:[%s20970_s1 + $0x1b18] sm:$0xff]   ;;  %v16871_v52 = vld [vmem:[%s20970_s1 + $0x1ce0] sm:$0xff]   ;;  %v16878_v60 = vld [vmem:[%s20970_s1 + $0x1c50] sm:$0xff]  }
 0x369   :  { %v15283_v1 = vpop.f32.mrf.mxu1  ;;  %v15262_v2 = vpop.f32.mrf.mxu0  ;;  %15554 = vmatprep.subr.bf16.mxu0 %v16833_v56  ;;  %v16872_v54 = vld [vmem:[%s20970_s1 + $0x1c20] sm:$0xff]   ;;  %v16874_v56 = vld [vmem:[%s20970_s1 + $0x1c58] sm:$0xff]  }
 0x36a   :  { %v20056_v4 = vadd.f32 %v15282_v63, %v11936_v62  ;;  %15575 = vmatpush3.bf16.msra.mxu1 %v16832_v53  ;;  %v16875_v57 = vld [vmem:[%s20970_s1 + $0x1cd8] sm:$0xff]   ;;  %v16880_v62 = vld [vmem:[%s20970_s1 + $0x1c10] sm:$0xff]   ;;  %v16883_v1 = vld [vmem:[%s20970_s1 + $0x1cc8] sm:$0xff]  }
 0x36b   :  { %v15284_v6 = vpop.f32.mrf.mxu1  ;;  %15576 = vmatprep.subr.bf16.mxu1 %v16834_v58  ;;  %v16876_v58 = vld [vmem:[%s20970_s1 + $0x1c18] sm:$0xff]   ;;  %v16881_v63 = vld [vmem:[%s20970_s1 + $0x1c90] sm:$0xff]   ;;  %v16884_v2 = vld [vmem:[%s20970_s1 + $0x1c08] sm:$0xff]  }
 0x36c   :  { %15555 = vmatpush3.bf16.msra.mxu0 %v16835_v61  ;;  %v16877_v59 = vld [vmem:[%s20970_s1 + $0x1c98] sm:$0xff]   ;;  %v16879_v61 = vld [vmem:[%s20970_s1 + $0x1cd0] sm:$0xff]  }
 0x36d   :  { %15556 = vmatprep.subr.bf16.mxu0 %v16837_v3  ;;  %v16885_v3 = vld [vmem:[%s20970_s1 + $0x1c88] sm:$0xff]   ;;  %v30_v6 = vld [vmem:[%s20969_s0 + $0x70] sm:$0xff] }
 0x36e   :  { %15577 = vmatpush3.bf16.msra.mxu1 %v16836_v0  ;;  %v16882_v0 = vld [vmem:[%s20970_s1 + $0x1c48] sm:$0xff]  }
 0x36f   :  { %15578 = vmatprep.subr.bf16.mxu1 %v16838_v5  ;;  %v16887_v5 = vld [vmem:[%s20970_s1 + $0x1cc0] sm:$0xff]  }
 0x370   :  { %15557 = vmatpush3.bf16.msra.mxu0 %v16839_v7  ;;  %v16888_v7 = vld [vmem:[%s20970_s1 + $0x1c00] sm:$0xff]  }
 0x371   :  { %15558 = vmatprep.subr.bf16.mxu0 %v16841_v9  ;;  %v3049_v9 = vcombine.high %v30_v6, %v30_v6 }
 0x372   :  { %15579 = vmatpush3.bf16.msra.mxu1 %v16840_v8  ;;  %v3056_v8 = vrot.slane %v30_v6, %v17271_v41 }
 0x373   :  { %15580 = vmatprep.subr.bf16.mxu1 %v16842_v10  ;;  %v16889_v10 = vld [vmem:[%s20970_s1 + $0x1c80] sm:$0xff]  }
 0x374   :  { %15559 = vmatpush3.bf16.msra.mxu0 %v16843_v11  ;;  %v3064_v11 = vcombine.high %v3056_v8, %v3056_v8 }
 0x375   :  { %15560 = vmatprep.subr.bf16.mxu0 %v16845_v13  ;;  %v16890_v13 = vld [vmem:[%s20970_s1 + $0x1d78] sm:$0xff]  }
 0x376   :  { %15581 = vmatpush3.bf16.msra.mxu1 %v16844_v12  ;;  %v3072_v12 = vrot.slane %v3056_v8, %v17271_v41  ;;  %v16928_v8 = vld [vmem:[%s20970_s1 + $0x1ef0] sm:$0xff]  }
 0x377   :  { %15582 = vmatprep.subr.bf16.mxu1 %v16846_v14  ;;  %v20225_v14 = vrot.slane %v3049_v9, %v17271_v41 }
 0x378   :  { %15561 = vmatpush3.bf16.msra.mxu0 %v16847_v15  ;;  %v16891_v15 = vld [vmem:[%s20970_s1 + $0x1df8] sm:$0xff]  }
 0x379   :  { %15562 = vmatprep.subr.bf16.mxu0 %v16849_v17  ;;  %v16892_v17 = vld [vmem:[%s20970_s1 + $0x1d38] sm:$0xff]  }
 0x37a   :  { %15583 = vmatpush3.bf16.msra.mxu1 %v16848_v16  ;;  %v3086_v16 = vrot.slane %v3064_v11, %v17271_v41  ;;  %v16930_v11 = vld [vmem:[%s20970_s1 + $0x1eb0] sm:$0xff]  }
 0x37b   :  { %15584 = vmatprep.subr.bf16.mxu1 %v16850_v18  ;;  %v3065_v18 = vcombine.high %v20225_v14, %v20225_v14 }
 0x37c   :  { %15563 = vmatpush3.bf16.msra.mxu0 %v16851_v19  ;;  %v16893_v19 = vld [vmem:[%s20970_s1 + $0x1db8] sm:$0xff]  }
 0x37d   :  { %15564 = vmatprep.subr.bf16.mxu0 %v16853_v21  ;;  %v3094_v21 = vcombine.high %v3072_v12, %v3072_v12 }
 0x37e   :  { %15585 = vmatpush3.bf16.msra.mxu1 %v16852_v20  ;;  %v3096_v20 = vcombine.high %v3086_v16, %v3086_v16 }
 0x37f   :  { %15586 = vmatprep.subr.bf16.mxu1 %v16854_v22  ;;  %v16894_v22 = vld [vmem:[%s20970_s1 + $0x1d70] sm:$0xff]  }
 0x380   :  { %15565 = vmatpush3.bf16.msra.mxu0 %v16855_v23  ;;  %v3093_v23 = vrot.slane %v3065_v18, %v17271_v41 }
 0x381   :  { %15594 = vmatprep.subr.bf16.mxu0 %v16858_v26  ;;  %v16896_v26 = vld [vmem:[%s20970_s1 + $0x1d30] sm:$0xff]  }
 0x382   :  { %15587 = vmatpush3.bf16.msra.mxu1 %v16856_v24  ;;  %v16895_v24 = vld [vmem:[%s20970_s1 + $0x1df0] sm:$0xff]  }
 0x383   :  { %v15302_v33 = vpop.f32.mrf.mxu0  ;;  %12494 = vmatmul.mubr.bf16.vlgmr.msra.gmra.mxu0 %v3030_v25  ;;  %15616 = vmatprep.subr.bf16.mxu1 %v16859_v27  ;;  %v3097_v27 = vcombine.high %v3093_v23, %v3093_v23 }
 0x384   :  { %15595 = vmatpush3.bf16.msra.mxu0 %v16860_v28  ;;  %12573 = vmatprep.mubr.bf16.mxu0 %v3086_v16  ;;  %v16897_v28 = vld [vmem:[%s20970_s1 + $0x1db0] sm:$0xff]   ;;  %v16932_v16 = vld [vmem:[%s20970_s1 + $0x1ee8] sm:$0xff]  }
 0x385   :  { %v15324_v36 = vpop.f32.mrf.mxu1  ;;  %12534 = vmatmul.mubr.bf16.vlgmr.msra.gmra.mxu1 %v3046_v30  ;;  %v15303_v37 = vpop.f32.mrf.mxu0  ;;  %15596 = vmatprep.subr.bf16.mxu0 %v16862_v31  ;;  %v16898_v31 = vld [vmem:[%s20970_s1 + $0x1d68] sm:$0xff]  }
 0x386   :  { %15617 = vmatpush3.bf16.msra.mxu1 %v16861_v29  ;;  %v15304_v39 = vadd.f32 %v15303_v37, %v15302_v33  ;;  %12613 = vmatprep.mubr.bf16.mxu1 %v3096_v20  ;;  %v16899_v33 = vld [vmem:[%s20970_s1 + $0x1de8] sm:$0xff]  }
 0x387   :  { %v15325_v42 = vpop.f32.mrf.mxu1  ;;  %v15305_v43 = vpop.f32.mrf.mxu0  ;;  %15618 = vmatprep.subr.bf16.mxu1 %v16863_v32 }
 0x388   :  { %v12016_v45 = vadd.f32 %v15304_v39, %v20056_v4  ;;  %v15326_v46 = vadd.f32 %v15325_v42, %v15324_v36  ;;  %15597 = vmatpush3.bf16.msra.mxu0 %v16864_v34  ;;  %v16886_v4 = vld [vmem:[%s20970_s1 + $0x1c40] sm:$0xff]   ;;  %v16900_v36 = vld [vmem:[%s20970_s1 + $0x1d28] sm:$0xff]  }
 0x389   :  { %v15327_v48 = vpop.f32.mrf.mxu1  ;;  %v15306_v49 = vpop.f32.mrf.mxu0  ;;  %15598 = vmatprep.subr.bf16.mxu0 %v16866_v38  ;;  %v16901_v39 = vld [vmem:[%s20970_s1 + $0x1da8] sm:$0xff]   ;;  %v16902_v43 = vld [vmem:[%s20970_s1 + $0x1d60] sm:$0xff]  }
 0x38a   :  { %v20157_v51 = vadd.f32 %v15326_v46, %v12016_v45  ;;  %15619 = vmatpush3.bf16.msra.mxu1 %v16865_v35  ;;  %v16903_v45 = vld [vmem:[%s20970_s1 + $0x1de0] sm:$0xff]   ;;  %v16906_v49 = vld [vmem:[%s20970_s1 + $0x1d58] sm:$0xff]  }
 0x38b   :  { %v15328_v53 = vpop.f32.mrf.mxu1  ;;  %15620 = vmatprep.subr.bf16.mxu1 %v16867_v40  ;;  %v16905_v48 = vld [vmem:[%s20970_s1 + $0x1da0] sm:$0xff]  }
 0x38c   :  { %15599 = vmatpush3.bf16.msra.mxu0 %v16868_v44  ;;  %v16910_v53 = vld [vmem:[%s20970_s1 + $0x1d50] sm:$0xff]  }
 0x38d   :  { %15600 = vmatprep.subr.bf16.mxu0 %v16870_v50  ;;  %v16907_v50 = vld [vmem:[%s20970_s1 + $0x1dd8] sm:$0xff]  }
 0x38e   :  { %15621 = vmatpush3.bf16.msra.mxu1 %v16869_v47  ;;  %v16904_v47 = vld [vmem:[%s20970_s1 + $0x1d20] sm:$0xff]  }
 0x38f   :  { %15622 = vmatprep.subr.bf16.mxu1 %v16871_v52  ;;  %v16909_v52 = vld [vmem:[%s20970_s1 + $0x1d98] sm:$0xff]  }
 0x390   :  { %15601 = vmatpush3.bf16.msra.mxu0 %v16872_v54  ;;  %v16911_v54 = vld [vmem:[%s20970_s1 + $0x1dd0] sm:$0xff]  }
 0x391   :  { %15602 = vmatprep.subr.bf16.mxu0 %v16874_v56  ;;  %v16913_v56 = vld [vmem:[%s20970_s1 + $0x1d90] sm:$0xff]  }
 0x392   :  { %15623 = vmatpush3.bf16.msra.mxu1 %v16873_v55  ;;  %v16912_v55 = vld [vmem:[%s20970_s1 + $0x1d10] sm:$0xff]  }
 0x393   :  { %15624 = vmatprep.subr.bf16.mxu1 %v16875_v57  ;;  %v16914_v57 = vld [vmem:[%s20970_s1 + $0x1d48] sm:$0xff]  }
 0x394   :  { %15603 = vmatpush3.bf16.msra.mxu0 %v16876_v58  ;;  %v16915_v58 = vld [vmem:[%s20970_s1 + $0x1dc8] sm:$0xff]  }
 0x395   :  { %15604 = vmatprep.subr.bf16.mxu0 %v16878_v60  ;;  %v16917_v60 = vld [vmem:[%s20970_s1 + $0x1d88] sm:$0xff]  }
 0x396   :  { %15625 = vmatpush3.bf16.msra.mxu1 %v16877_v59  ;;  %v16916_v59 = vld [vmem:[%s20970_s1 + $0x1d08] sm:$0xff]  }
 0x397   :  { %15626 = vmatprep.subr.bf16.mxu1 %v16879_v61  ;;  %v16918_v61 = vld [vmem:[%s20970_s1 + $0x1d40] sm:$0xff]  }
 0x398   :  { %15605 = vmatpush3.bf16.msra.mxu0 %v16880_v62  ;;  %v16919_v62 = vld [vmem:[%s20970_s1 + $0x1dc0] sm:$0xff]  }
 0x399   :  { %15606 = vmatprep.subr.bf16.mxu0 %v16882_v0  ;;  %v16921_v0 = vld [vmem:[%s20970_s1 + $0x1d80] sm:$0xff]  }
 0x39a   :  { %15627 = vmatpush3.bf16.msra.mxu1 %v16881_v63  ;;  %v16920_v63 = vld [vmem:[%s20970_s1 + $0x1d00] sm:$0xff]  }
 0x39b   :  { %15628 = vmatprep.subr.bf16.mxu1 %v16883_v1  ;;  %v3079_v1 = vrot.slane %v20225_v14, %v17271_v41  ;;  %v16931_v14 = vld [vmem:[%s20970_s1 + $0x1e68] sm:$0xff]  }
 0x39c   :  { %15607 = vmatpush3.bf16.msra.mxu0 %v16884_v2  ;;  %v16923_v2 = vld [vmem:[%s20970_s1 + $0x1e78] sm:$0xff]  }
 0x39d   :  { %15608 = vmatprep.subr.bf16.mxu0 %v16886_v4  ;;  %v16925_v4 = vld [vmem:[%s20970_s1 + $0x1e38] sm:$0xff]   ;;  %v3095_v6 = vcombine.high %v3079_v1, %v3079_v1 }
 0x39e   :  { %15629 = vmatpush3.bf16.msra.mxu1 %v16885_v3  ;;  %v16924_v3 = vld [vmem:[%s20970_s1 + $0x1ef8] sm:$0xff]  }
 0x39f   :  { %15630 = vmatprep.subr.bf16.mxu1 %v16887_v5  ;;  %v16926_v5 = vld [vmem:[%s20970_s1 + $0x1eb8] sm:$0xff]  }
 0x3a0   :  { %15609 = vmatpush3.bf16.msra.mxu0 %v16888_v7  ;;  %v16927_v7 = vld [vmem:[%s20970_s1 + $0x1e70] sm:$0xff]  }
 0x3a1   :  { %15638 = vmatprep.subr.bf16.mxu0 %v16890_v13 }
 0x3a2   :  { %15631 = vmatpush3.bf16.msra.mxu1 %v16889_v10  ;;  %v16929_v10 = vld [vmem:[%s20970_s1 + $0x1e30] sm:$0xff]  }
 0x3a3   :  { %v15346_v25 = vpop.f32.mrf.mxu0  ;;  %12574 = vmatmul.mubr.bf16.vlgmr.msra.gmra.mxu0 %v3072_v12  ;;  %15660 = vmatprep.subr.bf16.mxu1 %v16891_v15 }
 0x3a4   :  { %15639 = vmatpush3.bf16.msra.mxu0 %v16892_v17  ;;  %12653 = vmatprep.mubr.bf16.mxu0 %v3093_v23 }
 0x3a5   :  { %v15368_v29 = vpop.f32.mrf.mxu1  ;;  %12614 = vmatmul.mubr.bf16.vlgmr.msra.gmra.mxu1 %v3094_v21  ;;  %v15347_v30 = vpop.f32.mrf.mxu0  ;;  %15640 = vmatprep.subr.bf16.mxu0 %v16894_v22  ;;  %v16934_v22 = vld [vmem:[%s20970_s1 + $0x1ea8] sm:$0xff]  }
 0x3a6   :  { %15661 = vmatpush3.bf16.msra.mxu1 %v16893_v19  ;;  %v15348_v32 = vadd.f32 %v15347_v30, %v15346_v25  ;;  %12693 = vmatprep.mubr.bf16.mxu1 %v3097_v27  ;;  %v16933_v19 = vld [vmem:[%s20970_s1 + $0x1e28] sm:$0xff]   ;;  %v16935_v25 = vld [vmem:[%s20970_s1 + $0x1e60] sm:$0xff]  }
 0x3a7   :  { %v15369_v34 = vpop.f32.mrf.mxu1  ;;  %v15349_v35 = vpop.f32.mrf.mxu0  ;;  %15662 = vmatprep.subr.bf16.mxu1 %v16895_v24  ;;  %v16936_v27 = vld [vmem:[%s20970_s1 + $0x1ee0] sm:$0xff]  }
 0x3a8   :  { %v12096_v37 = vadd.f32 %v15348_v32, %v20157_v51  ;;  %v15370_v38 = vadd.f32 %v15369_v34, %v15368_v29  ;;  %15641 = vmatpush3.bf16.msra.mxu0 %v16896_v26  ;;  %v16908_v51 = vld [vmem:[%s20970_s1 + $0x1d18] sm:$0xff]   ;;  %v16937_v29 = vld [vmem:[%s20970_s1 + $0x1e20] sm:$0xff]   ;;  %v16943_v35 = vld [vmem:[%s20970_s1 + $0x1e50] sm:$0xff]  }
 0x3a9   :  { %v15371_v40 = vpop.f32.mrf.mxu1  ;;  %v15350_v42 = vpop.f32.mrf.mxu0  ;;  %15642 = vmatprep.subr.bf16.mxu0 %v16898_v31  ;;  %v16938_v30 = vld [vmem:[%s20970_s1 + $0x1ea0] sm:$0xff]   ;;  %v16939_v31 = vld [vmem:[%s20970_s1 + $0x1e58] sm:$0xff]  }
 0x3aa   :  { %v20268_v44 = vadd.f32 %v15370_v38, %v12096_v37  ;;  %15663 = vmatpush3.bf16.msra.mxu1 %v16897_v28  ;;  %v16940_v32 = vld [vmem:[%s20970_s1 + $0x1ed8] sm:$0xff]   ;;  %v16945_v37 = vld [vmem:[%s20970_s1 + $0x1e10] sm:$0xff]   ;;  %v16948_v40 = vld [vmem:[%s20970_s1 + $0x1ec8] sm:$0xff]  }
 0x3ab   :  { %v15372_v46 = vpop.f32.mrf.mxu1  ;;  %15664 = vmatprep.subr.bf16.mxu1 %v16899_v33  ;;  %v16941_v33 = vld [vmem:[%s20970_s1 + $0x1e18] sm:$0xff]   ;;  %v16946_v38 = vld [vmem:[%s20970_s1 + $0x1e90] sm:$0xff]   ;;  %v16949_v42 = vld [vmem:[%s20970_s1 + $0x1e08] sm:$0xff]  }
 0x3ac   :  { %15643 = vmatpush3.bf16.msra.mxu0 %v16900_v36  ;;  %v16942_v34 = vld [vmem:[%s20970_s1 + $0x1e98] sm:$0xff]   ;;  %v16944_v36 = vld [vmem:[%s20970_s1 + $0x1ed0] sm:$0xff]  }
 0x3ad   :  { %15644 = vmatprep.subr.bf16.mxu0 %v16902_v43  ;;  %v16950_v43 = vld [vmem:[%s20970_s1 + $0x1e88] sm:$0xff]   ;;  %v31_v46 = vld [vmem:[%s20969_s0 + $0x78] sm:$0xff] }
 0x3ae   :  { %15665 = vmatpush3.bf16.msra.mxu1 %v16901_v39  ;;  %v16947_v39 = vld [vmem:[%s20970_s1 + $0x1e48] sm:$0xff]  }
 0x3af   :  { %15666 = vmatprep.subr.bf16.mxu1 %v16903_v45  ;;  %v16952_v45 = vld [vmem:[%s20970_s1 + $0x1ec0] sm:$0xff]  }
 0x3b0   :  { %15645 = vmatpush3.bf16.msra.mxu0 %v16904_v47  ;;  %v16953_v47 = vld [vmem:[%s20970_s1 + $0x1e00] sm:$0xff]  }
 0x3b1   :  { %15646 = vmatprep.subr.bf16.mxu0 %v16906_v49  ;;  %v3098_v49 = vcombine.high %v31_v46, %v31_v46 }
 0x3b2   :  { %15667 = vmatpush3.bf16.msra.mxu1 %v16905_v48  ;;  %v3105_v48 = vrot.slane %v31_v46, %v17271_v41 }
 0x3b3   :  { %15668 = vmatprep.subr.bf16.mxu1 %v16907_v50  ;;  %v16954_v50 = vld [vmem:[%s20970_s1 + $0x1e80] sm:$0xff]  }
 0x3b4   :  { %15647 = vmatpush3.bf16.msra.mxu0 %v16908_v51  ;;  %v3113_v51 = vcombine.high %v3105_v48, %v3105_v48 }
 0x3b5   :  { %15648 = vmatprep.subr.bf16.mxu0 %v16910_v53  ;;  %v16955_v53 = vld [vmem:[%s20970_s1 + $0x1f78] sm:$0xff]  }
 0x3b6   :  { %15669 = vmatpush3.bf16.msra.mxu1 %v16909_v52  ;;  %v3121_v52 = vrot.slane %v3105_v48, %v17271_v41  ;;  %v16993_v48 = vld [vmem:[%s20970_s1 + $0x20f0] sm:$0xff]  }
 0x3b7   :  { %15670 = vmatprep.subr.bf16.mxu1 %v16911_v54  ;;  %v20437_v54 = vrot.slane %v3098_v49, %v17271_v41 }
 0x3b8   :  { %15649 = vmatpush3.bf16.msra.mxu0 %v16912_v55  ;;  %v16956_v55 = vld [vmem:[%s20970_s1 + $0x1ff8] sm:$0xff]  }
 0x3b9   :  { %15650 = vmatprep.subr.bf16.mxu0 %v16914_v57  ;;  %v16957_v57 = vld [vmem:[%s20970_s1 + $0x1f38] sm:$0xff]  }
 0x3ba   :  { %15671 = vmatpush3.bf16.msra.mxu1 %v16913_v56  ;;  %v3135_v56 = vrot.slane %v3113_v51, %v17271_v41  ;;  %v16995_v51 = vld [vmem:[%s20970_s1 + $0x20b0] sm:$0xff]  }
 0x3bb   :  { %15672 = vmatprep.subr.bf16.mxu1 %v16915_v58  ;;  %v3114_v58 = vcombine.high %v20437_v54, %v20437_v54 }
 0x3bc   :  { %15651 = vmatpush3.bf16.msra.mxu0 %v16916_v59  ;;  %v16958_v59 = vld [vmem:[%s20970_s1 + $0x1fb8] sm:$0xff]  }
 0x3bd   :  { %15652 = vmatprep.subr.bf16.mxu0 %v16918_v61  ;;  %v3143_v61 = vcombine.high %v3121_v52, %v3121_v52 }
 0x3be   :  { %15673 = vmatpush3.bf16.msra.mxu1 %v16917_v60  ;;  %v3145_v60 = vcombine.high %v3135_v56, %v3135_v56 }
 0x3bf   :  { %15674 = vmatprep.subr.bf16.mxu1 %v16919_v62  ;;  %v16959_v62 = vld [vmem:[%s20970_s1 + $0x1f70] sm:$0xff]  }
 0x3c0   :  { %15653 = vmatpush3.bf16.msra.mxu0 %v16920_v63  ;;  %v3142_v63 = vrot.slane %v3114_v58, %v17271_v41 }
 0x3c1   :  { %15682 = vmatprep.subr.bf16.mxu0 %v16923_v2  ;;  %v16961_v2 = vld [vmem:[%s20970_s1 + $0x1f30] sm:$0xff]  }
 0x3c2   :  { %15675 = vmatpush3.bf16.msra.mxu1 %v16921_v0  ;;  %v16960_v0 = vld [vmem:[%s20970_s1 + $0x1ff0] sm:$0xff]  }
 0x3c3   :  { %v15390_v9 = vpop.f32.mrf.mxu0  ;;  %12654 = vmatmul.mubr.bf16.vlgmr.msra.gmra.mxu0 %v3079_v1  ;;  %15704 = vmatprep.subr.bf16.mxu1 %v16924_v3  ;;  %v3146_v3 = vcombine.high %v3142_v63, %v3142_v63 }
 0x3c4   :  { %15683 = vmatpush3.bf16.msra.mxu0 %v16925_v4  ;;  %12733 = vmatprep.mubr.bf16.mxu0 %v3135_v56  ;;  %v16962_v4 = vld [vmem:[%s20970_s1 + $0x1fb0] sm:$0xff]   ;;  %v16997_v56 = vld [vmem:[%s20970_s1 + $0x20e8] sm:$0xff]  }
 0x3c5   :  { %v15412_v12 = vpop.f32.mrf.mxu1  ;;  %12694 = vmatmul.mubr.bf16.vlgmr.msra.gmra.mxu1 %v3095_v6  ;;  %v15391_v13 = vpop.f32.mrf.mxu0  ;;  %15684 = vmatprep.subr.bf16.mxu0 %v16927_v7  ;;  %v16963_v7 = vld [vmem:[%s20970_s1 + $0x1f68] sm:$0xff]  }
 0x3c6   :  { %15705 = vmatpush3.bf16.msra.mxu1 %v16926_v5  ;;  %v15392_v15 = vadd.f32 %v15391_v13, %v15390_v9  ;;  %12773 = vmatprep.mubr.bf16.mxu1 %v3145_v60  ;;  %v16964_v9 = vld [vmem:[%s20970_s1 + $0x1fe8] sm:$0xff]  }
 0x3c7   :  { %v15413_v17 = vpop.f32.mrf.mxu1  ;;  %v15393_v18 = vpop.f32.mrf.mxu0  ;;  %15706 = vmatprep.subr.bf16.mxu1 %v16928_v8 }
 0x3c8   :  { %v12176_v20 = vadd.f32 %v15392_v15, %v20268_v44  ;;  %v15414_v21 = vadd.f32 %v15413_v17, %v15412_v12  ;;  %15685 = vmatpush3.bf16.msra.mxu0 %v16929_v10  ;;  %v16951_v44 = vld [vmem:[%s20970_s1 + $0x1e40] sm:$0xff]   ;;  %v16965_v12 = vld [vmem:[%s20970_s1 + $0x1f28] sm:$0xff]  }
 0x3c9   :  { %v15415_v23 = vpop.f32.mrf.mxu1  ;;  %v15394_v24 = vpop.f32.mrf.mxu0  ;;  %15686 = vmatprep.subr.bf16.mxu0 %v16931_v14  ;;  %v16966_v15 = vld [vmem:[%s20970_s1 + $0x1fa8] sm:$0xff]   ;;  %v16967_v18 = vld [vmem:[%s20970_s1 + $0x1f60] sm:$0xff]  }
 0x3ca   :  { %v20369_v26 = vadd.f32 %v15414_v21, %v12176_v20  ;;  %15707 = vmatpush3.bf16.msra.mxu1 %v16930_v11  ;;  %v16968_v20 = vld [vmem:[%s20970_s1 + $0x1fe0] sm:$0xff]   ;;  %v16971_v24 = vld [vmem:[%s20970_s1 + $0x1f58] sm:$0xff]  }
 0x3cb   :  { %v15416_v28 = vpop.f32.mrf.mxu1  ;;  %15708 = vmatprep.subr.bf16.mxu1 %v16932_v16  ;;  %v16970_v23 = vld [vmem:[%s20970_s1 + $0x1fa0] sm:$0xff]  }
 0x3cc   :  { %15687 = vmatpush3.bf16.msra.mxu0 %v16933_v19  ;;  %v16975_v28 = vld [vmem:[%s20970_s1 + $0x1f50] sm:$0xff]  }
 0x3cd   :  { %15688 = vmatprep.subr.bf16.mxu0 %v16935_v25  ;;  %v16972_v25 = vld [vmem:[%s20970_s1 + $0x1fd8] sm:$0xff]  }
 0x3ce   :  { %15709 = vmatpush3.bf16.msra.mxu1 %v16934_v22  ;;  %v16969_v22 = vld [vmem:[%s20970_s1 + $0x1f20] sm:$0xff]  }
 0x3cf   :  { %15710 = vmatprep.subr.bf16.mxu1 %v16936_v27  ;;  %v16974_v27 = vld [vmem:[%s20970_s1 + $0x1f98] sm:$0xff]  }
 0x3d0   :  { %15689 = vmatpush3.bf16.msra.mxu0 %v16937_v29  ;;  %v16976_v29 = vld [vmem:[%s20970_s1 + $0x1fd0] sm:$0xff]  }
 0x3d1   :  { %15690 = vmatprep.subr.bf16.mxu0 %v16939_v31  ;;  %v16978_v31 = vld [vmem:[%s20970_s1 + $0x1f90] sm:$0xff]  }
 0x3d2   :  { %15711 = vmatpush3.bf16.msra.mxu1 %v16938_v30  ;;  %v16977_v30 = vld [vmem:[%s20970_s1 + $0x1f10] sm:$0xff]  }
 0x3d3   :  { %15712 = vmatprep.subr.bf16.mxu1 %v16940_v32  ;;  %v16979_v32 = vld [vmem:[%s20970_s1 + $0x1f48] sm:$0xff]  }
 0x3d4   :  { %15691 = vmatpush3.bf16.msra.mxu0 %v16941_v33  ;;  %v16980_v33 = vld [vmem:[%s20970_s1 + $0x1fc8] sm:$0xff]  }
 0x3d5   :  { %15692 = vmatprep.subr.bf16.mxu0 %v16943_v35  ;;  %v16982_v35 = vld [vmem:[%s20970_s1 + $0x1f88] sm:$0xff]  }
 0x3d6   :  { %15713 = vmatpush3.bf16.msra.mxu1 %v16942_v34  ;;  %v16981_v34 = vld [vmem:[%s20970_s1 + $0x1f08] sm:$0xff]  }
 0x3d7   :  { %15714 = vmatprep.subr.bf16.mxu1 %v16944_v36  ;;  %v16983_v36 = vld [vmem:[%s20970_s1 + $0x1f40] sm:$0xff]  }
 0x3d8   :  { %15693 = vmatpush3.bf16.msra.mxu0 %v16945_v37  ;;  %v16984_v37 = vld [vmem:[%s20970_s1 + $0x1fc0] sm:$0xff]  }
 0x3d9   :  { %15694 = vmatprep.subr.bf16.mxu0 %v16947_v39  ;;  %v16986_v39 = vld [vmem:[%s20970_s1 + $0x1f80] sm:$0xff]  }
 0x3da   :  { %15715 = vmatpush3.bf16.msra.mxu1 %v16946_v38  ;;  %v16985_v38 = vld [vmem:[%s20970_s1 + $0x1f00] sm:$0xff]  }
 0x3db   :  { %15716 = vmatprep.subr.bf16.mxu1 %v16948_v40  ;;  %v3128_v40 = vrot.slane %v20437_v54, %v17271_v41  ;;  %v16996_v54 = vld [vmem:[%s20970_s1 + $0x2068] sm:$0xff]  }
 0x3dc   :  { %15695 = vmatpush3.bf16.msra.mxu0 %v16949_v42  ;;  %v16988_v42 = vld [vmem:[%s20970_s1 + $0x2078] sm:$0xff]  }
 0x3dd   :  { %15696 = vmatprep.subr.bf16.mxu0 %v16951_v44  ;;  %v16990_v44 = vld [vmem:[%s20970_s1 + $0x2038] sm:$0xff]   ;;  %v3144_v46 = vcombine.high %v3128_v40, %v3128_v40 }
 0x3de   :  { %15717 = vmatpush3.bf16.msra.mxu1 %v16950_v43  ;;  %v16989_v43 = vld [vmem:[%s20970_s1 + $0x20f8] sm:$0xff]  }
 0x3df   :  { %15718 = vmatprep.subr.bf16.mxu1 %v16952_v45  ;;  %v16991_v45 = vld [vmem:[%s20970_s1 + $0x20b8] sm:$0xff]  }
 0x3e0   :  { %15697 = vmatpush3.bf16.msra.mxu0 %v16953_v47  ;;  %v16992_v47 = vld [vmem:[%s20970_s1 + $0x2070] sm:$0xff]  }
 0x3e1   :  { %15726 = vmatprep.subr.bf16.mxu0 %v16955_v53 }
 0x3e2   :  { %15719 = vmatpush3.bf16.msra.mxu1 %v16954_v50  ;;  %v16994_v50 = vld [vmem:[%s20970_s1 + $0x2030] sm:$0xff]  }
 0x3e3   :  { %v15434_v1 = vpop.f32.mrf.mxu0  ;;  %12734 = vmatmul.mubr.bf16.vlgmr.msra.gmra.mxu0 %v3121_v52  ;;  %15748 = vmatprep.subr.bf16.mxu1 %v16956_v55 }
 0x3e4   :  { %15727 = vmatpush3.bf16.msra.mxu0 %v16957_v57  ;;  %12813 = vmatprep.mubr.bf16.mxu0 %v3142_v63 }
 0x3e5   :  { %v15456_v5 = vpop.f32.mrf.mxu1  ;;  %12774 = vmatmul.mubr.bf16.vlgmr.msra.gmra.mxu1 %v3143_v61  ;;  %v15435_v6 = vpop.f32.mrf.mxu0  ;;  %15728 = vmatprep.subr.bf16.mxu0 %v16959_v62  ;;  %v16999_v62 = vld [vmem:[%s20970_s1 + $0x20a8] sm:$0xff]  }
 0x3e6   :  { %15749 = vmatpush3.bf16.msra.mxu1 %v16958_v59  ;;  %v15436_v8 = vadd.f32 %v15435_v6, %v15434_v1  ;;  %12853 = vmatprep.mubr.bf16.mxu1 %v3146_v3  ;;  %v16998_v59 = vld [vmem:[%s20970_s1 + $0x2028] sm:$0xff]   ;;  %v17000_v1 = vld [vmem:[%s20970_s1 + $0x2060] sm:$0xff]  }
 0x3e7   :  { %v15457_v10 = vpop.f32.mrf.mxu1  ;;  %v15437_v11 = vpop.f32.mrf.mxu0  ;;  %15750 = vmatprep.subr.bf16.mxu1 %v16960_v0  ;;  %v17001_v3 = vld [vmem:[%s20970_s1 + $0x20e0] sm:$0xff]  }
 0x3e8   :  { %v12256_v13 = vadd.f32 %v15436_v8, %v20369_v26  ;;  %v15458_v14 = vadd.f32 %v15457_v10, %v15456_v5  ;;  %15729 = vmatpush3.bf16.msra.mxu0 %v16961_v2  ;;  %v16973_v26 = vld [vmem:[%s20970_s1 + $0x1f18] sm:$0xff]   ;;  %v17002_v5 = vld [vmem:[%s20970_s1 + $0x2020] sm:$0xff]   ;;  %v17008_v11 = vld [vmem:[%s20970_s1 + $0x2050] sm:$0xff]  }
 0x3e9   :  { %v15459_v16 = vpop.f32.mrf.mxu1  ;;  %v15438_v17 = vpop.f32.mrf.mxu0  ;;  %15730 = vmatprep.subr.bf16.mxu0 %v16963_v7  ;;  %v17003_v6 = vld [vmem:[%s20970_s1 + $0x20a0] sm:$0xff]   ;;  %v17004_v7 = vld [vmem:[%s20970_s1 + $0x2058] sm:$0xff]  }
 0x3ea   :  { %v20480_v19 = vadd.f32 %v15458_v14, %v12256_v13  ;;  %15751 = vmatpush3.bf16.msra.mxu1 %v16962_v4  ;;  %v17005_v8 = vld [vmem:[%s20970_s1 + $0x20d8] sm:$0xff]   ;;  %v17010_v13 = vld [vmem:[%s20970_s1 + $0x2010] sm:$0xff]   ;;  %v17013_v16 = vld [vmem:[%s20970_s1 + $0x20c8] sm:$0xff]  }
 0x3eb   :  { %v15460_v21 = vpop.f32.mrf.mxu1  ;;  %15752 = vmatprep.subr.bf16.mxu1 %v16964_v9  ;;  %v17006_v9 = vld [vmem:[%s20970_s1 + $0x2018] sm:$0xff]   ;;  %v17011_v14 = vld [vmem:[%s20970_s1 + $0x2090] sm:$0xff]   ;;  %v17014_v17 = vld [vmem:[%s20970_s1 + $0x2008] sm:$0xff]  }
 0x3ec   :  { %15731 = vmatpush3.bf16.msra.mxu0 %v16965_v12  ;;  %v17007_v10 = vld [vmem:[%s20970_s1 + $0x2098] sm:$0xff]   ;;  %v17009_v12 = vld [vmem:[%s20970_s1 + $0x20d0] sm:$0xff]   ;;  %v32_v21 = vld [vmem:[%s20969_s0 + $0x80] sm:$0xff] }
 0x3ed   :  { %15732 = vmatprep.subr.bf16.mxu0 %v16967_v18  ;;  %v17015_v18 = vld [vmem:[%s20970_s1 + $0x2088] sm:$0xff]  }
 0x3ee   :  { %15753 = vmatpush3.bf16.msra.mxu1 %v16966_v15  ;;  %v17012_v15 = vld [vmem:[%s20970_s1 + $0x2048] sm:$0xff]  }
 0x3ef   :  { %15754 = vmatprep.subr.bf16.mxu1 %v16968_v20  ;;  %v17017_v20 = vld [vmem:[%s20970_s1 + $0x20c0] sm:$0xff]  }
 0x3f0   :  { %15733 = vmatpush3.bf16.msra.mxu0 %v16969_v22  ;;  %v17018_v22 = vld [vmem:[%s20970_s1 + $0x2000] sm:$0xff]  }
 0x3f1   :  { %15734 = vmatprep.subr.bf16.mxu0 %v16971_v24  ;;  %v3147_v24 = vcombine.high %v32_v21, %v32_v21 }
 0x3f2   :  { %15755 = vmatpush3.bf16.msra.mxu1 %v16970_v23  ;;  %v3154_v23 = vrot.slane %v32_v21, %v17271_v41 }
 0x3f3   :  { %15756 = vmatprep.subr.bf16.mxu1 %v16972_v25  ;;  %v17019_v25 = vld [vmem:[%s20970_s1 + $0x2080] sm:$0xff]  }
 0x3f4   :  { %15735 = vmatpush3.bf16.msra.mxu0 %v16973_v26  ;;  %v3162_v26 = vcombine.high %v3154_v23, %v3154_v23 }
 0x3f5   :  { %15736 = vmatprep.subr.bf16.mxu0 %v16975_v28  ;;  %v17020_v28 = vld [vmem:[%s20970_s1 + $0x2178] sm:$0xff]  }
 0x3f6   :  { %15757 = vmatpush3.bf16.msra.mxu1 %v16974_v27  ;;  %v3170_v27 = vrot.slane %v3154_v23, %v17271_v41  ;;  %v17058_v23 = vld [vmem:[%s20970_s1 + $0x22f0] sm:$0xff]  }
 0x3f7   :  { %15758 = vmatprep.subr.bf16.mxu1 %v16976_v29  ;;  %v20649_v29 = vrot.slane %v3147_v24, %v17271_v41 }
 0x3f8   :  { %15737 = vmatpush3.bf16.msra.mxu0 %v16977_v30  ;;  %v17021_v30 = vld [vmem:[%s20970_s1 + $0x21f8] sm:$0xff]  }
 0x3f9   :  { %15738 = vmatprep.subr.bf16.mxu0 %v16979_v32  ;;  %v17022_v32 = vld [vmem:[%s20970_s1 + $0x2138] sm:$0xff]  }
 0x3fa   :  { %15759 = vmatpush3.bf16.msra.mxu1 %v16978_v31  ;;  %v3184_v31 = vrot.slane %v3162_v26, %v17271_v41  ;;  %v17060_v26 = vld [vmem:[%s20970_s1 + $0x22b0] sm:$0xff]  }
 0x3fb   :  { %15760 = vmatprep.subr.bf16.mxu1 %v16980_v33  ;;  %v3163_v33 = vcombine.high %v20649_v29, %v20649_v29 }
 0x3fc   :  { %15739 = vmatpush3.bf16.msra.mxu0 %v16981_v34  ;;  %v17023_v34 = vld [vmem:[%s20970_s1 + $0x21b8] sm:$0xff]  }
 0x3fd   :  { %15740 = vmatprep.subr.bf16.mxu0 %v16983_v36  ;;  %v3192_v36 = vcombine.high %v3170_v27, %v3170_v27 }
 0x3fe   :  { %15761 = vmatpush3.bf16.msra.mxu1 %v16982_v35  ;;  %v3194_v35 = vcombine.high %v3184_v31, %v3184_v31 }
 0x3ff   :  { %15762 = vmatprep.subr.bf16.mxu1 %v16984_v37  ;;  %v17024_v37 = vld [vmem:[%s20970_s1 + $0x2170] sm:$0xff]  }
 0x400   :  { %15741 = vmatpush3.bf16.msra.mxu0 %v16985_v38  ;;  %v3191_v38 = vrot.slane %v3163_v33, %v17271_v41 }
 0x401   :  { %15770 = vmatprep.subr.bf16.mxu0 %v16988_v42  ;;  %v17026_v42 = vld [vmem:[%s20970_s1 + $0x2130] sm:$0xff]  }
 0x402   :  { %15763 = vmatpush3.bf16.msra.mxu1 %v16986_v39  ;;  %v17025_v39 = vld [vmem:[%s20970_s1 + $0x21f0] sm:$0xff]  }
 0x403   :  { %v15478_v49 = vpop.f32.mrf.mxu0  ;;  %12814 = vmatmul.mubr.bf16.vlgmr.msra.gmra.mxu0 %v3128_v40  ;;  %15792 = vmatprep.subr.bf16.mxu1 %v16989_v43  ;;  %v3195_v43 = vcombine.high %v3191_v38, %v3191_v38 }
 0x404   :  { %15771 = vmatpush3.bf16.msra.mxu0 %v16990_v44  ;;  %12893 = vmatprep.mubr.bf16.mxu0 %v3184_v31  ;;  %v17027_v44 = vld [vmem:[%s20970_s1 + $0x21b0] sm:$0xff]   ;;  %v17062_v31 = vld [vmem:[%s20970_s1 + $0x22e8] sm:$0xff]  }
 0x405   :  { %v15500_v52 = vpop.f32.mrf.mxu1  ;;  %12854 = vmatmul.mubr.bf16.vlgmr.msra.gmra.mxu1 %v3144_v46  ;;  %v15479_v53 = vpop.f32.mrf.mxu0  ;;  %15772 = vmatprep.subr.bf16.mxu0 %v16992_v47  ;;  %v17028_v47 = vld [vmem:[%s20970_s1 + $0x2168] sm:$0xff]  }
 0x406   :  { %15793 = vmatpush3.bf16.msra.mxu1 %v16991_v45  ;;  %v15480_v55 = vadd.f32 %v15479_v53, %v15478_v49  ;;  %12933 = vmatprep.mubr.bf16.mxu1 %v3194_v35  ;;  %v17029_v49 = vld [vmem:[%s20970_s1 + $0x21e8] sm:$0xff]  }
 0x407   :  { %v15501_v57 = vpop.f32.mrf.mxu1  ;;  %v15481_v58 = vpop.f32.mrf.mxu0  ;;  %15794 = vmatprep.subr.bf16.mxu1 %v16993_v48 }
 0x408   :  { %v12336_v60 = vadd.f32 %v15480_v55, %v20480_v19  ;;  %v15502_v61 = vadd.f32 %v15501_v57, %v15500_v52  ;;  %15773 = vmatpush3.bf16.msra.mxu0 %v16994_v50  ;;  %v17016_v19 = vld [vmem:[%s20970_s1 + $0x2040] sm:$0xff]   ;;  %v17030_v52 = vld [vmem:[%s20970_s1 + $0x2128] sm:$0xff]  }
 0x409   :  { %v15503_v63 = vpop.f32.mrf.mxu1  ;;  %v15482_v0 = vpop.f32.mrf.mxu0  ;;  %15774 = vmatprep.subr.bf16.mxu0 %v16996_v54  ;;  %v17031_v55 = vld [vmem:[%s20970_s1 + $0x21a8] sm:$0xff]   ;;  %v17032_v58 = vld [vmem:[%s20970_s1 + $0x2160] sm:$0xff]  }
 0x40a   :  { %v20581_v2 = vadd.f32 %v15502_v61, %v12336_v60  ;;  %15795 = vmatpush3.bf16.msra.mxu1 %v16995_v51  ;;  %v17033_v60 = vld [vmem:[%s20970_s1 + $0x21e0] sm:$0xff]   ;;  %v17036_v0 = vld [vmem:[%s20970_s1 + $0x2158] sm:$0xff]  }
 0x40b   :  { %v15504_v4 = vpop.f32.mrf.mxu1  ;;  %15796 = vmatprep.subr.bf16.mxu1 %v16997_v56  ;;  %v17035_v63 = vld [vmem:[%s20970_s1 + $0x21a0] sm:$0xff]  }
 0x40c   :  { %15775 = vmatpush3.bf16.msra.mxu0 %v16998_v59  ;;  %v17040_v4 = vld [vmem:[%s20970_s1 + $0x2150] sm:$0xff]  }
 0x40d   :  { %15776 = vmatprep.subr.bf16.mxu0 %v17000_v1  ;;  %v17037_v1 = vld [vmem:[%s20970_s1 + $0x21d8] sm:$0xff]  }
 0x40e   :  { %15797 = vmatpush3.bf16.msra.mxu1 %v16999_v62  ;;  %v17034_v62 = vld [vmem:[%s20970_s1 + $0x2120] sm:$0xff]  }
 0x40f   :  { %15798 = vmatprep.subr.bf16.mxu1 %v17001_v3  ;;  %v17039_v3 = vld [vmem:[%s20970_s1 + $0x2198] sm:$0xff]  }
 0x410   :  { %15777 = vmatpush3.bf16.msra.mxu0 %v17002_v5  ;;  %v17041_v5 = vld [vmem:[%s20970_s1 + $0x21d0] sm:$0xff]  }
 0x411   :  { %15778 = vmatprep.subr.bf16.mxu0 %v17004_v7  ;;  %v17043_v7 = vld [vmem:[%s20970_s1 + $0x2190] sm:$0xff]  }
 0x412   :  { %15799 = vmatpush3.bf16.msra.mxu1 %v17003_v6  ;;  %v17042_v6 = vld [vmem:[%s20970_s1 + $0x2110] sm:$0xff]  }
 0x413   :  { %15800 = vmatprep.subr.bf16.mxu1 %v17005_v8  ;;  %v17044_v8 = vld [vmem:[%s20970_s1 + $0x2148] sm:$0xff]  }
 0x414   :  { %15779 = vmatpush3.bf16.msra.mxu0 %v17006_v9  ;;  %v17045_v9 = vld [vmem:[%s20970_s1 + $0x21c8] sm:$0xff]  }
 0x415   :  { %15780 = vmatprep.subr.bf16.mxu0 %v17008_v11  ;;  %v17047_v11 = vld [vmem:[%s20970_s1 + $0x2188] sm:$0xff]  }
 0x416   :  { %15801 = vmatpush3.bf16.msra.mxu1 %v17007_v10  ;;  %v17046_v10 = vld [vmem:[%s20970_s1 + $0x2108] sm:$0xff]  }
 0x417   :  { %15802 = vmatprep.subr.bf16.mxu1 %v17009_v12  ;;  %v17048_v12 = vld [vmem:[%s20970_s1 + $0x2140] sm:$0xff]  }
 0x418   :  { %15781 = vmatpush3.bf16.msra.mxu0 %v17010_v13  ;;  %v17049_v13 = vld [vmem:[%s20970_s1 + $0x21c0] sm:$0xff]  }
 0x419   :  { %15782 = vmatprep.subr.bf16.mxu0 %v17012_v15  ;;  %v17051_v15 = vld [vmem:[%s20970_s1 + $0x2180] sm:$0xff]  }
 0x41a   :  { %15803 = vmatpush3.bf16.msra.mxu1 %v17011_v14  ;;  %v17050_v14 = vld [vmem:[%s20970_s1 + $0x2100] sm:$0xff]  }
 0x41b   :  { %15804 = vmatprep.subr.bf16.mxu1 %v17013_v16  ;;  %v3177_v16 = vrot.slane %v20649_v29, %v17271_v41  ;;  %v17061_v29 = vld [vmem:[%s20970_s1 + $0x2268] sm:$0xff]  }
 0x41c   :  { %15783 = vmatpush3.bf16.msra.mxu0 %v17014_v17  ;;  %v17053_v17 = vld [vmem:[%s20970_s1 + $0x2278] sm:$0xff]  }
 0x41d   :  { %15784 = vmatprep.subr.bf16.mxu0 %v17016_v19  ;;  %v17055_v19 = vld [vmem:[%s20970_s1 + $0x2238] sm:$0xff]   ;;  %v3193_v21 = vcombine.high %v3177_v16, %v3177_v16 }
 0x41e   :  { %15805 = vmatpush3.bf16.msra.mxu1 %v17015_v18  ;;  %v17054_v18 = vld [vmem:[%s20970_s1 + $0x22f8] sm:$0xff]  }
 0x41f   :  { %15806 = vmatprep.subr.bf16.mxu1 %v17017_v20  ;;  %v17056_v20 = vld [vmem:[%s20970_s1 + $0x22b8] sm:$0xff]  }
 0x420   :  { %15785 = vmatpush3.bf16.msra.mxu0 %v17018_v22  ;;  %v17057_v22 = vld [vmem:[%s20970_s1 + $0x2270] sm:$0xff]  }
 0x421   :  { %15814 = vmatprep.subr.bf16.mxu0 %v17020_v28 }
 0x422   :  { %15807 = vmatpush3.bf16.msra.mxu1 %v17019_v25  ;;  %v17059_v25 = vld [vmem:[%s20970_s1 + $0x2230] sm:$0xff]  }
 0x423   :  { %v15522_v40 = vpop.f32.mrf.mxu0  ;;  %12894 = vmatmul.mubr.bf16.vlgmr.msra.gmra.mxu0 %v3170_v27  ;;  %15836 = vmatprep.subr.bf16.mxu1 %v17021_v30 }
 0x424   :  { %15815 = vmatpush3.bf16.msra.mxu0 %v17022_v32  ;;  %12973 = vmatprep.mubr.bf16.mxu0 %v3191_v38 }
 0x425   :  { %v15544_v45 = vpop.f32.mrf.mxu1  ;;  %12934 = vmatmul.mubr.bf16.vlgmr.msra.gmra.mxu1 %v3192_v36  ;;  %v15523_v46 = vpop.f32.mrf.mxu0  ;;  %15816 = vmatprep.subr.bf16.mxu0 %v17024_v37  ;;  %v17064_v37 = vld [vmem:[%s20970_s1 + $0x22a8] sm:$0xff]  }
 0x426   :  { %15837 = vmatpush3.bf16.msra.mxu1 %v17023_v34  ;;  %v15524_v48 = vadd.f32 %v15523_v46, %v15522_v40  ;;  %13013 = vmatprep.mubr.bf16.mxu1 %v3195_v43  ;;  %v17063_v34 = vld [vmem:[%s20970_s1 + $0x2228] sm:$0xff]   ;;  %v17065_v40 = vld [vmem:[%s20970_s1 + $0x2260] sm:$0xff]  }
 0x427   :  { %v15545_v50 = vpop.f32.mrf.mxu1  ;;  %v15525_v51 = vpop.f32.mrf.mxu0  ;;  %15838 = vmatprep.subr.bf16.mxu1 %v17025_v39  ;;  %v17066_v43 = vld [vmem:[%s20970_s1 + $0x22e0] sm:$0xff]  }
 0x428   :  { %v12416_v53 = vadd.f32 %v15524_v48, %v20581_v2  ;;  %v15546_v54 = vadd.f32 %v15545_v50, %v15544_v45  ;;  %15817 = vmatpush3.bf16.msra.mxu0 %v17026_v42  ;;  %v17038_v2 = vld [vmem:[%s20970_s1 + $0x2118] sm:$0xff]   ;;  %v17067_v45 = vld [vmem:[%s20970_s1 + $0x2220] sm:$0xff]   ;;  %v17073_v51 = vld [vmem:[%s20970_s1 + $0x2250] sm:$0xff]  }
 0x429   :  { %v15547_v56 = vpop.f32.mrf.mxu1  ;;  %v15526_v57 = vpop.f32.mrf.mxu0  ;;  %15818 = vmatprep.subr.bf16.mxu0 %v17028_v47  ;;  %v17068_v46 = vld [vmem:[%s20970_s1 + $0x22a0] sm:$0xff]   ;;  %v17069_v47 = vld [vmem:[%s20970_s1 + $0x2258] sm:$0xff]  }
 0x42a   :  { %v20692_v59 = vadd.f32 %v15546_v54, %v12416_v53  ;;  %15839 = vmatpush3.bf16.msra.mxu1 %v17027_v44  ;;  %v17070_v48 = vld [vmem:[%s20970_s1 + $0x22d8] sm:$0xff]   ;;  %v17075_v53 = vld [vmem:[%s20970_s1 + $0x2210] sm:$0xff]   ;;  %v17078_v56 = vld [vmem:[%s20970_s1 + $0x22c8] sm:$0xff]  }
 0x42b   :  { %v15548_v61 = vpop.f32.mrf.mxu1  ;;  %15840 = vmatprep.subr.bf16.mxu1 %v17029_v49  ;;  %v17071_v49 = vld [vmem:[%s20970_s1 + $0x2218] sm:$0xff]   ;;  %v17076_v54 = vld [vmem:[%s20970_s1 + $0x2290] sm:$0xff]   ;;  %v17079_v57 = vld [vmem:[%s20970_s1 + $0x2208] sm:$0xff]  }
 0x42c   :  { %15819 = vmatpush3.bf16.msra.mxu0 %v17030_v52  ;;  %v17072_v50 = vld [vmem:[%s20970_s1 + $0x2298] sm:$0xff]   ;;  %v17074_v52 = vld [vmem:[%s20970_s1 + $0x22d0] sm:$0xff]   ;;  %v33_v61 = vld [vmem:[%s20969_s0 + $0x88] sm:$0xff] }
 0x42d   :  { %15820 = vmatprep.subr.bf16.mxu0 %v17032_v58  ;;  %v17080_v58 = vld [vmem:[%s20970_s1 + $0x2288] sm:$0xff]  }
 0x42e   :  { %15841 = vmatpush3.bf16.msra.mxu1 %v17031_v55  ;;  %v17077_v55 = vld [vmem:[%s20970_s1 + $0x2248] sm:$0xff]  }
 0x42f   :  { %15842 = vmatprep.subr.bf16.mxu1 %v17033_v60  ;;  %v17082_v60 = vld [vmem:[%s20970_s1 + $0x22c0] sm:$0xff]  }
 0x430   :  { %15821 = vmatpush3.bf16.msra.mxu0 %v17034_v62  ;;  %v17083_v62 = vld [vmem:[%s20970_s1 + $0x2200] sm:$0xff]  }
 0x431   :  { %15822 = vmatprep.subr.bf16.mxu0 %v17036_v0  ;;  %v3196_v0 = vcombine.high %v33_v61, %v33_v61 }
 0x432   :  { %15843 = vmatpush3.bf16.msra.mxu1 %v17035_v63  ;;  %v3203_v63 = vrot.slane %v33_v61, %v17271_v41 }
 0x433   :  { %15844 = vmatprep.subr.bf16.mxu1 %v17037_v1  ;;  %v17085_v1 = vld [vmem:[%s20970_s1 + $0x2378] sm:$0xff]  }
 0x434   :  { %15823 = vmatpush3.bf16.msra.mxu0 %v17038_v2  ;;  %v17084_v2 = vld [vmem:[%s20970_s1 + $0x2280] sm:$0xff]  }
 0x435   :  { %15824 = vmatprep.subr.bf16.mxu0 %v17040_v4  ;;  %v3219_v4 = vrot.slane %v3203_v63, %v17271_v41 }
 0x436   :  { %15845 = vmatpush3.bf16.msra.mxu1 %v17039_v3  ;;  %v3211_v3 = vcombine.high %v3203_v63, %v3203_v63 }
 0x437   :  { %15846 = vmatprep.subr.bf16.mxu1 %v17041_v5  ;;  %v20861_v5 = vrot.slane %v3196_v0, %v17271_v41 }
 0x438   :  { %15825 = vmatpush3.bf16.msra.mxu0 %v17042_v6  ;;  %v17086_v6 = vld [vmem:[%s20970_s1 + $0x23f8] sm:$0xff]  }
 0x439   :  { %15826 = vmatprep.subr.bf16.mxu0 %v17044_v8  ;;  %v17087_v8 = vld [vmem:[%s20970_s1 + $0x2338] sm:$0xff]  }
 0x43a   :  { %15847 = vmatpush3.bf16.msra.mxu1 %v17043_v7  ;;  %v3233_v7 = vrot.slane %v3211_v3, %v17271_v41 }
 0x43b   :  { %15848 = vmatprep.subr.bf16.mxu1 %v17045_v9  ;;  %v3212_v9 = vcombine.high %v20861_v5, %v20861_v5 }
 0x43c   :  { %15827 = vmatpush3.bf16.msra.mxu0 %v17046_v10  ;;  %v3241_v10 = vcombine.high %v3219_v4, %v3219_v4 }
 0x43d   :  { %15828 = vmatprep.subr.bf16.mxu0 %v17048_v12  ;;  %v3243_v12 = vcombine.high %v3233_v7, %v3233_v7 }
 0x43e   :  { %15849 = vmatpush3.bf16.msra.mxu1 %v17047_v11  ;;  %v17089_v11 = vld [vmem:[%s20970_s1 + $0x2370] sm:$0xff]  }
 0x43f   :  { %15850 = vmatprep.subr.bf16.mxu1 %v17049_v13  ;;  %v17088_v13 = vld [vmem:[%s20970_s1 + $0x23b8] sm:$0xff]  }
 0x440   :  { %15829 = vmatpush3.bf16.msra.mxu0 %v17050_v14  ;;  %v3240_v14 = vrot.slane %v3212_v9, %v17271_v41 }
 0x441   :  { %15858 = vmatprep.subr.bf16.mxu0 %v17053_v17  ;;  %v17091_v17 = vld [vmem:[%s20970_s1 + $0x2330] sm:$0xff]  }
 0x442   :  { %15851 = vmatpush3.bf16.msra.mxu1 %v17051_v15 }
 0x443   :  { %v15566_v24 = vpop.f32.mrf.mxu0  ;;  %12974 = vmatmul.mubr.bf16.vlgmr.msra.gmra.mxu0 %v3177_v16  ;;  %15880 = vmatprep.subr.bf16.mxu1 %v17054_v18  ;;  %v17090_v16 = vld [vmem:[%s20970_s1 + $0x23f0] sm:$0xff]   ;;  %v3244_v18 = vcombine.high %v3240_v14, %v3240_v14 }
 0x444   :  { %15859 = vmatpush3.bf16.msra.mxu0 %v17055_v19  ;;  %13053 = vmatprep.mubr.bf16.mxu0 %v3233_v7 }
 0x445   :  { %v15588_v27 = vpop.f32.mrf.mxu1  ;;  %13014 = vmatmul.mubr.bf16.vlgmr.msra.gmra.mxu1 %v3193_v21  ;;  %v15567_v28 = vpop.f32.mrf.mxu0  ;;  %15860 = vmatprep.subr.bf16.mxu0 %v17057_v22  ;;  %v17093_v21 = vld [vmem:[%s20970_s1 + $0x2368] sm:$0xff]  }
 0x446   :  { %15881 = vmatpush3.bf16.msra.mxu1 %v17056_v20  ;;  %v15568_v30 = vadd.f32 %v15567_v28, %v15566_v24  ;;  %13093 = vmatprep.mubr.bf16.mxu1 %v3243_v12 }
 0x447   :  { %v15589_v32 = vpop.f32.mrf.mxu1  ;;  %v15569_v33 = vpop.f32.mrf.mxu0  ;;  %15882 = vmatprep.subr.bf16.mxu1 %v17058_v23  ;;  %v17092_v23 = vld [vmem:[%s20970_s1 + $0x23b0] sm:$0xff]  }
 0x448   :  { %v12496_v35 = vadd.f32 %v15568_v30, %v20692_v59  ;;  %v15590_v36 = vadd.f32 %v15589_v32, %v15588_v27  ;;  %15861 = vmatpush3.bf16.msra.mxu0 %v17059_v25  ;;  %v17081_v59 = vld [vmem:[%s20970_s1 + $0x2240] sm:$0xff]  }
 0x449   :  { %v15591_v38 = vpop.f32.mrf.mxu1  ;;  %v15570_v39 = vpop.f32.mrf.mxu0  ;;  %15862 = vmatprep.subr.bf16.mxu0 %v17061_v29  ;;  %v17095_v29 = vld [vmem:[%s20970_s1 + $0x2328] sm:$0xff]   ;;  %v17097_v32 = vld [vmem:[%s20970_s1 + $0x2360] sm:$0xff]  }
 0x44a   :  { %v20793_v42 = vadd.f32 %v15590_v36, %v12496_v35  ;;  %15883 = vmatpush3.bf16.msra.mxu1 %v17060_v26  ;;  %v17094_v26 = vld [vmem:[%s20970_s1 + $0x23e8] sm:$0xff]   ;;  %v17098_v36 = vld [vmem:[%s20970_s1 + $0x23e0] sm:$0xff]   ;;  %v17101_v38 = vld [vmem:[%s20970_s1 + $0x2358] sm:$0xff]  }
 0x44b   :  { %v15592_v44 = vpop.f32.mrf.mxu1  ;;  %15884 = vmatprep.subr.bf16.mxu1 %v17062_v31  ;;  %v17100_v39 = vld [vmem:[%s20970_s1 + $0x23a0] sm:$0xff]  }
 0x44c   :  { %15863 = vmatpush3.bf16.msra.mxu0 %v17063_v34  ;;  %v17096_v34 = vld [vmem:[%s20970_s1 + $0x23a8] sm:$0xff]   ;;  %v17104_v44 = vld [vmem:[%s20970_s1 + $0x2398] sm:$0xff]  }
 0x44d   :  { %15864 = vmatprep.subr.bf16.mxu0 %v17065_v40  ;;  %v17102_v40 = vld [vmem:[%s20970_s1 + $0x23d8] sm:$0xff]  }
 0x44e   :  { %15885 = vmatpush3.bf16.msra.mxu1 %v17064_v37  ;;  %v17099_v37 = vld [vmem:[%s20970_s1 + $0x2320] sm:$0xff]  }
 0x44f   :  { %15886 = vmatprep.subr.bf16.mxu1 %v17066_v43  ;;  %v17105_v43 = vld [vmem:[%s20970_s1 + $0x2350] sm:$0xff]  }
 0x450   :  { %15865 = vmatpush3.bf16.msra.mxu0 %v17067_v45  ;;  %v17106_v45 = vld [vmem:[%s20970_s1 + $0x23d0] sm:$0xff]  }
 0x451   :  { %15866 = vmatprep.subr.bf16.mxu0 %v17069_v47  ;;  %v17109_v47 = vld [vmem:[%s20970_s1 + $0x2348] sm:$0xff]  }
 0x452   :  { %15887 = vmatpush3.bf16.msra.mxu1 %v17068_v46  ;;  %v17107_v46 = vld [vmem:[%s20970_s1 + $0x2310] sm:$0xff]  }
 0x453   :  { %15888 = vmatprep.subr.bf16.mxu1 %v17070_v48  ;;  %v17108_v48 = vld [vmem:[%s20970_s1 + $0x2390] sm:$0xff]  }
 0x454   :  { %15867 = vmatpush3.bf16.msra.mxu0 %v17071_v49  ;;  %v17110_v49 = vld [vmem:[%s20970_s1 + $0x23c8] sm:$0xff]  }
 0x455   :  { %15868 = vmatprep.subr.bf16.mxu0 %v17073_v51  ;;  %v17113_v51 = vld [vmem:[%s20970_s1 + $0x2340] sm:$0xff]  }
 0x456   :  { %15889 = vmatpush3.bf16.msra.mxu1 %v17072_v50  ;;  %v17111_v50 = vld [vmem:[%s20970_s1 + $0x2308] sm:$0xff]  }
 0x457   :  { %15890 = vmatprep.subr.bf16.mxu1 %v17074_v52  ;;  %v17112_v52 = vld [vmem:[%s20970_s1 + $0x2388] sm:$0xff]  }
 0x458   :  { %15869 = vmatpush3.bf16.msra.mxu0 %v17075_v53  ;;  %v17114_v53 = vld [vmem:[%s20970_s1 + $0x23c0] sm:$0xff]  }
 0x459   :  { %15870 = vmatprep.subr.bf16.mxu0 %v17077_v55 }
 0x45a   :  { %15891 = vmatpush3.bf16.msra.mxu1 %v17076_v54 }
 0x45b   :  { %15892 = vmatprep.subr.bf16.mxu1 %v17078_v56 }
 0x45c   :  { %15871 = vmatpush3.bf16.msra.mxu0 %v17079_v57 }
 0x45d   :  { %15872 = vmatprep.subr.bf16.mxu0 %v17081_v59 }
 0x45e   :  { %15893 = vmatpush3.bf16.msra.mxu1 %v17080_v58 }
 0x45f   :  { %15894 = vmatprep.subr.bf16.mxu1 %v17082_v60 }
 0x460   :  { %15873 = vmatpush3.bf16.msra.mxu0 %v17083_v62 }
 0x461   :  { %15902 = vmatprep.subr.bf16.mxu0 %v17085_v1 }
 0x462   :  { %15895 = vmatpush3.bf16.msra.mxu1 %v17084_v2 }
 0x463   :  { %v15610_v15 = vpop.f32.mrf.mxu0  ;;  %13054 = vmatmul.mubr.bf16.vlgmr.msra.gmra.mxu0 %v3219_v4  ;;  %15924 = vmatprep.subr.bf16.mxu1 %v17086_v6 }
 0x464   :  { %15903 = vmatpush3.bf16.msra.mxu0 %v17087_v8  ;;  %13133 = vmatprep.mubr.bf16.mxu0 %v3240_v14 }
 0x465   :  { %v15632_v19 = vpop.f32.mrf.mxu1  ;;  %13094 = vmatmul.mubr.bf16.vlgmr.msra.gmra.mxu1 %v3241_v10  ;;  %v15611_v20 = vpop.f32.mrf.mxu0  ;;  %15904 = vmatprep.subr.bf16.mxu0 %v17089_v11 }
 0x466   :  { %15925 = vmatpush3.bf16.msra.mxu1 %v17088_v13  ;;  %v15612_v22 = vadd.f32 %v15611_v20, %v15610_v15  ;;  %13173 = vmatprep.mubr.bf16.mxu1 %v3244_v18 }
 0x467   :  { %v15633_v24 = vpop.f32.mrf.mxu1  ;;  %v15613_v25 = vpop.f32.mrf.mxu0  ;;  %15926 = vmatprep.subr.bf16.mxu1 %v17090_v16 }
 0x468   :  { %v12576_v27 = vadd.f32 %v15612_v22, %v20793_v42  ;;  %v15634_v28 = vadd.f32 %v15633_v24, %v15632_v19  ;;  %15905 = vmatpush3.bf16.msra.mxu0 %v17091_v17  ;;  %v17103_v42 = vld [vmem:[%s20970_s1 + $0x2318] sm:$0xff]  }
 0x469   :  { %v15635_v30 = vpop.f32.mrf.mxu1  ;;  %v15614_v31 = vpop.f32.mrf.mxu0  ;;  %15906 = vmatprep.subr.bf16.mxu0 %v17093_v21 }
 0x46a   :  { %v12616_v33 = vadd.f32 %v15634_v28, %v12576_v27  ;;  %15927 = vmatpush3.bf16.msra.mxu1 %v17092_v23 }
 0x46b   :  { %v15636_v35 = vpop.f32.mrf.mxu1  ;;  %15928 = vmatprep.subr.bf16.mxu1 %v17094_v26 }
 0x46c   :  { %15907 = vmatpush3.bf16.msra.mxu0 %v17095_v29 }
 0x46d   :  { %15908 = vmatprep.subr.bf16.mxu0 %v17097_v32 }
 0x46e   :  { %15929 = vmatpush3.bf16.msra.mxu1 %v17096_v34 }
 0x46f   :  { %15930 = vmatprep.subr.bf16.mxu1 %v17098_v36 }
 0x470   :  { %15909 = vmatpush3.bf16.msra.mxu0 %v17099_v37 }
 0x471   :  { %15910 = vmatprep.subr.bf16.mxu0 %v17101_v38 }
 0x472   :  { %15931 = vmatpush3.bf16.msra.mxu1 %v17100_v39 }
 0x473   :  { %15932 = vmatprep.subr.bf16.mxu1 %v17102_v40 }
 0x474   :  { %15911 = vmatpush3.bf16.msra.mxu0 %v17103_v42 }
 0x475   :  { %15912 = vmatprep.subr.bf16.mxu0 %v17105_v43 }
 0x476   :  { %15933 = vmatpush3.bf16.msra.mxu1 %v17104_v44 }
 0x477   :  { %15934 = vmatprep.subr.bf16.mxu1 %v17106_v45 }
 0x478   :  { %15913 = vmatpush3.bf16.msra.mxu0 %v17107_v46 }
 0x479   :  { %15914 = vmatprep.subr.bf16.mxu0 %v17109_v47 }
 0x47a   :  { %15935 = vmatpush3.bf16.msra.mxu1 %v17108_v48 }
 0x47b   :  { %15936 = vmatprep.subr.bf16.mxu1 %v17110_v49 }
 0x47c   :  { %8 = vsyncpa [#allocation3], 0  ;;  %15915 = vmatpush3.bf16.msra.mxu0 %v17111_v50  ;;  %v17115_v54 = vld [vmem:[%s20970_s1 + $0x2300] sm:$0xff]   ;;  %v3226_v55 = vrot.slane %v20861_v5, %v17271_v41  ;;  %vm13181_vm0 = vcmask 74752  }
 0x47d   :  { %15916 = vmatprep.subr.bf16.mxu0 %v17113_v51  ;;  %v17116_v56 = vld [vmem:[%s20970_s1 + $0x2380] sm:$0xff]   ;;  %s17145_s1 = smov [#allocation2]  }
 0x47e   :  { %15937 = vmatpush3.bf16.msra.mxu1 %v17112_v52  ;;  %v3242_v57 = vcombine.high %v3226_v55, %v3226_v55  ;;  %s13201_s16 = sshll.u32 %s17145_s1, 4  ;;  %s13202_s16 = int_to_ptr.vmem [resolvable:$true] %s13201_s16 }
 0x47f   :  { %15938 = vmatprep.subr.bf16.mxu1 %v17114_v53  ;;  %s17122_s17 = scalar_lea.vmem %s13202_s16, 32  ;;  %p17127_p1 = scmp.lt.s32.totalorder %s13202_s16, %s13202_s16 }
 0x480   :  { %15917 = vmatpush3.bf16.msra.mxu0 %v17115_v54  ;;  %p17123_p0 = scmp.ne.s32.totalorder %s13202_s16, %s17122_s17  ;;  %p17128_p2 = scmp.lt.s32.totalorder %s17122_s17, %s17122_s17 }
 0x482   :  { %15939 = vmatpush3.bf16.msra.mxu1 %v17116_v56  ;;  %p17129_p3 = por %p17128_p2, %p17127_p1 }
 0x483   :  { %v15654_v58 = vpop.f32.mrf.mxu0  ;;  %13134 = vmatmul.mubr.bf16.vlgmr.msra.gmra.mxu0 %v3226_v55 }
 0x484   :  { %p17130_p4 = pnand %p17129_p3, %p17123_p0 }
 0x485   :  { %v15676_v59 = vpop.f32.mrf.mxu1  ;;  %13174 = vmatmul.mubr.bf16.vlgmr.msra.gmra.mxu1 %v3242_v57  ;;  %v15655_v60 = vpop.f32.mrf.mxu0 }
 0x486   :  { %v15656_v61 = vadd.f32 %v15655_v60, %v15654_v58 }
 0x487   :  { %v15677_v62 = vpop.f32.mrf.mxu1  ;;  %v15657_v63 = vpop.f32.mrf.mxu0 }
 0x488   :  { %v12656_v0 = vadd.f32 %v15656_v61, %v12616_v33  ;;  %v15678_v1 = vadd.f32 %v15677_v62, %v15676_v59 }
 0x489   :  { %v15679_v41 = vpop.f32.mrf.mxu1  ;;  %v15658_v2 = vpop.f32.mrf.mxu0 }
 0x48a   :  { %v12696_v3 = vadd.f32 %v15678_v1, %v12656_v0 }
 0x48b   :  { %v15680_v4 = vpop.f32.mrf.mxu1 }
 0x4a3   :  { %v15698_v5 = vpop.f32.mrf.mxu0 }
 0x4a5   :  { %v15720_v6 = vpop.f32.mrf.mxu1  ;;  %v15699_v7 = vpop.f32.mrf.mxu0 }
 0x4a6   :  { %v15700_v8 = vadd.f32 %v15699_v7, %v15698_v5 }
 0x4a7   :  { %v15721_v9 = vpop.f32.mrf.mxu1  ;;  %v15701_v10 = vpop.f32.mrf.mxu0 }
 0x4a8   :  { %v12736_v11 = vadd.f32 %v15700_v8, %v12696_v3  ;;  %v15722_v12 = vadd.f32 %v15721_v9, %v15720_v6 }
 0x4a9   :  { %v15723_v13 = vpop.f32.mrf.mxu1  ;;  %v15702_v14 = vpop.f32.mrf.mxu0 }
 0x4aa   :  { %v12776_v15 = vadd.f32 %v15722_v12, %v12736_v11 }
 0x4ab   :  { %v15724_v16 = vpop.f32.mrf.mxu1 }
 0x4c3   :  { %v15742_v17 = vpop.f32.mrf.mxu0 }
 0x4c5   :  { %v15764_v18 = vpop.f32.mrf.mxu1  ;;  %v15743_v19 = vpop.f32.mrf.mxu0 }
 0x4c6   :  { %v15744_v20 = vadd.f32 %v15743_v19, %v15742_v17 }
 0x4c7   :  { %v15765_v21 = vpop.f32.mrf.mxu1  ;;  %v15745_v22 = vpop.f32.mrf.mxu0 }
 0x4c8   :  { %v12816_v23 = vadd.f32 %v15744_v20, %v12776_v15  ;;  %v15766_v24 = vadd.f32 %v15765_v21, %v15764_v18 }
 0x4c9   :  { %v15767_v25 = vpop.f32.mrf.mxu1  ;;  %v15746_v26 = vpop.f32.mrf.mxu0 }
 0x4ca   :  { %v12856_v27 = vadd.f32 %v15766_v24, %v12816_v23 }
 0x4cb   :  { %v15768_v28 = vpop.f32.mrf.mxu1 }
 0x4e3   :  { %v15786_v29 = vpop.f32.mrf.mxu0 }
 0x4e5   :  { %v15808_v30 = vpop.f32.mrf.mxu1  ;;  %v15787_v31 = vpop.f32.mrf.mxu0 }
 0x4e6   :  { %v15788_v32 = vadd.f32 %v15787_v31, %v15786_v29 }
 0x4e7   :  { %v15809_v33 = vpop.f32.mrf.mxu1  ;;  %v15789_v34 = vpop.f32.mrf.mxu0 }
 0x4e8   :  { %v12896_v35 = vadd.f32 %v15788_v32, %v12856_v27  ;;  %v15810_v36 = vadd.f32 %v15809_v33, %v15808_v30 }
 0x4e9   :  { %v15811_v37 = vpop.f32.mrf.mxu1  ;;  %v15790_v38 = vpop.f32.mrf.mxu0 }
 0x4ea   :  { %v12936_v39 = vadd.f32 %v15810_v36, %v12896_v35 }
 0x4eb   :  { %v15812_v40 = vpop.f32.mrf.mxu1 }
 0x503   :  { %v15830_v42 = vpop.f32.mrf.mxu0 }
 0x505   :  { %v15852_v43 = vpop.f32.mrf.mxu1  ;;  %v15831_v44 = vpop.f32.mrf.mxu0 }
 0x506   :  { %v15832_v58 = vadd.f32 %v15831_v44, %v15830_v42 }
 0x507   :  { %v15853_v45 = vpop.f32.mrf.mxu1  ;;  %v15833_v46 = vpop.f32.mrf.mxu0 }
 0x508   :  { %v12976_v59 = vadd.f32 %v15832_v58, %v12936_v39  ;;  %v15854_v60 = vadd.f32 %v15853_v45, %v15852_v43 }
 0x509   :  { %v15855_v47 = vpop.f32.mrf.mxu1  ;;  %v15834_v48 = vpop.f32.mrf.mxu0 }
 0x50a   :  { %v13016_v62 = vadd.f32 %v15854_v60, %v12976_v59 }
 0x50b   :  { %v15856_v49 = vpop.f32.mrf.mxu1 }
 0x523   :  { %v15874_v50 = vpop.f32.mrf.mxu0 }
 0x525   :  { %v15896_v51 = vpop.f32.mrf.mxu1  ;;  %v15875_v52 = vpop.f32.mrf.mxu0 }
 0x526   :  { %v15876_v61 = vadd.f32 %v15875_v52, %v15874_v50 }
 0x527   :  { %v15897_v53 = vpop.f32.mrf.mxu1  ;;  %v15877_v54 = vpop.f32.mrf.mxu0 }
 0x528   :  { %v13056_v63 = vadd.f32 %v15876_v61, %v13016_v62  ;;  %v15898_v0 = vadd.f32 %v15897_v53, %v15896_v51 }
 0x529   :  { %v15899_v55 = vpop.f32.mrf.mxu1  ;;  %v15878_v56 = vpop.f32.mrf.mxu0 }
 0x52a   :  { %v13096_v3 = vadd.f32 %v15898_v0, %v13056_v63 }
 0x52b   :  { %v15900_v57 = vpop.f32.mrf.mxu1 }
 0x543   :  { %v15918_v1 = vpop.f32.mrf.mxu0 }
 0x545   :  { %v15940_v41 = vpop.f32.mrf.mxu1  ;;  %v15919_v2 = vpop.f32.mrf.mxu0 }
 0x546   :  { %v15920_v4 = vadd.f32 %v15919_v2, %v15918_v1 }
 0x547   :  { %v15941_v5 = vpop.f32.mrf.mxu1  ;;  %v15921_v6 = vpop.f32.mrf.mxu0 }
 0x548   :  { %v13136_v7 = vadd.f32 %v15920_v4, %v13096_v3  ;;  %v15942_v8 = vadd.f32 %v15941_v5, %v15940_v41 }
 0x549   :  { %v15943_v9 = vpop.f32.mrf.mxu1  ;;  %v15922_v10 = vpop.f32.mrf.mxu0 }
 0x54a   :  { %v13176_v11 = vadd.f32 %v15942_v8, %v13136_v7 }
 0x54b   :  { %v15944_v12 = vpop.f32.mrf.mxu1 }
 0x54c   :  { %v13182_v13 = vsel %vm13181_vm0, %v13176_v11, -inf }
 0x54d   :  { %13183 = vmax.xlane.f32.xlu0 %v13182_v13 }
 0x5d6   :  { %v13184_v14 = vpop.xlane.xlu0 %13183 }
 0x5d7   :  { %v13185_v15 = vsub.f32 %v13176_v11, %v13184_v14 }
 0x5d9   :  { %v13186_v16 = vmul.f32 1.442695, %v13185_v15 }
 0x5db   :  { %17118 = vpow2.f32 %v13186_v16 }
 0x5e8   :  { %v17119_v17 = vpop.eup %17118 }
 0x5e9   :  { %v13188_v18 = vsel %vm13181_vm0, %v17119_v17, 0.0 }
 0x5ea   :  { %13189 = vadd.xlane.f32.xlu0 %v13188_v18 }
 0x673   :  { %v13190_v19 = vpop.xlane.xlu0 %13189 }
 0x674   :  { %17120 = vlog2.f32 %v13190_v19 }
 0x681   :  { %v17121_v20 = vpop.eup %17120 }
 0x682   :  { %v13192_v21 = vmul.f32 0.6931472, %v17121_v20 }
 0x684   :  { %v13193_v22 = vsub.f32 %v13185_v15, %v13192_v21 }
 0x686   :  { %13194 = vst.msk [vmem:[#allocation2] sm:$0x3] %vm13181_vm0, %v13193_v22 }
 0x687   :  { %17133 = shalt.err (!%p17130_p4)
}
 0x688   :  { %13204 = dma.vmem_to_hbm [thread:$0]  %s13202_s16, 32, %s20972_s3, [#allocation3]  }
 0x689   :  { %17142 = dma.done.wait [#allocation3], 32  }
 0x68a   :  { %17143 = vsyncadd [#allocation3], 4294967264 }
 0x68b   :  { %13208 = vsyncpa [#allocation3], 1 }

</bundles_post_ra>
